<compile_context>
chip_gen: v6e
topology: v6e:2x2x1
jax: 0.10.0
libtpu: 0.0.40
codegen_flags: <defaults>
</compile_context>

<pallas_src>
import functools

import jax
import jax.numpy as jnp
from jax.experimental import pallas as pl
from jax.experimental.pallas import tpu as pltpu

_IN_DIM = 3 * 32 * 32      # 3072
_H1 = 1024
_H2 = 512
_OUT = 10
_OUT_PAD = 128             # lane-dense padded logit width (unmasked vst)
_NEG_BIG = -1e30           # pad-lane bias: keeps log_softmax exact on real lanes
_DEFAULT_TB = 512          # batch tile (f32 x tiles + resident weights ~ <40 MiB)
_VMEM_LIMIT = 56 << 20     # honest budget: fits v7x's 64 MiB physical VMEM


def _mlp_kernel(x_ref, w1_ref, b1_ref, w2_ref, b2_ref, w3_ref, b3_ref,
                out_ref, *, apply_logsoftmax):
    # In-kernel f32 -> bf16 cast of the streaming x tile (halves x HBM traffic
    # vs casting in the wrapper; VALU slots are idle under the MXU).
    x = x_ref[...].astype(jnp.bfloat16)
    # fc1 + relu  (bf16 matmul, f32 accumulate)
    h1 = jnp.dot(x, w1_ref[...], preferred_element_type=jnp.float32) + b1_ref[...]
    h1 = jnp.maximum(h1, 0.0)
    # fc2 + relu
    h2 = jnp.dot(h1.astype(jnp.bfloat16), w2_ref[...],
                 preferred_element_type=jnp.float32) + b2_ref[...]
    h2 = jnp.maximum(h2, 0.0)
    # fc3 (output padded to 128 lanes; pad lanes carry a -1e30 bias)
    logits = jnp.dot(h2.astype(jnp.bfloat16), w3_ref[...],
                     preferred_element_type=jnp.float32) + b3_ref[...]
    if apply_logsoftmax:
        # numerically stable log_softmax; pad lanes are -1e30 so they never win
        # the max and contribute exactly 0 to the logsumexp.
        m = jnp.max(logits, axis=1, keepdims=True)
        shifted = logits - m
        lse = jnp.log(jnp.sum(jnp.exp(shifted), axis=1, keepdims=True))
        out_ref[...] = (shifted - lse).astype(out_ref.dtype)
    else:
        out_ref[...] = logits.astype(out_ref.dtype)


def prepare_params(params):
    """One-time parameter transform (keep OUT of the per-call hot path).

    params: PyTorch nn.Linear convention: w{i} (out, in) f32, b{i} (out,) f32.
    Returns (in, out) bf16 weights, (1, out) f32 biases, layer-3 padded to 128.
    """
    w1 = jnp.asarray(params["w1"]).T.astype(jnp.bfloat16)           # (3072, 1024)
    w2 = jnp.asarray(params["w2"]).T.astype(jnp.bfloat16)           # (1024, 512)
    w3 = jnp.asarray(params["w3"]).T.astype(jnp.bfloat16)           # (512, 10)
    w3 = jnp.pad(w3, ((0, 0), (0, _OUT_PAD - _OUT)))                # (512, 128)
    b1 = jnp.asarray(params["b1"], jnp.float32).reshape(1, -1)      # (1, 1024)
    b2 = jnp.asarray(params["b2"], jnp.float32).reshape(1, -1)      # (1, 512)
    b3 = jnp.asarray(params["b3"], jnp.float32).reshape(1, -1)      # (1, 10)
    b3 = jnp.pad(b3, ((0, 0), (0, _OUT_PAD - _OUT)),
                 constant_values=_NEG_BIG)                          # (1, 128)
    return dict(w1=w1, b1=b1, w2=w2, b2=b2, w3=w3, b3=b3)


def _round_up(v, m):
    return ((v + m - 1) // m) * m


def _resident_spec(shape):
    """BlockSpec for a VMEM-resident operand (constant index_map, single buffer)."""
    index_map = lambda i: (0, 0)
    try:
        return pl.BlockSpec(shape, index_map, pipeline_mode=pl.Buffered(1))
    except Exception:  # older jax: no pipeline_mode / Buffered -> default buffering
        return pl.BlockSpec(shape, index_map)


@functools.partial(jax.jit, static_argnames=("last", "tb"))
def mlp_cifar10_forward(x, prepared, last="logsoftmax", tb=_DEFAULT_TB):
    """Pallas implementation of MLP_CIFAR10.forward.

    x: (B, 3, 32, 32) or (B, 3072); prepared: output of prepare_params().
    last: 'logsoftmax' (default) or 'logits'.
    """
    if last not in ("logsoftmax", "logits"):
        raise ValueError("Unknown last operation")

    B = x.shape[0]
    x2d = x.reshape(B, _IN_DIM).astype(jnp.float32)   # NO bf16 cast here

    # Pad only to the 8-row sublane granule (<= 7 rows), never to a full tile.
    B8 = _round_up(B, 8)
    if B8 != B:
        x2d = jnp.pad(x2d, ((0, B8 - B), (0, 0)))

    # Batch tile: multiple of 8, capped at `tb`.  For larger batches force at
    # least 2 grid steps so both v7x TensorCores get work.  The last block may
    # be ragged; Pallas masks the out-of-bounds writeback and the garbage rows
    # are independent + sliced off below.
    TB = _round_up(min(tb, B8), 8)
    if B8 > 256 and pl.cdiv(B8, TB) < 2:
        TB = _round_up(pl.cdiv(B8, 2), 8)
    grid_steps = pl.cdiv(B8, TB)

    rows = grid_steps * TB
    flops = 2 * rows * (_IN_DIM * _H1 + _H1 * _H2 + _H2 * _OUT_PAD)
    transcendentals = rows * _OUT_PAD if last == "logsoftmax" else 0
    bytes_accessed = (
        x2d.size * 4                                                 # f32 x
        + (prepared["w1"].size + prepared["w2"].size + prepared["w3"].size) * 2
        + (prepared["b1"].size + prepared["b2"].size + prepared["b3"].size) * 4
        + B8 * _OUT_PAD * 4)                                         # f32 out
    cost = pl.CostEstimate(flops=flops, transcendentals=transcendentals,
                           bytes_accessed=bytes_accessed)

    kernel = functools.partial(_mlp_kernel,
                               apply_logsoftmax=(last == "logsoftmax"))

    out_pad = pl.pallas_call(
        kernel,
        out_shape=jax.ShapeDtypeStruct((B8, _OUT_PAD), jnp.float32),
        grid=(grid_steps,),
        in_specs=[
            pl.BlockSpec((TB, _IN_DIM), lambda i: (i, 0)),   # x tiles stream (f32)
            _resident_spec((_IN_DIM, _H1)),                  # weights/bias resident,
            _resident_spec((1, _H1)),                        # single-buffered
            _resident_spec((_H1, _H2)),
            _resident_spec((1, _H2)),
            _resident_spec((_H2, _OUT_PAD)),
            _resident_spec((1, _OUT_PAD)),
        ],
        out_specs=pl.BlockSpec((TB, _OUT_PAD), lambda i: (i, 0)),
        compiler_params=pltpu.CompilerParams(
            dimension_semantics=("parallel",),     # shard batch across TCs (v7x)
            vmem_limit_bytes=_VMEM_LIMIT),
        cost_estimate=cost,
    )(x2d, prepared["w1"], prepared["b1"], prepared["w2"], prepared["b2"],
      prepared["w3"], prepared["b3"])

    return out_pad[:B, :_OUT]


def init_params(key):
    """Deterministic init mimicking nn.Linear default (uniform +-1/sqrt(fan_in)),
    stored in PyTorch (out, in) convention; prepare_params() converts once."""
    dims = [(_H1, _IN_DIM), (_H2, _H1), (_OUT, _H2)]
    params = {}
    for i, (out_d, in_d) in enumerate(dims, start=1):
        key, kw, kb = jax.random.split(key, 3)
        bound = 1.0 / jnp.sqrt(in_d)
        params[f"w{i}"] = jax.random.uniform(
            kw, (out_d, in_d), jnp.float32, -bound, bound)
        params[f"b{i}"] = jax.random.uniform(
            kb, (out_d,), jnp.float32, -bound, bound)
    return params


def _ref_forward(x, params, last="logsoftmax"):
    """Pure-JAX f32 reference (PyTorch semantics) for correctness checking."""
    xf = x.reshape(x.shape[0], -1)
    h1 = jnp.maximum(xf @ params["w1"].T + params["b1"], 0.0)
    h2 = jnp.maximum(h1 @ params["w2"].T + params["b2"], 0.0)
    logits = h2 @ params["w3"].T + params["b3"]
    if last == "logsoftmax":
        return jax.nn.log_softmax(logits, axis=1)
    return logits


if __name__ == "__main__":
    key = jax.random.PRNGKey(0)
    kp, kx = jax.random.split(key)
    params = init_params(kp)
    prepared = prepare_params(params)   # one-time transpose/cast/pad (hoisted)

    # Small batch of CIFAR10-shaped inputs (NCHW).
    x = jax.random.normal(kx, (2, 3, 32, 32), jnp.float32)

    out = mlp_cifar10_forward(x, prepared, last="logsoftmax")
    out = jax.block_until_ready(out)
    assert out.shape == (2, 10)
    # log_softmax rows must exponentiate-sum to ~1.
    row_sums = jnp.exp(out).sum(axis=1)
    assert jnp.allclose(row_sums, 1.0, atol=1e-3), row_sums
    # Match the f32 reference (bf16 matmuls -> loose tolerance).
    ref = _ref_forward(x, params, last="logsoftmax")
    assert jnp.allclose(out, ref, atol=1e-1, rtol=1e-1), jnp.max(jnp.abs(out - ref))

    # 'logits' branch of the original module is also supported.
    logits = jax.block_until_ready(mlp_cifar10_forward(x, prepared, last="logits"))
    assert logits.shape == (2, 10)
    ref_logits = _ref_forward(x, params, last="logits")
    assert jnp.allclose(logits, ref_logits, atol=1e-1, rtol=1e-1)

    # Non-multiple batch + ragged last grid block (B=20 padded to 24, TB=16).
    kx2 = jax.random.split(kx)[0]
    x_rag = jax.random.normal(kx2, (20, 3, 32, 32), jnp.float32)
    out_rag = jax.block_until_ready(
        mlp_cifar10_forward(x_rag, prepared, last="logsoftmax", tb=16))
    ref_rag = _ref_forward(x_rag, params, last="logsoftmax")
    assert out_rag.shape == (20, 10)
    assert jnp.allclose(out_rag, ref_rag, atol=1e-1, rtol=1e-1), (
        jnp.max(jnp.abs(out_rag - ref_rag)))

    print("KERNEL_OK")
</pallas_src>

<mosaic_0001>
module attributes {stable_mosaic.version = 11 : i64} {
  func.func @_mlp_kernel(%arg0: i32, %arg1: memref<8x3072xf32, #tpu.memory_space<vmem>>, %arg2: memref<3072x1024xbf16, #tpu.memory_space<vmem>>, %arg3: memref<1x1024xf32, #tpu.memory_space<vmem>>, %arg4: memref<1024x512xbf16, #tpu.memory_space<vmem>>, %arg5: memref<1x512xf32, #tpu.memory_space<vmem>>, %arg6: memref<512x128xbf16, #tpu.memory_space<vmem>>, %arg7: memref<1x128xf32, #tpu.memory_space<vmem>>, %arg8: memref<8x128xf32, #tpu.memory_space<vmem>>) attributes {dimension_semantics = [#tpu.dimension_semantics<parallel>], iteration_bounds = array<i64: 1>, scalar_prefetch = 0 : i64, scratch_operands = 0 : i64, tpu.core_type = #tpu.core_type<tc>, window_params = [{transform_indices = @transform_0, window_bounds = array<i64: 8, 3072>}, {pipeline_mode = #tpu.pipeline_mode<synchronous>, transform_indices = @transform_1, window_bounds = array<i64: 3072, 1024>}, {pipeline_mode = #tpu.pipeline_mode<synchronous>, transform_indices = @transform_2, window_bounds = array<i64: 1, 1024>}, {pipeline_mode = #tpu.pipeline_mode<synchronous>, transform_indices = @transform_3, window_bounds = array<i64: 1024, 512>}, {pipeline_mode = #tpu.pipeline_mode<synchronous>, transform_indices = @transform_4, window_bounds = array<i64: 1, 512>}, {pipeline_mode = #tpu.pipeline_mode<synchronous>, transform_indices = @transform_5, window_bounds = array<i64: 512, 128>}, {pipeline_mode = #tpu.pipeline_mode<synchronous>, transform_indices = @transform_6, window_bounds = array<i64: 1, 128>}, {transform_indices = @transform_7, window_bounds = array<i64: 8, 128>}]} {
    %c0 = arith.constant 0 : index
    %c0_0 = arith.constant 0 : index
    %0 = vector.load %arg1[%c0, %c0_0] : memref<8x3072xf32, #tpu.memory_space<vmem>>, vector<8x3072xf32>
    %1 = arith.truncf %0 : vector<8x3072xf32> to vector<8x3072xbf16>
    %c0_1 = arith.constant 0 : index
    %c0_2 = arith.constant 0 : index
    %2 = vector.load %arg2[%c0_1, %c0_2] : memref<3072x1024xbf16, #tpu.memory_space<vmem>>, vector<3072x1024xbf16>
    %cst = arith.constant dense<0.000000e+00> : vector<8x1024xf32>
    %3 = tpu.matmul %1, %2, %cst {dimension_numbers = #tpu.dot_dimension_numbers<[1], [0], [0], [1], [0, 0, 1, 1], [], []>} : vector<8x3072xbf16>, vector<3072x1024xbf16>, vector<8x1024xf32> -> vector<8x1024xf32>
    %c0_3 = arith.constant 0 : index
    %c0_4 = arith.constant 0 : index
    %4 = vector.load %arg3[%c0_3, %c0_4] : memref<1x1024xf32, #tpu.memory_space<vmem>>, vector<1x1024xf32>
    %5 = vector.broadcast %4 : vector<1x1024xf32> to vector<8x1024xf32>
    %6 = arith.addf %3, %5 : vector<8x1024xf32>
    %cst_5 = arith.constant 0.000000e+00 : f32
    %7 = vector.broadcast %cst_5 : f32 to vector<8x1024xf32>
    %8 = arith.maximumf %6, %7 : vector<8x1024xf32>
    %9 = arith.truncf %8 : vector<8x1024xf32> to vector<8x1024xbf16>
    %c0_6 = arith.constant 0 : index
    %c0_7 = arith.constant 0 : index
    %10 = vector.load %arg4[%c0_6, %c0_7] : memref<1024x512xbf16, #tpu.memory_space<vmem>>, vector<1024x512xbf16>
    %cst_8 = arith.constant dense<0.000000e+00> : vector<8x512xf32>
    %11 = tpu.matmul %9, %10, %cst_8 {dimension_numbers = #tpu.dot_dimension_numbers<[1], [0], [0], [1], [0, 0, 1, 1], [], []>} : vector<8x1024xbf16>, vector<1024x512xbf16>, vector<8x512xf32> -> vector<8x512xf32>
    %c0_9 = arith.constant 0 : index
    %c0_10 = arith.constant 0 : index
    %12 = vector.load %arg5[%c0_9, %c0_10] : memref<1x512xf32, #tpu.memory_space<vmem>>, vector<1x512xf32>
    %13 = vector.broadcast %12 : vector<1x512xf32> to vector<8x512xf32>
    %14 = arith.addf %11, %13 : vector<8x512xf32>
    %cst_11 = arith.constant 0.000000e+00 : f32
    %15 = vector.broadcast %cst_11 : f32 to vector<8x512xf32>
    %16 = arith.maximumf %14, %15 : vector<8x512xf32>
    %17 = arith.truncf %16 : vector<8x512xf32> to vector<8x512xbf16>
    %c0_12 = arith.constant 0 : index
    %c0_13 = arith.constant 0 : index
    %18 = vector.load %arg6[%c0_12, %c0_13] : memref<512x128xbf16, #tpu.memory_space<vmem>>, vector<512x128xbf16>
    %cst_14 = arith.constant dense<0.000000e+00> : vector<8x128xf32>
    %19 = tpu.matmul %17, %18, %cst_14 {dimension_numbers = #tpu.dot_dimension_numbers<[1], [0], [0], [1], [0, 0, 1, 1], [], []>} : vector<8x512xbf16>, vector<512x128xbf16>, vector<8x128xf32> -> vector<8x128xf32>
    %c0_15 = arith.constant 0 : index
    %c0_16 = arith.constant 0 : index
    %20 = vector.load %arg7[%c0_15, %c0_16] : memref<1x128xf32, #tpu.memory_space<vmem>>, vector<1x128xf32>
    %21 = vector.broadcast %20 : vector<1x128xf32> to vector<8x128xf32>
    %22 = arith.addf %19, %21 : vector<8x128xf32>
    %cst_17 = arith.constant dense<0xFF800000> : vector<8xf32>
    %23 = vector.multi_reduction <maximumf>, %22, %cst_17 [1] : vector<8x128xf32> to vector<8xf32>
    %24 = vector.shape_cast %23 : vector<8xf32> to vector<8x1xf32>
    %25 = vector.broadcast %24 : vector<8x1xf32> to vector<8x128xf32>
    %26 = arith.subf %22, %25 : vector<8x128xf32>
    %27 = math.exp %26 : vector<8x128xf32>
    %cst_18 = arith.constant dense<0.000000e+00> : vector<8xf32>
    %28 = vector.multi_reduction <add>, %27, %cst_18 [1] : vector<8x128xf32> to vector<8xf32>
    %29 = vector.shape_cast %28 : vector<8xf32> to vector<8x1xf32>
    %30 = math.log %29 : vector<8x1xf32>
    %31 = vector.broadcast %30 : vector<8x1xf32> to vector<8x128xf32>
    %32 = arith.subf %26, %31 : vector<8x128xf32>
    %c0_19 = arith.constant 0 : index
    %c0_20 = arith.constant 0 : index
    %33 = vector.load %arg8[%c0_19, %c0_20] : memref<8x128xf32, #tpu.memory_space<vmem>>, vector<8x128xf32>
    tpu.vector_store %arg8[%c0_19, %c0_20], %32 {strides = array<i32>} : memref<8x128xf32, #tpu.memory_space<vmem>>, vector<8x128xf32>,
    return
  }
  func.func @transform_0(%arg0: i32) -> (i32, i32) {
    %c0_i32 = arith.constant 0 : i32
    %c0_i32_0 = arith.constant 0 : i32
    return %arg0, %c0_i32 : i32, i32
  }
  func.func @transform_1(%arg0: i32) -> (i32, i32) {
    %c0_i32 = arith.constant 0 : i32
    %c0_i32_0 = arith.constant 0 : i32
    %c0_i32_1 = arith.constant 0 : i32
    return %c0_i32, %c0_i32_0 : i32, i32
  }
  func.func @transform_2(%arg0: i32) -> (i32, i32) {
    %c0_i32 = arith.constant 0 : i32
    %c0_i32_0 = arith.constant 0 : i32
    %c0_i32_1 = arith.constant 0 : i32
    return %c0_i32, %c0_i32_0 : i32, i32
  }
  func.func @transform_3(%arg0: i32) -> (i32, i32) {
    %c0_i32 = arith.constant 0 : i32
    %c0_i32_0 = arith.constant 0 : i32
    %c0_i32_1 = arith.constant 0 : i32
    return %c0_i32, %c0_i32_0 : i32, i32
  }
  func.func @transform_4(%arg0: i32) -> (i32, i32) {
    %c0_i32 = arith.constant 0 : i32
    %c0_i32_0 = arith.constant 0 : i32
    %c0_i32_1 = arith.constant 0 : i32
    return %c0_i32, %c0_i32_0 : i32, i32
  }
  func.func @transform_5(%arg0: i32) -> (i32, i32) {
    %c0_i32 = arith.constant 0 : i32
    %c0_i32_0 = arith.constant 0 : i32
    %c0_i32_1 = arith.constant 0 : i32
    return %c0_i32, %c0_i32_0 : i32, i32
  }
  func.func @transform_6(%arg0: i32) -> (i32, i32) {
    %c0_i32 = arith.constant 0 : i32
    %c0_i32_0 = arith.constant 0 : i32
    %c0_i32_1 = arith.constant 0 : i32
    return %c0_i32, %c0_i32_0 : i32, i32
  }
  func.func @transform_7(%arg0: i32) -> (i32, i32) {
    %c0_i32 = arith.constant 0 : i32
    %c0_i32_0 = arith.constant 0 : i32
    return %arg0, %c0_i32 : i32, i32
  }
}

</mosaic_0001>

<bundles_post_ra>
// kernel: mlp_cifar10_forward.1
= control target key start
LH: loop header
LB: loop body
LE: loop exit
PB: predicated region body
PF: predicated region fallthrough
CT: control target
= control target key end

     0   :  { %12 = vsyncpa [#allocation3], 0  ;;  %s16581_s0 = inlined_call_operand.vmem [shape: f32[8,3072], index: 0, kind: input, shape index: {}]   ;;  %s16582_s1 = inlined_call_operand.hbm [shape: bf16[3072,1024], index: 1, kind: input, shape index: {}]   ;;  %s16583_s2 = inlined_call_operand.hbm [shape: f32[1,1024], index: 2, kind: input, shape index: {}]   ;;  %s16584_s3 = inlined_call_operand.hbm [shape: bf16[1024,512], index: 3, kind: input, shape index: {}]   ;;  %s16585_s4 = inlined_call_operand.hbm [shape: f32[1,512], index: 4, kind: input, shape index: {}]   ;;  %s16586_s5 = inlined_call_operand.hbm [shape: bf16[512,128], index: 5, kind: input, shape index: {}]   ;;  %s16587_s6 = inlined_call_operand.hbm [shape: f32[1,128], index: 6, kind: input, shape index: {}]   ;;  %s16588_s7 = inlined_call_operand.vmem [shape: f32[8,128], index: 7, kind: output, shape index: {}]  }
   0x1   :  { %13 = vsyncpa [#allocation5], 0 }
   0x2   :  { %14 = vsyncpa [#allocation8], 0 }
   0x3   :  { %15 = vsyncpa [#allocation11], 0  ;;  %s16081_s24 = smov [#allocation4]   ;;  %s16082_s26 = smov [#allocation7]  }
   0x4   :  { %s36_s25 = sshll.u32 %s16081_s24, 4  ;;  %s58_s27 = sshll.u32 %s16082_s26, 4  ;;  %s37_s25 = int_to_ptr.vmem [resolvable:$true] %s36_s25  ;;  %s59_s27 = int_to_ptr.vmem [resolvable:$true] %s58_s27 }
   0x5   :  { %s15961_s28 = scalar_lea.vmem %s37_s25, 128  ;;  %p15966_p1 = scmp.lt.s32.totalorder %s37_s25, %s37_s25 }
   0x6   :  { %p15962_p0 = scmp.ne.s32.totalorder %s37_s25, %s15961_s28  ;;  %p15967_p2 = scmp.lt.s32.totalorder %s15961_s28, %s15961_s28 }
   0x8   :  { %p15968_p3 = por %p15967_p2, %p15966_p1 }
   0xa   :  { %p15969_p4 = pnand %p15968_p3, %p15962_p0 }
   0xc   :  { %15972 = shalt.err (!%p15969_p4)
}
   0xd   :  { %39 = dma.hbm_to_vmem [thread:$0]  %s16583_s2, 128, %s37_s25, [#allocation5]  }
   0xe   :  { %s15981_s8 = scalar_lea.vmem %s59_s27, 64  ;;  %p15986_p6 = scmp.lt.s32.totalorder %s59_s27, %s59_s27 }
   0xf   :  { %p15982_p5 = scmp.ne.s32.totalorder %s59_s27, %s15981_s8  ;;  %p15987_p7 = scmp.lt.s32.totalorder %s15981_s8, %s15981_s8 }
  0x11   :  { %p15988_p8 = por %p15987_p7, %p15986_p6 }
  0x13   :  { %p15989_p9 = pnand %p15988_p8, %p15982_p5 }
  0x15   :  { %15992 = shalt.err (!%p15989_p9)
}
  0x16   :  { %61 = dma.hbm_to_vmem [thread:$0]  %s16585_s4, 64, %s59_s27, [#allocation8]  }
  0x17   :  { %s16083_s11 = smov [#allocation2]  }
  0x18   :  { %s23_s12 = sshll.u32 %s16083_s11, 4  ;;  %s24_s12 = int_to_ptr.vmem [resolvable:$true] %s23_s12 }
  0x19   :  { %s16001_s13 = scalar_lea.vmem %s24_s12, 196608  ;;  %p16006_p11 = scmp.lt.s32.totalorder %s24_s12, %s24_s12 }
  0x1a   :  { %p16002_p10 = scmp.ne.s32.totalorder %s24_s12, %s16001_s13  ;;  %p16007_p12 = scmp.lt.s32.totalorder %s16001_s13, %s16001_s13 }
  0x1c   :  { %p16008_p13 = por %p16007_p12, %p16006_p11 }
  0x1e   :  { %p16009_p0 = pnand %p16008_p13, %p16002_p10 }
  0x20   :  { %16012 = shalt.err (!%p16009_p0)
}
  0x21   :  { %s16084_s2 = smov 512   ;;  %s16085_s14 = smov 32  }
  0x22   :  { %29 = dma.hbm_to_vmem [thread:$0]  %s16582_s1, 196608, %s24_s12, [#allocation3], %s16084_s2, %s16084_s2, %s16085_s14  }
  0x23   :  { %s16086_s17 = smov [#allocation6]  }
  0x24   :  { %s45_s18 = sshll.u32 %s16086_s17, 4  ;;  %s46_s18 = int_to_ptr.vmem [resolvable:$true] %s45_s18 }
  0x25   :  { %s16021_s4 = scalar_lea.vmem %s46_s18, 32768  ;;  %p16026_p2 = scmp.lt.s32.totalorder %s46_s18, %s46_s18 }
  0x26   :  { %p16022_p1 = scmp.ne.s32.totalorder %s46_s18, %s16021_s4  ;;  %p16027_p3 = scmp.lt.s32.totalorder %s16021_s4, %s16021_s4 }
  0x28   :  { %p16028_p4 = por %p16027_p3, %p16026_p2 }
  0x2a   :  { %p16029_p5 = pnand %p16028_p4, %p16022_p1 }
  0x2c   :  { %16032 = shalt.err (!%p16029_p5)
}
  0x2d   :  { %s16087_s19 = smov 256   ;;  %s16088_s20 = smov 16  }
  0x2e   :  { %51 = dma.hbm_to_vmem [thread:$0]  %s16584_s3, 32768, %s46_s18, [#allocation5], %s16087_s19, %s16087_s19, %s16088_s20  }
  0x2f   :  { %s16089_s23 = smov [#allocation9]  }
  0x30   :  { %s67_s24 = sshll.u32 %s16089_s23, 4  ;;  %s68_s24 = int_to_ptr.vmem [resolvable:$true] %s67_s24 }
  0x31   :  { %s16041_s1 = scalar_lea.vmem %s68_s24, 4096  ;;  %p16046_p7 = scmp.lt.s32.totalorder %s68_s24, %s68_s24 }
  0x32   :  { %p16042_p6 = scmp.ne.s32.totalorder %s68_s24, %s16041_s1  ;;  %p16047_p8 = scmp.lt.s32.totalorder %s16041_s1, %s16041_s1 }
  0x34   :  { %p16048_p9 = por %p16047_p8, %p16046_p7 }
  0x36   :  { %p16049_p10 = pnand %p16048_p9, %p16042_p6 }
  0x38   :  { %16052 = shalt.err (!%p16049_p10)
}
  0x39   :  { %s16090_s25 = smov 64   ;;  %s16091_s26 = smov 4  }
  0x3a   :  { %73 = dma.hbm_to_vmem [thread:$0]  %s16586_s5, 4096, %s68_s24, [#allocation8], %s16090_s25, %s16090_s25, %s16091_s26  }
  0x3b   :  { %s16092_s29 = smov [#allocation10]  }
  0x3c   :  { %s80_s30 = sshll.u32 %s16092_s29, 4  ;;  %s81_s30 = int_to_ptr.vmem [resolvable:$true] %s80_s30 }
  0x3d   :  { %s16061_s3 = scalar_lea.vmem %s81_s30, 16  ;;  %s16065_s8 = scalar_lea.vmem %s81_s30, 32 }
  0x3e   :  { %p16062_p11 = scmp.ne.s32.totalorder %s81_s30, %s16061_s3  ;;  %p16066_p12 = scmp.lt.s32.totalorder %s81_s30, %s81_s30 }
  0x3f   :  { %p16067_p13 = scmp.lt.s32.totalorder %s16065_s8, %s16061_s3 }
  0x41   :  { %p16068_p0 = por %p16067_p13, %p16066_p12 }
  0x43   :  { %p16069_p1 = pnand %p16068_p0, %p16062_p11 }
  0x45   :  { %16072 = shalt.err (!%p16069_p1)
}
  0x46   :  { %83 = dma.hbm_to_vmem [thread:$0]  %s16587_s6, 16, %s81_s30, [#allocation11]  }
  0x47   :  { %16073 = dma.done.wait [#allocation3], 196608  }
  0x48   :  { %16074 = vsyncadd [#allocation3], 4294770688 }
  0x49   :  { %16075 = dma.done.wait [#allocation5], 32896  }
  0x4a   :  { %16076 = vsyncadd [#allocation5], 4294934400 }
  0x4b   :  { %16077 = dma.done.wait [#allocation8], 4160  }
  0x4c   :  { %16078 = vsyncadd [#allocation8], 4294963136 }
  0x4d   :  { %16079 = dma.done.wait [#allocation11], 16  }
  0x4e   :  { %16080 = vsyncadd [#allocation11], 4294967280  ;;  %v207_v0 = vld [vmem:[#allocation2 + $0x1c0] sm:$0xff]  ;;  %v104_v53 = vld [vmem:[%s16581_s0 + $0x8] sm:$0xff] }
  0x4f   :  { %v211_v1 = vld [vmem:[#allocation2 + $0x1e0] sm:$0xff]  ;;  %v106_v54 = vld [vmem:[%s16581_s0 + $0x18] sm:$0xff]  ;;  %v16157_v58 = vpack.c.bf16 %v104_v53, %v104_v53 }
  0x50   :  { %v335_v2 = vld [vmem:[#allocation2 + $0x5c0] sm:$0xff]  ;;  %v13706_v3 = vcombine.high %v207_v0, %v211_v1  ;;  %v13705_v5 = vcombine.low %v207_v0, %v211_v1  ;;  %v16159_v59 = vpack.c.bf16 %v106_v54, %v106_v54 }
  0x51   :  { %v339_v4 = vld [vmem:[#allocation2 + $0x5e0] sm:$0xff]  ;;  %9441 = vmatprep.mubr.bf16.mxu0 %v16157_v58 }
  0x52   :  { %v199_v6 = vld [vmem:[#allocation2 + $0x180] sm:$0xff]  ;;  %v13834_v8 = vcombine.high %v335_v2, %v339_v4  ;;  %v13833_v9 = vcombine.low %v335_v2, %v339_v4  ;;  %9409 = vmatprep.subr.bf16.mxu0 %v13706_v3  ;;  %9482 = vmatprep.mubr.bf16.mxu1 %v16159_v59 }
  0x53   :  { %v203_v7 = vld [vmem:[#allocation2 + $0x1a0] sm:$0xff]  ;;  %9410 = vmatpush1.bf16.msra.mxu0 %v13705_v5 }
  0x54   :  { %v13698_v10 = vcombine.high %v199_v6, %v203_v7  ;;  %v327_v11 = vld [vmem:[#allocation2 + $0x580] sm:$0xff]  ;;  %9450 = vmatprep.subr.bf16.mxu1 %v13834_v8  ;;  %v13697_v18 = vcombine.low %v199_v6, %v203_v7 }
  0x55   :  { %v331_v12 = vld [vmem:[#allocation2 + $0x5a0] sm:$0xff]  ;;  %9451 = vmatpush1.bf16.msra.mxu1 %v13833_v9 }
  0x56   :  { %v191_v13 = vld [vmem:[#allocation2 + $0x140] sm:$0xff]  ;;  %v13826_v14 = vcombine.high %v327_v11, %v331_v12  ;;  %9411 = vmatprep.subr.bf16.mxu0 %v13698_v10  ;;  %v13825_v19 = vcombine.low %v327_v11, %v331_v12 }
  0x57   :  { %v195_v15 = vld [vmem:[#allocation2 + $0x160] sm:$0xff]  ;;  %9412 = vmatpush1.bf16.msra.mxu0 %v13697_v18 }
  0x58   :  { %v319_v16 = vld [vmem:[#allocation2 + $0x540] sm:$0xff]  ;;  %v13690_v20 = vcombine.high %v191_v13, %v195_v15  ;;  %9452 = vmatprep.subr.bf16.mxu1 %v13826_v14  ;;  %v13689_v26 = vcombine.low %v191_v13, %v195_v15 }
  0x59   :  { %v323_v17 = vld [vmem:[#allocation2 + $0x560] sm:$0xff]  ;;  %9453 = vmatpush1.bf16.msra.mxu1 %v13825_v19 }
  0x5a   :  { %v13818_v21 = vcombine.high %v319_v16, %v323_v17  ;;  %v183_v22 = vld [vmem:[#allocation2 + $0x100] sm:$0xff]  ;;  %9413 = vmatprep.subr.bf16.mxu0 %v13690_v20  ;;  %v13817_v27 = vcombine.low %v319_v16, %v323_v17 }
  0x5b   :  { %v187_v23 = vld [vmem:[#allocation2 + $0x120] sm:$0xff]  ;;  %9414 = vmatpush1.bf16.msra.mxu0 %v13689_v26 }
  0x5c   :  { %v311_v24 = vld [vmem:[#allocation2 + $0x500] sm:$0xff]  ;;  %v13682_v28 = vcombine.high %v183_v22, %v187_v23  ;;  %9454 = vmatprep.subr.bf16.mxu1 %v13818_v21  ;;  %v13681_v34 = vcombine.low %v183_v22, %v187_v23 }
  0x5d   :  { %v315_v25 = vld [vmem:[#allocation2 + $0x520] sm:$0xff]  ;;  %9455 = vmatpush1.bf16.msra.mxu1 %v13817_v27 }
  0x5e   :  { %v13810_v29 = vcombine.high %v311_v24, %v315_v25  ;;  %v175_v30 = vld [vmem:[#allocation2 + $0xc0] sm:$0xff]  ;;  %9415 = vmatprep.subr.bf16.mxu0 %v13682_v28  ;;  %v13809_v35 = vcombine.low %v311_v24, %v315_v25 }
  0x5f   :  { %v179_v31 = vld [vmem:[#allocation2 + $0xe0] sm:$0xff]  ;;  %9416 = vmatpush1.bf16.msra.mxu0 %v13681_v34 }
  0x60   :  { %v303_v32 = vld [vmem:[#allocation2 + $0x4c0] sm:$0xff]  ;;  %v13674_v36 = vcombine.high %v175_v30, %v179_v31  ;;  %9456 = vmatprep.subr.bf16.mxu1 %v13810_v29  ;;  %v13673_v42 = vcombine.low %v175_v30, %v179_v31 }
  0x61   :  { %v307_v33 = vld [vmem:[#allocation2 + $0x4e0] sm:$0xff]  ;;  %9457 = vmatpush1.bf16.msra.mxu1 %v13809_v35 }
  0x62   :  { %v13802_v37 = vcombine.high %v303_v32, %v307_v33  ;;  %v167_v38 = vld [vmem:[#allocation2 + $0x80] sm:$0xff]  ;;  %9417 = vmatprep.subr.bf16.mxu0 %v13674_v36  ;;  %v13801_v43 = vcombine.low %v303_v32, %v307_v33 }
  0x63   :  { %v171_v39 = vld [vmem:[#allocation2 + $0xa0] sm:$0xff]  ;;  %9418 = vmatpush1.bf16.msra.mxu0 %v13673_v42 }
  0x64   :  { %v295_v40 = vld [vmem:[#allocation2 + $0x480] sm:$0xff]  ;;  %v13666_v44 = vcombine.high %v167_v38, %v171_v39  ;;  %9458 = vmatprep.subr.bf16.mxu1 %v13802_v37  ;;  %v13665_v50 = vcombine.low %v167_v38, %v171_v39 }
  0x65   :  { %v299_v41 = vld [vmem:[#allocation2 + $0x4a0] sm:$0xff]  ;;  %9459 = vmatpush1.bf16.msra.mxu1 %v13801_v43 }
  0x66   :  { %v13794_v45 = vcombine.high %v295_v40, %v299_v41  ;;  %v159_v46 = vld [vmem:[#allocation2 + $0x40] sm:$0xff]  ;;  %9419 = vmatprep.subr.bf16.mxu0 %v13666_v44  ;;  %v13793_v51 = vcombine.low %v295_v40, %v299_v41 }
  0x67   :  { %v163_v47 = vld [vmem:[#allocation2 + $0x60] sm:$0xff]  ;;  %9420 = vmatpush1.bf16.msra.mxu0 %v13665_v50 }
  0x68   :  { %v287_v48 = vld [vmem:[#allocation2 + $0x440] sm:$0xff]  ;;  %v13658_v52 = vcombine.high %v159_v46, %v163_v47  ;;  %9460 = vmatprep.subr.bf16.mxu1 %v13794_v45  ;;  %v13657_v62 = vcombine.low %v159_v46, %v163_v47 }
  0x69   :  { %v291_v49 = vld [vmem:[#allocation2 + $0x460] sm:$0xff]  ;;  %9461 = vmatpush1.bf16.msra.mxu1 %v13793_v51 }
  0x6a   :  { %v13786_v55 = vcombine.high %v287_v48, %v291_v49  ;;  %v151_v56 = vld [vmem:[#allocation2] sm:$0xff]  ;;  %9421 = vmatprep.subr.bf16.mxu0 %v13658_v52  ;;  %v13785_v63 = vcombine.low %v287_v48, %v291_v49 }
  0x6b   :  { %v155_v57 = vld [vmem:[#allocation2 + $0x20] sm:$0xff]  ;;  %9422 = vmatpush1.bf16.msra.mxu0 %v13657_v62 }
  0x6c   :  { %v279_v60 = vld [vmem:[#allocation2 + $0x400] sm:$0xff]  ;;  %v13650_v0 = vcombine.high %v151_v56, %v155_v57  ;;  %9462 = vmatprep.subr.bf16.mxu1 %v13786_v55  ;;  %v13649_v6 = vcombine.low %v151_v56, %v155_v57 }
  0x6d   :  { %v283_v61 = vld [vmem:[#allocation2 + $0x420] sm:$0xff]  ;;  %9463 = vmatpush1.bf16.msra.mxu1 %v13785_v63 }
  0x6e   :  { %v13778_v1 = vcombine.high %v279_v60, %v283_v61  ;;  %v271_v2 = vld [vmem:[#allocation2 + $0x3c0] sm:$0xff]  ;;  %9423 = vmatprep.subr.bf16.mxu0 %v13650_v0  ;;  %v13777_v7 = vcombine.low %v279_v60, %v283_v61 }
  0x6f   :  { %v275_v3 = vld [vmem:[#allocation2 + $0x3e0] sm:$0xff]  ;;  %9424 = vmatpush1.bf16.msra.mxu0 %v13649_v6 }
  0x70   :  { %v399_v4 = vld [vmem:[#allocation2 + $0x7c0] sm:$0xff]  ;;  %v13770_v8 = vcombine.high %v271_v2, %v275_v3  ;;  %9464 = vmatprep.subr.bf16.mxu1 %v13778_v1  ;;  %v13769_v14 = vcombine.low %v271_v2, %v275_v3 }
  0x71   :  { %v403_v5 = vld [vmem:[#allocation2 + $0x7e0] sm:$0xff]  ;;  %9465 = vmatpush1.bf16.msra.mxu1 %v13777_v7 }
  0x72   :  { %v13898_v9 = vcombine.high %v399_v4, %v403_v5  ;;  %v263_v10 = vld [vmem:[#allocation2 + $0x380] sm:$0xff]  ;;  %9425 = vmatprep.subr.bf16.mxu0 %v13770_v8  ;;  %v13897_v15 = vcombine.low %v399_v4, %v403_v5 }
  0x73   :  { %v267_v11 = vld [vmem:[#allocation2 + $0x3a0] sm:$0xff]  ;;  %9426 = vmatpush2.bf16.msra.mxu0 %v13769_v14 }
  0x74   :  { %v391_v12 = vld [vmem:[#allocation2 + $0x780] sm:$0xff]  ;;  %v13762_v16 = vcombine.high %v263_v10, %v267_v11  ;;  %9466 = vmatprep.subr.bf16.mxu1 %v13898_v9  ;;  %v13761_v22 = vcombine.low %v263_v10, %v267_v11  ;;  %v105_v11 = vld [vmem:[%s16581_s0 + $0x10] sm:$0xff] }
  0x75   :  { %v395_v13 = vld [vmem:[#allocation2 + $0x7a0] sm:$0xff]  ;;  %9467 = vmatpush2.bf16.msra.mxu1 %v13897_v15 }
  0x76   :  { %v13890_v17 = vcombine.high %v391_v12, %v395_v13  ;;  %v255_v18 = vld [vmem:[#allocation2 + $0x340] sm:$0xff]  ;;  %9427 = vmatprep.subr.bf16.mxu0 %v13762_v16  ;;  %v13889_v23 = vcombine.low %v391_v12, %v395_v13 }
  0x77   :  { %v259_v19 = vld [vmem:[#allocation2 + $0x360] sm:$0xff]  ;;  %9428 = vmatpush2.bf16.msra.mxu0 %v13761_v22  ;;  %v110_v22 = vld [vmem:[%s16581_s0 + $0x38] sm:$0xff] }
  0x78   :  { %v383_v20 = vld [vmem:[#allocation2 + $0x740] sm:$0xff]  ;;  %v13754_v24 = vcombine.high %v255_v18, %v259_v19  ;;  %9468 = vmatprep.subr.bf16.mxu1 %v13890_v17  ;;  %v13753_v30 = vcombine.low %v255_v18, %v259_v19  ;;  %v108_v19 = vld [vmem:[%s16581_s0 + $0x28] sm:$0xff] }
  0x79   :  { %v387_v21 = vld [vmem:[#allocation2 + $0x760] sm:$0xff]  ;;  %9469 = vmatpush2.bf16.msra.mxu1 %v13889_v23 }
  0x7a   :  { %v13882_v25 = vcombine.high %v383_v20, %v387_v21  ;;  %v247_v26 = vld [vmem:[#allocation2 + $0x300] sm:$0xff]  ;;  %9429 = vmatprep.subr.bf16.mxu0 %v13754_v24  ;;  %v13881_v31 = vcombine.low %v383_v20, %v387_v21  ;;  %v16174_v20 = vpack.c.bf16 %v105_v11, %v105_v11 }
  0x7b   :  { %v251_v27 = vld [vmem:[#allocation2 + $0x320] sm:$0xff]  ;;  %9430 = vmatpush2.bf16.msra.mxu0 %v13753_v30 }
  0x7c   :  { %v375_v28 = vld [vmem:[#allocation2 + $0x700] sm:$0xff]  ;;  %v13746_v32 = vcombine.high %v247_v26, %v251_v27  ;;  %9470 = vmatprep.subr.bf16.mxu1 %v13882_v25  ;;  %v13745_v38 = vcombine.low %v247_v26, %v251_v27 }
  0x7d   :  { %v379_v29 = vld [vmem:[#allocation2 + $0x720] sm:$0xff]  ;;  %9471 = vmatpush2.bf16.msra.mxu1 %v13881_v31  ;;  %v16182_v31 = vpack.c.bf16 %v110_v22, %v110_v22 }
  0x7e   :  { %v13874_v33 = vcombine.high %v375_v28, %v379_v29  ;;  %v239_v34 = vld [vmem:[#allocation2 + $0x2c0] sm:$0xff]  ;;  %9431 = vmatprep.subr.bf16.mxu0 %v13746_v32  ;;  %v13873_v39 = vcombine.low %v375_v28, %v379_v29  ;;  %v16179_v28 = vpack.c.bf16 %v108_v19, %v108_v19 }
  0x7f   :  { %v243_v35 = vld [vmem:[#allocation2 + $0x2e0] sm:$0xff]  ;;  %9432 = vmatpush2.bf16.msra.mxu0 %v13745_v38 }
  0x80   :  { %v367_v36 = vld [vmem:[#allocation2 + $0x6c0] sm:$0xff]  ;;  %v13738_v40 = vcombine.high %v239_v34, %v243_v35  ;;  %9472 = vmatprep.subr.bf16.mxu1 %v13874_v33  ;;  %v13737_v46 = vcombine.low %v239_v34, %v243_v35 }
  0x81   :  { %v371_v37 = vld [vmem:[#allocation2 + $0x6e0] sm:$0xff]  ;;  %9473 = vmatpush2.bf16.msra.mxu1 %v13873_v39 }
  0x82   :  { %v13866_v41 = vcombine.high %v367_v36, %v371_v37  ;;  %v231_v42 = vld [vmem:[#allocation2 + $0x280] sm:$0xff]  ;;  %9433 = vmatprep.subr.bf16.mxu0 %v13738_v40  ;;  %v13865_v47 = vcombine.low %v367_v36, %v371_v37 }
  0x83   :  { %v235_v43 = vld [vmem:[#allocation2 + $0x2a0] sm:$0xff]  ;;  %9434 = vmatpush2.bf16.msra.mxu0 %v13737_v46 }
  0x84   :  { %v359_v44 = vld [vmem:[#allocation2 + $0x680] sm:$0xff]  ;;  %v13730_v48 = vcombine.high %v231_v42, %v235_v43  ;;  %9474 = vmatprep.subr.bf16.mxu1 %v13866_v41  ;;  %v13729_v54 = vcombine.low %v231_v42, %v235_v43 }
  0x85   :  { %v363_v45 = vld [vmem:[#allocation2 + $0x6a0] sm:$0xff]  ;;  %9475 = vmatpush2.bf16.msra.mxu1 %v13865_v47 }
  0x86   :  { %v13858_v49 = vcombine.high %v359_v44, %v363_v45  ;;  %v223_v50 = vld [vmem:[#allocation2 + $0x240] sm:$0xff]  ;;  %9435 = vmatprep.subr.bf16.mxu0 %v13730_v48  ;;  %v13857_v55 = vcombine.low %v359_v44, %v363_v45 }
  0x87   :  { %v227_v51 = vld [vmem:[#allocation2 + $0x260] sm:$0xff]  ;;  %9436 = vmatpush2.bf16.msra.mxu0 %v13729_v54 }
  0x88   :  { %v351_v52 = vld [vmem:[#allocation2 + $0x640] sm:$0xff]  ;;  %v13722_v56 = vcombine.high %v223_v50, %v227_v51  ;;  %9476 = vmatprep.subr.bf16.mxu1 %v13858_v49  ;;  %v13721_v0 = vcombine.low %v223_v50, %v227_v51 }
  0x89   :  { %v355_v53 = vld [vmem:[#allocation2 + $0x660] sm:$0xff]  ;;  %9477 = vmatpush2.bf16.msra.mxu1 %v13857_v55 }
  0x8a   :  { %v13850_v57 = vcombine.high %v351_v52, %v355_v53  ;;  %v215_v60 = vld [vmem:[#allocation2 + $0x200] sm:$0xff]  ;;  %9437 = vmatprep.subr.bf16.mxu0 %v13722_v56  ;;  %v13849_v1 = vcombine.low %v351_v52, %v355_v53 }
  0x8b   :  { %v219_v61 = vld [vmem:[#allocation2 + $0x220] sm:$0xff]  ;;  %9438 = vmatpush2.bf16.msra.mxu0 %v13721_v0 }
  0x8c   :  { %v343_v62 = vld [vmem:[#allocation2 + $0x600] sm:$0xff]  ;;  %v13714_v2 = vcombine.high %v215_v60, %v219_v61  ;;  %9478 = vmatprep.subr.bf16.mxu1 %v13850_v57  ;;  %v13713_v8 = vcombine.low %v215_v60, %v219_v61 }
  0x8d   :  { %v347_v63 = vld [vmem:[#allocation2 + $0x620] sm:$0xff]  ;;  %9479 = vmatpush2.bf16.msra.mxu1 %v13849_v1 }
  0x8e   :  { %v13842_v3 = vcombine.high %v343_v62, %v347_v63  ;;  %v463_v4 = vld [vmem:[#allocation2 + $0x9c0] sm:$0xff]  ;;  %9439 = vmatprep.subr.bf16.mxu0 %v13714_v2  ;;  %v13841_v10 = vcombine.low %v343_v62, %v347_v63 }
  0x8f   :  { %v467_v5 = vld [vmem:[#allocation2 + $0x9e0] sm:$0xff]  ;;  %9440 = vmatpush2.bf16.msra.mxu0 %v13713_v8 }
  0x90   :  { %v591_v6 = vld [vmem:[#allocation2 + $0xdc0] sm:$0xff]  ;;  %v13962_v12 = vcombine.high %v463_v4, %v467_v5  ;;  %9480 = vmatprep.subr.bf16.mxu1 %v13842_v3  ;;  %v13961_v21 = vcombine.low %v463_v4, %v467_v5 }
  0x91   :  { %v595_v7 = vld [vmem:[#allocation2 + $0xde0] sm:$0xff]  ;;  %9481 = vmatpush2.bf16.msra.mxu1 %v13841_v10 }
  0x92   :  { %v103_v9 = vld [vmem:[%s16581_s0] sm:$0xff]  ;;  %v14090_v13 = vcombine.high %v591_v6, %v595_v7  ;;  %9491 = vmatprep.subr.bf16.mxu0 %v13962_v12  ;;  %v14089_v23 = vcombine.low %v591_v6, %v595_v7 }
  0x93   :  { %v455_v14 = vld [vmem:[#allocation2 + $0x980] sm:$0xff]  ;;  %v16169_v16 = vpack.c.bf16 %v103_v9, %v103_v9 }
  0x94   :  { %v459_v15 = vld [vmem:[#allocation2 + $0x9a0] sm:$0xff]  ;;  %9532 = vmatprep.subr.bf16.mxu1 %v14090_v13  ;;  %9483 = vmatmul.mubr.bf16.vlgmr.msra.gmra.mxu1 %v16174_v20 }
  0x95   :  { %v583_v17 = vld [vmem:[#allocation2 + $0xd80] sm:$0xff]  ;;  %v13954_v24 = vcombine.high %v455_v14, %v459_v15  ;;  %9442 = vmatmul.mubr.bf16.vlgmr.msra.gmra.mxu0 %v16169_v16  ;;  %v13953_v32 = vcombine.low %v455_v14, %v459_v15  ;;  %9533 = vmatpush1.bf16.msra.mxu1 %v14089_v23 }
  0x96   :  { %v587_v18 = vld [vmem:[#allocation2 + $0xda0] sm:$0xff]  ;;  %9492 = vmatpush1.bf16.msra.mxu0 %v13961_v21  ;;  %9523 = vmatprep.mubr.bf16.mxu0 %v16179_v28 }
  0x97   :  { %v14082_v25 = vcombine.high %v583_v17, %v587_v18  ;;  %v447_v26 = vld [vmem:[#allocation2 + $0x940] sm:$0xff]  ;;  %9493 = vmatprep.subr.bf16.mxu0 %v13954_v24  ;;  %v14081_v33 = vcombine.low %v583_v17, %v587_v18  ;;  %9564 = vmatprep.mubr.bf16.mxu1 %v16182_v31 }
  0x98   :  { %v451_v27 = vld [vmem:[#allocation2 + $0x960] sm:$0xff] }
  0x99   :  { %v575_v29 = vld [vmem:[#allocation2 + $0xd40] sm:$0xff]  ;;  %v13946_v34 = vcombine.high %v447_v26, %v451_v27  ;;  %9534 = vmatprep.subr.bf16.mxu1 %v14082_v25  ;;  %v13945_v40 = vcombine.low %v447_v26, %v451_v27 }
  0x9a   :  { %v579_v30 = vld [vmem:[#allocation2 + $0xd60] sm:$0xff]  ;;  %9494 = vmatpush1.bf16.msra.mxu0 %v13953_v32  ;;  %9535 = vmatpush1.bf16.msra.mxu1 %v14081_v33 }
  0x9b   :  { %v439_v35 = vld [vmem:[#allocation2 + $0x900] sm:$0xff]  ;;  %v14074_v37 = vcombine.high %v575_v29, %v579_v30  ;;  %9495 = vmatprep.subr.bf16.mxu0 %v13946_v34  ;;  %v14073_v41 = vcombine.low %v575_v29, %v579_v30 }
  0x9c   :  { %v443_v36 = vld [vmem:[#allocation2 + $0x920] sm:$0xff] }
  0x9d   :  { %v567_v38 = vld [vmem:[#allocation2 + $0xd00] sm:$0xff]  ;;  %v13938_v42 = vcombine.high %v439_v35, %v443_v36  ;;  %9536 = vmatprep.subr.bf16.mxu1 %v14074_v37  ;;  %v13937_v48 = vcombine.low %v439_v35, %v443_v36 }
  0x9e   :  { %v571_v39 = vld [vmem:[#allocation2 + $0xd20] sm:$0xff]  ;;  %9496 = vmatpush1.bf16.msra.mxu0 %v13945_v40  ;;  %9537 = vmatpush1.bf16.msra.mxu1 %v14073_v41 }
  0x9f   :  { %v431_v43 = vld [vmem:[#allocation2 + $0x8c0] sm:$0xff]  ;;  %v14066_v46 = vcombine.high %v567_v38, %v571_v39  ;;  %9497 = vmatprep.subr.bf16.mxu0 %v13938_v42  ;;  %v14065_v49 = vcombine.low %v567_v38, %v571_v39 }
  0xa0   :  { %v435_v44 = vld [vmem:[#allocation2 + $0x8e0] sm:$0xff] }
  0xa1   :  { %v559_v45 = vld [vmem:[#allocation2 + $0xcc0] sm:$0xff]  ;;  %v13930_v50 = vcombine.high %v431_v43, %v435_v44  ;;  %9538 = vmatprep.subr.bf16.mxu1 %v14066_v46  ;;  %v13929_v56 = vcombine.low %v431_v43, %v435_v44 }
  0xa2   :  { %v563_v47 = vld [vmem:[#allocation2 + $0xce0] sm:$0xff]  ;;  %9498 = vmatpush1.bf16.msra.mxu0 %v13937_v48  ;;  %9539 = vmatpush1.bf16.msra.mxu1 %v14065_v49 }
  0xa3   :  { %v423_v51 = vld [vmem:[#allocation2 + $0x880] sm:$0xff]  ;;  %v14058_v54 = vcombine.high %v559_v45, %v563_v47  ;;  %9499 = vmatprep.subr.bf16.mxu0 %v13930_v50  ;;  %v14057_v57 = vcombine.low %v559_v45, %v563_v47 }
  0xa4   :  { %v427_v52 = vld [vmem:[#allocation2 + $0x8a0] sm:$0xff] }
  0xa5   :  { %v551_v53 = vld [vmem:[#allocation2 + $0xc80] sm:$0xff]  ;;  %v13922_v60 = vcombine.high %v423_v51, %v427_v52  ;;  %9540 = vmatprep.subr.bf16.mxu1 %v14058_v54  ;;  %v13921_v2 = vcombine.low %v423_v51, %v427_v52 }
  0xa6   :  { %v555_v55 = vld [vmem:[#allocation2 + $0xca0] sm:$0xff]  ;;  %9500 = vmatpush1.bf16.msra.mxu0 %v13929_v56  ;;  %9541 = vmatpush1.bf16.msra.mxu1 %v14057_v57 }
  0xa7   :  { %v415_v61 = vld [vmem:[#allocation2 + $0x840] sm:$0xff]  ;;  %v14050_v0 = vcombine.high %v551_v53, %v555_v55  ;;  %9501 = vmatprep.subr.bf16.mxu0 %v13922_v60  ;;  %v14049_v3 = vcombine.low %v551_v53, %v555_v55 }
  0xa8   :  { %v419_v62 = vld [vmem:[#allocation2 + $0x860] sm:$0xff] }
  0xa9   :  { %v543_v63 = vld [vmem:[#allocation2 + $0xc40] sm:$0xff]  ;;  %v13914_v4 = vcombine.high %v415_v61, %v419_v62  ;;  %9542 = vmatprep.subr.bf16.mxu1 %v14050_v0  ;;  %v13913_v10 = vcombine.low %v415_v61, %v419_v62 }
  0xaa   :  { %v547_v1 = vld [vmem:[#allocation2 + $0xc60] sm:$0xff]  ;;  %9502 = vmatpush1.bf16.msra.mxu0 %v13921_v2  ;;  %9543 = vmatpush1.bf16.msra.mxu1 %v14049_v3 }
  0xab   :  { %v407_v5 = vld [vmem:[#allocation2 + $0x800] sm:$0xff]  ;;  %v14042_v8 = vcombine.high %v543_v63, %v547_v1  ;;  %9503 = vmatprep.subr.bf16.mxu0 %v13914_v4  ;;  %v14041_v11 = vcombine.low %v543_v63, %v547_v1 }
  0xac   :  { %v411_v6 = vld [vmem:[#allocation2 + $0x820] sm:$0xff] }
  0xad   :  { %v535_v7 = vld [vmem:[#allocation2 + $0xc00] sm:$0xff]  ;;  %v13906_v12 = vcombine.high %v407_v5, %v411_v6  ;;  %9544 = vmatprep.subr.bf16.mxu1 %v14042_v8  ;;  %v13905_v19 = vcombine.low %v407_v5, %v411_v6 }
  0xae   :  { %v539_v9 = vld [vmem:[#allocation2 + $0xc20] sm:$0xff]  ;;  %9504 = vmatpush1.bf16.msra.mxu0 %v13913_v10  ;;  %9545 = vmatpush1.bf16.msra.mxu1 %v14041_v11 }
  0xaf   :  { %v527_v13 = vld [vmem:[#allocation2 + $0xbc0] sm:$0xff]  ;;  %v14034_v17 = vcombine.high %v535_v7, %v539_v9  ;;  %9505 = vmatprep.subr.bf16.mxu0 %v13906_v12  ;;  %v14033_v21 = vcombine.low %v535_v7, %v539_v9 }
  0xb0   :  { %v531_v14 = vld [vmem:[#allocation2 + $0xbe0] sm:$0xff] }
  0xb1   :  { %v655_v15 = vld [vmem:[#allocation2 + $0xfc0] sm:$0xff]  ;;  %v14026_v22 = vcombine.high %v527_v13, %v531_v14  ;;  %9546 = vmatprep.subr.bf16.mxu1 %v14034_v17  ;;  %v14025_v29 = vcombine.low %v527_v13, %v531_v14 }
  0xb2   :  { %v659_v18 = vld [vmem:[#allocation2 + $0xfe0] sm:$0xff]  ;;  %9506 = vmatpush1.bf16.msra.mxu0 %v13905_v19  ;;  %9547 = vmatpush1.bf16.msra.mxu1 %v14033_v21 }
  0xb3   :  { %v519_v23 = vld [vmem:[#allocation2 + $0xb80] sm:$0xff]  ;;  %v14154_v26 = vcombine.high %v655_v15, %v659_v18  ;;  %9507 = vmatprep.subr.bf16.mxu0 %v14026_v22  ;;  %v14153_v30 = vcombine.low %v655_v15, %v659_v18 }
  0xb4   :  { %v523_v24 = vld [vmem:[#allocation2 + $0xba0] sm:$0xff] }
  0xb5   :  { %v647_v25 = vld [vmem:[#allocation2 + $0xf80] sm:$0xff]  ;;  %v14018_v32 = vcombine.high %v519_v23, %v523_v24  ;;  %9548 = vmatprep.subr.bf16.mxu1 %v14154_v26  ;;  %v14017_v38 = vcombine.low %v519_v23, %v523_v24 }
  0xb6   :  { %v651_v27 = vld [vmem:[#allocation2 + $0xfa0] sm:$0xff]  ;;  %9508 = vmatpush2.bf16.msra.mxu0 %v14025_v29  ;;  %9549 = vmatpush2.bf16.msra.mxu1 %v14153_v30 }
  0xb7   :  { %v511_v33 = vld [vmem:[#allocation2 + $0xb40] sm:$0xff]  ;;  %v14146_v36 = vcombine.high %v647_v25, %v651_v27  ;;  %9509 = vmatprep.subr.bf16.mxu0 %v14018_v32  ;;  %v14145_v39 = vcombine.low %v647_v25, %v651_v27  ;;  %v109_v27 = vld [vmem:[%s16581_s0 + $0x30] sm:$0xff] }
  0xb8   :  { %v515_v34 = vld [vmem:[#allocation2 + $0xb60] sm:$0xff] }
  0xb9   :  { %v639_v35 = vld [vmem:[#allocation2 + $0xf40] sm:$0xff]  ;;  %v14010_v40 = vcombine.high %v511_v33, %v515_v34  ;;  %9550 = vmatprep.subr.bf16.mxu1 %v14146_v36  ;;  %v14009_v46 = vcombine.low %v511_v33, %v515_v34 }
  0xba   :  { %v643_v37 = vld [vmem:[#allocation2 + $0xf60] sm:$0xff]  ;;  %9510 = vmatpush2.bf16.msra.mxu0 %v14017_v38  ;;  %9551 = vmatpush2.bf16.msra.mxu1 %v14145_v39  ;;  %v112_v38 = vld [vmem:[%s16581_s0 + $0x48] sm:$0xff] }
  0xbb   :  { %v503_v41 = vld [vmem:[#allocation2 + $0xb00] sm:$0xff]  ;;  %v14138_v44 = vcombine.high %v639_v35, %v643_v37  ;;  %9511 = vmatprep.subr.bf16.mxu0 %v14010_v40  ;;  %v14137_v47 = vcombine.low %v639_v35, %v643_v37  ;;  %v16198_v40 = vpack.c.bf16 %v109_v27, %v109_v27 }
  0xbc   :  { %v507_v42 = vld [vmem:[#allocation2 + $0xb20] sm:$0xff] }
  0xbd   :  { %v631_v43 = vld [vmem:[#allocation2 + $0xf00] sm:$0xff]  ;;  %v14002_v48 = vcombine.high %v503_v41, %v507_v42  ;;  %9552 = vmatprep.subr.bf16.mxu1 %v14138_v44  ;;  %v14001_v54 = vcombine.low %v503_v41, %v507_v42  ;;  %v114_v42 = vld [vmem:[%s16581_s0 + $0x58] sm:$0xff] }
  0xbe   :  { %v635_v45 = vld [vmem:[#allocation2 + $0xf20] sm:$0xff]  ;;  %9512 = vmatpush2.bf16.msra.mxu0 %v14009_v46  ;;  %9553 = vmatpush2.bf16.msra.mxu1 %v14137_v47 }
  0xbf   :  { %v495_v49 = vld [vmem:[#allocation2 + $0xac0] sm:$0xff]  ;;  %v14130_v52 = vcombine.high %v631_v43, %v635_v45  ;;  %9513 = vmatprep.subr.bf16.mxu0 %v14002_v48  ;;  %v14129_v55 = vcombine.low %v631_v43, %v635_v45 }
  0xc0   :  { %v499_v50 = vld [vmem:[#allocation2 + $0xae0] sm:$0xff] }
  0xc1   :  { %v623_v51 = vld [vmem:[#allocation2 + $0xec0] sm:$0xff]  ;;  %v13994_v56 = vcombine.high %v495_v49, %v499_v50  ;;  %9554 = vmatprep.subr.bf16.mxu1 %v14130_v52  ;;  %v13993_v0 = vcombine.low %v495_v49, %v499_v50  ;;  %v16203_v49 = vpack.c.bf16 %v112_v38, %v112_v38 }
  0xc2   :  { %v627_v53 = vld [vmem:[#allocation2 + $0xee0] sm:$0xff]  ;;  %9514 = vmatpush2.bf16.msra.mxu0 %v14001_v54  ;;  %9555 = vmatpush2.bf16.msra.mxu1 %v14129_v55 }
  0xc3   :  { %v487_v57 = vld [vmem:[#allocation2 + $0xa80] sm:$0xff]  ;;  %v14122_v62 = vcombine.high %v623_v51, %v627_v53  ;;  %9515 = vmatprep.subr.bf16.mxu0 %v13994_v56  ;;  %v14121_v1 = vcombine.low %v623_v51, %v627_v53  ;;  %v16206_v51 = vpack.c.bf16 %v114_v42, %v114_v42 }
  0xc4   :  { %v491_v60 = vld [vmem:[#allocation2 + $0xaa0] sm:$0xff] }
  0xc5   :  { %v615_v61 = vld [vmem:[#allocation2 + $0xe80] sm:$0xff]  ;;  %v13986_v2 = vcombine.high %v487_v57, %v491_v60  ;;  %9556 = vmatprep.subr.bf16.mxu1 %v14122_v62  ;;  %v13985_v8 = vcombine.low %v487_v57, %v491_v60 }
  0xc6   :  { %v619_v63 = vld [vmem:[#allocation2 + $0xea0] sm:$0xff]  ;;  %9516 = vmatpush2.bf16.msra.mxu0 %v13993_v0  ;;  %9557 = vmatpush2.bf16.msra.mxu1 %v14121_v1 }
  0xc7   :  { %v479_v3 = vld [vmem:[#allocation2 + $0xa40] sm:$0xff]  ;;  %v14114_v6 = vcombine.high %v615_v61, %v619_v63  ;;  %9517 = vmatprep.subr.bf16.mxu0 %v13986_v2  ;;  %v14113_v9 = vcombine.low %v615_v61, %v619_v63 }
  0xc8   :  { %v483_v4 = vld [vmem:[#allocation2 + $0xa60] sm:$0xff] }
  0xc9   :  { %v607_v5 = vld [vmem:[#allocation2 + $0xe40] sm:$0xff]  ;;  %v13978_v10 = vcombine.high %v479_v3, %v483_v4  ;;  %9558 = vmatprep.subr.bf16.mxu1 %v14114_v6  ;;  %v13977_v17 = vcombine.low %v479_v3, %v483_v4 }
  0xca   :  { %v611_v7 = vld [vmem:[#allocation2 + $0xe60] sm:$0xff]  ;;  %9518 = vmatpush2.bf16.msra.mxu0 %v13985_v8  ;;  %9559 = vmatpush2.bf16.msra.mxu1 %v14113_v9 }
  0xcb   :  { %v471_v11 = vld [vmem:[#allocation2 + $0xa00] sm:$0xff]  ;;  %v14106_v14 = vcombine.high %v607_v5, %v611_v7  ;;  %9519 = vmatprep.subr.bf16.mxu0 %v13978_v10  ;;  %v14105_v18 = vcombine.low %v607_v5, %v611_v7 }
  0xcc   :  { %v475_v12 = vld [vmem:[#allocation2 + $0xa20] sm:$0xff] }
  0xcd   :  { %v599_v13 = vld [vmem:[#allocation2 + $0xe00] sm:$0xff]  ;;  %v13970_v19 = vcombine.high %v471_v11, %v475_v12  ;;  %9560 = vmatprep.subr.bf16.mxu1 %v14106_v14  ;;  %v13969_v29 = vcombine.low %v471_v11, %v475_v12 }
  0xce   :  { %v603_v15 = vld [vmem:[#allocation2 + $0xe20] sm:$0xff]  ;;  %9520 = vmatpush2.bf16.msra.mxu0 %v13977_v17  ;;  %9561 = vmatpush2.bf16.msra.mxu1 %v14105_v18 }
  0xcf   :  { %v719_v21 = vld [vmem:[#allocation2 + $0x11c0] sm:$0xff]  ;;  %v14098_v24 = vcombine.high %v599_v13, %v603_v15  ;;  %9521 = vmatprep.subr.bf16.mxu0 %v13970_v19  ;;  %v14097_v32 = vcombine.low %v599_v13, %v603_v15 }
  0xd0   :  { %v723_v22 = vld [vmem:[#allocation2 + $0x11e0] sm:$0xff] }
  0xd1   :  { %v847_v23 = vld [vmem:[#allocation2 + $0x15c0] sm:$0xff]  ;;  %v14218_v33 = vcombine.high %v719_v21, %v723_v22  ;;  %9562 = vmatprep.subr.bf16.mxu1 %v14098_v24  ;;  %v14217_v41 = vcombine.low %v719_v21, %v723_v22 }
  0xd2   :  { %v107_v25 = vld [vmem:[%s16581_s0 + $0x20] sm:$0xff]  ;;  %9522 = vmatpush2.bf16.msra.mxu0 %v13969_v29  ;;  %9563 = vmatpush2.bf16.msra.mxu1 %v14097_v32 }
  0xd3   :  { %v851_v26 = vld [vmem:[#allocation2 + $0x15e0] sm:$0xff]  ;;  %v16196_v39 = vpack.c.bf16 %v107_v25, %v107_v25  ;;  %9573 = vmatprep.subr.bf16.mxu0 %v14218_v33 }
  0xd4   :  { %v711_v30 = vld [vmem:[#allocation2 + $0x1180] sm:$0xff]  ;;  %v14346_v37 = vcombine.high %v847_v23, %v851_v26  ;;  %v14345_v43 = vcombine.low %v847_v23, %v851_v26 }
  0xd5   :  { %v715_v34 = vld [vmem:[#allocation2 + $0x11a0] sm:$0xff]  ;;  %9524 = vmatmul.mubr.bf16.vlgmr.msra.gmra.mxu0 %v16196_v39  ;;  %9565 = vmatmul.mubr.bf16.vlgmr.msra.gmra.mxu1 %v16198_v40 }
  0xd6   :  { %v839_v35 = vld [vmem:[#allocation2 + $0x1580] sm:$0xff]  ;;  %v14210_v44 = vcombine.high %v711_v30, %v715_v34  ;;  %9614 = vmatprep.subr.bf16.mxu1 %v14346_v37  ;;  %9574 = vmatpush1.bf16.msra.mxu0 %v14217_v41  ;;  %v14209_v52 = vcombine.low %v711_v30, %v715_v34 }
  0xd7   :  { %v843_v36 = vld [vmem:[#allocation2 + $0x15a0] sm:$0xff]  ;;  %9615 = vmatpush1.bf16.msra.mxu1 %v14345_v43  ;;  %9605 = vmatprep.mubr.bf16.mxu0 %v16203_v49 }
  0xd8   :  { %v14338_v45 = vcombine.high %v839_v35, %v843_v36  ;;  %v703_v46 = vld [vmem:[#allocation2 + $0x1140] sm:$0xff]  ;;  %9575 = vmatprep.subr.bf16.mxu0 %v14210_v44  ;;  %v14337_v53 = vcombine.low %v839_v35, %v843_v36  ;;  %9646 = vmatprep.mubr.bf16.mxu1 %v16206_v51 }
  0xd9   :  { %v707_v47 = vld [vmem:[#allocation2 + $0x1160] sm:$0xff] }
  0xda   :  { %v831_v48 = vld [vmem:[#allocation2 + $0x1540] sm:$0xff]  ;;  %v14202_v54 = vcombine.high %v703_v46, %v707_v47  ;;  %9616 = vmatprep.subr.bf16.mxu1 %v14338_v45  ;;  %9576 = vmatpush1.bf16.msra.mxu0 %v14209_v52  ;;  %v14201_v62 = vcombine.low %v703_v46, %v707_v47 }
  0xdb   :  { %v835_v50 = vld [vmem:[#allocation2 + $0x1560] sm:$0xff]  ;;  %9617 = vmatpush1.bf16.msra.mxu1 %v14337_v53 }
  0xdc   :  { %v695_v55 = vld [vmem:[#allocation2 + $0x1100] sm:$0xff]  ;;  %v14330_v60 = vcombine.high %v831_v48, %v835_v50  ;;  %9577 = vmatprep.subr.bf16.mxu0 %v14202_v54  ;;  %v14329_v63 = vcombine.low %v831_v48, %v835_v50 }
  0xdd   :  { %v699_v56 = vld [vmem:[#allocation2 + $0x1120] sm:$0xff] }
  0xde   :  { %v823_v57 = vld [vmem:[#allocation2 + $0x1500] sm:$0xff]  ;;  %v14194_v0 = vcombine.high %v695_v55, %v699_v56  ;;  %9618 = vmatprep.subr.bf16.mxu1 %v14330_v60  ;;  %9578 = vmatpush1.bf16.msra.mxu0 %v14201_v62  ;;  %v14193_v6 = vcombine.low %v695_v55, %v699_v56 }
  0xdf   :  { %v827_v61 = vld [vmem:[#allocation2 + $0x1520] sm:$0xff]  ;;  %9619 = vmatpush1.bf16.msra.mxu1 %v14329_v63 }
  0xe0   :  { %v687_v1 = vld [vmem:[#allocation2 + $0x10c0] sm:$0xff]  ;;  %v14322_v4 = vcombine.high %v823_v57, %v827_v61  ;;  %9579 = vmatprep.subr.bf16.mxu0 %v14194_v0  ;;  %v14321_v7 = vcombine.low %v823_v57, %v827_v61 }
  0xe1   :  { %v691_v2 = vld [vmem:[#allocation2 + $0x10e0] sm:$0xff] }
  0xe2   :  { %v815_v3 = vld [vmem:[#allocation2 + $0x14c0] sm:$0xff]  ;;  %v14186_v8 = vcombine.high %v687_v1, %v691_v2  ;;  %9620 = vmatprep.subr.bf16.mxu1 %v14322_v4  ;;  %9580 = vmatpush1.bf16.msra.mxu0 %v14193_v6  ;;  %v14185_v14 = vcombine.low %v687_v1, %v691_v2 }
  0xe3   :  { %v819_v5 = vld [vmem:[#allocation2 + $0x14e0] sm:$0xff]  ;;  %9621 = vmatpush1.bf16.msra.mxu1 %v14321_v7 }
  0xe4   :  { %v679_v9 = vld [vmem:[#allocation2 + $0x1080] sm:$0xff]  ;;  %v14314_v12 = vcombine.high %v815_v3, %v819_v5  ;;  %9581 = vmatprep.subr.bf16.mxu0 %v14186_v8  ;;  %v14313_v15 = vcombine.low %v815_v3, %v819_v5 }
  0xe5   :  { %v683_v10 = vld [vmem:[#allocation2 + $0x10a0] sm:$0xff] }
  0xe6   :  { %v807_v11 = vld [vmem:[#allocation2 + $0x1480] sm:$0xff]  ;;  %v14178_v17 = vcombine.high %v679_v9, %v683_v10  ;;  %9622 = vmatprep.subr.bf16.mxu1 %v14314_v12  ;;  %9582 = vmatpush1.bf16.msra.mxu0 %v14185_v14  ;;  %v14177_v24 = vcombine.low %v679_v9, %v683_v10 }
  0xe7   :  { %v811_v13 = vld [vmem:[#allocation2 + $0x14a0] sm:$0xff]  ;;  %9623 = vmatpush1.bf16.msra.mxu1 %v14313_v15 }
  0xe8   :  { %v671_v18 = vld [vmem:[#allocation2 + $0x1040] sm:$0xff]  ;;  %v14306_v22 = vcombine.high %v807_v11, %v811_v13  ;;  %9583 = vmatprep.subr.bf16.mxu0 %v14178_v17  ;;  %v14305_v25 = vcombine.low %v807_v11, %v811_v13 }
  0xe9   :  { %v675_v19 = vld [vmem:[#allocation2 + $0x1060] sm:$0xff] }
  0xea   :  { %v799_v21 = vld [vmem:[#allocation2 + $0x1440] sm:$0xff]  ;;  %v14170_v26 = vcombine.high %v671_v18, %v675_v19  ;;  %9624 = vmatprep.subr.bf16.mxu1 %v14306_v22  ;;  %9584 = vmatpush1.bf16.msra.mxu0 %v14177_v24  ;;  %v14169_v34 = vcombine.low %v671_v18, %v675_v19 }
  0xeb   :  { %v803_v23 = vld [vmem:[#allocation2 + $0x1460] sm:$0xff]  ;;  %9625 = vmatpush1.bf16.msra.mxu1 %v14305_v25 }
  0xec   :  { %v663_v27 = vld [vmem:[#allocation2 + $0x1000] sm:$0xff]  ;;  %v14298_v32 = vcombine.high %v799_v21, %v803_v23  ;;  %9585 = vmatprep.subr.bf16.mxu0 %v14170_v26  ;;  %v14297_v35 = vcombine.low %v799_v21, %v803_v23 }
  0xed   :  { %v667_v29 = vld [vmem:[#allocation2 + $0x1020] sm:$0xff] }
  0xee   :  { %v791_v30 = vld [vmem:[#allocation2 + $0x1400] sm:$0xff]  ;;  %v14162_v36 = vcombine.high %v663_v27, %v667_v29  ;;  %9626 = vmatprep.subr.bf16.mxu1 %v14298_v32  ;;  %9586 = vmatpush1.bf16.msra.mxu0 %v14169_v34  ;;  %v14161_v44 = vcombine.low %v663_v27, %v667_v29 }
  0xef   :  { %v795_v33 = vld [vmem:[#allocation2 + $0x1420] sm:$0xff]  ;;  %9627 = vmatpush1.bf16.msra.mxu1 %v14297_v35 }
  0xf0   :  { %v783_v37 = vld [vmem:[#allocation2 + $0x13c0] sm:$0xff]  ;;  %v14290_v42 = vcombine.high %v791_v30, %v795_v33  ;;  %9587 = vmatprep.subr.bf16.mxu0 %v14162_v36  ;;  %v14289_v45 = vcombine.low %v791_v30, %v795_v33 }
  0xf1   :  { %v787_v38 = vld [vmem:[#allocation2 + $0x13e0] sm:$0xff] }
  0xf2   :  { %v911_v41 = vld [vmem:[#allocation2 + $0x17c0] sm:$0xff]  ;;  %v14282_v46 = vcombine.high %v783_v37, %v787_v38  ;;  %9628 = vmatprep.subr.bf16.mxu1 %v14290_v42  ;;  %9588 = vmatpush1.bf16.msra.mxu0 %v14161_v44  ;;  %v14281_v54 = vcombine.low %v783_v37, %v787_v38 }
  0xf3   :  { %v915_v43 = vld [vmem:[#allocation2 + $0x17e0] sm:$0xff]  ;;  %9629 = vmatpush1.bf16.msra.mxu1 %v14289_v45 }
  0xf4   :  { %v775_v47 = vld [vmem:[#allocation2 + $0x1380] sm:$0xff]  ;;  %v14410_v52 = vcombine.high %v911_v41, %v915_v43  ;;  %9589 = vmatprep.subr.bf16.mxu0 %v14282_v46  ;;  %v14409_v55 = vcombine.low %v911_v41, %v915_v43 }
  0xf5   :  { %v779_v48 = vld [vmem:[#allocation2 + $0x13a0] sm:$0xff] }
  0xf6   :  { %v903_v50 = vld [vmem:[#allocation2 + $0x1780] sm:$0xff]  ;;  %v14274_v56 = vcombine.high %v775_v47, %v779_v48  ;;  %9630 = vmatprep.subr.bf16.mxu1 %v14410_v52  ;;  %9590 = vmatpush2.bf16.msra.mxu0 %v14281_v54  ;;  %v14273_v0 = vcombine.low %v775_v47, %v779_v48 }
  0xf7   :  { %v907_v53 = vld [vmem:[#allocation2 + $0x17a0] sm:$0xff]  ;;  %9631 = vmatpush2.bf16.msra.mxu1 %v14409_v55 }
  0xf8   :  { %v767_v57 = vld [vmem:[#allocation2 + $0x1340] sm:$0xff]  ;;  %v14402_v62 = vcombine.high %v903_v50, %v907_v53  ;;  %9591 = vmatprep.subr.bf16.mxu0 %v14274_v56  ;;  %v14401_v1 = vcombine.low %v903_v50, %v907_v53 }
  0xf9   :  { %v771_v60 = vld [vmem:[#allocation2 + $0x1360] sm:$0xff] }
  0xfa   :  { %v895_v61 = vld [vmem:[#allocation2 + $0x1740] sm:$0xff]  ;;  %v14266_v2 = vcombine.high %v767_v57, %v771_v60  ;;  %9632 = vmatprep.subr.bf16.mxu1 %v14402_v62  ;;  %9592 = vmatpush2.bf16.msra.mxu0 %v14273_v0  ;;  %v14265_v8 = vcombine.low %v767_v57, %v771_v60  ;;  %v113_v57 = vld [vmem:[%s16581_s0 + $0x50] sm:$0xff] }
  0xfb   :  { %v899_v63 = vld [vmem:[#allocation2 + $0x1760] sm:$0xff]  ;;  %9633 = vmatpush2.bf16.msra.mxu1 %v14401_v1 }
  0xfc   :  { %v759_v3 = vld [vmem:[#allocation2 + $0x1300] sm:$0xff]  ;;  %v14394_v6 = vcombine.high %v895_v61, %v899_v63  ;;  %9593 = vmatprep.subr.bf16.mxu0 %v14266_v2  ;;  %v14393_v9 = vcombine.low %v895_v61, %v899_v63 }
  0xfd   :  { %v763_v4 = vld [vmem:[#allocation2 + $0x1320] sm:$0xff] }
  0xfe   :  { %v887_v5 = vld [vmem:[#allocation2 + $0x1700] sm:$0xff]  ;;  %v14258_v10 = vcombine.high %v759_v3, %v763_v4  ;;  %9634 = vmatprep.subr.bf16.mxu1 %v14394_v6  ;;  %9594 = vmatpush2.bf16.msra.mxu0 %v14265_v8  ;;  %v14257_v17 = vcombine.low %v759_v3, %v763_v4  ;;  %v116_v4 = vld [vmem:[%s16581_s0 + $0x68] sm:$0xff]  ;;  %v16222_v6 = vpack.c.bf16 %v113_v57, %v113_v57  ;;  %v118_v8 = vld [vmem:[%s16581_s0 + $0x78] sm:$0xff] }
  0xff   :  { %v891_v7 = vld [vmem:[#allocation2 + $0x1720] sm:$0xff]  ;;  %9635 = vmatpush2.bf16.msra.mxu1 %v14393_v9 }
 0x100   :  { %v751_v11 = vld [vmem:[#allocation2 + $0x12c0] sm:$0xff]  ;;  %v14386_v14 = vcombine.high %v887_v5, %v891_v7  ;;  %9595 = vmatprep.subr.bf16.mxu0 %v14258_v10  ;;  %v14385_v18 = vcombine.low %v887_v5, %v891_v7 }
 0x101   :  { %v755_v12 = vld [vmem:[#allocation2 + $0x12e0] sm:$0xff] }
 0x102   :  { %v879_v13 = vld [vmem:[#allocation2 + $0x16c0] sm:$0xff]  ;;  %v14250_v19 = vcombine.high %v751_v11, %v755_v12  ;;  %9636 = vmatprep.subr.bf16.mxu1 %v14386_v14  ;;  %9596 = vmatpush2.bf16.msra.mxu0 %v14257_v17  ;;  %v14249_v26 = vcombine.low %v751_v11, %v755_v12  ;;  %v16227_v17 = vpack.c.bf16 %v116_v4, %v116_v4 }
 0x103   :  { %v883_v15 = vld [vmem:[#allocation2 + $0x16e0] sm:$0xff]  ;;  %9637 = vmatpush2.bf16.msra.mxu1 %v14385_v18  ;;  %v16230_v18 = vpack.c.bf16 %v118_v8, %v118_v8 }
 0x104   :  { %v743_v21 = vld [vmem:[#allocation2 + $0x1280] sm:$0xff]  ;;  %v14378_v24 = vcombine.high %v879_v13, %v883_v15  ;;  %9597 = vmatprep.subr.bf16.mxu0 %v14250_v19  ;;  %v14377_v27 = vcombine.low %v879_v13, %v883_v15 }
 0x105   :  { %v747_v22 = vld [vmem:[#allocation2 + $0x12a0] sm:$0xff] }
 0x106   :  { %v871_v23 = vld [vmem:[#allocation2 + $0x1680] sm:$0xff]  ;;  %v14242_v29 = vcombine.high %v743_v21, %v747_v22  ;;  %9638 = vmatprep.subr.bf16.mxu1 %v14378_v24  ;;  %9598 = vmatpush2.bf16.msra.mxu0 %v14249_v26  ;;  %v14241_v36 = vcombine.low %v743_v21, %v747_v22 }
 0x107   :  { %v875_v25 = vld [vmem:[#allocation2 + $0x16a0] sm:$0xff]  ;;  %9639 = vmatpush2.bf16.msra.mxu1 %v14377_v27 }
 0x108   :  { %v735_v30 = vld [vmem:[#allocation2 + $0x1240] sm:$0xff]  ;;  %v14370_v34 = vcombine.high %v871_v23, %v875_v25  ;;  %9599 = vmatprep.subr.bf16.mxu0 %v14242_v29  ;;  %v14369_v37 = vcombine.low %v871_v23, %v875_v25 }
 0x109   :  { %v739_v32 = vld [vmem:[#allocation2 + $0x1260] sm:$0xff] }
 0x10a   :  { %v863_v33 = vld [vmem:[#allocation2 + $0x1640] sm:$0xff]  ;;  %v14234_v38 = vcombine.high %v735_v30, %v739_v32  ;;  %9640 = vmatprep.subr.bf16.mxu1 %v14370_v34  ;;  %9600 = vmatpush2.bf16.msra.mxu0 %v14241_v36  ;;  %v14233_v46 = vcombine.low %v735_v30, %v739_v32 }
 0x10b   :  { %v867_v35 = vld [vmem:[#allocation2 + $0x1660] sm:$0xff]  ;;  %9641 = vmatpush2.bf16.msra.mxu1 %v14369_v37 }
 0x10c   :  { %v727_v41 = vld [vmem:[#allocation2 + $0x1200] sm:$0xff]  ;;  %v14362_v44 = vcombine.high %v863_v33, %v867_v35  ;;  %9601 = vmatprep.subr.bf16.mxu0 %v14234_v38  ;;  %v14361_v47 = vcombine.low %v863_v33, %v867_v35 }
 0x10d   :  { %v731_v42 = vld [vmem:[#allocation2 + $0x1220] sm:$0xff] }
 0x10e   :  { %v855_v43 = vld [vmem:[#allocation2 + $0x1600] sm:$0xff]  ;;  %v14226_v48 = vcombine.high %v727_v41, %v731_v42  ;;  %9642 = vmatprep.subr.bf16.mxu1 %v14362_v44  ;;  %9602 = vmatpush2.bf16.msra.mxu0 %v14233_v46  ;;  %v14225_v60 = vcombine.low %v727_v41, %v731_v42 }
 0x10f   :  { %v859_v45 = vld [vmem:[#allocation2 + $0x1620] sm:$0xff]  ;;  %9643 = vmatpush2.bf16.msra.mxu1 %v14361_v47 }
 0x110   :  { %v975_v50 = vld [vmem:[#allocation2 + $0x19c0] sm:$0xff]  ;;  %v14354_v54 = vcombine.high %v855_v43, %v859_v45  ;;  %9603 = vmatprep.subr.bf16.mxu0 %v14226_v48  ;;  %v14353_v62 = vcombine.low %v855_v43, %v859_v45 }
 0x111   :  { %v979_v52 = vld [vmem:[#allocation2 + $0x19e0] sm:$0xff] }
 0x112   :  { %v1103_v53 = vld [vmem:[#allocation2 + $0x1dc0] sm:$0xff]  ;;  %v14474_v63 = vcombine.high %v975_v50, %v979_v52  ;;  %9644 = vmatprep.subr.bf16.mxu1 %v14354_v54  ;;  %9604 = vmatpush2.bf16.msra.mxu0 %v14225_v60  ;;  %v14473_v7 = vcombine.low %v975_v50, %v979_v52 }
 0x113   :  { %v111_v55 = vld [vmem:[%s16581_s0 + $0x40] sm:$0xff]  ;;  %9645 = vmatpush2.bf16.msra.mxu1 %v14353_v62 }
 0x114   :  { %v1107_v56 = vld [vmem:[#allocation2 + $0x1de0] sm:$0xff]  ;;  %v16220_v5 = vpack.c.bf16 %v111_v55, %v111_v55  ;;  %9655 = vmatprep.subr.bf16.mxu0 %v14474_v63 }
 0x115   :  { %v967_v61 = vld [vmem:[#allocation2 + $0x1980] sm:$0xff]  ;;  %v14602_v3 = vcombine.high %v1103_v53, %v1107_v56  ;;  %v14601_v9 = vcombine.low %v1103_v53, %v1107_v56 }
 0x116   :  { %v971_v0 = vld [vmem:[#allocation2 + $0x19a0] sm:$0xff]  ;;  %9606 = vmatmul.mubr.bf16.vlgmr.msra.gmra.mxu0 %v16220_v5  ;;  %9647 = vmatmul.mubr.bf16.vlgmr.msra.gmra.mxu1 %v16222_v6 }
 0x117   :  { %v1095_v1 = vld [vmem:[#allocation2 + $0x1d80] sm:$0xff]  ;;  %v14466_v10 = vcombine.high %v967_v61, %v971_v0  ;;  %9696 = vmatprep.subr.bf16.mxu1 %v14602_v3  ;;  %9656 = vmatpush1.bf16.msra.mxu0 %v14473_v7  ;;  %v14465_v19 = vcombine.low %v967_v61, %v971_v0 }
 0x118   :  { %v1099_v2 = vld [vmem:[#allocation2 + $0x1da0] sm:$0xff]  ;;  %9697 = vmatpush1.bf16.msra.mxu1 %v14601_v9  ;;  %9687 = vmatprep.mubr.bf16.mxu0 %v16227_v17 }
 0x119   :  { %v959_v11 = vld [vmem:[#allocation2 + $0x1940] sm:$0xff]  ;;  %v14594_v12 = vcombine.high %v1095_v1, %v1099_v2  ;;  %9657 = vmatprep.subr.bf16.mxu0 %v14466_v10  ;;  %v14593_v21 = vcombine.low %v1095_v1, %v1099_v2  ;;  %9728 = vmatprep.mubr.bf16.mxu1 %v16230_v18 }
 0x11a   :  { %v963_v13 = vld [vmem:[#allocation2 + $0x1960] sm:$0xff] }
 0x11b   :  { %v1087_v14 = vld [vmem:[#allocation2 + $0x1d40] sm:$0xff]  ;;  %v14458_v22 = vcombine.high %v959_v11, %v963_v13  ;;  %9698 = vmatprep.subr.bf16.mxu1 %v14594_v12  ;;  %9658 = vmatpush1.bf16.msra.mxu0 %v14465_v19  ;;  %v14457_v29 = vcombine.low %v959_v11, %v963_v13 }
 0x11c   :  { %v1091_v15 = vld [vmem:[#allocation2 + $0x1d60] sm:$0xff]  ;;  %9699 = vmatpush1.bf16.msra.mxu1 %v14593_v21 }
 0x11d   :  { %v951_v23 = vld [vmem:[#allocation2 + $0x1900] sm:$0xff]  ;;  %v14586_v26 = vcombine.high %v1087_v14, %v1091_v15  ;;  %9659 = vmatprep.subr.bf16.mxu0 %v14458_v22  ;;  %v14585_v30 = vcombine.low %v1087_v14, %v1091_v15 }
 0x11e   :  { %v955_v24 = vld [vmem:[#allocation2 + $0x1920] sm:$0xff] }
 0x11f   :  { %v1079_v25 = vld [vmem:[#allocation2 + $0x1d00] sm:$0xff]  ;;  %v14450_v32 = vcombine.high %v951_v23, %v955_v24  ;;  %9700 = vmatprep.subr.bf16.mxu1 %v14586_v26  ;;  %9660 = vmatpush1.bf16.msra.mxu0 %v14457_v29  ;;  %v14449_v38 = vcombine.low %v951_v23, %v955_v24 }
 0x120   :  { %v1083_v27 = vld [vmem:[#allocation2 + $0x1d20] sm:$0xff]  ;;  %9701 = vmatpush1.bf16.msra.mxu1 %v14585_v30 }
 0x121   :  { %v943_v33 = vld [vmem:[#allocation2 + $0x18c0] sm:$0xff]  ;;  %v14578_v36 = vcombine.high %v1079_v25, %v1083_v27  ;;  %9661 = vmatprep.subr.bf16.mxu0 %v14450_v32  ;;  %v14577_v41 = vcombine.low %v1079_v25, %v1083_v27 }
 0x122   :  { %v947_v34 = vld [vmem:[#allocation2 + $0x18e0] sm:$0xff] }
 0x123   :  { %v1071_v35 = vld [vmem:[#allocation2 + $0x1cc0] sm:$0xff]  ;;  %v14442_v42 = vcombine.high %v943_v33, %v947_v34  ;;  %9702 = vmatprep.subr.bf16.mxu1 %v14578_v36  ;;  %9662 = vmatpush1.bf16.msra.mxu0 %v14449_v38  ;;  %v14441_v48 = vcombine.low %v943_v33, %v947_v34 }
 0x124   :  { %v1075_v37 = vld [vmem:[#allocation2 + $0x1ce0] sm:$0xff]  ;;  %9703 = vmatpush1.bf16.msra.mxu1 %v14577_v41 }
 0x125   :  { %v935_v43 = vld [vmem:[#allocation2 + $0x1880] sm:$0xff]  ;;  %v14570_v46 = vcombine.high %v1071_v35, %v1075_v37  ;;  %9663 = vmatprep.subr.bf16.mxu0 %v14442_v42  ;;  %v14569_v50 = vcombine.low %v1071_v35, %v1075_v37 }
 0x126   :  { %v939_v44 = vld [vmem:[#allocation2 + $0x18a0] sm:$0xff] }
 0x127   :  { %v1063_v45 = vld [vmem:[#allocation2 + $0x1c80] sm:$0xff]  ;;  %v14434_v52 = vcombine.high %v935_v43, %v939_v44  ;;  %9704 = vmatprep.subr.bf16.mxu1 %v14570_v46  ;;  %9664 = vmatpush1.bf16.msra.mxu0 %v14441_v48  ;;  %v14433_v60 = vcombine.low %v935_v43, %v939_v44 }
 0x128   :  { %v1067_v47 = vld [vmem:[#allocation2 + $0x1ca0] sm:$0xff]  ;;  %9705 = vmatpush1.bf16.msra.mxu1 %v14569_v50 }
 0x129   :  { %v927_v53 = vld [vmem:[#allocation2 + $0x1840] sm:$0xff]  ;;  %v14562_v56 = vcombine.high %v1063_v45, %v1067_v47  ;;  %9665 = vmatprep.subr.bf16.mxu0 %v14434_v52  ;;  %v14561_v61 = vcombine.low %v1063_v45, %v1067_v47 }
 0x12a   :  { %v931_v54 = vld [vmem:[#allocation2 + $0x1860] sm:$0xff] }
 0x12b   :  { %v1055_v55 = vld [vmem:[#allocation2 + $0x1c40] sm:$0xff]  ;;  %v14426_v62 = vcombine.high %v927_v53, %v931_v54  ;;  %9706 = vmatprep.subr.bf16.mxu1 %v14562_v56  ;;  %9666 = vmatpush1.bf16.msra.mxu0 %v14433_v60  ;;  %v14425_v4 = vcombine.low %v927_v53, %v931_v54 }
 0x12c   :  { %v1059_v57 = vld [vmem:[#allocation2 + $0x1c60] sm:$0xff]  ;;  %9707 = vmatpush1.bf16.msra.mxu1 %v14561_v61 }
 0x12d   :  { %v919_v63 = vld [vmem:[#allocation2 + $0x1800] sm:$0xff]  ;;  %v14554_v2 = vcombine.high %v1055_v55, %v1059_v57  ;;  %9667 = vmatprep.subr.bf16.mxu0 %v14426_v62  ;;  %v14553_v7 = vcombine.low %v1055_v55, %v1059_v57 }
 0x12e   :  { %v923_v0 = vld [vmem:[#allocation2 + $0x1820] sm:$0xff] }
 0x12f   :  { %v1047_v1 = vld [vmem:[#allocation2 + $0x1c00] sm:$0xff]  ;;  %v14418_v8 = vcombine.high %v919_v63, %v923_v0  ;;  %9708 = vmatprep.subr.bf16.mxu1 %v14554_v2  ;;  %9668 = vmatpush1.bf16.msra.mxu0 %v14425_v4  ;;  %v14417_v14 = vcombine.low %v919_v63, %v923_v0 }
 0x130   :  { %v1051_v3 = vld [vmem:[#allocation2 + $0x1c20] sm:$0xff]  ;;  %9709 = vmatpush1.bf16.msra.mxu1 %v14553_v7 }
 0x131   :  { %v1039_v9 = vld [vmem:[#allocation2 + $0x1bc0] sm:$0xff]  ;;  %v14546_v12 = vcombine.high %v1047_v1, %v1051_v3  ;;  %9669 = vmatprep.subr.bf16.mxu0 %v14418_v8  ;;  %v14545_v15 = vcombine.low %v1047_v1, %v1051_v3 }
 0x132   :  { %v1043_v10 = vld [vmem:[#allocation2 + $0x1be0] sm:$0xff] }
 0x133   :  { %v1167_v11 = vld [vmem:[#allocation2 + $0x1fc0] sm:$0xff]  ;;  %v14538_v19 = vcombine.high %v1039_v9, %v1043_v10  ;;  %9710 = vmatprep.subr.bf16.mxu1 %v14546_v12  ;;  %9670 = vmatpush1.bf16.msra.mxu0 %v14417_v14  ;;  %v14537_v26 = vcombine.low %v1039_v9, %v1043_v10 }
 0x134   :  { %v1171_v13 = vld [vmem:[#allocation2 + $0x1fe0] sm:$0xff]  ;;  %9711 = vmatpush1.bf16.msra.mxu1 %v14545_v15 }
 0x135   :  { %v1031_v21 = vld [vmem:[#allocation2 + $0x1b80] sm:$0xff]  ;;  %v14666_v24 = vcombine.high %v1167_v11, %v1171_v13  ;;  %9671 = vmatprep.subr.bf16.mxu0 %v14538_v19  ;;  %v14665_v27 = vcombine.low %v1167_v11, %v1171_v13  ;;  %v1689_v13 = vlaneseq }
 0x136   :  { %v1035_v22 = vld [vmem:[#allocation2 + $0x1ba0] sm:$0xff] }
 0x137   :  { %v1159_v23 = vld [vmem:[#allocation2 + $0x1f80] sm:$0xff]  ;;  %v14530_v29 = vcombine.high %v1031_v21, %v1035_v22  ;;  %9712 = vmatprep.subr.bf16.mxu1 %v14666_v24  ;;  %9672 = vmatpush2.bf16.msra.mxu0 %v14537_v26  ;;  %v14529_v36 = vcombine.low %v1031_v21, %v1035_v22  ;;  %v16235_v26 = vshrl.u32 %v1689_v13, 7 }
 0x138   :  { %v1163_v25 = vld [vmem:[#allocation2 + $0x1fa0] sm:$0xff]  ;;  %9713 = vmatpush2.bf16.msra.mxu1 %v14665_v27 }
 0x139   :  { %v1023_v30 = vld [vmem:[#allocation2 + $0x1b40] sm:$0xff]  ;;  %v14658_v34 = vcombine.high %v1159_v23, %v1163_v25  ;;  %9673 = vmatprep.subr.bf16.mxu0 %v14530_v29  ;;  %v14657_v37 = vcombine.low %v1159_v23, %v1163_v25 }
 0x13a   :  { %v1027_v32 = vld [vmem:[#allocation2 + $0x1b60] sm:$0xff] }
 0x13b   :  { %v1151_v33 = vld [vmem:[#allocation2 + $0x1f40] sm:$0xff]  ;;  %v14522_v38 = vcombine.high %v1023_v30, %v1027_v32  ;;  %9714 = vmatprep.subr.bf16.mxu1 %v14658_v34  ;;  %9674 = vmatpush2.bf16.msra.mxu0 %v14529_v36  ;;  %v14521_v46 = vcombine.low %v1023_v30, %v1027_v32 }
 0x13c   :  { %v1155_v35 = vld [vmem:[#allocation2 + $0x1f60] sm:$0xff]  ;;  %9715 = vmatpush2.bf16.msra.mxu1 %v14657_v37  ;;  %v1691_v37 = vsub.s32 0, %v16235_v26 }
 0x13d   :  { %v1015_v41 = vld [vmem:[#allocation2 + $0x1b00] sm:$0xff]  ;;  %v14650_v44 = vcombine.high %v1151_v33, %v1155_v35  ;;  %9675 = vmatprep.subr.bf16.mxu0 %v14522_v38  ;;  %v14649_v47 = vcombine.low %v1151_v33, %v1155_v35 }
 0x13e   :  { %v1019_v42 = vld [vmem:[#allocation2 + $0x1b20] sm:$0xff] }
 0x13f   :  { %v1143_v43 = vld [vmem:[#allocation2 + $0x1f00] sm:$0xff]  ;;  %v14514_v48 = vcombine.high %v1015_v41, %v1019_v42  ;;  %9716 = vmatprep.subr.bf16.mxu1 %v14650_v44  ;;  %9676 = vmatpush2.bf16.msra.mxu0 %v14521_v46  ;;  %v14513_v56 = vcombine.low %v1015_v41, %v1019_v42  ;;  %v1695_v46 = vsub.s32 1, %v16235_v26 }
 0x140   :  { %v1147_v45 = vld [vmem:[#allocation2 + $0x1f20] sm:$0xff]  ;;  %9717 = vmatpush2.bf16.msra.mxu1 %v14649_v47 }
 0x141   :  { %v1007_v50 = vld [vmem:[#allocation2 + $0x1ac0] sm:$0xff]  ;;  %v14642_v52 = vcombine.high %v1143_v43, %v1147_v45  ;;  %9677 = vmatprep.subr.bf16.mxu0 %v14514_v48  ;;  %v14641_v57 = vcombine.low %v1143_v43, %v1147_v45  ;;  %v117_v43 = vld [vmem:[%s16581_s0 + $0x70] sm:$0xff] }
 0x142   :  { %v1011_v53 = vld [vmem:[#allocation2 + $0x1ae0] sm:$0xff] }
 0x143   :  { %v1135_v54 = vld [vmem:[#allocation2 + $0x1ec0] sm:$0xff]  ;;  %v14506_v60 = vcombine.high %v1007_v50, %v1011_v53  ;;  %9718 = vmatprep.subr.bf16.mxu1 %v14642_v52  ;;  %9678 = vmatpush2.bf16.msra.mxu0 %v14513_v56  ;;  %v14505_v2 = vcombine.low %v1007_v50, %v1011_v53  ;;  %v16252_v56 = vpack.c.bf16 %v117_v43, %v117_v43 }
 0x144   :  { %v1139_v55 = vld [vmem:[#allocation2 + $0x1ee0] sm:$0xff]  ;;  %9719 = vmatpush2.bf16.msra.mxu1 %v14641_v57 }
 0x145   :  { %v14634_v61 = vcombine.high %v1135_v54, %v1139_v55  ;;  %v999_v62 = vld [vmem:[#allocation2 + $0x1a80] sm:$0xff]  ;;  %9679 = vmatprep.subr.bf16.mxu0 %v14506_v60  ;;  %v14633_v3 = vcombine.low %v1135_v54, %v1139_v55  ;;  %v120_v54 = vld [vmem:[%s16581_s0 + $0x88] sm:$0xff]  ;;  %v122_v60 = vld [vmem:[%s16581_s0 + $0x98] sm:$0xff] }
 0x146   :  { %v1003_v63 = vld [vmem:[#allocation2 + $0x1aa0] sm:$0xff] }
 0x147   :  { %v1127_v0 = vld [vmem:[#allocation2 + $0x1e80] sm:$0xff]  ;;  %v14498_v4 = vcombine.high %v999_v62, %v1003_v63  ;;  %9720 = vmatprep.subr.bf16.mxu1 %v14634_v61  ;;  %9680 = vmatpush2.bf16.msra.mxu0 %v14505_v2  ;;  %v14497_v12 = vcombine.low %v999_v62, %v1003_v63 }
 0x148   :  { %v1131_v1 = vld [vmem:[#allocation2 + $0x1ea0] sm:$0xff]  ;;  %9721 = vmatpush2.bf16.msra.mxu1 %v14633_v3  ;;  %v16259_v3 = vpack.c.bf16 %v120_v54, %v120_v54 }
 0x149   :  { %v14626_v7 = vcombine.high %v1127_v0, %v1131_v1  ;;  %v991_v8 = vld [vmem:[#allocation2 + $0x1a40] sm:$0xff]  ;;  %9681 = vmatprep.subr.bf16.mxu0 %v14498_v4  ;;  %v14625_v14 = vcombine.low %v1127_v0, %v1131_v1 }
 0x14a   :  { %v995_v9 = vld [vmem:[#allocation2 + $0x1a60] sm:$0xff] }
 0x14b   :  { %v1119_v10 = vld [vmem:[#allocation2 + $0x1e40] sm:$0xff]  ;;  %v14490_v15 = vcombine.high %v991_v8, %v995_v9  ;;  %9722 = vmatprep.subr.bf16.mxu1 %v14626_v7  ;;  %9682 = vmatpush2.bf16.msra.mxu0 %v14497_v12  ;;  %v14489_v25 = vcombine.low %v991_v8, %v995_v9  ;;  %v16262_v9 = vpack.c.bf16 %v122_v60, %v122_v60 }
 0x14c   :  { %v1123_v11 = vld [vmem:[#allocation2 + $0x1e60] sm:$0xff]  ;;  %9723 = vmatpush2.bf16.msra.mxu1 %v14625_v14 }
 0x14d   :  { %v14618_v19 = vcombine.high %v1119_v10, %v1123_v11  ;;  %v983_v21 = vld [vmem:[#allocation2 + $0x1a00] sm:$0xff]  ;;  %9683 = vmatprep.subr.bf16.mxu0 %v14490_v15  ;;  %v14617_v27 = vcombine.low %v1119_v10, %v1123_v11 }
 0x14e   :  { %v987_v22 = vld [vmem:[#allocation2 + $0x1a20] sm:$0xff] }
 0x14f   :  { %v1111_v23 = vld [vmem:[#allocation2 + $0x1e00] sm:$0xff]  ;;  %v14482_v29 = vcombine.high %v983_v21, %v987_v22  ;;  %9724 = vmatprep.subr.bf16.mxu1 %v14618_v19  ;;  %9684 = vmatpush2.bf16.msra.mxu0 %v14489_v25  ;;  %v14481_v36 = vcombine.low %v983_v21, %v987_v22 }
 0x150   :  { %v1115_v24 = vld [vmem:[#allocation2 + $0x1e20] sm:$0xff]  ;;  %9725 = vmatpush2.bf16.msra.mxu1 %v14617_v27 }
 0x151   :  { %v14610_v30 = vcombine.high %v1111_v23, %v1115_v24  ;;  %v1231_v32 = vld [vmem:[#allocation2 + $0x21c0] sm:$0xff]  ;;  %9685 = vmatprep.subr.bf16.mxu0 %v14482_v29  ;;  %v14609_v41 = vcombine.low %v1111_v23, %v1115_v24 }
 0x152   :  { %v1235_v33 = vld [vmem:[#allocation2 + $0x21e0] sm:$0xff] }
 0x153   :  { %v1359_v34 = vld [vmem:[#allocation2 + $0x25c0] sm:$0xff]  ;;  %v14730_v44 = vcombine.high %v1231_v32, %v1235_v33  ;;  %9726 = vmatprep.subr.bf16.mxu1 %v14610_v30  ;;  %9686 = vmatpush2.bf16.msra.mxu0 %v14481_v36  ;;  %v14729_v57 = vcombine.low %v1231_v32, %v1235_v33 }
 0x154   :  { %v1363_v35 = vld [vmem:[#allocation2 + $0x25e0] sm:$0xff]  ;;  %9727 = vmatpush2.bf16.msra.mxu1 %v14609_v41  ;;  %v9484_v11 = vpop.f32.mrf.mxu1 }
 0x155   :  { %v115_v38 = vld [vmem:[%s16581_s0 + $0x60] sm:$0xff]  ;;  %v14858_v45 = vcombine.high %v1359_v34, %v1363_v35  ;;  %9737 = vmatprep.subr.bf16.mxu0 %v14730_v44  ;;  %v14857_v61 = vcombine.low %v1359_v34, %v1363_v35  ;;  %v9443_v4 = vpop.f32.mrf.mxu0 }
 0x156   :  { %v1687_v42 = vld [vmem:[#allocation4] sm:$0xff]  ;;  %v16245_v50 = vpack.c.bf16 %v115_v38, %v115_v38  ;;  %v9486_v22 = vpop.f32.mrf.mxu1 }
 0x157   :  { %v1223_v47 = vld [vmem:[#allocation2 + $0x2180] sm:$0xff]  ;;  %v1692_v55 = vrot.slane %v1687_v42, %v1691_v37  ;;  %9778 = vmatprep.subr.bf16.mxu1 %v14858_v45  ;;  %v1696_v63 = vrot.slane %v1687_v42, %v1695_v46  ;;  %9729 = vmatmul.mubr.bf16.vlgmr.msra.gmra.mxu1 %v16252_v56  ;;  %v9445_v13 = vpop.f32.mrf.mxu0 }
 0x158   :  { %v1227_v48 = vld [vmem:[#allocation2 + $0x21a0] sm:$0xff]  ;;  %9688 = vmatmul.mubr.bf16.vlgmr.msra.gmra.mxu0 %v16245_v50  ;;  %9779 = vmatpush1.bf16.msra.mxu1 %v14857_v61  ;;  %v9488_v33 = vpop.f32.mrf.mxu1 }
 0x159   :  { %v1351_v52 = vld [vmem:[#allocation2 + $0x2580] sm:$0xff]  ;;  %v14722_v62 = vcombine.high %v1223_v47, %v1227_v48  ;;  %v9444_v10 = vadd.f32 %v9443_v4, %v1692_v55  ;;  %9738 = vmatpush1.bf16.msra.mxu0 %v14729_v57  ;;  %v14721_v12 = vcombine.low %v1223_v47, %v1227_v48  ;;  %v9446_v21 = vadd.f32 %v9445_v13, %v1696_v63  ;;  %v9447_v27 = vpop.f32.mrf.mxu0 }
 0x15a   :  { %v1355_v53 = vld [vmem:[#allocation2 + $0x25a0] sm:$0xff]  ;;  %9769 = vmatprep.mubr.bf16.mxu0 %v16259_v3  ;;  %9810 = vmatprep.mubr.bf16.mxu1 %v16262_v9  ;;  %v9489_v41 = vpop.f32.mrf.mxu1 }
 0x15b   :  { %v14850_v0 = vcombine.high %v1351_v52, %v1355_v53  ;;  %v1215_v1 = vld [vmem:[#allocation2 + $0x2140] sm:$0xff]  ;;  %9739 = vmatprep.subr.bf16.mxu0 %v14722_v62  ;;  %v14849_v14 = vcombine.low %v1351_v52, %v1355_v53  ;;  %v16265_v19 = vadd.f32 %v9484_v11, %v9444_v10  ;;  %v16269_v32 = vadd.f32 %v9486_v22, %v9446_v21  ;;  %v9448_v35 = vpop.f32.mrf.mxu0 }
 0x15c   :  { %v1219_v2 = vld [vmem:[#allocation2 + $0x2160] sm:$0xff] }
 0x15d   :  { %v1343_v7 = vld [vmem:[#allocation2 + $0x2540] sm:$0xff]  ;;  %v14714_v15 = vcombine.high %v1215_v1, %v1219_v2  ;;  %9780 = vmatprep.subr.bf16.mxu1 %v14850_v0  ;;  %9740 = vmatpush1.bf16.msra.mxu0 %v14721_v12  ;;  %v14713_v34 = vcombine.low %v1215_v1, %v1219_v2 }
 0x15e   :  { %v1347_v8 = vld [vmem:[#allocation2 + $0x2560] sm:$0xff]  ;;  %9781 = vmatpush1.bf16.msra.mxu1 %v14849_v14 }
 0x15f   :  { %v14842_v23 = vcombine.high %v1343_v7, %v1347_v8  ;;  %v1207_v24 = vld [vmem:[#allocation2 + $0x2100] sm:$0xff]  ;;  %9741 = vmatprep.subr.bf16.mxu0 %v14714_v15  ;;  %v14841_v36 = vcombine.low %v1343_v7, %v1347_v8 }
 0x160   :  { %v1211_v25 = vld [vmem:[#allocation2 + $0x2120] sm:$0xff] }
 0x161   :  { %v1335_v29 = vld [vmem:[#allocation2 + $0x2500] sm:$0xff]  ;;  %v14706_v38 = vcombine.high %v1207_v24, %v1211_v25  ;;  %9782 = vmatprep.subr.bf16.mxu1 %v14842_v23  ;;  %9742 = vmatpush1.bf16.msra.mxu0 %v14713_v34  ;;  %v14705_v48 = vcombine.low %v1207_v24, %v1211_v25 }
 0x162   :  { %v1339_v30 = vld [vmem:[#allocation2 + $0x2520] sm:$0xff]  ;;  %9783 = vmatpush1.bf16.msra.mxu1 %v14841_v36 }
 0x163   :  { %v14834_v42 = vcombine.high %v1335_v29, %v1339_v30  ;;  %v1199_v43 = vld [vmem:[#allocation2 + $0x20c0] sm:$0xff]  ;;  %9743 = vmatprep.subr.bf16.mxu0 %v14706_v38  ;;  %v14833_v52 = vcombine.low %v1335_v29, %v1339_v30 }
 0x164   :  { %v1203_v44 = vld [vmem:[#allocation2 + $0x20e0] sm:$0xff] }
 0x165   :  { %v1327_v45 = vld [vmem:[#allocation2 + $0x24c0] sm:$0xff]  ;;  %v14698_v53 = vcombine.high %v1199_v43, %v1203_v44  ;;  %9784 = vmatprep.subr.bf16.mxu1 %v14834_v42  ;;  %9744 = vmatpush1.bf16.msra.mxu0 %v14705_v48  ;;  %v14697_v62 = vcombine.low %v1199_v43, %v1203_v44 }
 0x166   :  { %v1331_v47 = vld [vmem:[#allocation2 + $0x24e0] sm:$0xff]  ;;  %9785 = vmatpush1.bf16.msra.mxu1 %v14833_v52 }
 0x167   :  { %v14826_v54 = vcombine.high %v1327_v45, %v1331_v47  ;;  %v1191_v55 = vld [vmem:[#allocation2 + $0x2080] sm:$0xff]  ;;  %9745 = vmatprep.subr.bf16.mxu0 %v14698_v53  ;;  %v14825_v63 = vcombine.low %v1327_v45, %v1331_v47 }
 0x168   :  { %v1195_v57 = vld [vmem:[#allocation2 + $0x20a0] sm:$0xff] }
 0x169   :  { %v1319_v60 = vld [vmem:[#allocation2 + $0x2480] sm:$0xff]  ;;  %v14690_v0 = vcombine.high %v1191_v55, %v1195_v57  ;;  %9786 = vmatprep.subr.bf16.mxu1 %v14826_v54  ;;  %9746 = vmatpush1.bf16.msra.mxu0 %v14697_v62  ;;  %v14689_v10 = vcombine.low %v1191_v55, %v1195_v57 }
 0x16a   :  { %v1323_v61 = vld [vmem:[#allocation2 + $0x24a0] sm:$0xff]  ;;  %9787 = vmatpush1.bf16.msra.mxu1 %v14825_v63 }
 0x16b   :  { %v14818_v1 = vcombine.high %v1319_v60, %v1323_v61  ;;  %v1183_v2 = vld [vmem:[#allocation2 + $0x2040] sm:$0xff]  ;;  %9747 = vmatprep.subr.bf16.mxu0 %v14690_v0  ;;  %v14817_v11 = vcombine.low %v1319_v60, %v1323_v61 }
 0x16c   :  { %v1187_v4 = vld [vmem:[#allocation2 + $0x2060] sm:$0xff] }
 0x16d   :  { %v1311_v7 = vld [vmem:[#allocation2 + $0x2440] sm:$0xff]  ;;  %v14682_v12 = vcombine.high %v1183_v2, %v1187_v4  ;;  %9788 = vmatprep.subr.bf16.mxu1 %v14818_v1  ;;  %9748 = vmatpush1.bf16.msra.mxu0 %v14689_v10  ;;  %v14681_v23 = vcombine.low %v1183_v2, %v1187_v4 }
 0x16e   :  { %v1315_v8 = vld [vmem:[#allocation2 + $0x2460] sm:$0xff]  ;;  %9789 = vmatpush1.bf16.msra.mxu1 %v14817_v11 }
 0x16f   :  { %v14810_v13 = vcombine.high %v1311_v7, %v1315_v8  ;;  %v1175_v14 = vld [vmem:[#allocation2 + $0x2000] sm:$0xff]  ;;  %9749 = vmatprep.subr.bf16.mxu0 %v14682_v12  ;;  %v14809_v24 = vcombine.low %v1311_v7, %v1315_v8 }
 0x170   :  { %v1179_v15 = vld [vmem:[#allocation2 + $0x2020] sm:$0xff] }
 0x171   :  { %v1303_v21 = vld [vmem:[#allocation2 + $0x2400] sm:$0xff]  ;;  %v14674_v25 = vcombine.high %v1175_v14, %v1179_v15  ;;  %9790 = vmatprep.subr.bf16.mxu1 %v14810_v13  ;;  %9750 = vmatpush1.bf16.msra.mxu0 %v14681_v23  ;;  %v14673_v35 = vcombine.low %v1175_v14, %v1179_v15 }
 0x172   :  { %v1307_v22 = vld [vmem:[#allocation2 + $0x2420] sm:$0xff]  ;;  %9791 = vmatpush1.bf16.msra.mxu1 %v14809_v24 }
 0x173   :  { %v14802_v27 = vcombine.high %v1303_v21, %v1307_v22  ;;  %v1295_v29 = vld [vmem:[#allocation2 + $0x23c0] sm:$0xff]  ;;  %9751 = vmatprep.subr.bf16.mxu0 %v14674_v25  ;;  %v14801_v36 = vcombine.low %v1303_v21, %v1307_v22 }
 0x174   :  { %v1299_v30 = vld [vmem:[#allocation2 + $0x23e0] sm:$0xff] }
 0x175   :  { %v1423_v33 = vld [vmem:[#allocation2 + $0x27c0] sm:$0xff]  ;;  %v14794_v38 = vcombine.high %v1295_v29, %v1299_v30  ;;  %9792 = vmatprep.subr.bf16.mxu1 %v14802_v27  ;;  %9752 = vmatpush1.bf16.msra.mxu0 %v14673_v35  ;;  %v14793_v47 = vcombine.low %v1295_v29, %v1299_v30 }
 0x176   :  { %v1427_v34 = vld [vmem:[#allocation2 + $0x27e0] sm:$0xff]  ;;  %9793 = vmatpush1.bf16.msra.mxu1 %v14801_v36 }
 0x177   :  { %v14922_v41 = vcombine.high %v1423_v33, %v1427_v34  ;;  %v1287_v42 = vld [vmem:[#allocation2 + $0x2380] sm:$0xff]  ;;  %9753 = vmatprep.subr.bf16.mxu0 %v14794_v38  ;;  %v14921_v48 = vcombine.low %v1423_v33, %v1427_v34 }
 0x178   :  { %v1291_v43 = vld [vmem:[#allocation2 + $0x23a0] sm:$0xff] }
 0x179   :  { %v1415_v44 = vld [vmem:[#allocation2 + $0x2780] sm:$0xff]  ;;  %v14786_v52 = vcombine.high %v1287_v42, %v1291_v43  ;;  %9794 = vmatprep.subr.bf16.mxu1 %v14922_v41  ;;  %9754 = vmatpush2.bf16.msra.mxu0 %v14793_v47  ;;  %v14785_v61 = vcombine.low %v1287_v42, %v1291_v43 }
 0x17a   :  { %v1419_v45 = vld [vmem:[#allocation2 + $0x27a0] sm:$0xff]  ;;  %9795 = vmatpush2.bf16.msra.mxu1 %v14921_v48 }
 0x17b   :  { %v14914_v53 = vcombine.high %v1415_v44, %v1419_v45  ;;  %v1279_v54 = vld [vmem:[#allocation2 + $0x2340] sm:$0xff]  ;;  %9755 = vmatprep.subr.bf16.mxu0 %v14786_v52  ;;  %v14913_v62 = vcombine.low %v1415_v44, %v1419_v45 }
 0x17c   :  { %v1283_v55 = vld [vmem:[#allocation2 + $0x2360] sm:$0xff] }
 0x17d   :  { %v1407_v57 = vld [vmem:[#allocation2 + $0x2740] sm:$0xff]  ;;  %v14778_v63 = vcombine.high %v1279_v54, %v1283_v55  ;;  %9796 = vmatprep.subr.bf16.mxu1 %v14914_v53  ;;  %9756 = vmatpush2.bf16.msra.mxu0 %v14785_v61  ;;  %v14777_v8 = vcombine.low %v1279_v54, %v1283_v55 }
 0x17e   :  { %v1411_v60 = vld [vmem:[#allocation2 + $0x2760] sm:$0xff]  ;;  %9797 = vmatpush2.bf16.msra.mxu1 %v14913_v62 }
 0x17f   :  { %v14906_v0 = vcombine.high %v1407_v57, %v1411_v60  ;;  %v1271_v1 = vld [vmem:[#allocation2 + $0x2300] sm:$0xff]  ;;  %9757 = vmatprep.subr.bf16.mxu0 %v14778_v63  ;;  %v14905_v10 = vcombine.low %v1407_v57, %v1411_v60 }
 0x180   :  { %v1275_v2 = vld [vmem:[#allocation2 + $0x2320] sm:$0xff] }
 0x181   :  { %v1399_v4 = vld [vmem:[#allocation2 + $0x2700] sm:$0xff]  ;;  %v14770_v11 = vcombine.high %v1271_v1, %v1275_v2  ;;  %9798 = vmatprep.subr.bf16.mxu1 %v14906_v0  ;;  %9758 = vmatpush2.bf16.msra.mxu0 %v14777_v8  ;;  %v14769_v22 = vcombine.low %v1271_v1, %v1275_v2 }
 0x182   :  { %v1403_v7 = vld [vmem:[#allocation2 + $0x2720] sm:$0xff]  ;;  %9799 = vmatpush2.bf16.msra.mxu1 %v14905_v10 }
 0x183   :  { %v14898_v12 = vcombine.high %v1399_v4, %v1403_v7  ;;  %v1263_v13 = vld [vmem:[#allocation2 + $0x22c0] sm:$0xff]  ;;  %9759 = vmatprep.subr.bf16.mxu0 %v14770_v11  ;;  %v14897_v23 = vcombine.low %v1399_v4, %v1403_v7  ;;  %v121_v11 = vld [vmem:[%s16581_s0 + $0x90] sm:$0xff] }
 0x184   :  { %v1267_v14 = vld [vmem:[#allocation2 + $0x22e0] sm:$0xff] }
 0x185   :  { %v1391_v15 = vld [vmem:[#allocation2 + $0x26c0] sm:$0xff]  ;;  %v14762_v24 = vcombine.high %v1263_v13, %v1267_v14  ;;  %9800 = vmatprep.subr.bf16.mxu1 %v14898_v12  ;;  %9760 = vmatpush2.bf16.msra.mxu0 %v14769_v22  ;;  %v14761_v34 = vcombine.low %v1263_v13, %v1267_v14 }
 0x186   :  { %v1395_v21 = vld [vmem:[#allocation2 + $0x26e0] sm:$0xff]  ;;  %9801 = vmatpush2.bf16.msra.mxu1 %v14897_v23 }
 0x187   :  { %v14890_v25 = vcombine.high %v1391_v15, %v1395_v21  ;;  %v1255_v27 = vld [vmem:[#allocation2 + $0x2280] sm:$0xff]  ;;  %9761 = vmatprep.subr.bf16.mxu0 %v14762_v24  ;;  %v14889_v35 = vcombine.low %v1391_v15, %v1395_v21  ;;  %v124_v24 = vld [vmem:[%s16581_s0 + $0xa8] sm:$0xff] }
 0x188   :  { %v1259_v29 = vld [vmem:[#allocation2 + $0x22a0] sm:$0xff] }
 0x189   :  { %v1383_v30 = vld [vmem:[#allocation2 + $0x2680] sm:$0xff]  ;;  %v14754_v36 = vcombine.high %v1255_v27, %v1259_v29  ;;  %9802 = vmatprep.subr.bf16.mxu1 %v14890_v25  ;;  %9762 = vmatpush2.bf16.msra.mxu0 %v14761_v34  ;;  %v14753_v45 = vcombine.low %v1255_v27, %v1259_v29  ;;  %v16282_v25 = vpack.c.bf16 %v121_v11, %v121_v11  ;;  %v126_v29 = vld [vmem:[%s16581_s0 + $0xb8] sm:$0xff] }
 0x18a   :  { %v1387_v33 = vld [vmem:[#allocation2 + $0x26a0] sm:$0xff]  ;;  %9803 = vmatpush2.bf16.msra.mxu1 %v14889_v35 }
 0x18b   :  { %v14882_v38 = vcombine.high %v1383_v30, %v1387_v33  ;;  %v1247_v41 = vld [vmem:[#allocation2 + $0x2240] sm:$0xff]  ;;  %9763 = vmatprep.subr.bf16.mxu0 %v14754_v36  ;;  %v14881_v47 = vcombine.low %v1383_v30, %v1387_v33 }
 0x18c   :  { %v1251_v42 = vld [vmem:[#allocation2 + $0x2260] sm:$0xff] }
 0x18d   :  { %v1375_v43 = vld [vmem:[#allocation2 + $0x2640] sm:$0xff]  ;;  %v14746_v48 = vcombine.high %v1247_v41, %v1251_v42  ;;  %9804 = vmatprep.subr.bf16.mxu1 %v14882_v38  ;;  %9764 = vmatpush2.bf16.msra.mxu0 %v14753_v45  ;;  %v14745_v60 = vcombine.low %v1247_v41, %v1251_v42  ;;  %v16287_v38 = vpack.c.bf16 %v124_v24, %v124_v24 }
 0x18e   :  { %v1379_v44 = vld [vmem:[#allocation2 + $0x2660] sm:$0xff]  ;;  %9805 = vmatpush2.bf16.msra.mxu1 %v14881_v47 }
 0x18f   :  { %v14874_v52 = vcombine.high %v1375_v43, %v1379_v44  ;;  %v1239_v53 = vld [vmem:[#allocation2 + $0x2200] sm:$0xff]  ;;  %9765 = vmatprep.subr.bf16.mxu0 %v14746_v48  ;;  %v14873_v61 = vcombine.low %v1375_v43, %v1379_v44  ;;  %v16290_v44 = vpack.c.bf16 %v126_v29, %v126_v29 }
 0x190   :  { %v1243_v54 = vld [vmem:[#allocation2 + $0x2220] sm:$0xff] }
 0x191   :  { %v1367_v55 = vld [vmem:[#allocation2 + $0x2600] sm:$0xff]  ;;  %v14738_v62 = vcombine.high %v1239_v53, %v1243_v54  ;;  %9806 = vmatprep.subr.bf16.mxu1 %v14874_v52  ;;  %9766 = vmatpush2.bf16.msra.mxu0 %v14745_v60  ;;  %v14737_v7 = vcombine.low %v1239_v53, %v1243_v54 }
 0x192   :  { %v1371_v57 = vld [vmem:[#allocation2 + $0x2620] sm:$0xff]  ;;  %9807 = vmatpush2.bf16.msra.mxu1 %v14873_v61 }
 0x193   :  { %v14866_v63 = vcombine.high %v1367_v55, %v1371_v57  ;;  %v1487_v0 = vld [vmem:[#allocation2 + $0x29c0] sm:$0xff]  ;;  %9767 = vmatprep.subr.bf16.mxu0 %v14738_v62  ;;  %v14865_v10 = vcombine.low %v1367_v55, %v1371_v57 }
 0x194   :  { %v1491_v1 = vld [vmem:[#allocation2 + $0x29e0] sm:$0xff] }
 0x195   :  { %v1615_v2 = vld [vmem:[#allocation2 + $0x2dc0] sm:$0xff]  ;;  %v14986_v12 = vcombine.high %v1487_v0, %v1491_v1  ;;  %9808 = vmatprep.subr.bf16.mxu1 %v14866_v63  ;;  %9768 = vmatpush2.bf16.msra.mxu0 %v14737_v7  ;;  %v14985_v27 = vcombine.low %v1487_v0, %v1491_v1  ;;  %v9525_v41 = vpop.f32.mrf.mxu0  ;;  %v9566_v47 = vpop.f32.mrf.mxu1 }
 0x196   :  { %v1619_v4 = vld [vmem:[#allocation2 + $0x2de0] sm:$0xff]  ;;  %9809 = vmatpush2.bf16.msra.mxu1 %v14865_v10  ;;  %v9526_v45 = vadd.f32 %v9525_v41, %v16265_v19 }
 0x197   :  { %v119_v8 = vld [vmem:[%s16581_s0 + $0x80] sm:$0xff]  ;;  %v15114_v13 = vcombine.high %v1615_v2, %v1619_v4  ;;  %9819 = vmatprep.subr.bf16.mxu0 %v14986_v12  ;;  %v15113_v30 = vcombine.low %v1615_v2, %v1619_v4  ;;  %v9527_v52 = vpop.f32.mrf.mxu0  ;;  %v9568_v60 = vpop.f32.mrf.mxu1 }
 0x198   :  { %v1479_v14 = vld [vmem:[#allocation2 + $0x2980] sm:$0xff]  ;;  %v16277_v21 = vpack.c.bf16 %v119_v8, %v119_v8  ;;  %v16294_v55 = vadd.f32 %v9566_v47, %v9526_v45  ;;  %v9528_v57 = vadd.f32 %v9527_v52, %v16269_v32 }
 0x199   :  { %v1483_v15 = vld [vmem:[#allocation2 + $0x29a0] sm:$0xff]  ;;  %9860 = vmatprep.subr.bf16.mxu1 %v15114_v13  ;;  %9811 = vmatmul.mubr.bf16.vlgmr.msra.gmra.mxu1 %v16282_v25  ;;  %v9529_v19 = vpop.f32.mrf.mxu0  ;;  %v9570_v4 = vpop.f32.mrf.mxu1 }
 0x19a   :  { %v1607_v22 = vld [vmem:[#allocation2 + $0x2d80] sm:$0xff]  ;;  %v14978_v33 = vcombine.high %v1479_v14, %v1483_v15  ;;  %9770 = vmatmul.mubr.bf16.vlgmr.msra.gmra.mxu0 %v16277_v21  ;;  %v14977_v48 = vcombine.low %v1479_v14, %v1483_v15  ;;  %9861 = vmatpush1.bf16.msra.mxu1 %v15113_v30  ;;  %v16299_v2 = vadd.f32 %v9568_v60, %v9528_v57 }
 0x19b   :  { %v1611_v23 = vld [vmem:[#allocation2 + $0x2da0] sm:$0xff]  ;;  %9820 = vmatpush1.bf16.msra.mxu0 %v14985_v27  ;;  %9851 = vmatprep.mubr.bf16.mxu0 %v16287_v38  ;;  %v9530_v8 = vpop.f32.mrf.mxu0  ;;  %v9571_v11 = vpop.f32.mrf.mxu1 }
 0x19c   :  { %v15106_v34 = vcombine.high %v1607_v22, %v1611_v23  ;;  %v1471_v35 = vld [vmem:[#allocation2 + $0x2940] sm:$0xff]  ;;  %9821 = vmatprep.subr.bf16.mxu0 %v14978_v33  ;;  %v15105_v53 = vcombine.low %v1607_v22, %v1611_v23  ;;  %9892 = vmatprep.mubr.bf16.mxu1 %v16290_v44 }
 0x19d   :  { %v1475_v36 = vld [vmem:[#allocation2 + $0x2960] sm:$0xff] }
 0x19e   :  { %v1599_v42 = vld [vmem:[#allocation2 + $0x2d40] sm:$0xff]  ;;  %v14970_v54 = vcombine.high %v1471_v35, %v1475_v36  ;;  %9862 = vmatprep.subr.bf16.mxu1 %v15106_v34  ;;  %v14969_v7 = vcombine.low %v1471_v35, %v1475_v36 }
 0x19f   :  { %v1603_v43 = vld [vmem:[#allocation2 + $0x2d60] sm:$0xff]  ;;  %9822 = vmatpush1.bf16.msra.mxu0 %v14977_v48  ;;  %9863 = vmatpush1.bf16.msra.mxu1 %v15105_v53 }
 0x1a0   :  { %v15098_v61 = vcombine.high %v1599_v42, %v1603_v43  ;;  %v1463_v62 = vld [vmem:[#allocation2 + $0x2900] sm:$0xff]  ;;  %9823 = vmatprep.subr.bf16.mxu0 %v14970_v54  ;;  %v15097_v32 = vcombine.low %v1599_v42, %v1603_v43 }
 0x1a1   :  { %v1467_v63 = vld [vmem:[#allocation2 + $0x2920] sm:$0xff] }
 0x1a2   :  { %v1591_v0 = vld [vmem:[#allocation2 + $0x2d00] sm:$0xff]  ;;  %v14962_v10 = vcombine.high %v1463_v62, %v1467_v63  ;;  %9864 = vmatprep.subr.bf16.mxu1 %v15098_v61  ;;  %v14961_v23 = vcombine.low %v1463_v62, %v1467_v63 }
 0x1a3   :  { %v1595_v1 = vld [vmem:[#allocation2 + $0x2d20] sm:$0xff]  ;;  %9824 = vmatpush1.bf16.msra.mxu0 %v14969_v7  ;;  %9865 = vmatpush1.bf16.msra.mxu1 %v15097_v32 }
 0x1a4   :  { %v15090_v12 = vcombine.high %v1591_v0, %v1595_v1  ;;  %v1455_v13 = vld [vmem:[#allocation2 + $0x28c0] sm:$0xff]  ;;  %9825 = vmatprep.subr.bf16.mxu0 %v14962_v10  ;;  %v15089_v24 = vcombine.low %v1591_v0, %v1595_v1 }
 0x1a5   :  { %v1459_v14 = vld [vmem:[#allocation2 + $0x28e0] sm:$0xff] }
 0x1a6   :  { %v1583_v15 = vld [vmem:[#allocation2 + $0x2cc0] sm:$0xff]  ;;  %v14954_v27 = vcombine.high %v1455_v13, %v1459_v14  ;;  %9866 = vmatprep.subr.bf16.mxu1 %v15090_v12  ;;  %v14953_v36 = vcombine.low %v1455_v13, %v1459_v14 }
 0x1a7   :  { %v1587_v22 = vld [vmem:[#allocation2 + $0x2ce0] sm:$0xff]  ;;  %9826 = vmatpush1.bf16.msra.mxu0 %v14961_v23  ;;  %9867 = vmatpush1.bf16.msra.mxu1 %v15089_v24 }
 0x1a8   :  { %v15082_v29 = vcombine.high %v1583_v15, %v1587_v22  ;;  %v1447_v30 = vld [vmem:[#allocation2 + $0x2880] sm:$0xff]  ;;  %9827 = vmatprep.subr.bf16.mxu0 %v14954_v27  ;;  %v15081_v41 = vcombine.low %v1583_v15, %v1587_v22 }
 0x1a9   :  { %v1451_v33 = vld [vmem:[#allocation2 + $0x28a0] sm:$0xff] }
 0x1aa   :  { %v1575_v34 = vld [vmem:[#allocation2 + $0x2c80] sm:$0xff]  ;;  %v14946_v42 = vcombine.high %v1447_v30, %v1451_v33  ;;  %9868 = vmatprep.subr.bf16.mxu1 %v15082_v29  ;;  %v14945_v53 = vcombine.low %v1447_v30, %v1451_v33 }
 0x1ab   :  { %v1579_v35 = vld [vmem:[#allocation2 + $0x2ca0] sm:$0xff]  ;;  %9828 = vmatpush1.bf16.msra.mxu0 %v14953_v36  ;;  %9869 = vmatpush1.bf16.msra.mxu1 %v15081_v41 }
 0x1ac   :  { %v15074_v43 = vcombine.high %v1575_v34, %v1579_v35  ;;  %v1439_v45 = vld [vmem:[#allocation2 + $0x2840] sm:$0xff]  ;;  %9829 = vmatprep.subr.bf16.mxu0 %v14946_v42  ;;  %v15073_v54 = vcombine.low %v1575_v34, %v1579_v35 }
 0x1ad   :  { %v1443_v47 = vld [vmem:[#allocation2 + $0x2860] sm:$0xff] }
 0x1ae   :  { %v1567_v48 = vld [vmem:[#allocation2 + $0x2c40] sm:$0xff]  ;;  %v14938_v57 = vcombine.high %v1439_v45, %v1443_v47  ;;  %9870 = vmatprep.subr.bf16.mxu1 %v15074_v43  ;;  %v14937_v0 = vcombine.low %v1439_v45, %v1443_v47 }
 0x1af   :  { %v1571_v52 = vld [vmem:[#allocation2 + $0x2c60] sm:$0xff]  ;;  %9830 = vmatpush1.bf16.msra.mxu0 %v14945_v53  ;;  %9871 = vmatpush1.bf16.msra.mxu1 %v15073_v54 }
 0x1b0   :  { %v15066_v60 = vcombine.high %v1567_v48, %v1571_v52  ;;  %v1431_v61 = vld [vmem:[#allocation2 + $0x2800] sm:$0xff]  ;;  %9831 = vmatprep.subr.bf16.mxu0 %v14938_v57  ;;  %v15065_v1 = vcombine.low %v1567_v48, %v1571_v52 }
 0x1b1   :  { %v1435_v62 = vld [vmem:[#allocation2 + $0x2820] sm:$0xff] }
 0x1b2   :  { %v1559_v63 = vld [vmem:[#allocation2 + $0x2c00] sm:$0xff]  ;;  %v14930_v4 = vcombine.high %v1431_v61, %v1435_v62  ;;  %9872 = vmatprep.subr.bf16.mxu1 %v15066_v60  ;;  %v14929_v12 = vcombine.low %v1431_v61, %v1435_v62 }
 0x1b3   :  { %v1563_v19 = vld [vmem:[#allocation2 + $0x2c20] sm:$0xff]  ;;  %9832 = vmatpush1.bf16.msra.mxu0 %v14937_v0  ;;  %9873 = vmatpush1.bf16.msra.mxu1 %v15065_v1 }
 0x1b4   :  { %v15058_v7 = vcombine.high %v1559_v63, %v1563_v19  ;;  %v1551_v8 = vld [vmem:[#allocation2 + $0x2bc0] sm:$0xff]  ;;  %9833 = vmatprep.subr.bf16.mxu0 %v14930_v4  ;;  %v15057_v13 = vcombine.low %v1559_v63, %v1563_v19 }
 0x1b5   :  { %v1555_v32 = vld [vmem:[#allocation2 + $0x2be0] sm:$0xff] }
 0x1b6   :  { %v1679_v10 = vld [vmem:[#allocation2 + $0x2fc0] sm:$0xff]  ;;  %v15050_v14 = vcombine.high %v1551_v8, %v1555_v32  ;;  %9874 = vmatprep.subr.bf16.mxu1 %v15058_v7  ;;  %v15049_v29 = vcombine.low %v1551_v8, %v1555_v32 }
 0x1b7   :  { %v1683_v11 = vld [vmem:[#allocation2 + $0x2fe0] sm:$0xff]  ;;  %9834 = vmatpush1.bf16.msra.mxu0 %v14929_v12  ;;  %9875 = vmatpush1.bf16.msra.mxu1 %v15057_v13 }
 0x1b8   :  { %v15178_v15 = vcombine.high %v1679_v10, %v1683_v11  ;;  %v1543_v22 = vld [vmem:[#allocation2 + $0x2b80] sm:$0xff]  ;;  %9835 = vmatprep.subr.bf16.mxu0 %v15050_v14  ;;  %v15177_v30 = vcombine.low %v1679_v10, %v1683_v11 }
 0x1b9   :  { %v1547_v23 = vld [vmem:[#allocation2 + $0x2ba0] sm:$0xff] }
 0x1ba   :  { %v1671_v24 = vld [vmem:[#allocation2 + $0x2f80] sm:$0xff]  ;;  %v15042_v33 = vcombine.high %v1543_v22, %v1547_v23  ;;  %9876 = vmatprep.subr.bf16.mxu1 %v15178_v15  ;;  %v15041_v43 = vcombine.low %v1543_v22, %v1547_v23 }
 0x1bb   :  { %v1675_v27 = vld [vmem:[#allocation2 + $0x2fa0] sm:$0xff]  ;;  %9836 = vmatpush2.bf16.msra.mxu0 %v15049_v29  ;;  %9877 = vmatpush2.bf16.msra.mxu1 %v15177_v30 }
 0x1bc   :  { %v15170_v34 = vcombine.high %v1671_v24, %v1675_v27  ;;  %v1535_v35 = vld [vmem:[#allocation2 + $0x2b40] sm:$0xff]  ;;  %9837 = vmatprep.subr.bf16.mxu0 %v15042_v33  ;;  %v15169_v45 = vcombine.low %v1671_v24, %v1675_v27 }
 0x1bd   :  { %v1539_v36 = vld [vmem:[#allocation2 + $0x2b60] sm:$0xff] }
 0x1be   :  { %v1663_v41 = vld [vmem:[#allocation2 + $0x2f40] sm:$0xff]  ;;  %v15034_v47 = vcombine.high %v1535_v35, %v1539_v36  ;;  %9878 = vmatprep.subr.bf16.mxu1 %v15170_v34  ;;  %v15033_v60 = vcombine.low %v1535_v35, %v1539_v36 }
 0x1bf   :  { %v1667_v42 = vld [vmem:[#allocation2 + $0x2f60] sm:$0xff]  ;;  %9838 = vmatpush2.bf16.msra.mxu0 %v15041_v43  ;;  %9879 = vmatpush2.bf16.msra.mxu1 %v15169_v45 }
 0x1c0   :  { %v15162_v48 = vcombine.high %v1663_v41, %v1667_v42  ;;  %v1527_v52 = vld [vmem:[#allocation2 + $0x2b00] sm:$0xff]  ;;  %9839 = vmatprep.subr.bf16.mxu0 %v15034_v47  ;;  %v15161_v61 = vcombine.low %v1663_v41, %v1667_v42 }
 0x1c1   :  { %v1531_v53 = vld [vmem:[#allocation2 + $0x2b20] sm:$0xff] }
 0x1c2   :  { %v1655_v54 = vld [vmem:[#allocation2 + $0x2f00] sm:$0xff]  ;;  %v15026_v62 = vcombine.high %v1527_v52, %v1531_v53  ;;  %9880 = vmatprep.subr.bf16.mxu1 %v15162_v48  ;;  %v15025_v7 = vcombine.low %v1527_v52, %v1531_v53 }
 0x1c3   :  { %v1659_v57 = vld [vmem:[#allocation2 + $0x2f20] sm:$0xff]  ;;  %9840 = vmatpush2.bf16.msra.mxu0 %v15033_v60  ;;  %9881 = vmatpush2.bf16.msra.mxu1 %v15161_v61  ;;  %v212_v60 = vld [vmem:[#allocation2 + $0x1e8] sm:$0xff] }
 0x1c4   :  { %v15154_v63 = vcombine.high %v1655_v54, %v1659_v57  ;;  %v1519_v19 = vld [vmem:[#allocation2 + $0x2ac0] sm:$0xff]  ;;  %9841 = vmatprep.subr.bf16.mxu0 %v15026_v62  ;;  %v15153_v8 = vcombine.low %v1655_v54, %v1659_v57  ;;  %v208_v57 = vld [vmem:[#allocation2 + $0x1c8] sm:$0xff] }
 0x1c5   :  { %v1523_v0 = vld [vmem:[#allocation2 + $0x2ae0] sm:$0xff]  ;;  %v336_v61 = vld [vmem:[#allocation2 + $0x5c8] sm:$0xff] }
 0x1c6   :  { %v1647_v1 = vld [vmem:[#allocation2 + $0x2ec0] sm:$0xff]  ;;  %v15018_v32 = vcombine.high %v1519_v19, %v1523_v0  ;;  %9882 = vmatprep.subr.bf16.mxu1 %v15154_v63  ;;  %v15017_v15 = vcombine.low %v1519_v19, %v1523_v0  ;;  %v340_v62 = vld [vmem:[#allocation2 + $0x5e8] sm:$0xff] }
 0x1c7   :  { %v1651_v4 = vld [vmem:[#allocation2 + $0x2ee0] sm:$0xff]  ;;  %9842 = vmatpush2.bf16.msra.mxu0 %v15025_v7  ;;  %9883 = vmatpush2.bf16.msra.mxu1 %v15153_v8  ;;  %v13836_v7 = vcombine.high %v336_v61, %v340_v62  ;;  %v200_v8 = vld [vmem:[#allocation2 + $0x188] sm:$0xff] }
 0x1c8   :  { %v15146_v10 = vcombine.high %v1647_v1, %v1651_v4  ;;  %v1511_v11 = vld [vmem:[#allocation2 + $0x2a80] sm:$0xff]  ;;  %9843 = vmatprep.subr.bf16.mxu0 %v15018_v32  ;;  %v15145_v22 = vcombine.low %v1647_v1, %v1651_v4  ;;  %v125_v1 = vld [vmem:[%s16581_s0 + $0xb0] sm:$0xff]  ;;  %v13708_v4 = vcombine.high %v208_v57, %v212_v60  ;;  %v204_v32 = vld [vmem:[#allocation2 + $0x1a8] sm:$0xff] }
 0x1c9   :  { %v1515_v12 = vld [vmem:[#allocation2 + $0x2aa0] sm:$0xff] }
 0x1ca   :  { %v1639_v13 = vld [vmem:[#allocation2 + $0x2e80] sm:$0xff]  ;;  %v15010_v23 = vcombine.high %v1511_v11, %v1515_v12  ;;  %9884 = vmatprep.subr.bf16.mxu1 %v15146_v10  ;;  %v15009_v34 = vcombine.low %v1511_v11, %v1515_v12  ;;  %v328_v11 = vld [vmem:[#allocation2 + $0x588] sm:$0xff] }
 0x1cb   :  { %v1643_v14 = vld [vmem:[#allocation2 + $0x2ea0] sm:$0xff]  ;;  %9844 = vmatpush2.bf16.msra.mxu0 %v15017_v15  ;;  %9885 = vmatpush2.bf16.msra.mxu1 %v15145_v22  ;;  %v332_v12 = vld [vmem:[#allocation2 + $0x5a8] sm:$0xff]  ;;  %v13835_v15 = vcombine.low %v336_v61, %v340_v62  ;;  %v13700_v22 = vcombine.high %v200_v8, %v204_v32 }
 0x1cc   :  { %v15138_v24 = vcombine.high %v1639_v13, %v1643_v14  ;;  %v1503_v27 = vld [vmem:[#allocation2 + $0x2a40] sm:$0xff]  ;;  %9845 = vmatprep.subr.bf16.mxu0 %v15010_v23  ;;  %v15137_v35 = vcombine.low %v1639_v13, %v1643_v14  ;;  %v16309_v13 = vpack.c.bf16 %v125_v1, %v125_v1  ;;  %v13707_v14 = vcombine.low %v208_v57, %v212_v60  ;;  %v312_v57 = vld [vmem:[#allocation2 + $0x508] sm:$0xff] }
 0x1cd   :  { %v1507_v29 = vld [vmem:[#allocation2 + $0x2a60] sm:$0xff]  ;;  %v13828_v23 = vcombine.high %v328_v11, %v332_v12  ;;  %v316_v60 = vld [vmem:[#allocation2 + $0x528] sm:$0xff] }
 0x1ce   :  { %v1631_v30 = vld [vmem:[#allocation2 + $0x2e40] sm:$0xff]  ;;  %v15002_v36 = vcombine.high %v1503_v27, %v1507_v29  ;;  %9886 = vmatprep.subr.bf16.mxu1 %v15138_v24  ;;  %v15001_v48 = vcombine.low %v1503_v27, %v1507_v29  ;;  %v192_v24 = vld [vmem:[#allocation2 + $0x148] sm:$0xff] }
 0x1cf   :  { %v1635_v33 = vld [vmem:[#allocation2 + $0x2e60] sm:$0xff]  ;;  %9846 = vmatpush2.bf16.msra.mxu0 %v15009_v34  ;;  %9887 = vmatpush2.bf16.msra.mxu1 %v15137_v35  ;;  %v196_v27 = vld [vmem:[#allocation2 + $0x168] sm:$0xff] }
 0x1d0   :  { %v15130_v41 = vcombine.high %v1631_v30, %v1635_v33  ;;  %v1495_v42 = vld [vmem:[#allocation2 + $0x2a00] sm:$0xff]  ;;  %9847 = vmatprep.subr.bf16.mxu0 %v15002_v36  ;;  %v15129_v52 = vcombine.low %v1631_v30, %v1635_v33  ;;  %v320_v30 = vld [vmem:[#allocation2 + $0x548] sm:$0xff]  ;;  %v13699_v36 = vcombine.low %v200_v8, %v204_v32 }
 0x1d1   :  { %v1499_v43 = vld [vmem:[#allocation2 + $0x2a20] sm:$0xff]  ;;  %v324_v33 = vld [vmem:[#allocation2 + $0x568] sm:$0xff] }
 0x1d2   :  { %v1623_v45 = vld [vmem:[#allocation2 + $0x2e00] sm:$0xff]  ;;  %v14994_v53 = vcombine.high %v1495_v42, %v1499_v43  ;;  %9888 = vmatprep.subr.bf16.mxu1 %v15130_v41  ;;  %v14993_v63 = vcombine.low %v1495_v42, %v1499_v43  ;;  %v13827_v42 = vcombine.low %v328_v11, %v332_v12  ;;  %v13692_v43 = vcombine.high %v192_v24, %v196_v27  ;;  %v180_v8 = vld [vmem:[#allocation2 + $0xe8] sm:$0xff] }
 0x1d3   :  { %v1627_v47 = vld [vmem:[#allocation2 + $0x2e20] sm:$0xff]  ;;  %9848 = vmatpush2.bf16.msra.mxu0 %v15001_v48  ;;  %9889 = vmatpush2.bf16.msra.mxu1 %v15129_v52  ;;  %v13820_v52 = vcombine.high %v320_v30, %v324_v33  ;;  %v304_v32 = vld [vmem:[#allocation2 + $0x4c8] sm:$0xff] }
 0x1d4   :  { %v15122_v54 = vcombine.high %v1623_v45, %v1627_v47  ;;  %v123_v19 = vld [vmem:[%s16581_s0 + $0xa0] sm:$0xff]  ;;  %9849 = vmatprep.subr.bf16.mxu0 %v14994_v53  ;;  %v15121_v0 = vcombine.low %v1623_v45, %v1627_v47  ;;  %v184_v53 = vld [vmem:[#allocation2 + $0x108] sm:$0xff] }
 0x1d5   :  { %v16307_v10 = vpack.c.bf16 %v123_v19, %v123_v19  ;;  %v308_v11 = vld [vmem:[#allocation2 + $0x4e8] sm:$0xff] }
 0x1d6   :  { %9890 = vmatprep.subr.bf16.mxu1 %v15122_v54  ;;  %v9607_v29 = vpop.f32.mrf.mxu0  ;;  %v9648_v35 = vpop.f32.mrf.mxu1  ;;  %v188_v54 = vld [vmem:[#allocation2 + $0x128] sm:$0xff] }
 0x1d7   :  { %9850 = vmatpush2.bf16.msra.mxu0 %v14993_v63  ;;  %9891 = vmatpush2.bf16.msra.mxu1 %v15121_v0  ;;  %v9608_v34 = vadd.f32 %v9607_v29, %v16294_v55  ;;  %v13691_v63 = vcombine.low %v192_v24, %v196_v27  ;;  %v13684_v0 = vcombine.high %v184_v53, %v188_v54  ;;  %v172_v24 = vld [vmem:[#allocation2 + $0xa8] sm:$0xff] }
 0x1d8   :  { %9901 = vmatprep.subr.bf16.mxu0 %v13708_v4  ;;  %9942 = vmatprep.subr.bf16.mxu1 %v13836_v7  ;;  %v9609_v41 = vpop.f32.mrf.mxu0  ;;  %v9650_v48 = vpop.f32.mrf.mxu1  ;;  %v13812_v4 = vcombine.high %v312_v57, %v316_v60  ;;  %v176_v7 = vld [vmem:[#allocation2 + $0xc8] sm:$0xff]  ;;  %v13683_v12 = vcombine.low %v184_v53, %v188_v54 }
 0x1d9   :  { %v16314_v45 = vadd.f32 %v9648_v35, %v9608_v34  ;;  %v9610_v47 = vadd.f32 %v9609_v41, %v16299_v2  ;;  %v13819_v2 = vcombine.low %v320_v30, %v324_v33  ;;  %v296_v27 = vld [vmem:[#allocation2 + $0x488] sm:$0xff]  ;;  %v13675_v30 = vcombine.low %v176_v7, %v180_v8 }
 0x1da   :  { %9852 = vmatmul.mubr.bf16.vlgmr.msra.gmra.mxu0 %v16307_v10  ;;  %9893 = vmatmul.mubr.bf16.vlgmr.msra.gmra.mxu1 %v16309_v13  ;;  %v9611_v55 = vpop.f32.mrf.mxu0  ;;  %v9652_v62 = vpop.f32.mrf.mxu1  ;;  %v300_v29 = vld [vmem:[#allocation2 + $0x4a8] sm:$0xff]  ;;  %v13803_v33 = vcombine.low %v304_v32, %v308_v11 }
 0x1db   :  { %9902 = vmatpush1.bf16.msra.mxu0 %v13707_v14  ;;  %9943 = vmatpush1.bf16.msra.mxu1 %v13835_v15  ;;  %v16319_v61 = vadd.f32 %v9650_v48, %v9610_v47  ;;  %v13811_v14 = vcombine.low %v312_v57, %v316_v60  ;;  %v13676_v15 = vcombine.high %v176_v7, %v180_v8  ;;  %v164_v41 = vld [vmem:[#allocation2 + $0x68] sm:$0xff] }
 0x1dc   :  { %9903 = vmatprep.subr.bf16.mxu0 %v13700_v22  ;;  %9944 = vmatprep.subr.bf16.mxu1 %v13828_v23  ;;  %v9612_v19 = vpop.f32.mrf.mxu0  ;;  %v9653_v1 = vpop.f32.mrf.mxu1  ;;  %v13804_v22 = vcombine.high %v304_v32, %v308_v11  ;;  %v168_v23 = vld [vmem:[#allocation2 + $0x88] sm:$0xff]  ;;  %v13796_v35 = vcombine.high %v296_v27, %v300_v29  ;;  %v13795_v48 = vcombine.low %v296_v27, %v300_v29 }
 0x1dd   :  { %9933 = vmatprep.mubr.bf16.mxu0 %v16157_v58  ;;  %9974 = vmatprep.mubr.bf16.mxu1 %v16159_v59  ;;  %v13668_v34 = vcombine.high %v168_v23, %v172_v24  ;;  %v13667_v47 = vcombine.low %v168_v23, %v172_v24  ;;  %v152_v54 = vld [vmem:[#allocation2 + $0x8] sm:$0xff] }
 0x1de   :  { %v156_v55 = vld [vmem:[#allocation2 + $0x28] sm:$0xff] }
 0x1df   :  { %9904 = vmatpush1.bf16.msra.mxu0 %v13699_v36  ;;  %9945 = vmatpush1.bf16.msra.mxu1 %v13827_v42  ;;  %v160_v36 = vld [vmem:[#allocation2 + $0x48] sm:$0xff]  ;;  %v13652_v19 = vcombine.high %v152_v54, %v156_v55  ;;  %v13651_v8 = vcombine.low %v152_v54, %v156_v55 }
 0x1e0   :  { %9905 = vmatprep.subr.bf16.mxu0 %v13692_v43  ;;  %9946 = vmatprep.subr.bf16.mxu1 %v13820_v52  ;;  %v288_v42 = vld [vmem:[#allocation2 + $0x448] sm:$0xff]  ;;  %v13660_v52 = vcombine.high %v160_v36, %v164_v41  ;;  %v13659_v62 = vcombine.low %v160_v36, %v164_v41 }
 0x1e1   :  { %v292_v43 = vld [vmem:[#allocation2 + $0x468] sm:$0xff] }
 0x1e2   :  { %v13788_v53 = vcombine.high %v288_v42, %v292_v43  ;;  %v280_v57 = vld [vmem:[#allocation2 + $0x408] sm:$0xff] }
 0x1e3   :  { %9906 = vmatpush1.bf16.msra.mxu0 %v13691_v63  ;;  %9947 = vmatpush1.bf16.msra.mxu1 %v13819_v2  ;;  %v284_v60 = vld [vmem:[#allocation2 + $0x428] sm:$0xff]  ;;  %v13787_v63 = vcombine.low %v288_v42, %v292_v43 }
 0x1e4   :  { %9907 = vmatprep.subr.bf16.mxu0 %v13684_v0  ;;  %9948 = vmatprep.subr.bf16.mxu1 %v13812_v4  ;;  %v13780_v2 = vcombine.high %v280_v57, %v284_v60  ;;  %v272_v0 = vld [vmem:[#allocation2 + $0x3c8] sm:$0xff]  ;;  %v13779_v32 = vcombine.low %v280_v57, %v284_v60 }
 0x1e5   :  { %v276_v1 = vld [vmem:[#allocation2 + $0x3e8] sm:$0xff] }
 0x1e6   :  { %v400_v4 = vld [vmem:[#allocation2 + $0x7c8] sm:$0xff]  ;;  %v13772_v11 = vcombine.high %v272_v0, %v276_v1  ;;  %v13771_v24 = vcombine.low %v272_v0, %v276_v1 }
 0x1e7   :  { %9908 = vmatpush1.bf16.msra.mxu0 %v13683_v12  ;;  %9949 = vmatpush1.bf16.msra.mxu1 %v13811_v14  ;;  %v404_v7 = vld [vmem:[#allocation2 + $0x7e8] sm:$0xff] }
 0x1e8   :  { %9909 = vmatprep.subr.bf16.mxu0 %v13676_v15  ;;  %9950 = vmatprep.subr.bf16.mxu1 %v13804_v22  ;;  %v13900_v12 = vcombine.high %v400_v4, %v404_v7  ;;  %v264_v14 = vld [vmem:[#allocation2 + $0x388] sm:$0xff]  ;;  %v13899_v27 = vcombine.low %v400_v4, %v404_v7 }
 0x1e9   :  { %v268_v15 = vld [vmem:[#allocation2 + $0x3a8] sm:$0xff] }
 0x1ea   :  { %v392_v22 = vld [vmem:[#allocation2 + $0x788] sm:$0xff]  ;;  %v13764_v29 = vcombine.high %v264_v14, %v268_v15  ;;  %v13763_v41 = vcombine.low %v264_v14, %v268_v15 }
 0x1eb   :  { %9910 = vmatpush1.bf16.msra.mxu0 %v13675_v30  ;;  %9951 = vmatpush1.bf16.msra.mxu1 %v13803_v33  ;;  %v396_v23 = vld [vmem:[#allocation2 + $0x7a8] sm:$0xff] }
 0x1ec   :  { %9911 = vmatprep.subr.bf16.mxu0 %v13668_v34  ;;  %9952 = vmatprep.subr.bf16.mxu1 %v13796_v35  ;;  %v13892_v30 = vcombine.high %v392_v22, %v396_v23  ;;  %v256_v33 = vld [vmem:[#allocation2 + $0x348] sm:$0xff]  ;;  %v13891_v42 = vcombine.low %v392_v22, %v396_v23 }
 0x1ed   :  { %v260_v34 = vld [vmem:[#allocation2 + $0x368] sm:$0xff] }
 0x1ee   :  { %v384_v35 = vld [vmem:[#allocation2 + $0x748] sm:$0xff]  ;;  %v13756_v43 = vcombine.high %v256_v33, %v260_v34  ;;  %v13755_v55 = vcombine.low %v256_v33, %v260_v34 }
 0x1ef   :  { %9912 = vmatpush1.bf16.msra.mxu0 %v13667_v47  ;;  %9953 = vmatpush1.bf16.msra.mxu1 %v13795_v48  ;;  %v388_v36 = vld [vmem:[#allocation2 + $0x768] sm:$0xff] }
 0x1f0   :  { %9913 = vmatprep.subr.bf16.mxu0 %v13660_v52  ;;  %9954 = vmatprep.subr.bf16.mxu1 %v13788_v53  ;;  %v13884_v47 = vcombine.high %v384_v35, %v388_v36  ;;  %v248_v48 = vld [vmem:[#allocation2 + $0x308] sm:$0xff]  ;;  %v13883_v57 = vcombine.low %v384_v35, %v388_v36 }
 0x1f1   :  { %v252_v52 = vld [vmem:[#allocation2 + $0x328] sm:$0xff] }
 0x1f2   :  { %v376_v53 = vld [vmem:[#allocation2 + $0x708] sm:$0xff]  ;;  %v13748_v60 = vcombine.high %v248_v48, %v252_v52  ;;  %v13747_v1 = vcombine.low %v248_v48, %v252_v52 }
 0x1f3   :  { %9914 = vmatpush1.bf16.msra.mxu0 %v13659_v62  ;;  %9955 = vmatpush1.bf16.msra.mxu1 %v13787_v63  ;;  %v380_v54 = vld [vmem:[#allocation2 + $0x728] sm:$0xff] }
 0x1f4   :  { %9915 = vmatprep.subr.bf16.mxu0 %v13652_v19  ;;  %9956 = vmatprep.subr.bf16.mxu1 %v13780_v2  ;;  %v13876_v62 = vcombine.high %v376_v53, %v380_v54  ;;  %v240_v63 = vld [vmem:[#allocation2 + $0x2c8] sm:$0xff]  ;;  %v13875_v4 = vcombine.low %v376_v53, %v380_v54 }
 0x1f5   :  { %v244_v19 = vld [vmem:[#allocation2 + $0x2e8] sm:$0xff] }
 0x1f6   :  { %v368_v2 = vld [vmem:[#allocation2 + $0x6c8] sm:$0xff]  ;;  %v13740_v7 = vcombine.high %v240_v63, %v244_v19  ;;  %v13739_v15 = vcombine.low %v240_v63, %v244_v19 }
 0x1f7   :  { %9916 = vmatpush1.bf16.msra.mxu0 %v13651_v8  ;;  %9957 = vmatpush1.bf16.msra.mxu1 %v13779_v32  ;;  %v372_v0 = vld [vmem:[#allocation2 + $0x6e8] sm:$0xff] }
 0x1f8   :  { %9917 = vmatprep.subr.bf16.mxu0 %v13772_v11  ;;  %9958 = vmatprep.subr.bf16.mxu1 %v13900_v12  ;;  %v13868_v8 = vcombine.high %v368_v2, %v372_v0  ;;  %v232_v32 = vld [vmem:[#allocation2 + $0x288] sm:$0xff]  ;;  %v13867_v22 = vcombine.low %v368_v2, %v372_v0 }
 0x1f9   :  { %v236_v11 = vld [vmem:[#allocation2 + $0x2a8] sm:$0xff] }
 0x1fa   :  { %v360_v12 = vld [vmem:[#allocation2 + $0x688] sm:$0xff]  ;;  %v13732_v23 = vcombine.high %v232_v32, %v236_v11  ;;  %v13731_v34 = vcombine.low %v232_v32, %v236_v11 }
 0x1fb   :  { %9918 = vmatpush2.bf16.msra.mxu0 %v13771_v24  ;;  %9959 = vmatpush2.bf16.msra.mxu1 %v13899_v27  ;;  %v364_v14 = vld [vmem:[#allocation2 + $0x6a8] sm:$0xff] }
 0x1fc   :  { %9919 = vmatprep.subr.bf16.mxu0 %v13764_v29  ;;  %9960 = vmatprep.subr.bf16.mxu1 %v13892_v30  ;;  %v13860_v24 = vcombine.high %v360_v12, %v364_v14  ;;  %v224_v27 = vld [vmem:[#allocation2 + $0x248] sm:$0xff]  ;;  %v13859_v35 = vcombine.low %v360_v12, %v364_v14 }
 0x1fd   :  { %v228_v29 = vld [vmem:[#allocation2 + $0x268] sm:$0xff] }
 0x1fe   :  { %v352_v30 = vld [vmem:[#allocation2 + $0x648] sm:$0xff]  ;;  %v13724_v36 = vcombine.high %v224_v27, %v228_v29  ;;  %v13723_v52 = vcombine.low %v224_v27, %v228_v29 }
 0x1ff   :  { %9920 = vmatpush2.bf16.msra.mxu0 %v13763_v41  ;;  %9961 = vmatpush2.bf16.msra.mxu1 %v13891_v42  ;;  %v356_v33 = vld [vmem:[#allocation2 + $0x668] sm:$0xff] }
 0x200   :  { %9921 = vmatprep.subr.bf16.mxu0 %v13756_v43  ;;  %9962 = vmatprep.subr.bf16.mxu1 %v13884_v47  ;;  %v13852_v41 = vcombine.high %v352_v30, %v356_v33  ;;  %v216_v42 = vld [vmem:[#allocation2 + $0x208] sm:$0xff]  ;;  %v13851_v53 = vcombine.low %v352_v30, %v356_v33 }
 0x201   :  { %v220_v43 = vld [vmem:[#allocation2 + $0x228] sm:$0xff] }
 0x202   :  { %v344_v47 = vld [vmem:[#allocation2 + $0x608] sm:$0xff]  ;;  %v13716_v54 = vcombine.high %v216_v42, %v220_v43  ;;  %v13715_v19 = vcombine.low %v216_v42, %v220_v43 }
 0x203   :  { %9922 = vmatpush2.bf16.msra.mxu0 %v13755_v55  ;;  %9963 = vmatpush2.bf16.msra.mxu1 %v13883_v57  ;;  %v348_v48 = vld [vmem:[#allocation2 + $0x628] sm:$0xff] }
 0x204   :  { %9923 = vmatprep.subr.bf16.mxu0 %v13748_v60  ;;  %9964 = vmatprep.subr.bf16.mxu1 %v13876_v62  ;;  %v13844_v55 = vcombine.high %v344_v47, %v348_v48  ;;  %v464_v57 = vld [vmem:[#allocation2 + $0x9c8] sm:$0xff]  ;;  %v13843_v2 = vcombine.low %v344_v47, %v348_v48 }
 0x205   :  { %v468_v60 = vld [vmem:[#allocation2 + $0x9e8] sm:$0xff] }
 0x206   :  { %v592_v62 = vld [vmem:[#allocation2 + $0xdc8] sm:$0xff]  ;;  %v13964_v0 = vcombine.high %v464_v57, %v468_v60  ;;  %v13963_v11 = vcombine.low %v464_v57, %v468_v60 }
 0x207   :  { %9924 = vmatpush2.bf16.msra.mxu0 %v13747_v1  ;;  %9965 = vmatpush2.bf16.msra.mxu1 %v13875_v4  ;;  %v596_v63 = vld [vmem:[#allocation2 + $0xde8] sm:$0xff] }
 0x208   :  { %9925 = vmatprep.subr.bf16.mxu0 %v13740_v7  ;;  %9966 = vmatprep.subr.bf16.mxu1 %v13868_v8  ;;  %v14092_v1 = vcombine.high %v592_v62, %v596_v63  ;;  %v456_v4 = vld [vmem:[#allocation2 + $0x988] sm:$0xff]  ;;  %v14091_v12 = vcombine.low %v592_v62, %v596_v63 }
 0x209   :  { %v460_v7 = vld [vmem:[#allocation2 + $0x9a8] sm:$0xff] }
 0x20a   :  { %v584_v8 = vld [vmem:[#allocation2 + $0xd88] sm:$0xff]  ;;  %v13956_v14 = vcombine.high %v456_v4, %v460_v7 }
 0x20b   :  { %9926 = vmatpush2.bf16.msra.mxu0 %v13739_v15  ;;  %9967 = vmatpush2.bf16.msra.mxu1 %v13867_v22  ;;  %v588_v32 = vld [vmem:[#allocation2 + $0xda8] sm:$0xff] }
 0x20c   :  { %9927 = vmatprep.subr.bf16.mxu0 %v13732_v23  ;;  %9968 = vmatprep.subr.bf16.mxu1 %v13860_v24  ;;  %v14084_v15 = vcombine.high %v584_v8, %v588_v32  ;;  %v448_v22 = vld [vmem:[#allocation2 + $0x948] sm:$0xff] }
 0x20d   :  { %v452_v23 = vld [vmem:[#allocation2 + $0x968] sm:$0xff] }
 0x20e   :  { %v576_v27 = vld [vmem:[#allocation2 + $0xd48] sm:$0xff]  ;;  %v13947_v62 = vcombine.low %v448_v22, %v452_v23 }
 0x20f   :  { %9928 = vmatpush2.bf16.msra.mxu0 %v13731_v34  ;;  %9969 = vmatpush2.bf16.msra.mxu1 %v13859_v35  ;;  %v580_v29 = vld [vmem:[#allocation2 + $0xd68] sm:$0xff]  ;;  %v13955_v34 = vcombine.low %v456_v4, %v460_v7 }
 0x210   :  { %9929 = vmatprep.subr.bf16.mxu0 %v13724_v36  ;;  %9970 = vmatprep.subr.bf16.mxu1 %v13852_v41  ;;  %v14083_v36 = vcombine.low %v584_v8, %v588_v32  ;;  %v13948_v41 = vcombine.high %v448_v22, %v452_v23  ;;  %v14076_v48 = vcombine.high %v576_v27, %v580_v29  ;;  %v436_v4 = vld [vmem:[#allocation2 + $0x8e8] sm:$0xff] }
 0x211   :  { %v560_v7 = vld [vmem:[#allocation2 + $0xcc8] sm:$0xff] }
 0x212   :  { %v564_v8 = vld [vmem:[#allocation2 + $0xce8] sm:$0xff] }
 0x213   :  { %9930 = vmatpush2.bf16.msra.mxu0 %v13723_v52  ;;  %9971 = vmatpush2.bf16.msra.mxu1 %v13851_v53  ;;  %v440_v52 = vld [vmem:[#allocation2 + $0x908] sm:$0xff] }
 0x214   :  { %9931 = vmatprep.subr.bf16.mxu0 %v13716_v54  ;;  %9972 = vmatprep.subr.bf16.mxu1 %v13844_v55  ;;  %v444_v53 = vld [vmem:[#allocation2 + $0x928] sm:$0xff] }
 0x215   :  { %v568_v54 = vld [vmem:[#allocation2 + $0xd08] sm:$0xff]  ;;  %v13939_v32 = vcombine.low %v440_v52, %v444_v53 }
 0x216   :  { %v572_v55 = vld [vmem:[#allocation2 + $0xd28] sm:$0xff] }
 0x217   :  { %9932 = vmatpush2.bf16.msra.mxu0 %v13715_v19  ;;  %9973 = vmatpush2.bf16.msra.mxu1 %v13843_v2  ;;  %v9730_v33 = vpop.f32.mrf.mxu1  ;;  %v13940_v19 = vcombine.high %v440_v52, %v444_v53  ;;  %v428_v22 = vld [vmem:[#allocation2 + $0x8a8] sm:$0xff] }
 0x218   :  { %9983 = vmatprep.subr.bf16.mxu0 %v13964_v0  ;;  %10024 = vmatprep.subr.bf16.mxu1 %v14092_v1  ;;  %v9689_v24 = vpop.f32.mrf.mxu0  ;;  %v14068_v0 = vcombine.high %v568_v54, %v572_v55  ;;  %v432_v1 = vld [vmem:[#allocation2 + $0x8c8] sm:$0xff] }
 0x219   :  { %v9690_v30 = vadd.f32 %v9689_v24, %v16314_v45  ;;  %v9732_v47 = vpop.f32.mrf.mxu1  ;;  %v552_v23 = vld [vmem:[#allocation2 + $0xc88] sm:$0xff] }
 0x21a   :  { %9934 = vmatmul.mubr.bf16.vlgmr.msra.gmra.mxu0 %v16169_v16  ;;  %9975 = vmatmul.mubr.bf16.vlgmr.msra.gmra.mxu1 %v16174_v20  ;;  %v9691_v35 = vpop.f32.mrf.mxu0  ;;  %v556_v24 = vld [vmem:[#allocation2 + $0xca8] sm:$0xff] }
 0x21b   :  { %9984 = vmatpush1.bf16.msra.mxu0 %v13963_v11  ;;  %10025 = vmatpush1.bf16.msra.mxu1 %v14091_v12  ;;  %v16324_v42 = vadd.f32 %v9730_v33, %v9690_v30  ;;  %v9692_v43 = vadd.f32 %v9691_v35, %v16319_v61  ;;  %v9734_v60 = vpop.f32.mrf.mxu1  ;;  %v14075_v61 = vcombine.low %v576_v27, %v580_v29  ;;  %v420_v35 = vld [vmem:[#allocation2 + $0x868] sm:$0xff] }
 0x21c   :  { %9985 = vmatprep.subr.bf16.mxu0 %v13956_v14  ;;  %10026 = vmatprep.subr.bf16.mxu1 %v14084_v15  ;;  %v9693_v45 = vpop.f32.mrf.mxu0  ;;  %v14067_v11 = vcombine.low %v568_v54, %v572_v55  ;;  %v13932_v12 = vcombine.high %v432_v1, %v436_v4  ;;  %v14060_v14 = vcombine.high %v560_v7, %v564_v8  ;;  %v424_v15 = vld [vmem:[#allocation2 + $0x888] sm:$0xff] }
 0x21d   :  { %10015 = vmatprep.mubr.bf16.mxu0 %v16179_v28  ;;  %10056 = vmatprep.mubr.bf16.mxu1 %v16182_v31  ;;  %v16329_v57 = vadd.f32 %v9732_v47, %v9692_v43  ;;  %v9735_v2 = vpop.f32.mrf.mxu1  ;;  %v13931_v27 = vcombine.low %v432_v1, %v436_v4  ;;  %v14059_v29 = vcombine.low %v560_v7, %v564_v8  ;;  %v408_v53 = vld [vmem:[#allocation2 + $0x808] sm:$0xff] }
 0x21e   :  { %v9694_v63 = vpop.f32.mrf.mxu0  ;;  %v13924_v30 = vcombine.high %v424_v15, %v428_v22  ;;  %v14052_v33 = vcombine.high %v552_v23, %v556_v24  ;;  %v13923_v43 = vcombine.low %v424_v15, %v428_v22  ;;  %v14051_v47 = vcombine.low %v552_v23, %v556_v24  ;;  %v412_v45 = vld [vmem:[#allocation2 + $0x828] sm:$0xff] }
 0x21f   :  { %9986 = vmatpush1.bf16.msra.mxu0 %v13955_v34  ;;  %10027 = vmatpush1.bf16.msra.mxu1 %v14083_v36  ;;  %v416_v34 = vld [vmem:[#allocation2 + $0x848] sm:$0xff]  ;;  %v13908_v63 = vcombine.high %v408_v53, %v412_v45  ;;  %v13907_v4 = vcombine.low %v408_v53, %v412_v45 }
 0x220   :  { %9987 = vmatprep.subr.bf16.mxu0 %v13948_v41  ;;  %10028 = vmatprep.subr.bf16.mxu1 %v14076_v48  ;;  %v544_v36 = vld [vmem:[#allocation2 + $0xc48] sm:$0xff]  ;;  %v13916_v48 = vcombine.high %v416_v34, %v420_v35  ;;  %v13915_v60 = vcombine.low %v416_v34, %v420_v35 }
 0x221   :  { %v548_v41 = vld [vmem:[#allocation2 + $0xc68] sm:$0xff] }
 0x222   :  { %v14044_v52 = vcombine.high %v544_v36, %v548_v41  ;;  %v536_v54 = vld [vmem:[#allocation2 + $0xc08] sm:$0xff] }
 0x223   :  { %9988 = vmatpush1.bf16.msra.mxu0 %v13947_v62  ;;  %10029 = vmatpush1.bf16.msra.mxu1 %v14075_v61  ;;  %v540_v55 = vld [vmem:[#allocation2 + $0xc28] sm:$0xff]  ;;  %v14043_v62 = vcombine.low %v544_v36, %v548_v41 }
 0x224   :  { %9989 = vmatprep.subr.bf16.mxu0 %v13940_v19  ;;  %10030 = vmatprep.subr.bf16.mxu1 %v14068_v0  ;;  %v14036_v61 = vcombine.high %v536_v54, %v540_v55  ;;  %v528_v19 = vld [vmem:[#allocation2 + $0xbc8] sm:$0xff]  ;;  %v14035_v7 = vcombine.low %v536_v54, %v540_v55 }
 0x225   :  { %v532_v2 = vld [vmem:[#allocation2 + $0xbe8] sm:$0xff] }
 0x226   :  { %v656_v0 = vld [vmem:[#allocation2 + $0xfc8] sm:$0xff]  ;;  %v14028_v8 = vcombine.high %v528_v19, %v532_v2  ;;  %v14027_v22 = vcombine.low %v528_v19, %v532_v2 }
 0x227   :  { %9990 = vmatpush1.bf16.msra.mxu0 %v13939_v32  ;;  %10031 = vmatpush1.bf16.msra.mxu1 %v14067_v11  ;;  %v660_v1 = vld [vmem:[#allocation2 + $0xfe8] sm:$0xff] }
 0x228   :  { %9991 = vmatprep.subr.bf16.mxu0 %v13932_v12  ;;  %10032 = vmatprep.subr.bf16.mxu1 %v14060_v14  ;;  %v14156_v32 = vcombine.high %v656_v0, %v660_v1  ;;  %v520_v11 = vld [vmem:[#allocation2 + $0xb88] sm:$0xff]  ;;  %v14155_v23 = vcombine.low %v656_v0, %v660_v1 }
 0x229   :  { %v524_v12 = vld [vmem:[#allocation2 + $0xba8] sm:$0xff] }
 0x22a   :  { %v648_v14 = vld [vmem:[#allocation2 + $0xf88] sm:$0xff]  ;;  %v14020_v24 = vcombine.high %v520_v11, %v524_v12  ;;  %v14019_v35 = vcombine.low %v520_v11, %v524_v12 }
 0x22b   :  { %9992 = vmatpush1.bf16.msra.mxu0 %v13931_v27  ;;  %10033 = vmatpush1.bf16.msra.mxu1 %v14059_v29  ;;  %v652_v15 = vld [vmem:[#allocation2 + $0xfa8] sm:$0xff] }
 0x22c   :  { %9993 = vmatprep.subr.bf16.mxu0 %v13924_v30  ;;  %10034 = vmatprep.subr.bf16.mxu1 %v14052_v33  ;;  %v14148_v27 = vcombine.high %v648_v14, %v652_v15  ;;  %v512_v29 = vld [vmem:[#allocation2 + $0xb48] sm:$0xff]  ;;  %v14147_v36 = vcombine.low %v648_v14, %v652_v15 }
 0x22d   :  { %v516_v30 = vld [vmem:[#allocation2 + $0xb68] sm:$0xff] }
 0x22e   :  { %v640_v33 = vld [vmem:[#allocation2 + $0xf48] sm:$0xff]  ;;  %v14012_v41 = vcombine.high %v512_v29, %v516_v30  ;;  %v14011_v45 = vcombine.low %v512_v29, %v516_v30 }
 0x22f   :  { %9994 = vmatpush1.bf16.msra.mxu0 %v13923_v43  ;;  %10035 = vmatpush1.bf16.msra.mxu1 %v14051_v47  ;;  %v644_v34 = vld [vmem:[#allocation2 + $0xf68] sm:$0xff] }
 0x230   :  { %9995 = vmatprep.subr.bf16.mxu0 %v13916_v48  ;;  %10036 = vmatprep.subr.bf16.mxu1 %v14044_v52  ;;  %v14140_v43 = vcombine.high %v640_v33, %v644_v34  ;;  %v504_v47 = vld [vmem:[#allocation2 + $0xb08] sm:$0xff]  ;;  %v14139_v54 = vcombine.low %v640_v33, %v644_v34 }
 0x231   :  { %v508_v48 = vld [vmem:[#allocation2 + $0xb28] sm:$0xff] }
 0x232   :  { %v632_v52 = vld [vmem:[#allocation2 + $0xf08] sm:$0xff]  ;;  %v14004_v55 = vcombine.high %v504_v47, %v508_v48  ;;  %v14003_v2 = vcombine.low %v504_v47, %v508_v48 }
 0x233   :  { %9996 = vmatpush1.bf16.msra.mxu0 %v13915_v60  ;;  %10037 = vmatpush1.bf16.msra.mxu1 %v14043_v62  ;;  %v636_v53 = vld [vmem:[#allocation2 + $0xf28] sm:$0xff] }
 0x234   :  { %9997 = vmatprep.subr.bf16.mxu0 %v13908_v63  ;;  %10038 = vmatprep.subr.bf16.mxu1 %v14036_v61  ;;  %v14132_v60 = vcombine.high %v632_v52, %v636_v53  ;;  %v496_v62 = vld [vmem:[#allocation2 + $0xac8] sm:$0xff]  ;;  %v14131_v0 = vcombine.low %v632_v52, %v636_v53 }
 0x235   :  { %v500_v63 = vld [vmem:[#allocation2 + $0xae8] sm:$0xff] }
 0x236   :  { %v624_v61 = vld [vmem:[#allocation2 + $0xec8] sm:$0xff]  ;;  %v13996_v1 = vcombine.high %v496_v62, %v500_v63  ;;  %v13995_v12 = vcombine.low %v496_v62, %v500_v63 }
 0x237   :  { %9998 = vmatpush1.bf16.msra.mxu0 %v13907_v4  ;;  %10039 = vmatpush1.bf16.msra.mxu1 %v14035_v7  ;;  %v628_v19 = vld [vmem:[#allocation2 + $0xee8] sm:$0xff] }
 0x238   :  { %9999 = vmatprep.subr.bf16.mxu0 %v14028_v8  ;;  %10040 = vmatprep.subr.bf16.mxu1 %v14156_v32  ;;  %v14124_v4 = vcombine.high %v624_v61, %v628_v19  ;;  %v488_v7 = vld [vmem:[#allocation2 + $0xa88] sm:$0xff]  ;;  %v14123_v14 = vcombine.low %v624_v61, %v628_v19 }
 0x239   :  { %v492_v8 = vld [vmem:[#allocation2 + $0xaa8] sm:$0xff] }
 0x23a   :  { %v616_v32 = vld [vmem:[#allocation2 + $0xe88] sm:$0xff]  ;;  %v13988_v15 = vcombine.high %v488_v7, %v492_v8  ;;  %v13987_v30 = vcombine.low %v488_v7, %v492_v8 }
 0x23b   :  { %10000 = vmatpush2.bf16.msra.mxu0 %v14027_v22  ;;  %10041 = vmatpush2.bf16.msra.mxu1 %v14155_v23  ;;  %v620_v11 = vld [vmem:[#allocation2 + $0xea8] sm:$0xff] }
 0x23c   :  { %10001 = vmatprep.subr.bf16.mxu0 %v14020_v24  ;;  %10042 = vmatprep.subr.bf16.mxu1 %v14148_v27  ;;  %v14116_v22 = vcombine.high %v616_v32, %v620_v11  ;;  %v480_v23 = vld [vmem:[#allocation2 + $0xa48] sm:$0xff]  ;;  %v14115_v33 = vcombine.low %v616_v32, %v620_v11 }
 0x23d   :  { %v484_v24 = vld [vmem:[#allocation2 + $0xa68] sm:$0xff] }
 0x23e   :  { %v608_v27 = vld [vmem:[#allocation2 + $0xe48] sm:$0xff]  ;;  %v13980_v34 = vcombine.high %v480_v23, %v484_v24  ;;  %v13979_v48 = vcombine.low %v480_v23, %v484_v24 }
 0x23f   :  { %10002 = vmatpush2.bf16.msra.mxu0 %v14019_v35  ;;  %10043 = vmatpush2.bf16.msra.mxu1 %v14147_v36  ;;  %v612_v29 = vld [vmem:[#allocation2 + $0xe68] sm:$0xff] }
 0x240   :  { %10003 = vmatprep.subr.bf16.mxu0 %v14012_v41  ;;  %10044 = vmatprep.subr.bf16.mxu1 %v14140_v43  ;;  %v14108_v35 = vcombine.high %v608_v27, %v612_v29  ;;  %v472_v36 = vld [vmem:[#allocation2 + $0xa08] sm:$0xff]  ;;  %v14107_v52 = vcombine.low %v608_v27, %v612_v29 }
 0x241   :  { %v476_v41 = vld [vmem:[#allocation2 + $0xa28] sm:$0xff] }
 0x242   :  { %v600_v43 = vld [vmem:[#allocation2 + $0xe08] sm:$0xff]  ;;  %v13972_v53 = vcombine.high %v472_v36, %v476_v41  ;;  %v13971_v63 = vcombine.low %v472_v36, %v476_v41 }
 0x243   :  { %10004 = vmatpush2.bf16.msra.mxu0 %v14011_v45  ;;  %10045 = vmatpush2.bf16.msra.mxu1 %v14139_v54  ;;  %v604_v47 = vld [vmem:[#allocation2 + $0xe28] sm:$0xff] }
 0x244   :  { %10005 = vmatprep.subr.bf16.mxu0 %v14004_v55  ;;  %10046 = vmatprep.subr.bf16.mxu1 %v14132_v60  ;;  %v14100_v45 = vcombine.high %v600_v43, %v604_v47  ;;  %v720_v54 = vld [vmem:[#allocation2 + $0x11c8] sm:$0xff]  ;;  %v14099_v61 = vcombine.low %v600_v43, %v604_v47 }
 0x245   :  { %v724_v55 = vld [vmem:[#allocation2 + $0x11e8] sm:$0xff] }
 0x246   :  { %v848_v60 = vld [vmem:[#allocation2 + $0x15c8] sm:$0xff]  ;;  %v14220_v19 = vcombine.high %v720_v54, %v724_v55  ;;  %v14219_v8 = vcombine.low %v720_v54, %v724_v55 }
 0x247   :  { %10006 = vmatpush2.bf16.msra.mxu0 %v14003_v2  ;;  %10047 = vmatpush2.bf16.msra.mxu1 %v14131_v0  ;;  %v852_v62 = vld [vmem:[#allocation2 + $0x15e8] sm:$0xff] }
 0x248   :  { %10007 = vmatprep.subr.bf16.mxu0 %v13996_v1  ;;  %10048 = vmatprep.subr.bf16.mxu1 %v14124_v4  ;;  %v14348_v2 = vcombine.high %v848_v60, %v852_v62  ;;  %v712_v0 = vld [vmem:[#allocation2 + $0x1188] sm:$0xff]  ;;  %v14347_v32 = vcombine.low %v848_v60, %v852_v62 }
 0x249   :  { %v716_v1 = vld [vmem:[#allocation2 + $0x11a8] sm:$0xff] }
 0x24a   :  { %v840_v4 = vld [vmem:[#allocation2 + $0x1588] sm:$0xff]  ;;  %v14212_v11 = vcombine.high %v712_v0, %v716_v1 }
 0x24b   :  { %10008 = vmatpush2.bf16.msra.mxu0 %v13995_v12  ;;  %10049 = vmatpush2.bf16.msra.mxu1 %v14123_v14  ;;  %v844_v7 = vld [vmem:[#allocation2 + $0x15a8] sm:$0xff] }
 0x24c   :  { %10009 = vmatprep.subr.bf16.mxu0 %v13988_v15  ;;  %10050 = vmatprep.subr.bf16.mxu1 %v14116_v22  ;;  %v14340_v12 = vcombine.high %v840_v4, %v844_v7  ;;  %v704_v14 = vld [vmem:[#allocation2 + $0x1148] sm:$0xff] }
 0x24d   :  { %v708_v15 = vld [vmem:[#allocation2 + $0x1168] sm:$0xff] }
 0x24e   :  { %v832_v23 = vld [vmem:[#allocation2 + $0x1548] sm:$0xff]  ;;  %v14203_v60 = vcombine.low %v704_v14, %v708_v15 }
 0x24f   :  { %10010 = vmatpush2.bf16.msra.mxu0 %v13987_v30  ;;  %10051 = vmatpush2.bf16.msra.mxu1 %v14115_v33  ;;  %v836_v24 = vld [vmem:[#allocation2 + $0x1568] sm:$0xff]  ;;  %v14211_v30 = vcombine.low %v712_v0, %v716_v1 }
 0x250   :  { %10011 = vmatprep.subr.bf16.mxu0 %v13980_v34  ;;  %10052 = vmatprep.subr.bf16.mxu1 %v14108_v35  ;;  %v14339_v34 = vcombine.low %v840_v4, %v844_v7  ;;  %v14204_v35 = vcombine.high %v704_v14, %v708_v15  ;;  %v14332_v47 = vcombine.high %v832_v23, %v836_v24  ;;  %v692_v0 = vld [vmem:[#allocation2 + $0x10e8] sm:$0xff] }
 0x251   :  { %v816_v1 = vld [vmem:[#allocation2 + $0x14c8] sm:$0xff] }
 0x252   :  { %v820_v4 = vld [vmem:[#allocation2 + $0x14e8] sm:$0xff] }
 0x253   :  { %10012 = vmatpush2.bf16.msra.mxu0 %v13979_v48  ;;  %10053 = vmatpush2.bf16.msra.mxu1 %v14107_v52  ;;  %v696_v48 = vld [vmem:[#allocation2 + $0x1108] sm:$0xff] }
 0x254   :  { %10013 = vmatprep.subr.bf16.mxu0 %v13972_v53  ;;  %10054 = vmatprep.subr.bf16.mxu1 %v14100_v45  ;;  %v700_v52 = vld [vmem:[#allocation2 + $0x1128] sm:$0xff] }
 0x255   :  { %v824_v53 = vld [vmem:[#allocation2 + $0x1508] sm:$0xff]  ;;  %v14195_v7 = vcombine.low %v696_v48, %v700_v52 }
 0x256   :  { %v828_v45 = vld [vmem:[#allocation2 + $0x1528] sm:$0xff] }
 0x257   :  { %10014 = vmatpush2.bf16.msra.mxu0 %v13971_v63  ;;  %10055 = vmatpush2.bf16.msra.mxu1 %v14099_v61  ;;  %v14196_v63 = vcombine.high %v696_v48, %v700_v52  ;;  %v684_v14 = vld [vmem:[#allocation2 + $0x10a8] sm:$0xff] }
 0x258   :  { %10065 = vmatprep.subr.bf16.mxu0 %v14220_v19  ;;  %10106 = vmatprep.subr.bf16.mxu1 %v14348_v2  ;;  %v14324_v19 = vcombine.high %v824_v53, %v828_v45  ;;  %v688_v2 = vld [vmem:[#allocation2 + $0x10c8] sm:$0xff] }
 0x259   :  { %v9812_v29 = vpop.f32.mrf.mxu1  ;;  %v808_v15 = vld [vmem:[#allocation2 + $0x1488] sm:$0xff] }
 0x25a   :  { %v9771_v22 = vpop.f32.mrf.mxu0  ;;  %10016 = vmatmul.mubr.bf16.vlgmr.msra.gmra.mxu0 %v16196_v39  ;;  %10057 = vmatmul.mubr.bf16.vlgmr.msra.gmra.mxu1 %v16198_v40  ;;  %v664_v52 = vld [vmem:[#allocation2 + $0x1008] sm:$0xff] }
 0x25b   :  { %v9772_v27 = vadd.f32 %v9771_v22, %v16324_v42  ;;  %10066 = vmatpush1.bf16.msra.mxu0 %v14219_v8  ;;  %10107 = vmatpush1.bf16.msra.mxu1 %v14347_v32  ;;  %v9814_v43 = vpop.f32.mrf.mxu1  ;;  %v14323_v8 = vcombine.low %v824_v53, %v828_v45  ;;  %v14188_v32 = vcombine.high %v688_v2, %v692_v0  ;;  %v812_v22 = vld [vmem:[#allocation2 + $0x14a8] sm:$0xff] }
 0x25c   :  { %v9773_v33 = vpop.f32.mrf.mxu0  ;;  %10067 = vmatprep.subr.bf16.mxu0 %v14212_v11  ;;  %10108 = vmatprep.subr.bf16.mxu1 %v14340_v12  ;;  %v14316_v11 = vcombine.high %v816_v1, %v820_v4  ;;  %v680_v12 = vld [vmem:[#allocation2 + $0x1088] sm:$0xff] }
 0x25d   :  { %v16334_v36 = vadd.f32 %v9812_v29, %v9772_v27  ;;  %v9774_v41 = vadd.f32 %v9773_v33, %v16329_v57  ;;  %10097 = vmatprep.mubr.bf16.mxu0 %v16203_v49  ;;  %10138 = vmatprep.mubr.bf16.mxu1 %v16206_v51  ;;  %v9816_v55 = vpop.f32.mrf.mxu1  ;;  %v14331_v57 = vcombine.low %v832_v23, %v836_v24  ;;  %v676_v33 = vld [vmem:[#allocation2 + $0x1068] sm:$0xff] }
 0x25e   :  { %v9775_v42 = vpop.f32.mrf.mxu0  ;;  %v14187_v23 = vcombine.low %v688_v2, %v692_v0  ;;  %v14315_v24 = vcombine.low %v816_v1, %v820_v4  ;;  %v14180_v27 = vcombine.high %v680_v12, %v684_v14  ;;  %v14308_v29 = vcombine.high %v808_v15, %v812_v22  ;;  %v792_v53 = vld [vmem:[#allocation2 + $0x1408] sm:$0xff] }
 0x25f   :  { %v16339_v54 = vadd.f32 %v9814_v43, %v9774_v41  ;;  %10068 = vmatpush1.bf16.msra.mxu0 %v14211_v30  ;;  %10109 = vmatpush1.bf16.msra.mxu1 %v14339_v34  ;;  %v9817_v61 = vpop.f32.mrf.mxu1  ;;  %v672_v30 = vld [vmem:[#allocation2 + $0x1048] sm:$0xff]  ;;  %v14179_v41 = vcombine.low %v680_v12, %v684_v14  ;;  %v14307_v43 = vcombine.low %v808_v15, %v812_v22 }
 0x260   :  { %v9776_v62 = vpop.f32.mrf.mxu0  ;;  %10069 = vmatprep.subr.bf16.mxu0 %v14204_v35  ;;  %10110 = vmatprep.subr.bf16.mxu1 %v14332_v47  ;;  %v800_v34 = vld [vmem:[#allocation2 + $0x1448] sm:$0xff]  ;;  %v14172_v47 = vcombine.high %v672_v30, %v676_v33  ;;  %v14171_v55 = vcombine.low %v672_v30, %v676_v33 }
 0x261   :  { %v804_v35 = vld [vmem:[#allocation2 + $0x1468] sm:$0xff] }
 0x262   :  { %v14300_v48 = vcombine.high %v800_v34, %v804_v35  ;;  %v668_v42 = vld [vmem:[#allocation2 + $0x1028] sm:$0xff] }
 0x263   :  { %10070 = vmatpush1.bf16.msra.mxu0 %v14203_v60  ;;  %10111 = vmatpush1.bf16.msra.mxu1 %v14331_v57  ;;  %v796_v45 = vld [vmem:[#allocation2 + $0x1428] sm:$0xff]  ;;  %v14299_v60 = vcombine.low %v800_v34, %v804_v35  ;;  %v14164_v62 = vcombine.high %v664_v52, %v668_v42  ;;  %v14163_v0 = vcombine.low %v664_v52, %v668_v42 }
 0x264   :  { %10071 = vmatprep.subr.bf16.mxu0 %v14196_v63  ;;  %10112 = vmatprep.subr.bf16.mxu1 %v14324_v19  ;;  %v14292_v57 = vcombine.high %v792_v53, %v796_v45  ;;  %v784_v63 = vld [vmem:[#allocation2 + $0x13c8] sm:$0xff]  ;;  %v14291_v1 = vcombine.low %v792_v53, %v796_v45 }
 0x265   :  { %v788_v61 = vld [vmem:[#allocation2 + $0x13e8] sm:$0xff] }
 0x266   :  { %v912_v19 = vld [vmem:[#allocation2 + $0x17c8] sm:$0xff]  ;;  %v14284_v4 = vcombine.high %v784_v63, %v788_v61  ;;  %v14283_v14 = vcombine.low %v784_v63, %v788_v61 }
 0x267   :  { %10072 = vmatpush1.bf16.msra.mxu0 %v14195_v7  ;;  %10113 = vmatpush1.bf16.msra.mxu1 %v14323_v8  ;;  %v916_v2 = vld [vmem:[#allocation2 + $0x17e8] sm:$0xff] }
 0x268   :  { %10073 = vmatprep.subr.bf16.mxu0 %v14188_v32  ;;  %10114 = vmatprep.subr.bf16.mxu1 %v14316_v11  ;;  %v14412_v7 = vcombine.high %v912_v19, %v916_v2  ;;  %v776_v8 = vld [vmem:[#allocation2 + $0x1388] sm:$0xff]  ;;  %v14411_v15 = vcombine.low %v912_v19, %v916_v2 }
 0x269   :  { %v780_v32 = vld [vmem:[#allocation2 + $0x13a8] sm:$0xff] }
 0x26a   :  { %v904_v11 = vld [vmem:[#allocation2 + $0x1788] sm:$0xff]  ;;  %v14276_v22 = vcombine.high %v776_v8, %v780_v32  ;;  %v14275_v33 = vcombine.low %v776_v8, %v780_v32 }
 0x26b   :  { %10074 = vmatpush1.bf16.msra.mxu0 %v14187_v23  ;;  %10115 = vmatpush1.bf16.msra.mxu1 %v14315_v24  ;;  %v908_v12 = vld [vmem:[#allocation2 + $0x17a8] sm:$0xff] }
 0x26c   :  { %10075 = vmatprep.subr.bf16.mxu0 %v14180_v27  ;;  %10116 = vmatprep.subr.bf16.mxu1 %v14308_v29  ;;  %v14404_v23 = vcombine.high %v904_v11, %v908_v12  ;;  %v768_v24 = vld [vmem:[#allocation2 + $0x1348] sm:$0xff]  ;;  %v14403_v34 = vcombine.low %v904_v11, %v908_v12 }
 0x26d   :  { %v772_v27 = vld [vmem:[#allocation2 + $0x1368] sm:$0xff] }
 0x26e   :  { %v896_v29 = vld [vmem:[#allocation2 + $0x1748] sm:$0xff]  ;;  %v14268_v35 = vcombine.high %v768_v24, %v772_v27  ;;  %v14267_v42 = vcombine.low %v768_v24, %v772_v27 }
 0x26f   :  { %10076 = vmatpush1.bf16.msra.mxu0 %v14179_v41  ;;  %10117 = vmatpush1.bf16.msra.mxu1 %v14307_v43  ;;  %v900_v30 = vld [vmem:[#allocation2 + $0x1768] sm:$0xff] }
 0x270   :  { %10077 = vmatprep.subr.bf16.mxu0 %v14172_v47  ;;  %10118 = vmatprep.subr.bf16.mxu1 %v14300_v48  ;;  %v14396_v41 = vcombine.high %v896_v29, %v900_v30  ;;  %v760_v43 = vld [vmem:[#allocation2 + $0x1308] sm:$0xff]  ;;  %v14395_v53 = vcombine.low %v896_v29, %v900_v30 }
 0x271   :  { %v764_v47 = vld [vmem:[#allocation2 + $0x1328] sm:$0xff] }
 0x272   :  { %v888_v48 = vld [vmem:[#allocation2 + $0x1708] sm:$0xff]  ;;  %v14260_v45 = vcombine.high %v760_v43, %v764_v47  ;;  %v14259_v61 = vcombine.low %v760_v43, %v764_v47 }
 0x273   :  { %10078 = vmatpush1.bf16.msra.mxu0 %v14171_v55  ;;  %10119 = vmatpush1.bf16.msra.mxu1 %v14299_v60  ;;  %v892_v52 = vld [vmem:[#allocation2 + $0x1728] sm:$0xff] }
 0x274   :  { %10079 = vmatprep.subr.bf16.mxu0 %v14164_v62  ;;  %10120 = vmatprep.subr.bf16.mxu1 %v14292_v57  ;;  %v14388_v55 = vcombine.high %v888_v48, %v892_v52  ;;  %v752_v60 = vld [vmem:[#allocation2 + $0x12c8] sm:$0xff]  ;;  %v14387_v19 = vcombine.low %v888_v48, %v892_v52 }
 0x275   :  { %v756_v62 = vld [vmem:[#allocation2 + $0x12e8] sm:$0xff] }
 0x276   :  { %v880_v57 = vld [vmem:[#allocation2 + $0x16c8] sm:$0xff]  ;;  %v14252_v2 = vcombine.high %v752_v60, %v756_v62  ;;  %v14251_v32 = vcombine.low %v752_v60, %v756_v62 }
 0x277   :  { %10080 = vmatpush1.bf16.msra.mxu0 %v14163_v0  ;;  %10121 = vmatpush1.bf16.msra.mxu1 %v14291_v1  ;;  %v884_v63 = vld [vmem:[#allocation2 + $0x16e8] sm:$0xff] }
 0x278   :  { %10081 = vmatprep.subr.bf16.mxu0 %v14284_v4  ;;  %10122 = vmatprep.subr.bf16.mxu1 %v14412_v7  ;;  %v14380_v0 = vcombine.high %v880_v57, %v884_v63  ;;  %v744_v1 = vld [vmem:[#allocation2 + $0x1288] sm:$0xff]  ;;  %v14379_v11 = vcombine.low %v880_v57, %v884_v63 }
 0x279   :  { %v748_v4 = vld [vmem:[#allocation2 + $0x12a8] sm:$0xff] }
 0x27a   :  { %v872_v7 = vld [vmem:[#allocation2 + $0x1688] sm:$0xff]  ;;  %v14244_v12 = vcombine.high %v744_v1, %v748_v4  ;;  %v14243_v27 = vcombine.low %v744_v1, %v748_v4 }
 0x27b   :  { %10082 = vmatpush2.bf16.msra.mxu0 %v14283_v14  ;;  %10123 = vmatpush2.bf16.msra.mxu1 %v14411_v15  ;;  %v876_v8 = vld [vmem:[#allocation2 + $0x16a8] sm:$0xff] }
 0x27c   :  { %10083 = vmatprep.subr.bf16.mxu0 %v14276_v22  ;;  %10124 = vmatprep.subr.bf16.mxu1 %v14404_v23  ;;  %v14372_v14 = vcombine.high %v872_v7, %v876_v8  ;;  %v736_v15 = vld [vmem:[#allocation2 + $0x1248] sm:$0xff]  ;;  %v14371_v29 = vcombine.low %v872_v7, %v876_v8 }
 0x27d   :  { %v740_v22 = vld [vmem:[#allocation2 + $0x1268] sm:$0xff] }
 0x27e   :  { %v864_v23 = vld [vmem:[#allocation2 + $0x1648] sm:$0xff]  ;;  %v14236_v30 = vcombine.high %v736_v15, %v740_v22  ;;  %v14235_v47 = vcombine.low %v736_v15, %v740_v22 }
 0x27f   :  { %10084 = vmatpush2.bf16.msra.mxu0 %v14275_v33  ;;  %10125 = vmatpush2.bf16.msra.mxu1 %v14403_v34  ;;  %v868_v24 = vld [vmem:[#allocation2 + $0x1668] sm:$0xff] }
 0x280   :  { %10085 = vmatprep.subr.bf16.mxu0 %v14268_v35  ;;  %10126 = vmatprep.subr.bf16.mxu1 %v14396_v41  ;;  %v14364_v33 = vcombine.high %v864_v23, %v868_v24  ;;  %v728_v34 = vld [vmem:[#allocation2 + $0x1208] sm:$0xff]  ;;  %v14363_v48 = vcombine.low %v864_v23, %v868_v24 }
 0x281   :  { %v732_v35 = vld [vmem:[#allocation2 + $0x1228] sm:$0xff] }
 0x282   :  { %v856_v41 = vld [vmem:[#allocation2 + $0x1608] sm:$0xff]  ;;  %v14228_v52 = vcombine.high %v728_v34, %v732_v35  ;;  %v14227_v62 = vcombine.low %v728_v34, %v732_v35 }
 0x283   :  { %10086 = vmatpush2.bf16.msra.mxu0 %v14267_v42  ;;  %10127 = vmatpush2.bf16.msra.mxu1 %v14395_v53  ;;  %v860_v43 = vld [vmem:[#allocation2 + $0x1628] sm:$0xff] }
 0x284   :  { %10087 = vmatprep.subr.bf16.mxu0 %v14260_v45  ;;  %10128 = vmatprep.subr.bf16.mxu1 %v14388_v55  ;;  %v14356_v42 = vcombine.high %v856_v41, %v860_v43  ;;  %v976_v53 = vld [vmem:[#allocation2 + $0x19c8] sm:$0xff]  ;;  %v14355_v57 = vcombine.low %v856_v41, %v860_v43 }
 0x285   :  { %v980_v45 = vld [vmem:[#allocation2 + $0x19e8] sm:$0xff] }
 0x286   :  { %v1104_v55 = vld [vmem:[#allocation2 + $0x1dc8] sm:$0xff]  ;;  %v14476_v63 = vcombine.high %v976_v53, %v980_v45  ;;  %v14475_v4 = vcombine.low %v976_v53, %v980_v45 }
 0x287   :  { %10088 = vmatpush2.bf16.msra.mxu0 %v14259_v61  ;;  %10129 = vmatpush2.bf16.msra.mxu1 %v14387_v19  ;;  %v1108_v60 = vld [vmem:[#allocation2 + $0x1de8] sm:$0xff] }
 0x288   :  { %10089 = vmatprep.subr.bf16.mxu0 %v14252_v2  ;;  %10130 = vmatprep.subr.bf16.mxu1 %v14380_v0  ;;  %v14604_v61 = vcombine.high %v1104_v55, %v1108_v60  ;;  %v968_v19 = vld [vmem:[#allocation2 + $0x1988] sm:$0xff]  ;;  %v14603_v7 = vcombine.low %v1104_v55, %v1108_v60 }
 0x289   :  { %v972_v2 = vld [vmem:[#allocation2 + $0x19a8] sm:$0xff] }
 0x28a   :  { %v1096_v0 = vld [vmem:[#allocation2 + $0x1d88] sm:$0xff]  ;;  %v14468_v8 = vcombine.high %v968_v19, %v972_v2 }
 0x28b   :  { %10090 = vmatpush2.bf16.msra.mxu0 %v14251_v32  ;;  %10131 = vmatpush2.bf16.msra.mxu1 %v14379_v11  ;;  %v1100_v1 = vld [vmem:[#allocation2 + $0x1da8] sm:$0xff] }
 0x28c   :  { %10091 = vmatprep.subr.bf16.mxu0 %v14244_v12  ;;  %10132 = vmatprep.subr.bf16.mxu1 %v14372_v14  ;;  %v14596_v32 = vcombine.high %v1096_v0, %v1100_v1  ;;  %v960_v11 = vld [vmem:[#allocation2 + $0x1948] sm:$0xff] }
 0x28d   :  { %v964_v12 = vld [vmem:[#allocation2 + $0x1968] sm:$0xff] }
 0x28e   :  { %v1088_v15 = vld [vmem:[#allocation2 + $0x1d48] sm:$0xff]  ;;  %v14459_v55 = vcombine.low %v960_v11, %v964_v12 }
 0x28f   :  { %10092 = vmatpush2.bf16.msra.mxu0 %v14243_v27  ;;  %10133 = vmatpush2.bf16.msra.mxu1 %v14371_v29  ;;  %v1092_v22 = vld [vmem:[#allocation2 + $0x1d68] sm:$0xff]  ;;  %v14467_v27 = vcombine.low %v968_v19, %v972_v2 }
 0x290   :  { %10093 = vmatprep.subr.bf16.mxu0 %v14236_v30  ;;  %10134 = vmatprep.subr.bf16.mxu1 %v14364_v33  ;;  %v14595_v30 = vcombine.low %v1096_v0, %v1100_v1  ;;  %v14460_v33 = vcombine.high %v960_v11, %v964_v12  ;;  %v14588_v43 = vcombine.high %v1088_v15, %v1092_v22  ;;  %v948_v19 = vld [vmem:[#allocation2 + $0x18e8] sm:$0xff] }
 0x291   :  { %v1072_v2 = vld [vmem:[#allocation2 + $0x1cc8] sm:$0xff] }
 0x292   :  { %v1076_v0 = vld [vmem:[#allocation2 + $0x1ce8] sm:$0xff] }
 0x293   :  { %10094 = vmatpush2.bf16.msra.mxu0 %v14235_v47  ;;  %10135 = vmatpush2.bf16.msra.mxu1 %v14363_v48  ;;  %v952_v47 = vld [vmem:[#allocation2 + $0x1908] sm:$0xff] }
 0x294   :  { %10095 = vmatprep.subr.bf16.mxu0 %v14228_v52  ;;  %10136 = vmatprep.subr.bf16.mxu1 %v14356_v42  ;;  %v956_v48 = vld [vmem:[#allocation2 + $0x1928] sm:$0xff] }
 0x295   :  { %v1080_v52 = vld [vmem:[#allocation2 + $0x1d08] sm:$0xff]  ;;  %v14451_v1 = vcombine.low %v952_v47, %v956_v48 }
 0x296   :  { %v1084_v42 = vld [vmem:[#allocation2 + $0x1d28] sm:$0xff] }
 0x297   :  { %10096 = vmatpush2.bf16.msra.mxu0 %v14227_v62  ;;  %10137 = vmatpush2.bf16.msra.mxu1 %v14355_v57  ;;  %v14452_v62 = vcombine.high %v952_v47, %v956_v48  ;;  %v940_v11 = vld [vmem:[#allocation2 + $0x18a8] sm:$0xff] }
 0x298   :  { %10147 = vmatprep.subr.bf16.mxu0 %v14476_v63  ;;  %10188 = vmatprep.subr.bf16.mxu1 %v14604_v61  ;;  %v14580_v63 = vcombine.high %v1080_v52, %v1084_v42  ;;  %v944_v61 = vld [vmem:[#allocation2 + $0x18c8] sm:$0xff] }
 0x299   :  { %v1064_v12 = vld [vmem:[#allocation2 + $0x1c88] sm:$0xff] }
 0x29a   :  { %v9853_v14 = vpop.f32.mrf.mxu0  ;;  %10098 = vmatmul.mubr.bf16.vlgmr.msra.gmra.mxu0 %v16220_v5  ;;  %v9894_v24 = vpop.f32.mrf.mxu1  ;;  %10139 = vmatmul.mubr.bf16.vlgmr.msra.gmra.mxu1 %v16222_v6  ;;  %v920_v48 = vld [vmem:[#allocation2 + $0x1808] sm:$0xff] }
 0x29b   :  { %v9854_v23 = vadd.f32 %v9853_v14, %v16334_v36  ;;  %10148 = vmatpush1.bf16.msra.mxu0 %v14475_v4  ;;  %10189 = vmatpush1.bf16.msra.mxu1 %v14603_v7  ;;  %v14579_v4 = vcombine.low %v1080_v52, %v1084_v42  ;;  %v14444_v7 = vcombine.high %v944_v61, %v948_v19  ;;  %v1068_v14 = vld [vmem:[#allocation2 + $0x1ca8] sm:$0xff] }
 0x29c   :  { %v9855_v29 = vpop.f32.mrf.mxu0  ;;  %10149 = vmatprep.subr.bf16.mxu0 %v14468_v8  ;;  %v9896_v41 = vpop.f32.mrf.mxu1  ;;  %10190 = vmatprep.subr.bf16.mxu1 %v14596_v32  ;;  %v14572_v8 = vcombine.high %v1072_v2, %v1076_v0  ;;  %v936_v32 = vld [vmem:[#allocation2 + $0x1888] sm:$0xff] }
 0x29d   :  { %v16344_v34 = vadd.f32 %v9894_v24, %v9854_v23  ;;  %v9856_v35 = vadd.f32 %v9855_v29, %v16339_v54  ;;  %10179 = vmatprep.mubr.bf16.mxu0 %v16227_v17  ;;  %10220 = vmatprep.mubr.bf16.mxu1 %v16230_v18  ;;  %v14587_v54 = vcombine.low %v1088_v15, %v1092_v22  ;;  %v932_v29 = vld [vmem:[#allocation2 + $0x1868] sm:$0xff] }
 0x29e   :  { %v9857_v36 = vpop.f32.mrf.mxu0  ;;  %v9898_v45 = vpop.f32.mrf.mxu1  ;;  %v14443_v15 = vcombine.low %v944_v61, %v948_v19  ;;  %v14571_v22 = vcombine.low %v1072_v2, %v1076_v0  ;;  %v14436_v23 = vcombine.high %v936_v32, %v940_v11  ;;  %v14564_v24 = vcombine.high %v1064_v12, %v1068_v14  ;;  %v1048_v52 = vld [vmem:[#allocation2 + $0x1c08] sm:$0xff] }
 0x29f   :  { %v16349_v53 = vadd.f32 %v9896_v41, %v9856_v35  ;;  %10150 = vmatpush1.bf16.msra.mxu0 %v14467_v27  ;;  %10191 = vmatpush1.bf16.msra.mxu1 %v14595_v30  ;;  %v928_v27 = vld [vmem:[#allocation2 + $0x1848] sm:$0xff]  ;;  %v14435_v35 = vcombine.low %v936_v32, %v940_v11  ;;  %v14563_v41 = vcombine.low %v1064_v12, %v1068_v14 }
 0x2a0   :  { %v9858_v60 = vpop.f32.mrf.mxu0  ;;  %10151 = vmatprep.subr.bf16.mxu0 %v14460_v33  ;;  %v9899_v57 = vpop.f32.mrf.mxu1  ;;  %10192 = vmatprep.subr.bf16.mxu1 %v14588_v43  ;;  %v1056_v30 = vld [vmem:[#allocation2 + $0x1c48] sm:$0xff]  ;;  %v14428_v43 = vcombine.high %v928_v27, %v932_v29  ;;  %v14427_v45 = vcombine.low %v928_v27, %v932_v29 }
 0x2a1   :  { %v1060_v33 = vld [vmem:[#allocation2 + $0x1c68] sm:$0xff] }
 0x2a2   :  { %v14556_v47 = vcombine.high %v1056_v30, %v1060_v33  ;;  %v924_v36 = vld [vmem:[#allocation2 + $0x1828] sm:$0xff] }
 0x2a3   :  { %10152 = vmatpush1.bf16.msra.mxu0 %v14459_v55  ;;  %10193 = vmatpush1.bf16.msra.mxu1 %v14587_v54  ;;  %v1052_v42 = vld [vmem:[#allocation2 + $0x1c28] sm:$0xff]  ;;  %v14555_v55 = vcombine.low %v1056_v30, %v1060_v33  ;;  %v14420_v60 = vcombine.high %v920_v48, %v924_v36  ;;  %v14419_v19 = vcombine.low %v920_v48, %v924_v36 }
 0x2a4   :  { %10153 = vmatprep.subr.bf16.mxu0 %v14452_v62  ;;  %10194 = vmatprep.subr.bf16.mxu1 %v14580_v63  ;;  %v14548_v54 = vcombine.high %v1048_v52, %v1052_v42  ;;  %v1040_v62 = vld [vmem:[#allocation2 + $0x1bc8] sm:$0xff]  ;;  %v14547_v2 = vcombine.low %v1048_v52, %v1052_v42 }
 0x2a5   :  { %v1044_v57 = vld [vmem:[#allocation2 + $0x1be8] sm:$0xff] }
 0x2a6   :  { %v1168_v63 = vld [vmem:[#allocation2 + $0x1fc8] sm:$0xff]  ;;  %v14540_v0 = vcombine.high %v1040_v62, %v1044_v57  ;;  %v14539_v11 = vcombine.low %v1040_v62, %v1044_v57 }
 0x2a7   :  { %10154 = vmatpush1.bf16.msra.mxu0 %v14451_v1  ;;  %10195 = vmatpush1.bf16.msra.mxu1 %v14579_v4  ;;  %v1172_v61 = vld [vmem:[#allocation2 + $0x1fe8] sm:$0xff] }
 0x2a8   :  { %10155 = vmatprep.subr.bf16.mxu0 %v14444_v7  ;;  %10196 = vmatprep.subr.bf16.mxu1 %v14572_v8  ;;  %v14668_v1 = vcombine.high %v1168_v63, %v1172_v61  ;;  %v1032_v4 = vld [vmem:[#allocation2 + $0x1b88] sm:$0xff]  ;;  %v14667_v12 = vcombine.low %v1168_v63, %v1172_v61 }
 0x2a9   :  { %v1036_v7 = vld [vmem:[#allocation2 + $0x1ba8] sm:$0xff] }
 0x2aa   :  { %v1160_v8 = vld [vmem:[#allocation2 + $0x1f88] sm:$0xff]  ;;  %v14532_v14 = vcombine.high %v1032_v4, %v1036_v7  ;;  %v14531_v29 = vcombine.low %v1032_v4, %v1036_v7 }
 0x2ab   :  { %10156 = vmatpush1.bf16.msra.mxu0 %v14443_v15  ;;  %10197 = vmatpush1.bf16.msra.mxu1 %v14571_v22  ;;  %v1164_v32 = vld [vmem:[#allocation2 + $0x1fa8] sm:$0xff] }
 0x2ac   :  { %10157 = vmatprep.subr.bf16.mxu0 %v14436_v23  ;;  %10198 = vmatprep.subr.bf16.mxu1 %v14564_v24  ;;  %v14660_v15 = vcombine.high %v1160_v8, %v1164_v32  ;;  %v1024_v22 = vld [vmem:[#allocation2 + $0x1b48] sm:$0xff]  ;;  %v14659_v30 = vcombine.low %v1160_v8, %v1164_v32 }
 0x2ad   :  { %v1028_v23 = vld [vmem:[#allocation2 + $0x1b68] sm:$0xff] }
 0x2ae   :  { %v1152_v24 = vld [vmem:[#allocation2 + $0x1f48] sm:$0xff]  ;;  %v14524_v33 = vcombine.high %v1024_v22, %v1028_v23  ;;  %v14523_v36 = vcombine.low %v1024_v22, %v1028_v23 }
 0x2af   :  { %10158 = vmatpush1.bf16.msra.mxu0 %v14435_v35  ;;  %10199 = vmatpush1.bf16.msra.mxu1 %v14563_v41  ;;  %v1156_v27 = vld [vmem:[#allocation2 + $0x1f68] sm:$0xff] }
 0x2b0   :  { %10159 = vmatprep.subr.bf16.mxu0 %v14428_v43  ;;  %10200 = vmatprep.subr.bf16.mxu1 %v14556_v47  ;;  %v14652_v35 = vcombine.high %v1152_v24, %v1156_v27  ;;  %v1016_v41 = vld [vmem:[#allocation2 + $0x1b08] sm:$0xff]  ;;  %v14651_v52 = vcombine.low %v1152_v24, %v1156_v27 }
 0x2b1   :  { %v1020_v43 = vld [vmem:[#allocation2 + $0x1b28] sm:$0xff] }
 0x2b2   :  { %v1144_v47 = vld [vmem:[#allocation2 + $0x1f08] sm:$0xff]  ;;  %v14516_v42 = vcombine.high %v1016_v41, %v1020_v43  ;;  %v14515_v57 = vcombine.low %v1016_v41, %v1020_v43 }
 0x2b3   :  { %10160 = vmatpush1.bf16.msra.mxu0 %v14427_v45  ;;  %10201 = vmatpush1.bf16.msra.mxu1 %v14555_v55  ;;  %v1148_v48 = vld [vmem:[#allocation2 + $0x1f28] sm:$0xff] }
 0x2b4   :  { %10161 = vmatprep.subr.bf16.mxu0 %v14420_v60  ;;  %10202 = vmatprep.subr.bf16.mxu1 %v14548_v54  ;;  %v14644_v45 = vcombine.high %v1144_v47, %v1148_v48  ;;  %v1008_v55 = vld [vmem:[#allocation2 + $0x1ac8] sm:$0xff]  ;;  %v14643_v63 = vcombine.low %v1144_v47, %v1148_v48 }
 0x2b5   :  { %v1012_v60 = vld [vmem:[#allocation2 + $0x1ae8] sm:$0xff] }
 0x2b6   :  { %v1136_v54 = vld [vmem:[#allocation2 + $0x1ec8] sm:$0xff]  ;;  %v14508_v61 = vcombine.high %v1008_v55, %v1012_v60  ;;  %v14507_v7 = vcombine.low %v1008_v55, %v1012_v60 }
 0x2b7   :  { %10162 = vmatpush1.bf16.msra.mxu0 %v14419_v19  ;;  %10203 = vmatpush1.bf16.msra.mxu1 %v14547_v2  ;;  %v1140_v62 = vld [vmem:[#allocation2 + $0x1ee8] sm:$0xff] }
 0x2b8   :  { %10163 = vmatprep.subr.bf16.mxu0 %v14540_v0  ;;  %10204 = vmatprep.subr.bf16.mxu1 %v14668_v1  ;;  %v14636_v19 = vcombine.high %v1136_v54, %v1140_v62  ;;  %v1000_v2 = vld [vmem:[#allocation2 + $0x1a88] sm:$0xff]  ;;  %v14635_v8 = vcombine.low %v1136_v54, %v1140_v62  ;;  %v1699_v54 = vsub.s32 2, %v16235_v26 }
 0x2b9   :  { %v1004_v0 = vld [vmem:[#allocation2 + $0x1aa8] sm:$0xff] }
 0x2ba   :  { %v1128_v1 = vld [vmem:[#allocation2 + $0x1e88] sm:$0xff]  ;;  %v14500_v32 = vcombine.high %v1000_v2, %v1004_v0  ;;  %v14499_v23 = vcombine.low %v1000_v2, %v1004_v0 }
 0x2bb   :  { %10164 = vmatpush2.bf16.msra.mxu0 %v14539_v11  ;;  %10205 = vmatpush2.bf16.msra.mxu1 %v14667_v12  ;;  %v1132_v4 = vld [vmem:[#allocation2 + $0x1ea8] sm:$0xff] }
 0x2bc   :  { %10165 = vmatprep.subr.bf16.mxu0 %v14532_v14  ;;  %10206 = vmatprep.subr.bf16.mxu1 %v14660_v15  ;;  %v14628_v11 = vcombine.high %v1128_v1, %v1132_v4  ;;  %v992_v12 = vld [vmem:[#allocation2 + $0x1a48] sm:$0xff]  ;;  %v14627_v24 = vcombine.low %v1128_v1, %v1132_v4  ;;  %v15950_v4 = vld [vmem:[#allocation4] sm:$0xff] }
 0x2bd   :  { %v996_v14 = vld [vmem:[#allocation2 + $0x1a68] sm:$0xff] }
 0x2be   :  { %v1120_v15 = vld [vmem:[#allocation2 + $0x1e48] sm:$0xff]  ;;  %v14492_v27 = vcombine.high %v992_v12, %v996_v14  ;;  %v14491_v43 = vcombine.low %v992_v12, %v996_v14 }
 0x2bf   :  { %10166 = vmatpush2.bf16.msra.mxu0 %v14531_v29  ;;  %10207 = vmatpush2.bf16.msra.mxu1 %v14659_v30  ;;  %v1124_v22 = vld [vmem:[#allocation2 + $0x1e68] sm:$0xff] }
 0x2c0   :  { %10167 = vmatprep.subr.bf16.mxu0 %v14524_v33  ;;  %10208 = vmatprep.subr.bf16.mxu1 %v14652_v35  ;;  %v14620_v29 = vcombine.high %v1120_v15, %v1124_v22  ;;  %v984_v30 = vld [vmem:[#allocation2 + $0x1a08] sm:$0xff]  ;;  %v14619_v47 = vcombine.low %v1120_v15, %v1124_v22 }
 0x2c1   :  { %v988_v33 = vld [vmem:[#allocation2 + $0x1a28] sm:$0xff] }
 0x2c2   :  { %v1112_v35 = vld [vmem:[#allocation2 + $0x1e08] sm:$0xff]  ;;  %v14484_v48 = vcombine.high %v984_v30, %v988_v33  ;;  %v14483_v60 = vcombine.low %v984_v30, %v988_v33 }
 0x2c3   :  { %10168 = vmatpush2.bf16.msra.mxu0 %v14523_v36  ;;  %10209 = vmatpush2.bf16.msra.mxu1 %v14651_v52  ;;  %v1116_v41 = vld [vmem:[#allocation2 + $0x1e28] sm:$0xff] }
 0x2c4   :  { %10169 = vmatprep.subr.bf16.mxu0 %v14516_v42  ;;  %10210 = vmatprep.subr.bf16.mxu1 %v14644_v45  ;;  %v14612_v36 = vcombine.high %v1112_v35, %v1116_v41  ;;  %v1232_v52 = vld [vmem:[#allocation2 + $0x21c8] sm:$0xff]  ;;  %v14611_v62 = vcombine.low %v1112_v35, %v1116_v41 }
 0x2c5   :  { %v1236_v42 = vld [vmem:[#allocation2 + $0x21e8] sm:$0xff] }
 0x2c6   :  { %v1360_v45 = vld [vmem:[#allocation2 + $0x25c8] sm:$0xff] }
 0x2c7   :  { %10170 = vmatpush2.bf16.msra.mxu0 %v14515_v57  ;;  %10211 = vmatpush2.bf16.msra.mxu1 %v14643_v63  ;;  %v1364_v55 = vld [vmem:[#allocation2 + $0x25e8] sm:$0xff]  ;;  %v14732_v57 = vcombine.high %v1232_v52, %v1236_v42 }
 0x2c8   :  { %10171 = vmatprep.subr.bf16.mxu0 %v14508_v61  ;;  %10212 = vmatprep.subr.bf16.mxu1 %v14636_v19  ;;  %v14860_v63 = vcombine.high %v1360_v45, %v1364_v55  ;;  %v1703_v61 = vsub.s32 3, %v16235_v26  ;;  %v1224_v19 = vld [vmem:[#allocation2 + $0x2188] sm:$0xff] }
 0x2c9   :  { %v1228_v2 = vld [vmem:[#allocation2 + $0x21a8] sm:$0xff] }
 0x2ca   :  { %v1352_v0 = vld [vmem:[#allocation2 + $0x2588] sm:$0xff]  ;;  %v1704_v12 = vrot.slane %v15950_v4, %v1703_v61  ;;  %v14723_v33 = vcombine.low %v1224_v19, %v1228_v2 }
 0x2cb   :  { %10172 = vmatpush2.bf16.msra.mxu0 %v14507_v7  ;;  %10213 = vmatpush2.bf16.msra.mxu1 %v14635_v8  ;;  %v1356_v1 = vld [vmem:[#allocation2 + $0x25a8] sm:$0xff]  ;;  %v1700_v7 = vrot.slane %v15950_v4, %v1699_v54  ;;  %v14731_v8 = vcombine.low %v1232_v52, %v1236_v42 }
 0x2cc   :  { %10173 = vmatprep.subr.bf16.mxu0 %v14500_v32  ;;  %10214 = vmatprep.subr.bf16.mxu1 %v14628_v11  ;;  %v14859_v32 = vcombine.low %v1360_v45, %v1364_v55  ;;  %v14724_v11 = vcombine.high %v1224_v19, %v1228_v2  ;;  %v14852_v14 = vcombine.high %v1352_v0, %v1356_v1  ;;  %v1216_v15 = vld [vmem:[#allocation2 + $0x2148] sm:$0xff] }
 0x2cd   :  { %v1220_v22 = vld [vmem:[#allocation2 + $0x2168] sm:$0xff]  ;;  %v14851_v41 = vcombine.low %v1352_v0, %v1356_v1 }
 0x2ce   :  { %v1208_v42 = vld [vmem:[#allocation2 + $0x2108] sm:$0xff]  ;;  %v14715_v19 = vcombine.low %v1216_v15, %v1220_v22 }
 0x2cf   :  { %10174 = vmatpush2.bf16.msra.mxu0 %v14499_v23  ;;  %10215 = vmatpush2.bf16.msra.mxu1 %v14627_v24  ;;  %v1344_v24 = vld [vmem:[#allocation2 + $0x2548] sm:$0xff] }
 0x2d0   :  { %10175 = vmatprep.subr.bf16.mxu0 %v14492_v27  ;;  %10216 = vmatprep.subr.bf16.mxu1 %v14620_v29  ;;  %v1348_v27 = vld [vmem:[#allocation2 + $0x2568] sm:$0xff] }
 0x2d1   :  { %v14844_v52 = vcombine.high %v1344_v24, %v1348_v27  ;;  %v1212_v45 = vld [vmem:[#allocation2 + $0x2128] sm:$0xff]  ;;  %v14843_v0 = vcombine.low %v1344_v24, %v1348_v27 }
 0x2d2   :  { %v14708_v1 = vcombine.high %v1208_v42, %v1212_v45  ;;  %v1324_v24 = vld [vmem:[#allocation2 + $0x24a8] sm:$0xff] }
 0x2d3   :  { %10176 = vmatpush2.bf16.msra.mxu0 %v14491_v43  ;;  %10217 = vmatpush2.bf16.msra.mxu1 %v14619_v47  ;;  %v14716_v43 = vcombine.high %v1216_v15, %v1220_v22  ;;  %v1192_v22 = vld [vmem:[#allocation2 + $0x2088] sm:$0xff] }
 0x2d4   :  { %10177 = vmatprep.subr.bf16.mxu0 %v14484_v48  ;;  %10218 = vmatprep.subr.bf16.mxu1 %v14612_v36 }
 0x2d7   :  { %10178 = vmatpush2.bf16.msra.mxu0 %v14483_v60  ;;  %10219 = vmatpush2.bf16.msra.mxu1 %v14611_v62  ;;  %v1336_v60 = vld [vmem:[#allocation2 + $0x2508] sm:$0xff] }
 0x2d8   :  { %10229 = vmatprep.subr.bf16.mxu0 %v14732_v57  ;;  %10270 = vmatprep.subr.bf16.mxu1 %v14860_v63  ;;  %v1340_v62 = vld [vmem:[#allocation2 + $0x2528] sm:$0xff] }
 0x2da   :  { %v9935_v23 = vpop.f32.mrf.mxu0  ;;  %10180 = vmatmul.mubr.bf16.vlgmr.msra.gmra.mxu0 %v16245_v50  ;;  %v9976_v30 = vpop.f32.mrf.mxu1  ;;  %10221 = vmatmul.mubr.bf16.vlgmr.msra.gmra.mxu1 %v16252_v56 }
 0x2db   :  { %v9936_v29 = vadd.f32 %v9935_v23, %v1700_v7  ;;  %10230 = vmatpush1.bf16.msra.mxu0 %v14731_v8  ;;  %10271 = vmatpush1.bf16.msra.mxu1 %v14859_v32  ;;  %v14836_v7 = vcombine.high %v1336_v60, %v1340_v62  ;;  %v1200_v8 = vld [vmem:[#allocation2 + $0x20c8] sm:$0xff]  ;;  %v14835_v23 = vcombine.low %v1336_v60, %v1340_v62 }
 0x2dc   :  { %v9937_v35 = vpop.f32.mrf.mxu0  ;;  %10231 = vmatprep.subr.bf16.mxu0 %v14724_v11  ;;  %v9978_v36 = vpop.f32.mrf.mxu1  ;;  %10272 = vmatprep.subr.bf16.mxu1 %v14852_v14  ;;  %v1204_v32 = vld [vmem:[#allocation2 + $0x20e8] sm:$0xff]  ;;  %v14707_v14 = vcombine.low %v1208_v42, %v1212_v45 }
 0x2dd   :  { %v16359_v47 = vadd.f32 %v9976_v30, %v9936_v29  ;;  %v9938_v48 = vadd.f32 %v9937_v35, %v1704_v12  ;;  %10261 = vmatprep.mubr.bf16.mxu0 %v16259_v3  ;;  %10302 = vmatprep.mubr.bf16.mxu1 %v16262_v9  ;;  %v1328_v11 = vld [vmem:[#allocation2 + $0x24c8] sm:$0xff]  ;;  %v14700_v29 = vcombine.high %v1200_v8, %v1204_v32 }
 0x2de   :  { %v9939_v55 = vpop.f32.mrf.mxu0  ;;  %v9980_v63 = vpop.f32.mrf.mxu1  ;;  %v1332_v12 = vld [vmem:[#allocation2 + $0x24e8] sm:$0xff]  ;;  %v14699_v27 = vcombine.low %v1200_v8, %v1204_v32 }
 0x2df   :  { %v16363_v57 = vadd.f32 %v9978_v36, %v9938_v48  ;;  %10232 = vmatpush1.bf16.msra.mxu0 %v14723_v33  ;;  %10273 = vmatpush1.bf16.msra.mxu1 %v14851_v41  ;;  %v14828_v15 = vcombine.high %v1328_v11, %v1332_v12  ;;  %v1196_v30 = vld [vmem:[#allocation2 + $0x20a8] sm:$0xff]  ;;  %v14827_v35 = vcombine.low %v1328_v11, %v1332_v12 }
 0x2e0   :  { %v9940_v2 = vpop.f32.mrf.mxu0  ;;  %10233 = vmatprep.subr.bf16.mxu0 %v14716_v43  ;;  %v9981_v4 = vpop.f32.mrf.mxu1  ;;  %10274 = vmatprep.subr.bf16.mxu1 %v14844_v52  ;;  %v1320_v33 = vld [vmem:[#allocation2 + $0x2488] sm:$0xff]  ;;  %v14692_v41 = vcombine.high %v1192_v22, %v1196_v30  ;;  %v14691_v45 = vcombine.low %v1192_v22, %v1196_v30 }
 0x2e1   :  { %v14820_v43 = vcombine.high %v1320_v33, %v1324_v24  ;;  %v1184_v48 = vld [vmem:[#allocation2 + $0x2048] sm:$0xff]  ;;  %v14819_v55 = vcombine.low %v1320_v33, %v1324_v24 }
 0x2e2   :  { %v1188_v36 = vld [vmem:[#allocation2 + $0x2068] sm:$0xff] }
 0x2e3   :  { %10234 = vmatpush1.bf16.msra.mxu0 %v14715_v19  ;;  %10275 = vmatpush1.bf16.msra.mxu1 %v14843_v0  ;;  %v1312_v52 = vld [vmem:[#allocation2 + $0x2448] sm:$0xff]  ;;  %v14684_v60 = vcombine.high %v1184_v48, %v1188_v36 }
 0x2e4   :  { %10235 = vmatprep.subr.bf16.mxu0 %v14708_v1  ;;  %10276 = vmatprep.subr.bf16.mxu1 %v14836_v7  ;;  %v1316_v42 = vld [vmem:[#allocation2 + $0x2468] sm:$0xff]  ;;  %v14683_v1 = vcombine.low %v1184_v48, %v1188_v36 }
 0x2e5   :  { %v14812_v62 = vcombine.high %v1312_v52, %v1316_v42  ;;  %v1176_v63 = vld [vmem:[#allocation2 + $0x2008] sm:$0xff]  ;;  %v14811_v4 = vcombine.low %v1312_v52, %v1316_v42 }
 0x2e6   :  { %v1180_v19 = vld [vmem:[#allocation2 + $0x2028] sm:$0xff] }
 0x2e7   :  { %10236 = vmatpush1.bf16.msra.mxu0 %v14707_v14  ;;  %10277 = vmatpush1.bf16.msra.mxu1 %v14835_v23  ;;  %v1304_v2 = vld [vmem:[#allocation2 + $0x2408] sm:$0xff]  ;;  %v14676_v7 = vcombine.high %v1176_v63, %v1180_v19  ;;  %v14675_v23 = vcombine.low %v1176_v63, %v1180_v19 }
 0x2e8   :  { %10237 = vmatprep.subr.bf16.mxu0 %v14700_v29  ;;  %10278 = vmatprep.subr.bf16.mxu1 %v14828_v15  ;;  %v1308_v0 = vld [vmem:[#allocation2 + $0x2428] sm:$0xff] }
 0x2e9   :  { %v14804_v8 = vcombine.high %v1304_v2, %v1308_v0  ;;  %v1296_v32 = vld [vmem:[#allocation2 + $0x23c8] sm:$0xff]  ;;  %v14803_v29 = vcombine.low %v1304_v2, %v1308_v0 }
 0x2ea   :  { %v1300_v11 = vld [vmem:[#allocation2 + $0x23e8] sm:$0xff] }
 0x2eb   :  { %10238 = vmatpush1.bf16.msra.mxu0 %v14699_v27  ;;  %10279 = vmatpush1.bf16.msra.mxu1 %v14827_v35  ;;  %v1424_v12 = vld [vmem:[#allocation2 + $0x27c8] sm:$0xff]  ;;  %v14796_v15 = vcombine.high %v1296_v32, %v1300_v11  ;;  %v14795_v35 = vcombine.low %v1296_v32, %v1300_v11 }
 0x2ec   :  { %10239 = vmatprep.subr.bf16.mxu0 %v14692_v41  ;;  %10280 = vmatprep.subr.bf16.mxu1 %v14820_v43  ;;  %v1428_v14 = vld [vmem:[#allocation2 + $0x27e8] sm:$0xff] }
 0x2ed   :  { %v14924_v22 = vcombine.high %v1424_v12, %v1428_v14  ;;  %v1288_v30 = vld [vmem:[#allocation2 + $0x2388] sm:$0xff]  ;;  %v14923_v41 = vcombine.low %v1424_v12, %v1428_v14 }
 0x2ee   :  { %v1292_v33 = vld [vmem:[#allocation2 + $0x23a8] sm:$0xff] }
 0x2ef   :  { %10240 = vmatpush1.bf16.msra.mxu0 %v14691_v45  ;;  %10281 = vmatpush1.bf16.msra.mxu1 %v14819_v55  ;;  %v1416_v24 = vld [vmem:[#allocation2 + $0x2788] sm:$0xff]  ;;  %v14788_v43 = vcombine.high %v1288_v30, %v1292_v33  ;;  %v14787_v55 = vcombine.low %v1288_v30, %v1292_v33 }
 0x2f0   :  { %10241 = vmatprep.subr.bf16.mxu0 %v14684_v60  ;;  %10282 = vmatprep.subr.bf16.mxu1 %v14812_v62  ;;  %v1420_v27 = vld [vmem:[#allocation2 + $0x27a8] sm:$0xff] }
 0x2f1   :  { %v14916_v48 = vcombine.high %v1416_v24, %v1420_v27  ;;  %v1280_v36 = vld [vmem:[#allocation2 + $0x2348] sm:$0xff]  ;;  %v14915_v60 = vcombine.low %v1416_v24, %v1420_v27 }
 0x2f2   :  { %v1284_v52 = vld [vmem:[#allocation2 + $0x2368] sm:$0xff] }
 0x2f3   :  { %10242 = vmatpush1.bf16.msra.mxu0 %v14683_v1  ;;  %10283 = vmatpush1.bf16.msra.mxu1 %v14811_v4  ;;  %v1408_v42 = vld [vmem:[#allocation2 + $0x2748] sm:$0xff]  ;;  %v14780_v62 = vcombine.high %v1280_v36, %v1284_v52  ;;  %v14779_v4 = vcombine.low %v1280_v36, %v1284_v52 }
 0x2f4   :  { %10243 = vmatprep.subr.bf16.mxu0 %v14676_v7  ;;  %10284 = vmatprep.subr.bf16.mxu1 %v14804_v8  ;;  %v1412_v45 = vld [vmem:[#allocation2 + $0x2768] sm:$0xff] }
 0x2f5   :  { %v14908_v63 = vcombine.high %v1408_v42, %v1412_v45  ;;  %v1272_v19 = vld [vmem:[#allocation2 + $0x2308] sm:$0xff]  ;;  %v14907_v7 = vcombine.low %v1408_v42, %v1412_v45 }
 0x2f6   :  { %v1276_v2 = vld [vmem:[#allocation2 + $0x2328] sm:$0xff] }
 0x2f7   :  { %10244 = vmatpush1.bf16.msra.mxu0 %v14675_v23  ;;  %10285 = vmatpush1.bf16.msra.mxu1 %v14803_v29  ;;  %v1400_v0 = vld [vmem:[#allocation2 + $0x2708] sm:$0xff]  ;;  %v14772_v8 = vcombine.high %v1272_v19, %v1276_v2  ;;  %v14771_v29 = vcombine.low %v1272_v19, %v1276_v2 }
 0x2f8   :  { %10245 = vmatprep.subr.bf16.mxu0 %v14796_v15  ;;  %10286 = vmatprep.subr.bf16.mxu1 %v14924_v22  ;;  %v1404_v1 = vld [vmem:[#allocation2 + $0x2728] sm:$0xff] }
 0x2f9   :  { %v14900_v32 = vcombine.high %v1400_v0, %v1404_v1  ;;  %v1264_v11 = vld [vmem:[#allocation2 + $0x22c8] sm:$0xff]  ;;  %v14899_v15 = vcombine.low %v1400_v0, %v1404_v1 }
 0x2fa   :  { %v1268_v12 = vld [vmem:[#allocation2 + $0x22e8] sm:$0xff] }
 0x2fb   :  { %10246 = vmatpush2.bf16.msra.mxu0 %v14795_v35  ;;  %10287 = vmatpush2.bf16.msra.mxu1 %v14923_v41  ;;  %v1392_v14 = vld [vmem:[#allocation2 + $0x26c8] sm:$0xff]  ;;  %v14764_v22 = vcombine.high %v1264_v11, %v1268_v12  ;;  %v14763_v41 = vcombine.low %v1264_v11, %v1268_v12 }
 0x2fc   :  { %10247 = vmatprep.subr.bf16.mxu0 %v14788_v43  ;;  %10288 = vmatprep.subr.bf16.mxu1 %v14916_v48  ;;  %v1396_v23 = vld [vmem:[#allocation2 + $0x26e8] sm:$0xff] }
 0x2fd   :  { %v14892_v30 = vcombine.high %v1392_v14, %v1396_v23  ;;  %v1256_v33 = vld [vmem:[#allocation2 + $0x2288] sm:$0xff]  ;;  %v14891_v43 = vcombine.low %v1392_v14, %v1396_v23 }
 0x2fe   :  { %v1260_v24 = vld [vmem:[#allocation2 + $0x22a8] sm:$0xff] }
 0x2ff   :  { %10248 = vmatpush2.bf16.msra.mxu0 %v14787_v55  ;;  %10289 = vmatpush2.bf16.msra.mxu1 %v14915_v60  ;;  %v1384_v27 = vld [vmem:[#allocation2 + $0x2688] sm:$0xff]  ;;  %v14756_v48 = vcombine.high %v1256_v33, %v1260_v24  ;;  %v14755_v60 = vcombine.low %v1256_v33, %v1260_v24 }
 0x300   :  { %10249 = vmatprep.subr.bf16.mxu0 %v14780_v62  ;;  %10290 = vmatprep.subr.bf16.mxu1 %v14908_v63  ;;  %v1388_v35 = vld [vmem:[#allocation2 + $0x26a8] sm:$0xff] }
 0x301   :  { %v14884_v36 = vcombine.high %v1384_v27, %v1388_v35  ;;  %v1248_v52 = vld [vmem:[#allocation2 + $0x2248] sm:$0xff]  ;;  %v14883_v62 = vcombine.low %v1384_v27, %v1388_v35 }
 0x302   :  { %v1252_v42 = vld [vmem:[#allocation2 + $0x2268] sm:$0xff] }
 0x303   :  { %10250 = vmatpush2.bf16.msra.mxu0 %v14779_v4  ;;  %10291 = vmatpush2.bf16.msra.mxu1 %v14907_v7  ;;  %v1376_v45 = vld [vmem:[#allocation2 + $0x2648] sm:$0xff]  ;;  %v14748_v63 = vcombine.high %v1248_v52, %v1252_v42  ;;  %v14747_v7 = vcombine.low %v1248_v52, %v1252_v42 }
 0x304   :  { %10251 = vmatprep.subr.bf16.mxu0 %v14772_v8  ;;  %10292 = vmatprep.subr.bf16.mxu1 %v14900_v32  ;;  %v1380_v55 = vld [vmem:[#allocation2 + $0x2668] sm:$0xff] }
 0x305   :  { %v14876_v19 = vcombine.high %v1376_v45, %v1380_v55  ;;  %v1240_v2 = vld [vmem:[#allocation2 + $0x2208] sm:$0xff]  ;;  %v14875_v8 = vcombine.low %v1376_v45, %v1380_v55 }
 0x306   :  { %v1244_v0 = vld [vmem:[#allocation2 + $0x2228] sm:$0xff] }
 0x307   :  { %10252 = vmatpush2.bf16.msra.mxu0 %v14771_v29  ;;  %10293 = vmatpush2.bf16.msra.mxu1 %v14899_v15  ;;  %v1368_v1 = vld [vmem:[#allocation2 + $0x2608] sm:$0xff]  ;;  %v14740_v32 = vcombine.high %v1240_v2, %v1244_v0  ;;  %v14739_v15 = vcombine.low %v1240_v2, %v1244_v0 }
 0x308   :  { %10253 = vmatprep.subr.bf16.mxu0 %v14764_v22  ;;  %10294 = vmatprep.subr.bf16.mxu1 %v14892_v30  ;;  %v1372_v4 = vld [vmem:[#allocation2 + $0x2628] sm:$0xff] }
 0x309   :  { %v14868_v11 = vcombine.high %v1368_v1, %v1372_v4  ;;  %v1488_v12 = vld [vmem:[#allocation2 + $0x29c8] sm:$0xff]  ;;  %v14867_v22 = vcombine.low %v1368_v1, %v1372_v4 }
 0x30a   :  { %v1492_v14 = vld [vmem:[#allocation2 + $0x29e8] sm:$0xff] }
 0x30b   :  { %10254 = vmatpush2.bf16.msra.mxu0 %v14763_v41  ;;  %10295 = vmatpush2.bf16.msra.mxu1 %v14891_v43  ;;  %v1616_v23 = vld [vmem:[#allocation2 + $0x2dc8] sm:$0xff]  ;;  %v14988_v30 = vcombine.high %v1488_v12, %v1492_v14  ;;  %v14987_v43 = vcombine.low %v1488_v12, %v1492_v14 }
 0x30c   :  { %10255 = vmatprep.subr.bf16.mxu0 %v14756_v48  ;;  %10296 = vmatprep.subr.bf16.mxu1 %v14884_v36  ;;  %v1620_v29 = vld [vmem:[#allocation2 + $0x2de8] sm:$0xff] }
 0x30d   :  { %v15116_v33 = vcombine.high %v1616_v23, %v1620_v29  ;;  %v1480_v24 = vld [vmem:[#allocation2 + $0x2988] sm:$0xff]  ;;  %v15115_v48 = vcombine.low %v1616_v23, %v1620_v29 }
 0x30e   :  { %v1484_v27 = vld [vmem:[#allocation2 + $0x29a8] sm:$0xff] }
 0x30f   :  { %10256 = vmatpush2.bf16.msra.mxu0 %v14755_v60  ;;  %10297 = vmatpush2.bf16.msra.mxu1 %v14883_v62  ;;  %v1608_v35 = vld [vmem:[#allocation2 + $0x2d88] sm:$0xff]  ;;  %v14980_v36 = vcombine.high %v1480_v24, %v1484_v27  ;;  %v14979_v2 = vcombine.low %v1480_v24, %v1484_v27 }
 0x310   :  { %10257 = vmatprep.subr.bf16.mxu0 %v14748_v63  ;;  %10298 = vmatprep.subr.bf16.mxu1 %v14876_v19  ;;  %v1612_v41 = vld [vmem:[#allocation2 + $0x2da8] sm:$0xff] }
 0x311   :  { %v15108_v52 = vcombine.high %v1608_v35, %v1612_v41  ;;  %v1472_v42 = vld [vmem:[#allocation2 + $0x2948] sm:$0xff]  ;;  %v15107_v1 = vcombine.low %v1608_v35, %v1612_v41 }
 0x312   :  { %v1476_v45 = vld [vmem:[#allocation2 + $0x2968] sm:$0xff] }
 0x313   :  { %10258 = vmatpush2.bf16.msra.mxu0 %v14747_v7  ;;  %10299 = vmatpush2.bf16.msra.mxu1 %v14875_v8  ;;  %v1600_v60 = vld [vmem:[#allocation2 + $0x2d48] sm:$0xff]  ;;  %v14972_v4 = vcombine.high %v1472_v42, %v1476_v45 }
 0x314   :  { %10259 = vmatprep.subr.bf16.mxu0 %v14740_v32  ;;  %10300 = vmatprep.subr.bf16.mxu1 %v14868_v11  ;;  %v1604_v62 = vld [vmem:[#allocation2 + $0x2d68] sm:$0xff] }
 0x315   :  { %v15100_v11 = vcombine.high %v1600_v60, %v1604_v62  ;;  %v1464_v12 = vld [vmem:[#allocation2 + $0x2908] sm:$0xff] }
 0x316   :  { %v1468_v14 = vld [vmem:[#allocation2 + $0x2928] sm:$0xff] }
 0x317   :  { %10260 = vmatpush2.bf16.msra.mxu0 %v14739_v15  ;;  %10301 = vmatpush2.bf16.msra.mxu1 %v14867_v22  ;;  %v1592_v23 = vld [vmem:[#allocation2 + $0x2d08] sm:$0xff]  ;;  %v14964_v24 = vcombine.high %v1464_v12, %v1468_v14 }
 0x318   :  { %10311 = vmatprep.subr.bf16.mxu0 %v14988_v30  ;;  %10352 = vmatprep.subr.bf16.mxu1 %v15116_v33  ;;  %v1596_v29 = vld [vmem:[#allocation2 + $0x2d28] sm:$0xff]  ;;  %v14971_v30 = vcombine.low %v1472_v42, %v1476_v45 }
 0x319   :  { %v15092_v35 = vcombine.high %v1592_v23, %v1596_v29  ;;  %v1456_v41 = vld [vmem:[#allocation2 + $0x28c8] sm:$0xff] }
 0x31a   :  { %v10017_v55 = vpop.f32.mrf.mxu0  ;;  %10262 = vmatmul.mubr.bf16.vlgmr.msra.gmra.mxu0 %v16277_v21  ;;  %v10058_v19 = vpop.f32.mrf.mxu1  ;;  %10303 = vmatmul.mubr.bf16.vlgmr.msra.gmra.mxu1 %v16282_v25  ;;  %v1448_v45 = vld [vmem:[#allocation2 + $0x2888] sm:$0xff] }
 0x31b   :  { %v10018_v63 = vadd.f32 %v10017_v55, %v16359_v47  ;;  %10312 = vmatpush1.bf16.msra.mxu0 %v14987_v43  ;;  %10353 = vmatpush1.bf16.msra.mxu1 %v15115_v48  ;;  %v1460_v43 = vld [vmem:[#allocation2 + $0x28e8] sm:$0xff]  ;;  %v15091_v55 = vcombine.low %v1592_v23, %v1596_v29 }
 0x31c   :  { %v10019_v0 = vpop.f32.mrf.mxu0  ;;  %10313 = vmatprep.subr.bf16.mxu0 %v14980_v36  ;;  %v10060_v32 = vpop.f32.mrf.mxu1  ;;  %10354 = vmatprep.subr.bf16.mxu1 %v15108_v52  ;;  %v1584_v48 = vld [vmem:[#allocation2 + $0x2cc8] sm:$0xff]  ;;  %v14963_v52 = vcombine.low %v1464_v12, %v1468_v14 }
 0x31d   :  { %v16368_v7 = vadd.f32 %v10058_v19, %v10018_v63  ;;  %v10020_v8 = vadd.f32 %v10019_v0, %v16363_v57  ;;  %10343 = vmatprep.mubr.bf16.mxu0 %v16287_v38  ;;  %10384 = vmatprep.mubr.bf16.mxu1 %v16290_v44  ;;  %v15099_v57 = vcombine.low %v1600_v60, %v1604_v62  ;;  %v1588_v36 = vld [vmem:[#allocation2 + $0x2ce8] sm:$0xff] }
 0x31e   :  { %v10021_v47 = vpop.f32.mrf.mxu0  ;;  %v10062_v22 = vpop.f32.mrf.mxu1  ;;  %v14956_v63 = vcombine.high %v1456_v41, %v1460_v43  ;;  %v15084_v42 = vcombine.high %v1584_v48, %v1588_v36  ;;  %v1452_v19 = vld [vmem:[#allocation2 + $0x28a8] sm:$0xff]  ;;  %v14955_v62 = vcombine.low %v1456_v41, %v1460_v43  ;;  %v15083_v0 = vcombine.low %v1584_v48, %v1588_v36 }
 0x31f   :  { %v16373_v15 = vadd.f32 %v10060_v32, %v10020_v8  ;;  %10314 = vmatpush1.bf16.msra.mxu0 %v14979_v2  ;;  %10355 = vmatpush1.bf16.msra.mxu1 %v15107_v1  ;;  %v1576_v2 = vld [vmem:[#allocation2 + $0x2c88] sm:$0xff]  ;;  %v14948_v1 = vcombine.high %v1448_v45, %v1452_v19  ;;  %v14947_v14 = vcombine.low %v1448_v45, %v1452_v19 }
 0x320   :  { %v10022_v33 = vpop.f32.mrf.mxu0  ;;  %10315 = vmatprep.subr.bf16.mxu0 %v14972_v4  ;;  %v10063_v27 = vpop.f32.mrf.mxu1  ;;  %10356 = vmatprep.subr.bf16.mxu1 %v15100_v11  ;;  %v1580_v60 = vld [vmem:[#allocation2 + $0x2ca8] sm:$0xff] }
 0x321   :  { %v15076_v4 = vcombine.high %v1576_v2, %v1580_v60  ;;  %v1440_v8 = vld [vmem:[#allocation2 + $0x2848] sm:$0xff]  ;;  %v15075_v47 = vcombine.low %v1576_v2, %v1580_v60 }
 0x322   :  { %v1444_v32 = vld [vmem:[#allocation2 + $0x2868] sm:$0xff] }
 0x323   :  { %10316 = vmatpush1.bf16.msra.mxu0 %v14971_v30  ;;  %10357 = vmatpush1.bf16.msra.mxu1 %v15099_v57  ;;  %v1568_v11 = vld [vmem:[#allocation2 + $0x2c48] sm:$0xff]  ;;  %v14940_v23 = vcombine.high %v1440_v8, %v1444_v32 }
 0x324   :  { %10317 = vmatprep.subr.bf16.mxu0 %v14964_v24  ;;  %10358 = vmatprep.subr.bf16.mxu1 %v15092_v35  ;;  %v1572_v12 = vld [vmem:[#allocation2 + $0x2c68] sm:$0xff]  ;;  %v14939_v24 = vcombine.low %v1440_v8, %v1444_v32 }
 0x325   :  { %v15068_v29 = vcombine.high %v1568_v11, %v1572_v12  ;;  %v1432_v22 = vld [vmem:[#allocation2 + $0x2808] sm:$0xff]  ;;  %v15067_v27 = vcombine.low %v1568_v11, %v1572_v12 }
 0x326   :  { %v1436_v30 = vld [vmem:[#allocation2 + $0x2828] sm:$0xff] }
 0x327   :  { %10318 = vmatpush1.bf16.msra.mxu0 %v14963_v52  ;;  %10359 = vmatpush1.bf16.msra.mxu1 %v15091_v55  ;;  %v1560_v33 = vld [vmem:[#allocation2 + $0x2c08] sm:$0xff]  ;;  %v14932_v35 = vcombine.high %v1432_v22, %v1436_v30  ;;  %v14931_v55 = vcombine.low %v1432_v22, %v1436_v30 }
 0x328   :  { %10319 = vmatprep.subr.bf16.mxu0 %v14956_v63  ;;  %10360 = vmatprep.subr.bf16.mxu1 %v15084_v42  ;;  %v1564_v57 = vld [vmem:[#allocation2 + $0x2c28] sm:$0xff] }
 0x329   :  { %v15060_v41 = vcombine.high %v1560_v33, %v1564_v57  ;;  %v1552_v43 = vld [vmem:[#allocation2 + $0x2bc8] sm:$0xff]  ;;  %v15059_v63 = vcombine.low %v1560_v33, %v1564_v57 }
 0x32a   :  { %v1556_v48 = vld [vmem:[#allocation2 + $0x2be8] sm:$0xff] }
 0x32b   :  { %10320 = vmatpush1.bf16.msra.mxu0 %v14955_v62  ;;  %10361 = vmatpush1.bf16.msra.mxu1 %v15083_v0  ;;  %v1680_v36 = vld [vmem:[#allocation2 + $0x2fc8] sm:$0xff]  ;;  %v15052_v42 = vcombine.high %v1552_v43, %v1556_v48  ;;  %v15051_v0 = vcombine.low %v1552_v43, %v1556_v48 }
 0x32c   :  { %10321 = vmatprep.subr.bf16.mxu0 %v14948_v1  ;;  %10362 = vmatprep.subr.bf16.mxu1 %v15076_v4  ;;  %v1684_v52 = vld [vmem:[#allocation2 + $0x2fe8] sm:$0xff] }
 0x32d   :  { %v15180_v45 = vcombine.high %v1680_v36, %v1684_v52  ;;  %v1544_v19 = vld [vmem:[#allocation2 + $0x2b88] sm:$0xff]  ;;  %v15179_v1 = vcombine.low %v1680_v36, %v1684_v52 }
 0x32e   :  { %v1548_v2 = vld [vmem:[#allocation2 + $0x2ba8] sm:$0xff] }
 0x32f   :  { %10322 = vmatpush1.bf16.msra.mxu0 %v14947_v14  ;;  %10363 = vmatpush1.bf16.msra.mxu1 %v15075_v47  ;;  %v1672_v60 = vld [vmem:[#allocation2 + $0x2f88] sm:$0xff]  ;;  %v15044_v4 = vcombine.high %v1544_v19, %v1548_v2  ;;  %v15043_v47 = vcombine.low %v1544_v19, %v1548_v2 }
 0x330   :  { %10323 = vmatprep.subr.bf16.mxu0 %v14940_v23  ;;  %10364 = vmatprep.subr.bf16.mxu1 %v15068_v29  ;;  %v1676_v62 = vld [vmem:[#allocation2 + $0x2fa8] sm:$0xff] }
 0x331   :  { %v15172_v8 = vcombine.high %v1672_v60, %v1676_v62  ;;  %v1536_v32 = vld [vmem:[#allocation2 + $0x2b48] sm:$0xff]  ;;  %v15171_v23 = vcombine.low %v1672_v60, %v1676_v62 }
 0x332   :  { %v1540_v11 = vld [vmem:[#allocation2 + $0x2b68] sm:$0xff] }
 0x333   :  { %10324 = vmatpush1.bf16.msra.mxu0 %v14939_v24  ;;  %10365 = vmatpush1.bf16.msra.mxu1 %v15067_v27  ;;  %v1664_v12 = vld [vmem:[#allocation2 + $0x2f48] sm:$0xff]  ;;  %v15036_v29 = vcombine.high %v1536_v32, %v1540_v11  ;;  %v15035_v27 = vcombine.low %v1536_v32, %v1540_v11 }
 0x334   :  { %10325 = vmatprep.subr.bf16.mxu0 %v14932_v35  ;;  %10366 = vmatprep.subr.bf16.mxu1 %v15060_v41  ;;  %v1668_v14 = vld [vmem:[#allocation2 + $0x2f68] sm:$0xff] }
 0x335   :  { %v15164_v22 = vcombine.high %v1664_v12, %v1668_v14  ;;  %v1528_v30 = vld [vmem:[#allocation2 + $0x2b08] sm:$0xff]  ;;  %v15163_v35 = vcombine.low %v1664_v12, %v1668_v14 }
 0x336   :  { %v1532_v33 = vld [vmem:[#allocation2 + $0x2b28] sm:$0xff] }
 0x337   :  { %10326 = vmatpush1.bf16.msra.mxu0 %v14931_v55  ;;  %10367 = vmatpush1.bf16.msra.mxu1 %v15059_v63  ;;  %v1656_v57 = vld [vmem:[#allocation2 + $0x2f08] sm:$0xff]  ;;  %v15028_v41 = vcombine.high %v1528_v30, %v1532_v33  ;;  %v15027_v63 = vcombine.low %v1528_v30, %v1532_v33 }
 0x338   :  { %10327 = vmatprep.subr.bf16.mxu0 %v15052_v42  ;;  %10368 = vmatprep.subr.bf16.mxu1 %v15180_v45  ;;  %v1660_v24 = vld [vmem:[#allocation2 + $0x2f28] sm:$0xff] }
 0x339   :  { %v15156_v43 = vcombine.high %v1656_v57, %v1660_v24  ;;  %v1520_v48 = vld [vmem:[#allocation2 + $0x2ac8] sm:$0xff]  ;;  %v15155_v42 = vcombine.low %v1656_v57, %v1660_v24 }
 0x33a   :  { %v1524_v36 = vld [vmem:[#allocation2 + $0x2ae8] sm:$0xff] }
 0x33b   :  { %10328 = vmatpush2.bf16.msra.mxu0 %v15051_v0  ;;  %10369 = vmatpush2.bf16.msra.mxu1 %v15179_v1  ;;  %v1648_v52 = vld [vmem:[#allocation2 + $0x2ec8] sm:$0xff]  ;;  %v15020_v45 = vcombine.high %v1520_v48, %v1524_v36  ;;  %v15019_v1 = vcombine.low %v1520_v48, %v1524_v36  ;;  %v209_v36 = vld [vmem:[#allocation2 + $0x1d0] sm:$0xff] }
 0x33c   :  { %10329 = vmatprep.subr.bf16.mxu0 %v15044_v4  ;;  %10370 = vmatprep.subr.bf16.mxu1 %v15172_v8  ;;  %v1652_v55 = vld [vmem:[#allocation2 + $0x2ee8] sm:$0xff] }
 0x33d   :  { %v15148_v19 = vcombine.high %v1648_v52, %v1652_v55  ;;  %v1512_v2 = vld [vmem:[#allocation2 + $0x2a88] sm:$0xff]  ;;  %v15147_v4 = vcombine.low %v1648_v52, %v1652_v55  ;;  %v213_v52 = vld [vmem:[#allocation2 + $0x1f0] sm:$0xff] }
 0x33e   :  { %v1516_v60 = vld [vmem:[#allocation2 + $0x2aa8] sm:$0xff]  ;;  %v337_v55 = vld [vmem:[#allocation2 + $0x5d0] sm:$0xff] }
 0x33f   :  { %10330 = vmatpush2.bf16.msra.mxu0 %v15043_v47  ;;  %10371 = vmatpush2.bf16.msra.mxu1 %v15171_v23  ;;  %v1640_v62 = vld [vmem:[#allocation2 + $0x2e88] sm:$0xff]  ;;  %v15012_v8 = vcombine.high %v1512_v2, %v1516_v60  ;;  %v15011_v23 = vcombine.low %v1512_v2, %v1516_v60  ;;  %v201_v60 = vld [vmem:[#allocation2 + $0x190] sm:$0xff] }
 0x340   :  { %10331 = vmatprep.subr.bf16.mxu0 %v15036_v29  ;;  %10372 = vmatprep.subr.bf16.mxu1 %v15164_v22  ;;  %v1644_v0 = vld [vmem:[#allocation2 + $0x2ea8] sm:$0xff] }
 0x341   :  { %v15140_v32 = vcombine.high %v1640_v62, %v1644_v0  ;;  %v1504_v11 = vld [vmem:[#allocation2 + $0x2a48] sm:$0xff]  ;;  %v15139_v29 = vcombine.low %v1640_v62, %v1644_v0  ;;  %v205_v62 = vld [vmem:[#allocation2 + $0x1b0] sm:$0xff] }
 0x342   :  { %v1508_v12 = vld [vmem:[#allocation2 + $0x2a68] sm:$0xff]  ;;  %v329_v0 = vld [vmem:[#allocation2 + $0x590] sm:$0xff] }
 0x343   :  { %10332 = vmatpush2.bf16.msra.mxu0 %v15035_v27  ;;  %10373 = vmatpush2.bf16.msra.mxu1 %v15163_v35  ;;  %v1632_v14 = vld [vmem:[#allocation2 + $0x2e48] sm:$0xff]  ;;  %v15004_v22 = vcombine.high %v1504_v11, %v1508_v12  ;;  %v15003_v35 = vcombine.low %v1504_v11, %v1508_v12  ;;  %v193_v12 = vld [vmem:[#allocation2 + $0x150] sm:$0xff] }
 0x344   :  { %10333 = vmatprep.subr.bf16.mxu0 %v15028_v41  ;;  %10374 = vmatprep.subr.bf16.mxu1 %v15156_v43  ;;  %v1636_v47 = vld [vmem:[#allocation2 + $0x2e68] sm:$0xff] }
 0x345   :  { %v15132_v30 = vcombine.high %v1632_v14, %v1636_v47  ;;  %v1496_v33 = vld [vmem:[#allocation2 + $0x2a08] sm:$0xff]  ;;  %v15131_v41 = vcombine.low %v1632_v14, %v1636_v47  ;;  %v197_v14 = vld [vmem:[#allocation2 + $0x170] sm:$0xff] }
 0x346   :  { %v1500_v57 = vld [vmem:[#allocation2 + $0x2a28] sm:$0xff] }
 0x347   :  { %10334 = vmatpush2.bf16.msra.mxu0 %v15027_v63  ;;  %10375 = vmatpush2.bf16.msra.mxu1 %v15155_v42  ;;  %v1624_v24 = vld [vmem:[#allocation2 + $0x2e08] sm:$0xff]  ;;  %v14996_v43 = vcombine.high %v1496_v33, %v1500_v57  ;;  %v341_v63 = vld [vmem:[#allocation2 + $0x5f0] sm:$0xff]  ;;  %v14995_v42 = vcombine.low %v1496_v33, %v1500_v57  ;;  %v13701_v33 = vcombine.low %v201_v60, %v205_v62 }
 0x348   :  { %10335 = vmatprep.subr.bf16.mxu0 %v15020_v45  ;;  %10376 = vmatprep.subr.bf16.mxu1 %v15148_v19  ;;  %v1628_v27 = vld [vmem:[#allocation2 + $0x2e28] sm:$0xff]  ;;  %v13710_v19 = vcombine.high %v209_v36, %v213_v52  ;;  %v13838_v2 = vcombine.high %v337_v55, %v341_v63 }
 0x349   :  { %v15124_v48 = vcombine.high %v1624_v24, %v1628_v27  ;;  %v15123_v45 = vcombine.low %v1624_v24, %v1628_v27  ;;  %v13694_v27 = vcombine.high %v193_v12, %v197_v14 }
 0x34b   :  { %10336 = vmatpush2.bf16.msra.mxu0 %v15019_v1  ;;  %10377 = vmatpush2.bf16.msra.mxu1 %v15147_v4  ;;  %v333_v1 = vld [vmem:[#allocation2 + $0x5b0] sm:$0xff]  ;;  %v13709_v4 = vcombine.low %v209_v36, %v213_v52 }
 0x34c   :  { %10337 = vmatprep.subr.bf16.mxu0 %v15012_v8  ;;  %10378 = vmatprep.subr.bf16.mxu1 %v15140_v32  ;;  %v13837_v8 = vcombine.low %v337_v55, %v341_v63  ;;  %v13702_v32 = vcombine.high %v201_v60, %v205_v62  ;;  %v13830_v11 = vcombine.high %v329_v0, %v333_v1  ;;  %v185_v36 = vld [vmem:[#allocation2 + $0x110] sm:$0xff] }
 0x34d   :  { %v13829_v24 = vcombine.low %v329_v0, %v333_v1  ;;  %v189_v52 = vld [vmem:[#allocation2 + $0x130] sm:$0xff] }
 0x34e   :  { %v313_v55 = vld [vmem:[#allocation2 + $0x510] sm:$0xff]  ;;  %v13686_v60 = vcombine.high %v185_v36, %v189_v52 }
 0x34f   :  { %10338 = vmatpush2.bf16.msra.mxu0 %v15011_v23  ;;  %10379 = vmatpush2.bf16.msra.mxu1 %v15139_v29  ;;  %v321_v23 = vld [vmem:[#allocation2 + $0x550] sm:$0xff] }
 0x350   :  { %10339 = vmatprep.subr.bf16.mxu0 %v15004_v22  ;;  %10380 = vmatprep.subr.bf16.mxu1 %v15132_v30  ;;  %v325_v29 = vld [vmem:[#allocation2 + $0x570] sm:$0xff] }
 0x351   :  { %v317_v63 = vld [vmem:[#allocation2 + $0x530] sm:$0xff] }
 0x352   :  { %v13814_v0 = vcombine.high %v313_v55, %v317_v63  ;;  %v177_v1 = vld [vmem:[#allocation2 + $0xd0] sm:$0xff] }
 0x353   :  { %10340 = vmatpush2.bf16.msra.mxu0 %v15003_v35  ;;  %10381 = vmatpush2.bf16.msra.mxu1 %v15131_v41 }
 0x354   :  { %10341 = vmatprep.subr.bf16.mxu0 %v14996_v43  ;;  %10382 = vmatprep.subr.bf16.mxu1 %v15124_v48  ;;  %v13822_v48 = vcombine.high %v321_v23, %v325_v29 }
 0x357   :  { %10342 = vmatpush2.bf16.msra.mxu0 %v14995_v42  ;;  %10383 = vmatpush2.bf16.msra.mxu1 %v15123_v45 }
 0x358   :  { %10393 = vmatprep.subr.bf16.mxu0 %v13710_v19  ;;  %10434 = vmatprep.subr.bf16.mxu1 %v13838_v2  ;;  %v13693_v19 = vcombine.low %v193_v12, %v197_v14  ;;  %v169_v14 = vld [vmem:[#allocation2 + $0x90] sm:$0xff] }
 0x35a   :  { %v10099_v47 = vpop.f32.mrf.mxu0  ;;  %10344 = vmatmul.mubr.bf16.vlgmr.msra.gmra.mxu0 %v16307_v10  ;;  %v10140_v30 = vpop.f32.mrf.mxu1  ;;  %10385 = vmatmul.mubr.bf16.vlgmr.msra.gmra.mxu1 %v16309_v13 }
 0x35b   :  { %v10100_v22 = vadd.f32 %v10099_v47, %v16368_v7  ;;  %10394 = vmatpush1.bf16.msra.mxu0 %v13709_v4  ;;  %10435 = vmatpush1.bf16.msra.mxu1 %v13837_v8  ;;  %v181_v4 = vld [vmem:[#allocation2 + $0xf0] sm:$0xff]  ;;  %v13813_v47 = vcombine.low %v313_v55, %v317_v63 }
 0x35c   :  { %v10101_v57 = vpop.f32.mrf.mxu0  ;;  %10395 = vmatprep.subr.bf16.mxu0 %v13702_v32  ;;  %v10142_v43 = vpop.f32.mrf.mxu1  ;;  %10436 = vmatprep.subr.bf16.mxu1 %v13830_v11  ;;  %v305_v8 = vld [vmem:[#allocation2 + $0x4d0] sm:$0xff]  ;;  %v13685_v11 = vcombine.low %v185_v36, %v189_v52 }
 0x35d   :  { %v16378_v35 = vadd.f32 %v10140_v30, %v10100_v22  ;;  %v10102_v41 = vadd.f32 %v10101_v57, %v16373_v15  ;;  %10425 = vmatprep.mubr.bf16.mxu0 %v16157_v58  ;;  %10466 = vmatprep.mubr.bf16.mxu1 %v16159_v59  ;;  %v13821_v15 = vcombine.low %v321_v23, %v325_v29  ;;  %v309_v32 = vld [vmem:[#allocation2 + $0x4f0] sm:$0xff] }
 0x35e   :  { %v10103_v7 = vpop.f32.mrf.mxu0  ;;  %v10144_v45 = vpop.f32.mrf.mxu1  ;;  %v13678_v22 = vcombine.high %v177_v1, %v181_v4  ;;  %v13806_v12 = vcombine.high %v305_v8, %v309_v32  ;;  %v173_v30 = vld [vmem:[#allocation2 + $0xb0] sm:$0xff]  ;;  %v13677_v29 = vcombine.low %v177_v1, %v181_v4  ;;  %v13805_v57 = vcombine.low %v305_v8, %v309_v32 }
 0x35f   :  { %v16383_v42 = vadd.f32 %v10142_v43, %v10102_v41  ;;  %10396 = vmatpush1.bf16.msra.mxu0 %v13701_v33  ;;  %10437 = vmatpush1.bf16.msra.mxu1 %v13829_v24  ;;  %v297_v33 = vld [vmem:[#allocation2 + $0x490] sm:$0xff]  ;;  %v13670_v24 = vcombine.high %v169_v14, %v173_v30  ;;  %v13669_v52 = vcombine.low %v169_v14, %v173_v30 }
 0x360   :  { %v10104_v2 = vpop.f32.mrf.mxu0  ;;  %10397 = vmatprep.subr.bf16.mxu0 %v13694_v27  ;;  %v10145_v62 = vpop.f32.mrf.mxu1  ;;  %10438 = vmatprep.subr.bf16.mxu1 %v13822_v48  ;;  %v301_v23 = vld [vmem:[#allocation2 + $0x4b0] sm:$0xff] }
 0x361   :  { %v13798_v27 = vcombine.high %v297_v33, %v301_v23  ;;  %v161_v41 = vld [vmem:[#allocation2 + $0x50] sm:$0xff]  ;;  %v13797_v7 = vcombine.low %v297_v33, %v301_v23 }
 0x362   :  { %v165_v43 = vld [vmem:[#allocation2 + $0x70] sm:$0xff] }
 0x363   :  { %10398 = vmatpush1.bf16.msra.mxu0 %v13693_v19  ;;  %10439 = vmatpush1.bf16.msra.mxu1 %v13821_v15  ;;  %v289_v48 = vld [vmem:[#allocation2 + $0x450] sm:$0xff]  ;;  %v13662_v55 = vcombine.high %v161_v41, %v165_v43 }
 0x364   :  { %10399 = vmatprep.subr.bf16.mxu0 %v13686_v60  ;;  %10440 = vmatprep.subr.bf16.mxu1 %v13814_v0  ;;  %v293_v36 = vld [vmem:[#allocation2 + $0x470] sm:$0xff]  ;;  %v13661_v60 = vcombine.low %v161_v41, %v165_v43 }
 0x365   :  { %v13790_v63 = vcombine.high %v289_v48, %v293_v36  ;;  %v153_v45 = vld [vmem:[#allocation2 + $0x10] sm:$0xff]  ;;  %v13789_v62 = vcombine.low %v289_v48, %v293_v36 }
 0x366   :  { %v157_v19 = vld [vmem:[#allocation2 + $0x30] sm:$0xff] }
 0x367   :  { %10400 = vmatpush1.bf16.msra.mxu0 %v13685_v11  ;;  %10441 = vmatpush1.bf16.msra.mxu1 %v13813_v47  ;;  %v281_v2 = vld [vmem:[#allocation2 + $0x410] sm:$0xff]  ;;  %v13654_v0 = vcombine.high %v153_v45, %v157_v19  ;;  %v13653_v47 = vcombine.low %v153_v45, %v157_v19 }
 0x368   :  { %10401 = vmatprep.subr.bf16.mxu0 %v13678_v22  ;;  %10442 = vmatprep.subr.bf16.mxu1 %v13806_v12  ;;  %v285_v15 = vld [vmem:[#allocation2 + $0x430] sm:$0xff] }
 0x369   :  { %v13782_v1 = vcombine.high %v281_v2, %v285_v15  ;;  %v273_v4 = vld [vmem:[#allocation2 + $0x3d0] sm:$0xff]  ;;  %v13781_v22 = vcombine.low %v281_v2, %v285_v15 }
 0x36a   :  { %v277_v8 = vld [vmem:[#allocation2 + $0x3f0] sm:$0xff] }
 0x36b   :  { %10402 = vmatpush1.bf16.msra.mxu0 %v13677_v29  ;;  %10443 = vmatpush1.bf16.msra.mxu1 %v13805_v57  ;;  %v401_v32 = vld [vmem:[#allocation2 + $0x7d0] sm:$0xff]  ;;  %v13774_v12 = vcombine.high %v273_v4, %v277_v8  ;;  %v13773_v57 = vcombine.low %v273_v4, %v277_v8 }
 0x36c   :  { %10403 = vmatprep.subr.bf16.mxu0 %v13670_v24  ;;  %10444 = vmatprep.subr.bf16.mxu1 %v13798_v27  ;;  %v405_v11 = vld [vmem:[#allocation2 + $0x7f0] sm:$0xff] }
 0x36d   :  { %v13902_v14 = vcombine.high %v401_v32, %v405_v11  ;;  %v265_v30 = vld [vmem:[#allocation2 + $0x390] sm:$0xff]  ;;  %v13901_v24 = vcombine.low %v401_v32, %v405_v11 }
 0x36e   :  { %v269_v33 = vld [vmem:[#allocation2 + $0x3b0] sm:$0xff] }
 0x36f   :  { %10404 = vmatpush1.bf16.msra.mxu0 %v13669_v52  ;;  %10445 = vmatpush1.bf16.msra.mxu1 %v13797_v7  ;;  %v393_v23 = vld [vmem:[#allocation2 + $0x790] sm:$0xff]  ;;  %v13766_v27 = vcombine.high %v265_v30, %v269_v33  ;;  %v13765_v7 = vcombine.low %v265_v30, %v269_v33 }
 0x370   :  { %10405 = vmatprep.subr.bf16.mxu0 %v13662_v55  ;;  %10446 = vmatprep.subr.bf16.mxu1 %v13790_v63  ;;  %v397_v29 = vld [vmem:[#allocation2 + $0x7b0] sm:$0xff] }
 0x371   :  { %v13894_v41 = vcombine.high %v393_v23, %v397_v29  ;;  %v257_v43 = vld [vmem:[#allocation2 + $0x350] sm:$0xff]  ;;  %v13893_v55 = vcombine.low %v393_v23, %v397_v29 }
 0x372   :  { %v261_v48 = vld [vmem:[#allocation2 + $0x370] sm:$0xff] }
 0x373   :  { %10406 = vmatpush1.bf16.msra.mxu0 %v13661_v60  ;;  %10447 = vmatpush1.bf16.msra.mxu1 %v13789_v62  ;;  %v385_v36 = vld [vmem:[#allocation2 + $0x750] sm:$0xff]  ;;  %v13758_v63 = vcombine.high %v257_v43, %v261_v48  ;;  %v13757_v62 = vcombine.low %v257_v43, %v261_v48 }
 0x374   :  { %10407 = vmatprep.subr.bf16.mxu0 %v13654_v0  ;;  %10448 = vmatprep.subr.bf16.mxu1 %v13782_v1  ;;  %v389_v52 = vld [vmem:[#allocation2 + $0x770] sm:$0xff] }
 0x375   :  { %v13886_v45 = vcombine.high %v385_v36, %v389_v52  ;;  %v249_v19 = vld [vmem:[#allocation2 + $0x310] sm:$0xff]  ;;  %v13885_v0 = vcombine.low %v385_v36, %v389_v52 }
 0x376   :  { %v253_v2 = vld [vmem:[#allocation2 + $0x330] sm:$0xff] }
 0x377   :  { %10408 = vmatpush1.bf16.msra.mxu0 %v13653_v47  ;;  %10449 = vmatpush1.bf16.msra.mxu1 %v13781_v22  ;;  %v377_v15 = vld [vmem:[#allocation2 + $0x710] sm:$0xff]  ;;  %v13750_v1 = vcombine.high %v249_v19, %v253_v2  ;;  %v13749_v22 = vcombine.low %v249_v19, %v253_v2 }
 0x378   :  { %10409 = vmatprep.subr.bf16.mxu0 %v13774_v12  ;;  %10450 = vmatprep.subr.bf16.mxu1 %v13902_v14  ;;  %v381_v60 = vld [vmem:[#allocation2 + $0x730] sm:$0xff] }
 0x379   :  { %v13878_v4 = vcombine.high %v377_v15, %v381_v60  ;;  %v241_v8 = vld [vmem:[#allocation2 + $0x2d0] sm:$0xff]  ;;  %v13877_v12 = vcombine.low %v377_v15, %v381_v60 }
 0x37a   :  { %v245_v32 = vld [vmem:[#allocation2 + $0x2f0] sm:$0xff] }
 0x37b   :  { %10410 = vmatpush2.bf16.msra.mxu0 %v13773_v57  ;;  %10451 = vmatpush2.bf16.msra.mxu1 %v13901_v24  ;;  %v369_v11 = vld [vmem:[#allocation2 + $0x6d0] sm:$0xff]  ;;  %v13742_v14 = vcombine.high %v241_v8, %v245_v32  ;;  %v13741_v24 = vcombine.low %v241_v8, %v245_v32 }
 0x37c   :  { %10411 = vmatprep.subr.bf16.mxu0 %v13766_v27  ;;  %10452 = vmatprep.subr.bf16.mxu1 %v13894_v41  ;;  %v373_v47 = vld [vmem:[#allocation2 + $0x6f0] sm:$0xff] }
 0x37d   :  { %v13870_v30 = vcombine.high %v369_v11, %v373_v47  ;;  %v233_v33 = vld [vmem:[#allocation2 + $0x290] sm:$0xff]  ;;  %v13869_v27 = vcombine.low %v369_v11, %v373_v47 }
 0x37e   :  { %v237_v23 = vld [vmem:[#allocation2 + $0x2b0] sm:$0xff] }
 0x37f   :  { %10412 = vmatpush2.bf16.msra.mxu0 %v13765_v7  ;;  %10453 = vmatpush2.bf16.msra.mxu1 %v13893_v55  ;;  %v361_v29 = vld [vmem:[#allocation2 + $0x690] sm:$0xff]  ;;  %v13734_v41 = vcombine.high %v233_v33, %v237_v23  ;;  %v13733_v55 = vcombine.low %v233_v33, %v237_v23 }
 0x380   :  { %10413 = vmatprep.subr.bf16.mxu0 %v13758_v63  ;;  %10454 = vmatprep.subr.bf16.mxu1 %v13886_v45  ;;  %v365_v57 = vld [vmem:[#allocation2 + $0x6b0] sm:$0xff] }
 0x381   :  { %v13862_v43 = vcombine.high %v361_v29, %v365_v57  ;;  %v225_v48 = vld [vmem:[#allocation2 + $0x250] sm:$0xff]  ;;  %v13861_v63 = vcombine.low %v361_v29, %v365_v57 }
 0x382   :  { %v229_v36 = vld [vmem:[#allocation2 + $0x270] sm:$0xff] }
 0x383   :  { %10414 = vmatpush2.bf16.msra.mxu0 %v13757_v62  ;;  %10455 = vmatpush2.bf16.msra.mxu1 %v13885_v0  ;;  %v353_v52 = vld [vmem:[#allocation2 + $0x650] sm:$0xff]  ;;  %v13726_v45 = vcombine.high %v225_v48, %v229_v36  ;;  %v13725_v0 = vcombine.low %v225_v48, %v229_v36 }
 0x384   :  { %10415 = vmatprep.subr.bf16.mxu0 %v13750_v1  ;;  %10456 = vmatprep.subr.bf16.mxu1 %v13878_v4  ;;  %v357_v7 = vld [vmem:[#allocation2 + $0x670] sm:$0xff] }
 0x385   :  { %v13854_v19 = vcombine.high %v353_v52, %v357_v7  ;;  %v217_v2 = vld [vmem:[#allocation2 + $0x210] sm:$0xff]  ;;  %v13853_v1 = vcombine.low %v353_v52, %v357_v7 }
 0x386   :  { %v221_v15 = vld [vmem:[#allocation2 + $0x230] sm:$0xff] }
 0x387   :  { %10416 = vmatpush2.bf16.msra.mxu0 %v13749_v22  ;;  %10457 = vmatpush2.bf16.msra.mxu1 %v13877_v12  ;;  %v345_v60 = vld [vmem:[#allocation2 + $0x610] sm:$0xff]  ;;  %v13718_v4 = vcombine.high %v217_v2, %v221_v15  ;;  %v13717_v12 = vcombine.low %v217_v2, %v221_v15 }
 0x388   :  { %10417 = vmatprep.subr.bf16.mxu0 %v13742_v14  ;;  %10458 = vmatprep.subr.bf16.mxu1 %v13870_v30  ;;  %v349_v62 = vld [vmem:[#allocation2 + $0x630] sm:$0xff] }
 0x389   :  { %v13846_v8 = vcombine.high %v345_v60, %v349_v62  ;;  %v465_v32 = vld [vmem:[#allocation2 + $0x9d0] sm:$0xff]  ;;  %v13845_v14 = vcombine.low %v345_v60, %v349_v62 }
 0x38a   :  { %v469_v11 = vld [vmem:[#allocation2 + $0x9f0] sm:$0xff] }
 0x38b   :  { %10418 = vmatpush2.bf16.msra.mxu0 %v13741_v24  ;;  %10459 = vmatpush2.bf16.msra.mxu1 %v13869_v27  ;;  %v593_v47 = vld [vmem:[#allocation2 + $0xdd0] sm:$0xff]  ;;  %v13966_v30 = vcombine.high %v465_v32, %v469_v11  ;;  %v13965_v27 = vcombine.low %v465_v32, %v469_v11 }
 0x38c   :  { %10419 = vmatprep.subr.bf16.mxu0 %v13734_v41  ;;  %10460 = vmatprep.subr.bf16.mxu1 %v13862_v43  ;;  %v597_v22 = vld [vmem:[#allocation2 + $0xdf0] sm:$0xff] }
 0x38d   :  { %v14094_v33 = vcombine.high %v593_v47, %v597_v22  ;;  %v457_v23 = vld [vmem:[#allocation2 + $0x990] sm:$0xff]  ;;  %v14093_v41 = vcombine.low %v593_v47, %v597_v22 }
 0x38e   :  { %v461_v29 = vld [vmem:[#allocation2 + $0x9b0] sm:$0xff] }
 0x38f   :  { %10420 = vmatpush2.bf16.msra.mxu0 %v13733_v55  ;;  %10461 = vmatpush2.bf16.msra.mxu1 %v13861_v63  ;;  %v585_v57 = vld [vmem:[#allocation2 + $0xd90] sm:$0xff]  ;;  %v13958_v43 = vcombine.high %v457_v23, %v461_v29  ;;  %v13957_v2 = vcombine.low %v457_v23, %v461_v29 }
 0x390   :  { %10421 = vmatprep.subr.bf16.mxu0 %v13726_v45  ;;  %10462 = vmatprep.subr.bf16.mxu1 %v13854_v19  ;;  %v589_v24 = vld [vmem:[#allocation2 + $0xdb0] sm:$0xff] }
 0x391   :  { %v14086_v48 = vcombine.high %v585_v57, %v589_v24  ;;  %v449_v36 = vld [vmem:[#allocation2 + $0x950] sm:$0xff]  ;;  %v14085_v60 = vcombine.low %v585_v57, %v589_v24 }
 0x392   :  { %v453_v52 = vld [vmem:[#allocation2 + $0x970] sm:$0xff] }
 0x393   :  { %10422 = vmatpush2.bf16.msra.mxu0 %v13725_v0  ;;  %10463 = vmatpush2.bf16.msra.mxu1 %v13853_v1  ;;  %v577_v55 = vld [vmem:[#allocation2 + $0xd50] sm:$0xff]  ;;  %v13950_v62 = vcombine.high %v449_v36, %v453_v52 }
 0x394   :  { %10423 = vmatprep.subr.bf16.mxu0 %v13718_v4  ;;  %10464 = vmatprep.subr.bf16.mxu1 %v13846_v8  ;;  %v581_v63 = vld [vmem:[#allocation2 + $0xd70] sm:$0xff] }
 0x395   :  { %v14078_v8 = vcombine.high %v577_v55, %v581_v63  ;;  %v441_v32 = vld [vmem:[#allocation2 + $0x910] sm:$0xff] }
 0x396   :  { %v445_v11 = vld [vmem:[#allocation2 + $0x930] sm:$0xff] }
 0x397   :  { %10424 = vmatpush2.bf16.msra.mxu0 %v13717_v12  ;;  %10465 = vmatpush2.bf16.msra.mxu1 %v13845_v14  ;;  %v569_v47 = vld [vmem:[#allocation2 + $0xd10] sm:$0xff]  ;;  %v13942_v23 = vcombine.high %v441_v32, %v445_v11 }
 0x398   :  { %10475 = vmatprep.subr.bf16.mxu0 %v13966_v30  ;;  %10516 = vmatprep.subr.bf16.mxu1 %v14094_v33  ;;  %v573_v22 = vld [vmem:[#allocation2 + $0xd30] sm:$0xff]  ;;  %v13949_v30 = vcombine.low %v449_v36, %v453_v52 }
 0x399   :  { %v14070_v57 = vcombine.high %v569_v47, %v573_v22  ;;  %v433_v24 = vld [vmem:[#allocation2 + $0x8d0] sm:$0xff] }
 0x39a   :  { %v10181_v7 = vpop.f32.mrf.mxu0  ;;  %10426 = vmatmul.mubr.bf16.vlgmr.msra.gmra.mxu0 %v16169_v16  ;;  %v10222_v19 = vpop.f32.mrf.mxu1  ;;  %10467 = vmatmul.mubr.bf16.vlgmr.msra.gmra.mxu1 %v16174_v20  ;;  %v425_v52 = vld [vmem:[#allocation2 + $0x890] sm:$0xff] }
 0x39b   :  { %v10182_v45 = vadd.f32 %v10181_v7, %v16378_v35  ;;  %10476 = vmatpush1.bf16.msra.mxu0 %v13965_v27  ;;  %10517 = vmatpush1.bf16.msra.mxu1 %v14093_v41  ;;  %v437_v27 = vld [vmem:[#allocation2 + $0x8f0] sm:$0xff]  ;;  %v14069_v7 = vcombine.low %v569_v47, %v573_v22 }
 0x39c   :  { %v10183_v15 = vpop.f32.mrf.mxu0  ;;  %10477 = vmatprep.subr.bf16.mxu0 %v13958_v43  ;;  %v10224_v4 = vpop.f32.mrf.mxu1  ;;  %10518 = vmatprep.subr.bf16.mxu1 %v14086_v48  ;;  %v561_v41 = vld [vmem:[#allocation2 + $0xcd0] sm:$0xff]  ;;  %v13941_v48 = vcombine.low %v441_v32, %v445_v11 }
 0x39d   :  { %v16388_v0 = vadd.f32 %v10222_v19, %v10182_v45  ;;  %v10184_v1 = vadd.f32 %v10183_v15, %v16383_v42  ;;  %10507 = vmatprep.mubr.bf16.mxu0 %v16179_v28  ;;  %10548 = vmatprep.mubr.bf16.mxu1 %v16182_v31  ;;  %v14077_v42 = vcombine.low %v577_v55, %v581_v63  ;;  %v565_v43 = vld [vmem:[#allocation2 + $0xcf0] sm:$0xff] }
 0x39e   :  { %v10185_v35 = vpop.f32.mrf.mxu0  ;;  %v10226_v14 = vpop.f32.mrf.mxu1  ;;  %v13934_v45 = vcombine.high %v433_v24, %v437_v27  ;;  %v14062_v36 = vcombine.high %v561_v41, %v565_v43  ;;  %v429_v19 = vld [vmem:[#allocation2 + $0x8b0] sm:$0xff]  ;;  %v13933_v63 = vcombine.low %v433_v24, %v437_v27  ;;  %v14061_v15 = vcombine.low %v561_v41, %v565_v43 }
 0x39f   :  { %v16393_v12 = vadd.f32 %v10224_v4, %v10184_v1  ;;  %10478 = vmatpush1.bf16.msra.mxu0 %v13957_v2  ;;  %10519 = vmatpush1.bf16.msra.mxu1 %v14085_v60  ;;  %v553_v2 = vld [vmem:[#allocation2 + $0xc90] sm:$0xff]  ;;  %v13926_v60 = vcombine.high %v425_v52, %v429_v19  ;;  %v13925_v11 = vcombine.low %v425_v52, %v429_v19 }
 0x3a0   :  { %v10186_v33 = vpop.f32.mrf.mxu0  ;;  %10479 = vmatprep.subr.bf16.mxu0 %v13950_v62  ;;  %v10227_v29 = vpop.f32.mrf.mxu1  ;;  %10520 = vmatprep.subr.bf16.mxu1 %v14078_v8  ;;  %v557_v55 = vld [vmem:[#allocation2 + $0xcb0] sm:$0xff] }
 0x3a1   :  { %v14054_v62 = vcombine.high %v553_v2, %v557_v55  ;;  %v417_v1 = vld [vmem:[#allocation2 + $0x850] sm:$0xff]  ;;  %v14053_v35 = vcombine.low %v553_v2, %v557_v55 }
 0x3a2   :  { %v421_v4 = vld [vmem:[#allocation2 + $0x870] sm:$0xff] }
 0x3a3   :  { %10480 = vmatpush1.bf16.msra.mxu0 %v13949_v30  ;;  %10521 = vmatpush1.bf16.msra.mxu1 %v14077_v42  ;;  %v545_v8 = vld [vmem:[#allocation2 + $0xc50] sm:$0xff]  ;;  %v13918_v47 = vcombine.high %v417_v1, %v421_v4 }
 0x3a4   :  { %10481 = vmatprep.subr.bf16.mxu0 %v13942_v23  ;;  %10522 = vmatprep.subr.bf16.mxu1 %v14070_v57  ;;  %v549_v32 = vld [vmem:[#allocation2 + $0xc70] sm:$0xff]  ;;  %v13917_v23 = vcombine.low %v417_v1, %v421_v4 }
 0x3a5   :  { %v14046_v22 = vcombine.high %v545_v8, %v549_v32  ;;  %v409_v14 = vld [vmem:[#allocation2 + $0x810] sm:$0xff]  ;;  %v14045_v29 = vcombine.low %v545_v8, %v549_v32 }
 0x3a6   :  { %v413_v30 = vld [vmem:[#allocation2 + $0x830] sm:$0xff] }
 0x3a7   :  { %10482 = vmatpush1.bf16.msra.mxu0 %v13941_v48  ;;  %10523 = vmatpush1.bf16.msra.mxu1 %v14069_v7  ;;  %v537_v33 = vld [vmem:[#allocation2 + $0xc10] sm:$0xff]  ;;  %v13910_v57 = vcombine.high %v409_v14, %v413_v30  ;;  %v13909_v7 = vcombine.low %v409_v14, %v413_v30 }
 0x3a8   :  { %10483 = vmatprep.subr.bf16.mxu0 %v13934_v45  ;;  %10524 = vmatprep.subr.bf16.mxu1 %v14062_v36  ;;  %v541_v42 = vld [vmem:[#allocation2 + $0xc30] sm:$0xff] }
 0x3a9   :  { %v14038_v24 = vcombine.high %v537_v33, %v541_v42  ;;  %v529_v27 = vld [vmem:[#allocation2 + $0xbd0] sm:$0xff]  ;;  %v14037_v45 = vcombine.low %v537_v33, %v541_v42 }
 0x3aa   :  { %v533_v41 = vld [vmem:[#allocation2 + $0xbf0] sm:$0xff] }
 0x3ab   :  { %10484 = vmatpush1.bf16.msra.mxu0 %v13933_v63  ;;  %10525 = vmatpush1.bf16.msra.mxu1 %v14061_v15  ;;  %v657_v43 = vld [vmem:[#allocation2 + $0xfd0] sm:$0xff]  ;;  %v14030_v36 = vcombine.high %v529_v27, %v533_v41  ;;  %v14029_v15 = vcombine.low %v529_v27, %v533_v41 }
 0x3ac   :  { %10485 = vmatprep.subr.bf16.mxu0 %v13926_v60  ;;  %10526 = vmatprep.subr.bf16.mxu1 %v14054_v62  ;;  %v661_v48 = vld [vmem:[#allocation2 + $0xff0] sm:$0xff] }
 0x3ad   :  { %v14158_v52 = vcombine.high %v657_v43, %v661_v48  ;;  %v521_v19 = vld [vmem:[#allocation2 + $0xb90] sm:$0xff]  ;;  %v14157_v60 = vcombine.low %v657_v43, %v661_v48 }
 0x3ae   :  { %v525_v2 = vld [vmem:[#allocation2 + $0xbb0] sm:$0xff] }
 0x3af   :  { %10486 = vmatpush1.bf16.msra.mxu0 %v13925_v11  ;;  %10527 = vmatpush1.bf16.msra.mxu1 %v14053_v35  ;;  %v649_v55 = vld [vmem:[#allocation2 + $0xf90] sm:$0xff]  ;;  %v14022_v62 = vcombine.high %v521_v19, %v525_v2  ;;  %v14021_v35 = vcombine.low %v521_v19, %v525_v2 }
 0x3b0   :  { %10487 = vmatprep.subr.bf16.mxu0 %v13918_v47  ;;  %10528 = vmatprep.subr.bf16.mxu1 %v14046_v22  ;;  %v653_v63 = vld [vmem:[#allocation2 + $0xfb0] sm:$0xff] }
 0x3b1   :  { %v14150_v1 = vcombine.high %v649_v55, %v653_v63  ;;  %v513_v4 = vld [vmem:[#allocation2 + $0xb50] sm:$0xff]  ;;  %v14149_v47 = vcombine.low %v649_v55, %v653_v63 }
 0x3b2   :  { %v517_v8 = vld [vmem:[#allocation2 + $0xb70] sm:$0xff] }
 0x3b3   :  { %10488 = vmatpush1.bf16.msra.mxu0 %v13917_v23  ;;  %10529 = vmatpush1.bf16.msra.mxu1 %v14045_v29  ;;  %v641_v32 = vld [vmem:[#allocation2 + $0xf50] sm:$0xff]  ;;  %v14014_v22 = vcombine.high %v513_v4, %v517_v8  ;;  %v14013_v29 = vcombine.low %v513_v4, %v517_v8 }
 0x3b4   :  { %10489 = vmatprep.subr.bf16.mxu0 %v13910_v57  ;;  %10530 = vmatprep.subr.bf16.mxu1 %v14038_v24  ;;  %v645_v11 = vld [vmem:[#allocation2 + $0xf70] sm:$0xff] }
 0x3b5   :  { %v14142_v14 = vcombine.high %v641_v32, %v645_v11  ;;  %v505_v30 = vld [vmem:[#allocation2 + $0xb10] sm:$0xff]  ;;  %v14141_v57 = vcombine.low %v641_v32, %v645_v11 }
 0x3b6   :  { %v509_v33 = vld [vmem:[#allocation2 + $0xb30] sm:$0xff] }
 0x3b7   :  { %10490 = vmatpush1.bf16.msra.mxu0 %v13909_v7  ;;  %10531 = vmatpush1.bf16.msra.mxu1 %v14037_v45  ;;  %v633_v42 = vld [vmem:[#allocation2 + $0xf10] sm:$0xff]  ;;  %v14006_v24 = vcombine.high %v505_v30, %v509_v33  ;;  %v14005_v45 = vcombine.low %v505_v30, %v509_v33 }
 0x3b8   :  { %10491 = vmatprep.subr.bf16.mxu0 %v14030_v36  ;;  %10532 = vmatprep.subr.bf16.mxu1 %v14158_v52  ;;  %v637_v23 = vld [vmem:[#allocation2 + $0xf30] sm:$0xff] }
 0x3b9   :  { %v14134_v27 = vcombine.high %v633_v42, %v637_v23  ;;  %v497_v41 = vld [vmem:[#allocation2 + $0xad0] sm:$0xff]  ;;  %v14133_v36 = vcombine.low %v633_v42, %v637_v23 }
 0x3ba   :  { %v501_v43 = vld [vmem:[#allocation2 + $0xaf0] sm:$0xff] }
 0x3bb   :  { %10492 = vmatpush2.bf16.msra.mxu0 %v14029_v15  ;;  %10533 = vmatpush2.bf16.msra.mxu1 %v14157_v60  ;;  %v625_v48 = vld [vmem:[#allocation2 + $0xed0] sm:$0xff]  ;;  %v13998_v52 = vcombine.high %v497_v41, %v501_v43  ;;  %v13997_v60 = vcombine.low %v497_v41, %v501_v43 }
 0x3bc   :  { %10493 = vmatprep.subr.bf16.mxu0 %v14022_v62  ;;  %10534 = vmatprep.subr.bf16.mxu1 %v14150_v1  ;;  %v629_v7 = vld [vmem:[#allocation2 + $0xef0] sm:$0xff] }
 0x3bd   :  { %v14126_v19 = vcombine.high %v625_v48, %v629_v7  ;;  %v489_v2 = vld [vmem:[#allocation2 + $0xa90] sm:$0xff]  ;;  %v14125_v62 = vcombine.low %v625_v48, %v629_v7 }
 0x3be   :  { %v493_v55 = vld [vmem:[#allocation2 + $0xab0] sm:$0xff] }
 0x3bf   :  { %10494 = vmatpush2.bf16.msra.mxu0 %v14021_v35  ;;  %10535 = vmatpush2.bf16.msra.mxu1 %v14149_v47  ;;  %v617_v63 = vld [vmem:[#allocation2 + $0xe90] sm:$0xff]  ;;  %v13990_v1 = vcombine.high %v489_v2, %v493_v55  ;;  %v13989_v47 = vcombine.low %v489_v2, %v493_v55 }
 0x3c0   :  { %10495 = vmatprep.subr.bf16.mxu0 %v14014_v22  ;;  %10536 = vmatprep.subr.bf16.mxu1 %v14142_v14  ;;  %v621_v15 = vld [vmem:[#allocation2 + $0xeb0] sm:$0xff] }
 0x3c1   :  { %v14118_v4 = vcombine.high %v617_v63, %v621_v15  ;;  %v481_v8 = vld [vmem:[#allocation2 + $0xa50] sm:$0xff]  ;;  %v14117_v22 = vcombine.low %v617_v63, %v621_v15 }
 0x3c2   :  { %v485_v32 = vld [vmem:[#allocation2 + $0xa70] sm:$0xff] }
 0x3c3   :  { %10496 = vmatpush2.bf16.msra.mxu0 %v14013_v29  ;;  %10537 = vmatpush2.bf16.msra.mxu1 %v14141_v57  ;;  %v609_v11 = vld [vmem:[#allocation2 + $0xe50] sm:$0xff]  ;;  %v13982_v14 = vcombine.high %v481_v8, %v485_v32  ;;  %v13981_v57 = vcombine.low %v481_v8, %v485_v32 }
 0x3c4   :  { %10497 = vmatprep.subr.bf16.mxu0 %v14006_v24  ;;  %10538 = vmatprep.subr.bf16.mxu1 %v14134_v27  ;;  %v613_v35 = vld [vmem:[#allocation2 + $0xe70] sm:$0xff] }
 0x3c5   :  { %v14110_v30 = vcombine.high %v609_v11, %v613_v35  ;;  %v473_v33 = vld [vmem:[#allocation2 + $0xa10] sm:$0xff]  ;;  %v14109_v24 = vcombine.low %v609_v11, %v613_v35 }
 0x3c6   :  { %v477_v42 = vld [vmem:[#allocation2 + $0xa30] sm:$0xff] }
 0x3c7   :  { %10498 = vmatpush2.bf16.msra.mxu0 %v14005_v45  ;;  %10539 = vmatpush2.bf16.msra.mxu1 %v14133_v36  ;;  %v601_v23 = vld [vmem:[#allocation2 + $0xe10] sm:$0xff]  ;;  %v13974_v27 = vcombine.high %v473_v33, %v477_v42  ;;  %v13973_v36 = vcombine.low %v473_v33, %v477_v42 }
 0x3c8   :  { %10499 = vmatprep.subr.bf16.mxu0 %v13998_v52  ;;  %10540 = vmatprep.subr.bf16.mxu1 %v14126_v19  ;;  %v605_v29 = vld [vmem:[#allocation2 + $0xe30] sm:$0xff] }
 0x3c9   :  { %v14102_v41 = vcombine.high %v601_v23, %v605_v29  ;;  %v721_v43 = vld [vmem:[#allocation2 + $0x11d0] sm:$0xff]  ;;  %v14101_v52 = vcombine.low %v601_v23, %v605_v29 }
 0x3ca   :  { %v725_v48 = vld [vmem:[#allocation2 + $0x11f0] sm:$0xff] }
 0x3cb   :  { %10500 = vmatpush2.bf16.msra.mxu0 %v13997_v60  ;;  %10541 = vmatpush2.bf16.msra.mxu1 %v14125_v62  ;;  %v849_v7 = vld [vmem:[#allocation2 + $0x15d0] sm:$0xff]  ;;  %v14222_v19 = vcombine.high %v721_v43, %v725_v48  ;;  %v14221_v62 = vcombine.low %v721_v43, %v725_v48 }
 0x3cc   :  { %10501 = vmatprep.subr.bf16.mxu0 %v13990_v1  ;;  %10542 = vmatprep.subr.bf16.mxu1 %v14118_v4  ;;  %v853_v45 = vld [vmem:[#allocation2 + $0x15f0] sm:$0xff] }
 0x3cd   :  { %v14350_v2 = vcombine.high %v849_v7, %v853_v45  ;;  %v713_v55 = vld [vmem:[#allocation2 + $0x1190] sm:$0xff]  ;;  %v14349_v1 = vcombine.low %v849_v7, %v853_v45 }
 0x3ce   :  { %v717_v63 = vld [vmem:[#allocation2 + $0x11b0] sm:$0xff] }
 0x3cf   :  { %10502 = vmatpush2.bf16.msra.mxu0 %v13989_v47  ;;  %10543 = vmatpush2.bf16.msra.mxu1 %v14117_v22  ;;  %v841_v15 = vld [vmem:[#allocation2 + $0x1590] sm:$0xff]  ;;  %v14214_v4 = vcombine.high %v713_v55, %v717_v63  ;;  %v14213_v33 = vcombine.low %v713_v55, %v717_v63 }
 0x3d0   :  { %10503 = vmatprep.subr.bf16.mxu0 %v13982_v14  ;;  %10544 = vmatprep.subr.bf16.mxu1 %v14110_v30  ;;  %v845_v60 = vld [vmem:[#allocation2 + $0x15b0] sm:$0xff] }
 0x3d1   :  { %v14342_v8 = vcombine.high %v841_v15, %v845_v60  ;;  %v705_v32 = vld [vmem:[#allocation2 + $0x1150] sm:$0xff]  ;;  %v14341_v23 = vcombine.low %v841_v15, %v845_v60 }
 0x3d2   :  { %v709_v11 = vld [vmem:[#allocation2 + $0x1170] sm:$0xff] }
 0x3d3   :  { %10504 = vmatpush2.bf16.msra.mxu0 %v13981_v57  ;;  %10545 = vmatpush2.bf16.msra.mxu1 %v14109_v24  ;;  %v833_v47 = vld [vmem:[#allocation2 + $0x1550] sm:$0xff]  ;;  %v14206_v29 = vcombine.high %v705_v32, %v709_v11 }
 0x3d4   :  { %10505 = vmatprep.subr.bf16.mxu0 %v13974_v27  ;;  %10546 = vmatprep.subr.bf16.mxu1 %v14102_v41  ;;  %v837_v22 = vld [vmem:[#allocation2 + $0x1570] sm:$0xff] }
 0x3d5   :  { %v14334_v41 = vcombine.high %v833_v47, %v837_v22  ;;  %v697_v43 = vld [vmem:[#allocation2 + $0x1110] sm:$0xff] }
 0x3d6   :  { %v701_v48 = vld [vmem:[#allocation2 + $0x1130] sm:$0xff] }
 0x3d7   :  { %10506 = vmatpush2.bf16.msra.mxu0 %v13973_v36  ;;  %10547 = vmatpush2.bf16.msra.mxu1 %v14101_v52  ;;  %v825_v7 = vld [vmem:[#allocation2 + $0x1510] sm:$0xff]  ;;  %v14198_v55 = vcombine.high %v697_v43, %v701_v48 }
 0x3d8   :  { %10557 = vmatprep.subr.bf16.mxu0 %v14222_v19  ;;  %10598 = vmatprep.subr.bf16.mxu1 %v14350_v2  ;;  %v829_v45 = vld [vmem:[#allocation2 + $0x1530] sm:$0xff]  ;;  %v14205_v19 = vcombine.low %v705_v32, %v709_v11 }
 0x3d9   :  { %v14326_v15 = vcombine.high %v825_v7, %v829_v45  ;;  %v689_v60 = vld [vmem:[#allocation2 + $0x10d0] sm:$0xff] }
 0x3da   :  { %v10263_v35 = vpop.f32.mrf.mxu0  ;;  %10508 = vmatmul.mubr.bf16.vlgmr.msra.gmra.mxu0 %v16196_v39  ;;  %v10304_v30 = vpop.f32.mrf.mxu1  ;;  %10549 = vmatmul.mubr.bf16.vlgmr.msra.gmra.mxu1 %v16198_v40  ;;  %v681_v11 = vld [vmem:[#allocation2 + $0x1090] sm:$0xff] }
 0x3db   :  { %v10264_v14 = vadd.f32 %v10263_v35, %v16388_v0  ;;  %10558 = vmatpush1.bf16.msra.mxu0 %v14221_v62  ;;  %10599 = vmatpush1.bf16.msra.mxu1 %v14349_v1  ;;  %v693_v62 = vld [vmem:[#allocation2 + $0x10f0] sm:$0xff]  ;;  %v14325_v35 = vcombine.low %v825_v7, %v829_v45 }
 0x3dc   :  { %v10265_v42 = vpop.f32.mrf.mxu0  ;;  %10559 = vmatprep.subr.bf16.mxu0 %v14214_v4  ;;  %v10306_v27 = vpop.f32.mrf.mxu1  ;;  %10600 = vmatprep.subr.bf16.mxu1 %v14342_v8  ;;  %v817_v1 = vld [vmem:[#allocation2 + $0x14d0] sm:$0xff]  ;;  %v14197_v8 = vcombine.low %v697_v43, %v701_v48 }
 0x3dd   :  { %v16398_v57 = vadd.f32 %v10304_v30, %v10264_v14  ;;  %v10266_v24 = vadd.f32 %v10265_v42, %v16393_v12  ;;  %10589 = vmatprep.mubr.bf16.mxu0 %v16203_v49  ;;  %10630 = vmatprep.mubr.bf16.mxu1 %v16206_v51  ;;  %v14333_v12 = vcombine.low %v833_v47, %v837_v22  ;;  %v821_v4 = vld [vmem:[#allocation2 + $0x14f0] sm:$0xff] }
 0x3de   :  { %v10267_v0 = vpop.f32.mrf.mxu0  ;;  %v10308_v52 = vpop.f32.mrf.mxu1  ;;  %v14190_v14 = vcombine.high %v689_v60, %v693_v62  ;;  %v14318_v32 = vcombine.high %v817_v1, %v821_v4  ;;  %v685_v30 = vld [vmem:[#allocation2 + $0x10b0] sm:$0xff]  ;;  %v14189_v22 = vcombine.low %v689_v60, %v693_v62  ;;  %v14317_v42 = vcombine.low %v817_v1, %v821_v4 }
 0x3df   :  { %v16403_v36 = vadd.f32 %v10306_v27, %v10266_v24  ;;  %10560 = vmatpush1.bf16.msra.mxu0 %v14213_v33  ;;  %10601 = vmatpush1.bf16.msra.mxu1 %v14341_v23  ;;  %v809_v33 = vld [vmem:[#allocation2 + $0x1490] sm:$0xff]  ;;  %v14182_v23 = vcombine.high %v681_v11, %v685_v30  ;;  %v14181_v48 = vcombine.low %v681_v11, %v685_v30 }
 0x3e0   :  { %v10268_v2 = vpop.f32.mrf.mxu0  ;;  %10561 = vmatprep.subr.bf16.mxu0 %v14206_v29  ;;  %v10309_v63 = vpop.f32.mrf.mxu1  ;;  %10602 = vmatprep.subr.bf16.mxu1 %v14334_v41  ;;  %v813_v47 = vld [vmem:[#allocation2 + $0x14b0] sm:$0xff] }
 0x3e1   :  { %v14310_v29 = vcombine.high %v809_v33, %v813_v47  ;;  %v673_v24 = vld [vmem:[#allocation2 + $0x1050] sm:$0xff]  ;;  %v14309_v0 = vcombine.low %v809_v33, %v813_v47 }
 0x3e2   :  { %v677_v27 = vld [vmem:[#allocation2 + $0x1070] sm:$0xff] }
 0x3e3   :  { %10562 = vmatpush1.bf16.msra.mxu0 %v14205_v19  ;;  %10603 = vmatpush1.bf16.msra.mxu1 %v14333_v12  ;;  %v801_v41 = vld [vmem:[#allocation2 + $0x1450] sm:$0xff]  ;;  %v14174_v7 = vcombine.high %v673_v24, %v677_v27 }
 0x3e4   :  { %10563 = vmatprep.subr.bf16.mxu0 %v14198_v55  ;;  %10604 = vmatprep.subr.bf16.mxu1 %v14326_v15  ;;  %v805_v43 = vld [vmem:[#allocation2 + $0x1470] sm:$0xff]  ;;  %v14173_v55 = vcombine.low %v673_v24, %v677_v27 }
 0x3e5   :  { %v14302_v45 = vcombine.high %v801_v41, %v805_v43  ;;  %v665_v52 = vld [vmem:[#allocation2 + $0x1010] sm:$0xff]  ;;  %v14301_v63 = vcombine.low %v801_v41, %v805_v43 }
 0x3e6   :  { %v669_v19 = vld [vmem:[#allocation2 + $0x1030] sm:$0xff] }
 0x3e7   :  { %10564 = vmatpush1.bf16.msra.mxu0 %v14197_v8  ;;  %10605 = vmatpush1.bf16.msra.mxu1 %v14325_v35  ;;  %v793_v2 = vld [vmem:[#allocation2 + $0x1410] sm:$0xff]  ;;  %v14166_v15 = vcombine.high %v665_v52, %v669_v19  ;;  %v14165_v35 = vcombine.low %v665_v52, %v669_v19 }
 0x3e8   :  { %10565 = vmatprep.subr.bf16.mxu0 %v14190_v14  ;;  %10606 = vmatprep.subr.bf16.mxu1 %v14318_v32  ;;  %v797_v12 = vld [vmem:[#allocation2 + $0x1430] sm:$0xff] }
 0x3e9   :  { %v14294_v60 = vcombine.high %v793_v2, %v797_v12  ;;  %v785_v62 = vld [vmem:[#allocation2 + $0x13d0] sm:$0xff]  ;;  %v14293_v14 = vcombine.low %v793_v2, %v797_v12 }
 0x3ea   :  { %v789_v1 = vld [vmem:[#allocation2 + $0x13f0] sm:$0xff] }
 0x3eb   :  { %10566 = vmatpush1.bf16.msra.mxu0 %v14189_v22  ;;  %10607 = vmatpush1.bf16.msra.mxu1 %v14317_v42  ;;  %v913_v4 = vld [vmem:[#allocation2 + $0x17d0] sm:$0xff]  ;;  %v14286_v32 = vcombine.high %v785_v62, %v789_v1  ;;  %v14285_v42 = vcombine.low %v785_v62, %v789_v1 }
 0x3ec   :  { %10567 = vmatprep.subr.bf16.mxu0 %v14182_v23  ;;  %10608 = vmatprep.subr.bf16.mxu1 %v14310_v29  ;;  %v917_v8 = vld [vmem:[#allocation2 + $0x17f0] sm:$0xff] }
 0x3ed   :  { %v14414_v11 = vcombine.high %v913_v4, %v917_v8  ;;  %v777_v30 = vld [vmem:[#allocation2 + $0x1390] sm:$0xff]  ;;  %v14413_v23 = vcombine.low %v913_v4, %v917_v8 }
 0x3ee   :  { %v781_v33 = vld [vmem:[#allocation2 + $0x13b0] sm:$0xff] }
 0x3ef   :  { %10568 = vmatpush1.bf16.msra.mxu0 %v14181_v48  ;;  %10609 = vmatpush1.bf16.msra.mxu1 %v14309_v0  ;;  %v905_v47 = vld [vmem:[#allocation2 + $0x1790] sm:$0xff]  ;;  %v14278_v29 = vcombine.high %v777_v30, %v781_v33  ;;  %v14277_v0 = vcombine.low %v777_v30, %v781_v33 }
 0x3f0   :  { %10569 = vmatprep.subr.bf16.mxu0 %v14174_v7  ;;  %10610 = vmatprep.subr.bf16.mxu1 %v14302_v45  ;;  %v909_v22 = vld [vmem:[#allocation2 + $0x17b0] sm:$0xff] }
 0x3f1   :  { %v14406_v24 = vcombine.high %v905_v47, %v909_v22  ;;  %v769_v27 = vld [vmem:[#allocation2 + $0x1350] sm:$0xff]  ;;  %v14405_v7 = vcombine.low %v905_v47, %v909_v22 }
 0x3f2   :  { %v773_v41 = vld [vmem:[#allocation2 + $0x1370] sm:$0xff] }
 0x3f3   :  { %10570 = vmatpush1.bf16.msra.mxu0 %v14173_v55  ;;  %10611 = vmatpush1.bf16.msra.mxu1 %v14301_v63  ;;  %v897_v43 = vld [vmem:[#allocation2 + $0x1750] sm:$0xff]  ;;  %v14270_v45 = vcombine.high %v769_v27, %v773_v41  ;;  %v14269_v63 = vcombine.low %v769_v27, %v773_v41 }
 0x3f4   :  { %10571 = vmatprep.subr.bf16.mxu0 %v14166_v15  ;;  %10612 = vmatprep.subr.bf16.mxu1 %v14294_v60  ;;  %v901_v48 = vld [vmem:[#allocation2 + $0x1770] sm:$0xff] }
 0x3f5   :  { %v14398_v52 = vcombine.high %v897_v43, %v901_v48  ;;  %v761_v19 = vld [vmem:[#allocation2 + $0x1310] sm:$0xff]  ;;  %v14397_v15 = vcombine.low %v897_v43, %v901_v48 }
 0x3f6   :  { %v765_v2 = vld [vmem:[#allocation2 + $0x1330] sm:$0xff] }
 0x3f7   :  { %10572 = vmatpush1.bf16.msra.mxu0 %v14165_v35  ;;  %10613 = vmatpush1.bf16.msra.mxu1 %v14293_v14  ;;  %v889_v12 = vld [vmem:[#allocation2 + $0x1710] sm:$0xff]  ;;  %v14262_v60 = vcombine.high %v761_v19, %v765_v2  ;;  %v14261_v14 = vcombine.low %v761_v19, %v765_v2 }
 0x3f8   :  { %10573 = vmatprep.subr.bf16.mxu0 %v14286_v32  ;;  %10614 = vmatprep.subr.bf16.mxu1 %v14414_v11  ;;  %v893_v55 = vld [vmem:[#allocation2 + $0x1730] sm:$0xff] }
 0x3f9   :  { %v14390_v62 = vcombine.high %v889_v12, %v893_v55  ;;  %v753_v1 = vld [vmem:[#allocation2 + $0x12d0] sm:$0xff]  ;;  %v14389_v32 = vcombine.low %v889_v12, %v893_v55 }
 0x3fa   :  { %v757_v4 = vld [vmem:[#allocation2 + $0x12f0] sm:$0xff] }
 0x3fb   :  { %10574 = vmatpush2.bf16.msra.mxu0 %v14285_v42  ;;  %10615 = vmatpush2.bf16.msra.mxu1 %v14413_v23  ;;  %v881_v8 = vld [vmem:[#allocation2 + $0x16d0] sm:$0xff]  ;;  %v14254_v11 = vcombine.high %v753_v1, %v757_v4  ;;  %v14253_v23 = vcombine.low %v753_v1, %v757_v4 }
 0x3fc   :  { %10575 = vmatprep.subr.bf16.mxu0 %v14278_v29  ;;  %10616 = vmatprep.subr.bf16.mxu1 %v14406_v24  ;;  %v885_v35 = vld [vmem:[#allocation2 + $0x16f0] sm:$0xff] }
 0x3fd   :  { %v14382_v30 = vcombine.high %v881_v8, %v885_v35  ;;  %v745_v33 = vld [vmem:[#allocation2 + $0x1290] sm:$0xff]  ;;  %v14381_v29 = vcombine.low %v881_v8, %v885_v35 }
 0x3fe   :  { %v749_v47 = vld [vmem:[#allocation2 + $0x12b0] sm:$0xff] }
 0x3ff   :  { %10576 = vmatpush2.bf16.msra.mxu0 %v14277_v0  ;;  %10617 = vmatpush2.bf16.msra.mxu1 %v14405_v7  ;;  %v873_v22 = vld [vmem:[#allocation2 + $0x1690] sm:$0xff]  ;;  %v14246_v24 = vcombine.high %v745_v33, %v749_v47  ;;  %v14245_v7 = vcombine.low %v745_v33, %v749_v47 }
 0x400   :  { %10577 = vmatprep.subr.bf16.mxu0 %v14270_v45  ;;  %10618 = vmatprep.subr.bf16.mxu1 %v14398_v52  ;;  %v877_v42 = vld [vmem:[#allocation2 + $0x16b0] sm:$0xff] }
 0x401   :  { %v14374_v27 = vcombine.high %v873_v22, %v877_v42  ;;  %v737_v41 = vld [vmem:[#allocation2 + $0x1250] sm:$0xff]  ;;  %v14373_v45 = vcombine.low %v873_v22, %v877_v42 }
 0x402   :  { %v741_v43 = vld [vmem:[#allocation2 + $0x1270] sm:$0xff] }
 0x403   :  { %10578 = vmatpush2.bf16.msra.mxu0 %v14269_v63  ;;  %10619 = vmatpush2.bf16.msra.mxu1 %v14397_v15  ;;  %v865_v48 = vld [vmem:[#allocation2 + $0x1650] sm:$0xff]  ;;  %v14238_v52 = vcombine.high %v737_v41, %v741_v43  ;;  %v14237_v15 = vcombine.low %v737_v41, %v741_v43 }
 0x404   :  { %10579 = vmatprep.subr.bf16.mxu0 %v14262_v60  ;;  %10620 = vmatprep.subr.bf16.mxu1 %v14390_v62  ;;  %v869_v0 = vld [vmem:[#allocation2 + $0x1670] sm:$0xff] }
 0x405   :  { %v14366_v19 = vcombine.high %v865_v48, %v869_v0  ;;  %v729_v2 = vld [vmem:[#allocation2 + $0x1210] sm:$0xff]  ;;  %v14365_v60 = vcombine.low %v865_v48, %v869_v0 }
 0x406   :  { %v733_v12 = vld [vmem:[#allocation2 + $0x1230] sm:$0xff] }
 0x407   :  { %10580 = vmatpush2.bf16.msra.mxu0 %v14261_v14  ;;  %10621 = vmatpush2.bf16.msra.mxu1 %v14389_v32  ;;  %v857_v55 = vld [vmem:[#allocation2 + $0x1610] sm:$0xff]  ;;  %v14230_v62 = vcombine.high %v729_v2, %v733_v12  ;;  %v14229_v32 = vcombine.low %v729_v2, %v733_v12 }
 0x408   :  { %10581 = vmatprep.subr.bf16.mxu0 %v14254_v11  ;;  %10622 = vmatprep.subr.bf16.mxu1 %v14382_v30  ;;  %v861_v63 = vld [vmem:[#allocation2 + $0x1630] sm:$0xff] }
 0x409   :  { %v14358_v1 = vcombine.high %v857_v55, %v861_v63  ;;  %v977_v4 = vld [vmem:[#allocation2 + $0x19d0] sm:$0xff]  ;;  %v14357_v11 = vcombine.low %v857_v55, %v861_v63 }
 0x40a   :  { %v981_v8 = vld [vmem:[#allocation2 + $0x19f0] sm:$0xff] }
 0x40b   :  { %10582 = vmatpush2.bf16.msra.mxu0 %v14253_v23  ;;  %10623 = vmatpush2.bf16.msra.mxu1 %v14381_v29  ;;  %v1105_v35 = vld [vmem:[#allocation2 + $0x1dd0] sm:$0xff]  ;;  %v14478_v30 = vcombine.high %v977_v4, %v981_v8  ;;  %v14477_v29 = vcombine.low %v977_v4, %v981_v8 }
 0x40c   :  { %10583 = vmatprep.subr.bf16.mxu0 %v14246_v24  ;;  %10624 = vmatprep.subr.bf16.mxu1 %v14374_v27  ;;  %v1109_v14 = vld [vmem:[#allocation2 + $0x1df0] sm:$0xff] }
 0x40d   :  { %v14606_v33 = vcombine.high %v1105_v35, %v1109_v14  ;;  %v969_v47 = vld [vmem:[#allocation2 + $0x1990] sm:$0xff]  ;;  %v14605_v24 = vcombine.low %v1105_v35, %v1109_v14 }
 0x40e   :  { %v973_v22 = vld [vmem:[#allocation2 + $0x19b0] sm:$0xff] }
 0x40f   :  { %10584 = vmatpush2.bf16.msra.mxu0 %v14245_v7  ;;  %10625 = vmatpush2.bf16.msra.mxu1 %v14373_v45  ;;  %v1097_v42 = vld [vmem:[#allocation2 + $0x1d90] sm:$0xff]  ;;  %v14470_v27 = vcombine.high %v969_v47, %v973_v22  ;;  %v14469_v2 = vcombine.low %v969_v47, %v973_v22 }
 0x410   :  { %10585 = vmatprep.subr.bf16.mxu0 %v14238_v52  ;;  %10626 = vmatprep.subr.bf16.mxu1 %v14366_v19  ;;  %v1101_v23 = vld [vmem:[#allocation2 + $0x1db0] sm:$0xff] }
 0x411   :  { %v14598_v41 = vcombine.high %v1097_v42, %v1101_v23  ;;  %v961_v43 = vld [vmem:[#allocation2 + $0x1950] sm:$0xff]  ;;  %v14597_v55 = vcombine.low %v1097_v42, %v1101_v23 }
 0x412   :  { %v965_v48 = vld [vmem:[#allocation2 + $0x1970] sm:$0xff] }
 0x413   :  { %10586 = vmatpush2.bf16.msra.mxu0 %v14237_v15  ;;  %10627 = vmatpush2.bf16.msra.mxu1 %v14365_v60  ;;  %v1089_v7 = vld [vmem:[#allocation2 + $0x1d50] sm:$0xff]  ;;  %v14462_v63 = vcombine.high %v961_v43, %v965_v48 }
 0x414   :  { %10587 = vmatprep.subr.bf16.mxu0 %v14230_v62  ;;  %10628 = vmatprep.subr.bf16.mxu1 %v14358_v1  ;;  %v1093_v45 = vld [vmem:[#allocation2 + $0x1d70] sm:$0xff] }
 0x415   :  { %v14590_v1 = vcombine.high %v1089_v7, %v1093_v45  ;;  %v953_v4 = vld [vmem:[#allocation2 + $0x1910] sm:$0xff] }
 0x416   :  { %v957_v8 = vld [vmem:[#allocation2 + $0x1930] sm:$0xff] }
 0x417   :  { %10588 = vmatpush2.bf16.msra.mxu0 %v14229_v32  ;;  %10629 = vmatpush2.bf16.msra.mxu1 %v14357_v11  ;;  %v1081_v35 = vld [vmem:[#allocation2 + $0x1d10] sm:$0xff]  ;;  %v14454_v47 = vcombine.high %v953_v4, %v957_v8 }
 0x418   :  { %10639 = vmatprep.subr.bf16.mxu0 %v14478_v30  ;;  %10680 = vmatprep.subr.bf16.mxu1 %v14606_v33  ;;  %v1085_v14 = vld [vmem:[#allocation2 + $0x1d30] sm:$0xff]  ;;  %v14461_v30 = vcombine.low %v961_v43, %v965_v48 }
 0x419   :  { %v14582_v42 = vcombine.high %v1081_v35, %v1085_v14  ;;  %v945_v23 = vld [vmem:[#allocation2 + $0x18d0] sm:$0xff] }
 0x41a   :  { %v10345_v0 = vpop.f32.mrf.mxu0  ;;  %10590 = vmatmul.mubr.bf16.vlgmr.msra.gmra.mxu0 %v16220_v5  ;;  %v10386_v19 = vpop.f32.mrf.mxu1  ;;  %10631 = vmatmul.mubr.bf16.vlgmr.msra.gmra.mxu1 %v16222_v6  ;;  %v937_v48 = vld [vmem:[#allocation2 + $0x1890] sm:$0xff] }
 0x41b   :  { %v10346_v52 = vadd.f32 %v10345_v0, %v16398_v57  ;;  %10640 = vmatpush1.bf16.msra.mxu0 %v14477_v29  ;;  %10681 = vmatpush1.bf16.msra.mxu1 %v14605_v24  ;;  %v949_v29 = vld [vmem:[#allocation2 + $0x18f0] sm:$0xff]  ;;  %v14581_v0 = vcombine.low %v1081_v35, %v1085_v14 }
 0x41c   :  { %v10347_v12 = vpop.f32.mrf.mxu0  ;;  %10641 = vmatprep.subr.bf16.mxu0 %v14470_v27  ;;  %v10388_v62 = vpop.f32.mrf.mxu1  ;;  %10682 = vmatprep.subr.bf16.mxu1 %v14598_v41  ;;  %v1073_v24 = vld [vmem:[#allocation2 + $0x1cd0] sm:$0xff]  ;;  %v14453_v41 = vcombine.low %v953_v4, %v957_v8 }
 0x41d   :  { %v16408_v15 = vadd.f32 %v10386_v19, %v10346_v52  ;;  %v10348_v60 = vadd.f32 %v10347_v12, %v16403_v36  ;;  %10671 = vmatprep.mubr.bf16.mxu0 %v16227_v17  ;;  %10712 = vmatprep.mubr.bf16.mxu1 %v16230_v18  ;;  %v14589_v36 = vcombine.low %v1089_v7, %v1093_v45  ;;  %v1077_v27 = vld [vmem:[#allocation2 + $0x1cf0] sm:$0xff] }
 0x41e   :  { %v10349_v57 = vpop.f32.mrf.mxu0  ;;  %v10390_v11 = vpop.f32.mrf.mxu1  ;;  %v14446_v52 = vcombine.high %v945_v23, %v949_v29  ;;  %v14574_v43 = vcombine.high %v1073_v24, %v1077_v27  ;;  %v941_v19 = vld [vmem:[#allocation2 + $0x18b0] sm:$0xff]  ;;  %v14445_v45 = vcombine.low %v945_v23, %v949_v29  ;;  %v14573_v12 = vcombine.low %v1073_v24, %v1077_v27 }
 0x41f   :  { %v16413_v32 = vadd.f32 %v10388_v62, %v10348_v60  ;;  %10642 = vmatpush1.bf16.msra.mxu0 %v14469_v2  ;;  %10683 = vmatpush1.bf16.msra.mxu1 %v14597_v55  ;;  %v1065_v2 = vld [vmem:[#allocation2 + $0x1c90] sm:$0xff]  ;;  %v14438_v55 = vcombine.high %v937_v48, %v941_v19  ;;  %v14437_v8 = vcombine.low %v937_v48, %v941_v19 }
 0x420   :  { %v10350_v33 = vpop.f32.mrf.mxu0  ;;  %10643 = vmatprep.subr.bf16.mxu0 %v14462_v63  ;;  %v10391_v22 = vpop.f32.mrf.mxu1  ;;  %10684 = vmatprep.subr.bf16.mxu1 %v14590_v1  ;;  %v1069_v7 = vld [vmem:[#allocation2 + $0x1cb0] sm:$0xff] }
 0x421   :  { %v14566_v63 = vcombine.high %v1065_v2, %v1069_v7  ;;  %v929_v60 = vld [vmem:[#allocation2 + $0x1850] sm:$0xff]  ;;  %v14565_v57 = vcombine.low %v1065_v2, %v1069_v7 }
 0x422   :  { %v933_v62 = vld [vmem:[#allocation2 + $0x1870] sm:$0xff] }
 0x423   :  { %10644 = vmatpush1.bf16.msra.mxu0 %v14461_v30  ;;  %10685 = vmatpush1.bf16.msra.mxu1 %v14589_v36  ;;  %v1057_v1 = vld [vmem:[#allocation2 + $0x1c50] sm:$0xff]  ;;  %v14430_v35 = vcombine.high %v929_v60, %v933_v62 }
 0x424   :  { %10645 = vmatprep.subr.bf16.mxu0 %v14454_v47  ;;  %10686 = vmatprep.subr.bf16.mxu1 %v14582_v42  ;;  %v1061_v4 = vld [vmem:[#allocation2 + $0x1c70] sm:$0xff]  ;;  %v14429_v47 = vcombine.low %v929_v60, %v933_v62 }
 0x425   :  { %v14558_v14 = vcombine.high %v1057_v1, %v1061_v4  ;;  %v921_v11 = vld [vmem:[#allocation2 + $0x1810] sm:$0xff]  ;;  %v14557_v22 = vcombine.low %v1057_v1, %v1061_v4 }
 0x426   :  { %v925_v30 = vld [vmem:[#allocation2 + $0x1830] sm:$0xff] }
 0x427   :  { %10646 = vmatpush1.bf16.msra.mxu0 %v14453_v41  ;;  %10687 = vmatpush1.bf16.msra.mxu1 %v14581_v0  ;;  %v1049_v33 = vld [vmem:[#allocation2 + $0x1c10] sm:$0xff]  ;;  %v14422_v42 = vcombine.high %v921_v11, %v925_v30  ;;  %v14421_v0 = vcombine.low %v921_v11, %v925_v30 }
 0x428   :  { %10647 = vmatprep.subr.bf16.mxu0 %v14446_v52  ;;  %10688 = vmatprep.subr.bf16.mxu1 %v14574_v43  ;;  %v1053_v36 = vld [vmem:[#allocation2 + $0x1c30] sm:$0xff] }
 0x429   :  { %v14550_v23 = vcombine.high %v1049_v33, %v1053_v36  ;;  %v1041_v29 = vld [vmem:[#allocation2 + $0x1bd0] sm:$0xff]  ;;  %v14549_v52 = vcombine.low %v1049_v33, %v1053_v36 }
 0x42a   :  { %v1045_v24 = vld [vmem:[#allocation2 + $0x1bf0] sm:$0xff] }
 0x42b   :  { %10648 = vmatpush1.bf16.msra.mxu0 %v14445_v45  ;;  %10689 = vmatpush1.bf16.msra.mxu1 %v14573_v12  ;;  %v1169_v27 = vld [vmem:[#allocation2 + $0x1fd0] sm:$0xff]  ;;  %v14542_v43 = vcombine.high %v1041_v29, %v1045_v24  ;;  %v14541_v12 = vcombine.low %v1041_v29, %v1045_v24 }
 0x42c   :  { %10649 = vmatprep.subr.bf16.mxu0 %v14438_v55  ;;  %10690 = vmatprep.subr.bf16.mxu1 %v14566_v63  ;;  %v1173_v41 = vld [vmem:[#allocation2 + $0x1ff0] sm:$0xff] }
 0x42d   :  { %v14670_v48 = vcombine.high %v1169_v27, %v1173_v41  ;;  %v1033_v19 = vld [vmem:[#allocation2 + $0x1b90] sm:$0xff]  ;;  %v14669_v55 = vcombine.low %v1169_v27, %v1173_v41 }
 0x42e   :  { %v1037_v2 = vld [vmem:[#allocation2 + $0x1bb0] sm:$0xff] }
 0x42f   :  { %10650 = vmatpush1.bf16.msra.mxu0 %v14437_v8  ;;  %10691 = vmatpush1.bf16.msra.mxu1 %v14565_v57  ;;  %v1161_v7 = vld [vmem:[#allocation2 + $0x1f90] sm:$0xff]  ;;  %v14534_v63 = vcombine.high %v1033_v19, %v1037_v2  ;;  %v14533_v57 = vcombine.low %v1033_v19, %v1037_v2 }
 0x430   :  { %10651 = vmatprep.subr.bf16.mxu0 %v14430_v35  ;;  %10692 = vmatprep.subr.bf16.mxu1 %v14558_v14  ;;  %v1165_v45 = vld [vmem:[#allocation2 + $0x1fb0] sm:$0xff] }
 0x431   :  { %v14662_v60 = vcombine.high %v1161_v7, %v1165_v45  ;;  %v1025_v62 = vld [vmem:[#allocation2 + $0x1b50] sm:$0xff]  ;;  %v14661_v35 = vcombine.low %v1161_v7, %v1165_v45 }
 0x432   :  { %v1029_v1 = vld [vmem:[#allocation2 + $0x1b70] sm:$0xff] }
 0x433   :  { %10652 = vmatpush1.bf16.msra.mxu0 %v14429_v47  ;;  %10693 = vmatpush1.bf16.msra.mxu1 %v14557_v22  ;;  %v1153_v4 = vld [vmem:[#allocation2 + $0x1f50] sm:$0xff]  ;;  %v14526_v14 = vcombine.high %v1025_v62, %v1029_v1  ;;  %v14525_v22 = vcombine.low %v1025_v62, %v1029_v1 }
 0x434   :  { %10653 = vmatprep.subr.bf16.mxu0 %v14422_v42  ;;  %10694 = vmatprep.subr.bf16.mxu1 %v14550_v23  ;;  %v1157_v8 = vld [vmem:[#allocation2 + $0x1f70] sm:$0xff] }
 0x435   :  { %v14654_v11 = vcombine.high %v1153_v4, %v1157_v8  ;;  %v1017_v30 = vld [vmem:[#allocation2 + $0x1b10] sm:$0xff]  ;;  %v14653_v42 = vcombine.low %v1153_v4, %v1157_v8 }
 0x436   :  { %v1021_v33 = vld [vmem:[#allocation2 + $0x1b30] sm:$0xff] }
 0x437   :  { %10654 = vmatpush1.bf16.msra.mxu0 %v14421_v0  ;;  %10695 = vmatpush1.bf16.msra.mxu1 %v14549_v52  ;;  %v1145_v36 = vld [vmem:[#allocation2 + $0x1f10] sm:$0xff]  ;;  %v14518_v23 = vcombine.high %v1017_v30, %v1021_v33  ;;  %v14517_v52 = vcombine.low %v1017_v30, %v1021_v33 }
 0x438   :  { %10655 = vmatprep.subr.bf16.mxu0 %v14542_v43  ;;  %10696 = vmatprep.subr.bf16.mxu1 %v14670_v48  ;;  %v1149_v47 = vld [vmem:[#allocation2 + $0x1f30] sm:$0xff] }
 0x439   :  { %v14646_v29 = vcombine.high %v1145_v36, %v1149_v47  ;;  %v1009_v24 = vld [vmem:[#allocation2 + $0x1ad0] sm:$0xff]  ;;  %v14645_v43 = vcombine.low %v1145_v36, %v1149_v47 }
 0x43a   :  { %v1013_v27 = vld [vmem:[#allocation2 + $0x1af0] sm:$0xff] }
 0x43b   :  { %10656 = vmatpush2.bf16.msra.mxu0 %v14541_v12  ;;  %10697 = vmatpush2.bf16.msra.mxu1 %v14669_v55  ;;  %v1137_v41 = vld [vmem:[#allocation2 + $0x1ed0] sm:$0xff]  ;;  %v14510_v48 = vcombine.high %v1009_v24, %v1013_v27  ;;  %v14509_v55 = vcombine.low %v1009_v24, %v1013_v27 }
 0x43c   :  { %10657 = vmatprep.subr.bf16.mxu0 %v14534_v63  ;;  %10698 = vmatprep.subr.bf16.mxu1 %v14662_v60  ;;  %v1141_v0 = vld [vmem:[#allocation2 + $0x1ef0] sm:$0xff] }
 0x43d   :  { %v14638_v19 = vcombine.high %v1137_v41, %v1141_v0  ;;  %v1001_v2 = vld [vmem:[#allocation2 + $0x1a90] sm:$0xff]  ;;  %v14637_v63 = vcombine.low %v1137_v41, %v1141_v0 }
 0x43e   :  { %v1005_v7 = vld [vmem:[#allocation2 + $0x1ab0] sm:$0xff] }
 0x43f   :  { %10658 = vmatpush2.bf16.msra.mxu0 %v14533_v57  ;;  %10699 = vmatpush2.bf16.msra.mxu1 %v14661_v35  ;;  %v1129_v45 = vld [vmem:[#allocation2 + $0x1e90] sm:$0xff]  ;;  %v14502_v60 = vcombine.high %v1001_v2, %v1005_v7  ;;  %v14501_v35 = vcombine.low %v1001_v2, %v1005_v7 }
 0x440   :  { %10659 = vmatprep.subr.bf16.mxu0 %v14526_v14  ;;  %10700 = vmatprep.subr.bf16.mxu1 %v14654_v11  ;;  %v1133_v12 = vld [vmem:[#allocation2 + $0x1eb0] sm:$0xff] }
 0x441   :  { %v14630_v62 = vcombine.high %v1129_v45, %v1133_v12  ;;  %v993_v1 = vld [vmem:[#allocation2 + $0x1a50] sm:$0xff]  ;;  %v14629_v14 = vcombine.low %v1129_v45, %v1133_v12  ;;  %v1711_v45 = vsub.s32 5, %v16235_v26 }
 0x442   :  { %v997_v4 = vld [vmem:[#allocation2 + $0x1a70] sm:$0xff] }
 0x443   :  { %10660 = vmatpush2.bf16.msra.mxu0 %v14525_v22  ;;  %10701 = vmatpush2.bf16.msra.mxu1 %v14653_v42  ;;  %v1121_v8 = vld [vmem:[#allocation2 + $0x1e50] sm:$0xff]  ;;  %v14494_v11 = vcombine.high %v993_v1, %v997_v4  ;;  %v14493_v42 = vcombine.low %v993_v1, %v997_v4 }
 0x444   :  { %10661 = vmatprep.subr.bf16.mxu0 %v14518_v23  ;;  %10702 = vmatprep.subr.bf16.mxu1 %v14646_v29  ;;  %v1125_v57 = vld [vmem:[#allocation2 + $0x1e70] sm:$0xff] }
 0x445   :  { %v14622_v30 = vcombine.high %v1121_v8, %v1125_v57  ;;  %v985_v33 = vld [vmem:[#allocation2 + $0x1a10] sm:$0xff]  ;;  %v14621_v23 = vcombine.low %v1121_v8, %v1125_v57 }
 0x446   :  { %v989_v36 = vld [vmem:[#allocation2 + $0x1a30] sm:$0xff] }
 0x447   :  { %10662 = vmatpush2.bf16.msra.mxu0 %v14517_v52  ;;  %10703 = vmatpush2.bf16.msra.mxu1 %v14645_v43  ;;  %v1113_v47 = vld [vmem:[#allocation2 + $0x1e10] sm:$0xff]  ;;  %v14486_v29 = vcombine.high %v985_v33, %v989_v36  ;;  %v14485_v43 = vcombine.low %v985_v33, %v989_v36 }
 0x448   :  { %10663 = vmatprep.subr.bf16.mxu0 %v14510_v48  ;;  %10704 = vmatprep.subr.bf16.mxu1 %v14638_v19  ;;  %v1117_v22 = vld [vmem:[#allocation2 + $0x1e30] sm:$0xff]  ;;  %v1707_v48 = vsub.s32 4, %v16235_v26 }
 0x449   :  { %v14614_v24 = vcombine.high %v1113_v47, %v1117_v22  ;;  %v1233_v27 = vld [vmem:[#allocation2 + $0x21d0] sm:$0xff]  ;;  %v14613_v19 = vcombine.low %v1113_v47, %v1117_v22 }
 0x44a   :  { %v1237_v41 = vld [vmem:[#allocation2 + $0x21f0] sm:$0xff] }
 0x44b   :  { %10664 = vmatpush2.bf16.msra.mxu0 %v14509_v55  ;;  %10705 = vmatpush2.bf16.msra.mxu1 %v14637_v63  ;;  %v1361_v0 = vld [vmem:[#allocation2 + $0x25d0] sm:$0xff]  ;;  %v14734_v2 = vcombine.high %v1233_v27, %v1237_v41  ;;  %v14733_v4 = vcombine.low %v1233_v27, %v1237_v41 }
 0x44c   :  { %10665 = vmatprep.subr.bf16.mxu0 %v14502_v60  ;;  %10706 = vmatprep.subr.bf16.mxu1 %v14630_v62  ;;  %v1365_v52 = vld [vmem:[#allocation2 + $0x25f0] sm:$0xff]  ;;  %v15951_v62 = vld [vmem:[#allocation4] sm:$0xff] }
 0x44d   :  { %v14862_v7 = vcombine.high %v1361_v0, %v1365_v52  ;;  %v1225_v12 = vld [vmem:[#allocation2 + $0x2190] sm:$0xff]  ;;  %v1708_v1 = vrot.slane %v15951_v62, %v1707_v48  ;;  %v14861_v8 = vcombine.low %v1361_v0, %v1365_v52 }
 0x44e   :  { %v1229_v55 = vld [vmem:[#allocation2 + $0x21b0] sm:$0xff] }
 0x44f   :  { %10666 = vmatpush2.bf16.msra.mxu0 %v14501_v35  ;;  %10707 = vmatpush2.bf16.msra.mxu1 %v14629_v14  ;;  %v1353_v63 = vld [vmem:[#allocation2 + $0x2590] sm:$0xff]  ;;  %v14726_v57 = vcombine.high %v1225_v12, %v1229_v55  ;;  %v1712_v35 = vrot.slane %v15951_v62, %v1711_v45 }
 0x450   :  { %10667 = vmatprep.subr.bf16.mxu0 %v14494_v11  ;;  %10708 = vmatprep.subr.bf16.mxu1 %v14622_v30  ;;  %v1357_v60 = vld [vmem:[#allocation2 + $0x25b0] sm:$0xff] }
 0x451   :  { %v14854_v14 = vcombine.high %v1353_v63, %v1357_v60  ;;  %v1217_v11 = vld [vmem:[#allocation2 + $0x2150] sm:$0xff] }
 0x452   :  { %v1221_v30 = vld [vmem:[#allocation2 + $0x2170] sm:$0xff] }
 0x453   :  { %10668 = vmatpush2.bf16.msra.mxu0 %v14493_v42  ;;  %10709 = vmatpush2.bf16.msra.mxu1 %v14621_v23  ;;  %v1345_v36 = vld [vmem:[#allocation2 + $0x2550] sm:$0xff]  ;;  %v14725_v23 = vcombine.low %v1225_v12, %v1229_v55  ;;  %v14718_v27 = vcombine.high %v1217_v11, %v1221_v30 }
 0x454   :  { %10669 = vmatprep.subr.bf16.mxu0 %v14486_v29  ;;  %10710 = vmatprep.subr.bf16.mxu1 %v14614_v24  ;;  %v1349_v47 = vld [vmem:[#allocation2 + $0x2570] sm:$0xff]  ;;  %v14853_v24 = vcombine.low %v1353_v63, %v1357_v60  ;;  %v14717_v63 = vcombine.low %v1217_v11, %v1221_v30 }
 0x455   :  { %v1209_v48 = vld [vmem:[#allocation2 + $0x2110] sm:$0xff]  ;;  %v14845_v62 = vcombine.low %v1345_v36, %v1349_v47 }
 0x456   :  { %v1341_v45 = vld [vmem:[#allocation2 + $0x2530] sm:$0xff] }
 0x457   :  { %10670 = vmatpush2.bf16.msra.mxu0 %v14485_v43  ;;  %10711 = vmatpush2.bf16.msra.mxu1 %v14613_v19  ;;  %v14846_v43 = vcombine.high %v1345_v36, %v1349_v47  ;;  %v1213_v19 = vld [vmem:[#allocation2 + $0x2130] sm:$0xff] }
 0x458   :  { %10721 = vmatprep.subr.bf16.mxu0 %v14734_v2  ;;  %10762 = vmatprep.subr.bf16.mxu1 %v14862_v7  ;;  %v1337_v7 = vld [vmem:[#allocation2 + $0x2510] sm:$0xff] }
 0x459   :  { %v1193_v30 = vld [vmem:[#allocation2 + $0x2090] sm:$0xff] }
 0x45a   :  { %v10427_v33 = vpop.f32.mrf.mxu0  ;;  %10672 = vmatmul.mubr.bf16.vlgmr.msra.gmra.mxu0 %v16245_v50  ;;  %v10468_v42 = vpop.f32.mrf.mxu1  ;;  %10713 = vmatmul.mubr.bf16.vlgmr.msra.gmra.mxu1 %v16252_v56  ;;  %v1325_v36 = vld [vmem:[#allocation2 + $0x24b0] sm:$0xff] }
 0x45b   :  { %v10428_v22 = vadd.f32 %v10427_v33, %v1708_v1  ;;  %10722 = vmatpush1.bf16.msra.mxu0 %v14733_v4  ;;  %10763 = vmatpush1.bf16.msra.mxu1 %v14861_v8  ;;  %v14710_v1 = vcombine.high %v1209_v48, %v1213_v19  ;;  %v14838_v8 = vcombine.high %v1337_v7, %v1341_v45  ;;  %v1333_v33 = vld [vmem:[#allocation2 + $0x24f0] sm:$0xff] }
 0x45c   :  { %v10429_v29 = vpop.f32.mrf.mxu0  ;;  %10723 = vmatprep.subr.bf16.mxu0 %v14726_v57  ;;  %v10470_v52 = vpop.f32.mrf.mxu1  ;;  %10764 = vmatprep.subr.bf16.mxu1 %v14854_v14  ;;  %v1201_v57 = vld [vmem:[#allocation2 + $0x20d0] sm:$0xff] }
 0x45d   :  { %v16419_v41 = vadd.f32 %v10468_v42, %v10428_v22  ;;  %v10430_v0 = vadd.f32 %v10429_v29, %v1712_v35  ;;  %10753 = vmatprep.mubr.bf16.mxu0 %v16259_v3  ;;  %10794 = vmatprep.mubr.bf16.mxu1 %v16262_v9  ;;  %v1205_v35 = vld [vmem:[#allocation2 + $0x20f0] sm:$0xff]  ;;  %v14709_v22 = vcombine.low %v1209_v48, %v1213_v19 }
 0x45e   :  { %v10431_v2 = vpop.f32.mrf.mxu0  ;;  %v10472_v55 = vpop.f32.mrf.mxu1  ;;  %v1329_v14 = vld [vmem:[#allocation2 + $0x24d0] sm:$0xff]  ;;  %v14837_v42 = vcombine.low %v1337_v7, %v1341_v45  ;;  %v14702_v29 = vcombine.high %v1201_v57, %v1205_v35  ;;  %v14701_v47 = vcombine.low %v1201_v57, %v1205_v35 }
 0x45f   :  { %v16423_v12 = vadd.f32 %v10470_v52, %v10430_v0  ;;  %10724 = vmatpush1.bf16.msra.mxu0 %v14725_v23  ;;  %10765 = vmatpush1.bf16.msra.mxu1 %v14853_v24  ;;  %v14830_v11 = vcombine.high %v1329_v14, %v1333_v33  ;;  %v1197_v23 = vld [vmem:[#allocation2 + $0x20b0] sm:$0xff] }
 0x460   :  { %v10432_v60 = vpop.f32.mrf.mxu0  ;;  %10725 = vmatprep.subr.bf16.mxu0 %v14718_v27  ;;  %v10473_v4 = vpop.f32.mrf.mxu1  ;;  %10766 = vmatprep.subr.bf16.mxu1 %v14846_v43  ;;  %v1321_v24 = vld [vmem:[#allocation2 + $0x2490] sm:$0xff]  ;;  %v14829_v27 = vcombine.low %v1329_v14, %v1333_v33  ;;  %v14694_v0 = vcombine.high %v1193_v30, %v1197_v23  ;;  %v14693_v7 = vcombine.low %v1193_v30, %v1197_v23 }
 0x461   :  { %v14822_v52 = vcombine.high %v1321_v24, %v1325_v36  ;;  %v1185_v43 = vld [vmem:[#allocation2 + $0x2050] sm:$0xff]  ;;  %v14821_v45 = vcombine.low %v1321_v24, %v1325_v36 }
 0x462   :  { %v1189_v48 = vld [vmem:[#allocation2 + $0x2070] sm:$0xff] }
 0x463   :  { %10726 = vmatpush1.bf16.msra.mxu0 %v14717_v63  ;;  %10767 = vmatpush1.bf16.msra.mxu1 %v14845_v62  ;;  %v1313_v19 = vld [vmem:[#allocation2 + $0x2450] sm:$0xff]  ;;  %v14686_v55 = vcombine.high %v1185_v43, %v1189_v48 }
 0x464   :  { %10727 = vmatprep.subr.bf16.mxu0 %v14710_v1  ;;  %10768 = vmatprep.subr.bf16.mxu1 %v14838_v8  ;;  %v1317_v2 = vld [vmem:[#allocation2 + $0x2470] sm:$0xff]  ;;  %v14685_v8 = vcombine.low %v1185_v43, %v1189_v48 }
 0x465   :  { %v14814_v63 = vcombine.high %v1313_v19, %v1317_v2  ;;  %v1177_v60 = vld [vmem:[#allocation2 + $0x2010] sm:$0xff]  ;;  %v14813_v57 = vcombine.low %v1313_v19, %v1317_v2 }
 0x466   :  { %v1181_v62 = vld [vmem:[#allocation2 + $0x2030] sm:$0xff] }
 0x467   :  { %10728 = vmatpush1.bf16.msra.mxu0 %v14709_v22  ;;  %10769 = vmatpush1.bf16.msra.mxu1 %v14837_v42  ;;  %v1305_v1 = vld [vmem:[#allocation2 + $0x2410] sm:$0xff]  ;;  %v14678_v35 = vcombine.high %v1177_v60, %v1181_v62 }
 0x468   :  { %10729 = vmatprep.subr.bf16.mxu0 %v14702_v29  ;;  %10770 = vmatprep.subr.bf16.mxu1 %v14830_v11  ;;  %v1309_v4 = vld [vmem:[#allocation2 + $0x2430] sm:$0xff]  ;;  %v14677_v11 = vcombine.low %v1177_v60, %v1181_v62 }
 0x469   :  { %v14806_v14 = vcombine.high %v1305_v1, %v1309_v4  ;;  %v1297_v33 = vld [vmem:[#allocation2 + $0x23d0] sm:$0xff]  ;;  %v14805_v30 = vcombine.low %v1305_v1, %v1309_v4 }
 0x46a   :  { %v1301_v22 = vld [vmem:[#allocation2 + $0x23f0] sm:$0xff] }
 0x46b   :  { %10730 = vmatpush1.bf16.msra.mxu0 %v14701_v47  ;;  %10771 = vmatpush1.bf16.msra.mxu1 %v14829_v27  ;;  %v1425_v42 = vld [vmem:[#allocation2 + $0x27d0] sm:$0xff]  ;;  %v14798_v23 = vcombine.high %v1297_v33, %v1301_v22 }
 0x46c   :  { %10731 = vmatprep.subr.bf16.mxu0 %v14694_v0  ;;  %10772 = vmatprep.subr.bf16.mxu1 %v14822_v52  ;;  %v1429_v29 = vld [vmem:[#allocation2 + $0x27f0] sm:$0xff]  ;;  %v14797_v52 = vcombine.low %v1297_v33, %v1301_v22 }
 0x46d   :  { %v14926_v24 = vcombine.high %v1425_v42, %v1429_v29  ;;  %v1289_v36 = vld [vmem:[#allocation2 + $0x2390] sm:$0xff]  ;;  %v14925_v43 = vcombine.low %v1425_v42, %v1429_v29 }
 0x46e   :  { %v1293_v47 = vld [vmem:[#allocation2 + $0x23b0] sm:$0xff] }
 0x46f   :  { %10732 = vmatpush1.bf16.msra.mxu0 %v14693_v7  ;;  %10773 = vmatpush1.bf16.msra.mxu1 %v14821_v45  ;;  %v1417_v27 = vld [vmem:[#allocation2 + $0x2790] sm:$0xff]  ;;  %v14790_v48 = vcombine.high %v1289_v36, %v1293_v47 }
 0x470   :  { %10733 = vmatprep.subr.bf16.mxu0 %v14686_v55  ;;  %10774 = vmatprep.subr.bf16.mxu1 %v14814_v63  ;;  %v1421_v0 = vld [vmem:[#allocation2 + $0x27b0] sm:$0xff]  ;;  %v14789_v63 = vcombine.low %v1289_v36, %v1293_v47 }
 0x471   :  { %v14918_v19 = vcombine.high %v1417_v27, %v1421_v0  ;;  %v1281_v2 = vld [vmem:[#allocation2 + $0x2350] sm:$0xff]  ;;  %v14917_v60 = vcombine.low %v1417_v27, %v1421_v0 }
 0x472   :  { %v1285_v7 = vld [vmem:[#allocation2 + $0x2370] sm:$0xff] }
 0x473   :  { %10734 = vmatpush1.bf16.msra.mxu0 %v14685_v8  ;;  %10775 = vmatpush1.bf16.msra.mxu1 %v14813_v57  ;;  %v1409_v45 = vld [vmem:[#allocation2 + $0x2750] sm:$0xff]  ;;  %v14782_v62 = vcombine.high %v1281_v2, %v1285_v7 }
 0x474   :  { %10735 = vmatprep.subr.bf16.mxu0 %v14678_v35  ;;  %10776 = vmatprep.subr.bf16.mxu1 %v14806_v14  ;;  %v1413_v55 = vld [vmem:[#allocation2 + $0x2770] sm:$0xff]  ;;  %v14781_v14 = vcombine.low %v1281_v2, %v1285_v7 }
 0x475   :  { %v14910_v1 = vcombine.high %v1409_v45, %v1413_v55  ;;  %v1273_v4 = vld [vmem:[#allocation2 + $0x2310] sm:$0xff]  ;;  %v14909_v33 = vcombine.low %v1409_v45, %v1413_v55 }
 0x476   :  { %v1277_v8 = vld [vmem:[#allocation2 + $0x2330] sm:$0xff] }
 0x477   :  { %10736 = vmatpush1.bf16.msra.mxu0 %v14677_v11  ;;  %10777 = vmatpush1.bf16.msra.mxu1 %v14805_v30  ;;  %v1401_v57 = vld [vmem:[#allocation2 + $0x2710] sm:$0xff]  ;;  %v14774_v22 = vcombine.high %v1273_v4, %v1277_v8 }
 0x478   :  { %10737 = vmatprep.subr.bf16.mxu0 %v14798_v23  ;;  %10778 = vmatprep.subr.bf16.mxu1 %v14926_v24  ;;  %v1405_v35 = vld [vmem:[#allocation2 + $0x2730] sm:$0xff]  ;;  %v14773_v24 = vcombine.low %v1273_v4, %v1277_v8 }
 0x479   :  { %v14902_v42 = vcombine.high %v1401_v57, %v1405_v35  ;;  %v1265_v29 = vld [vmem:[#allocation2 + $0x22d0] sm:$0xff]  ;;  %v14901_v36 = vcombine.low %v1401_v57, %v1405_v35 }
 0x47a   :  { %v1269_v11 = vld [vmem:[#allocation2 + $0x22f0] sm:$0xff] }
 0x47b   :  { %10738 = vmatpush2.bf16.msra.mxu0 %v14797_v52  ;;  %10779 = vmatpush2.bf16.msra.mxu1 %v14925_v43  ;;  %v1393_v30 = vld [vmem:[#allocation2 + $0x26d0] sm:$0xff]  ;;  %v14766_v47 = vcombine.high %v1265_v29, %v1269_v11 }
 0x47c   :  { %10739 = vmatprep.subr.bf16.mxu0 %v14790_v48  ;;  %10780 = vmatprep.subr.bf16.mxu1 %v14918_v19  ;;  %v1397_v23 = vld [vmem:[#allocation2 + $0x26f0] sm:$0xff]  ;;  %v14765_v19 = vcombine.low %v1265_v29, %v1269_v11 }
 0x47d   :  { %v14894_v27 = vcombine.high %v1393_v30, %v1397_v23  ;;  %v1257_v0 = vld [vmem:[#allocation2 + $0x2290] sm:$0xff]  ;;  %v14893_v2 = vcombine.low %v1393_v30, %v1397_v23 }
 0x47e   :  { %v1261_v52 = vld [vmem:[#allocation2 + $0x22b0] sm:$0xff] }
 0x47f   :  { %10740 = vmatpush2.bf16.msra.mxu0 %v14789_v63  ;;  %10781 = vmatpush2.bf16.msra.mxu1 %v14917_v60  ;;  %v1385_v43 = vld [vmem:[#allocation2 + $0x2690] sm:$0xff]  ;;  %v14758_v7 = vcombine.high %v1257_v0, %v1261_v52 }
 0x480   :  { %10741 = vmatprep.subr.bf16.mxu0 %v14782_v62  ;;  %10782 = vmatprep.subr.bf16.mxu1 %v14910_v1  ;;  %v1389_v48 = vld [vmem:[#allocation2 + $0x26b0] sm:$0xff]  ;;  %v14757_v1 = vcombine.low %v1257_v0, %v1261_v52 }
 0x481   :  { %v14886_v45 = vcombine.high %v1385_v43, %v1389_v48  ;;  %v1249_v55 = vld [vmem:[#allocation2 + $0x2250] sm:$0xff]  ;;  %v14885_v4 = vcombine.low %v1385_v43, %v1389_v48 }
 0x482   :  { %v1253_v63 = vld [vmem:[#allocation2 + $0x2270] sm:$0xff] }
 0x483   :  { %10742 = vmatpush2.bf16.msra.mxu0 %v14781_v14  ;;  %10783 = vmatpush2.bf16.msra.mxu1 %v14909_v33  ;;  %v1377_v60 = vld [vmem:[#allocation2 + $0x2650] sm:$0xff]  ;;  %v14750_v8 = vcombine.high %v1249_v55, %v1253_v63 }
 0x484   :  { %10743 = vmatprep.subr.bf16.mxu0 %v14774_v22  ;;  %10784 = vmatprep.subr.bf16.mxu1 %v14902_v42  ;;  %v1381_v62 = vld [vmem:[#allocation2 + $0x2670] sm:$0xff]  ;;  %v14749_v42 = vcombine.low %v1249_v55, %v1253_v63 }
 0x485   :  { %v14878_v57 = vcombine.high %v1377_v60, %v1381_v62  ;;  %v1241_v35 = vld [vmem:[#allocation2 + $0x2210] sm:$0xff]  ;;  %v14877_v29 = vcombine.low %v1377_v60, %v1381_v62 }
 0x486   :  { %v1245_v14 = vld [vmem:[#allocation2 + $0x2230] sm:$0xff] }
 0x487   :  { %10744 = vmatpush2.bf16.msra.mxu0 %v14773_v24  ;;  %10785 = vmatpush2.bf16.msra.mxu1 %v14901_v36  ;;  %v1369_v33 = vld [vmem:[#allocation2 + $0x2610] sm:$0xff]  ;;  %v14742_v11 = vcombine.high %v1241_v35, %v1245_v14 }
 0x488   :  { %10745 = vmatprep.subr.bf16.mxu0 %v14766_v47  ;;  %10786 = vmatprep.subr.bf16.mxu1 %v14894_v27  ;;  %v1373_v22 = vld [vmem:[#allocation2 + $0x2630] sm:$0xff]  ;;  %v14741_v27 = vcombine.low %v1241_v35, %v1245_v14 }
 0x489   :  { %v14870_v30 = vcombine.high %v1369_v33, %v1373_v22  ;;  %v1489_v23 = vld [vmem:[#allocation2 + $0x29d0] sm:$0xff]  ;;  %v14869_v0 = vcombine.low %v1369_v33, %v1373_v22 }
 0x48a   :  { %v1493_v24 = vld [vmem:[#allocation2 + $0x29f0] sm:$0xff] }
 0x48b   :  { %10746 = vmatpush2.bf16.msra.mxu0 %v14765_v19  ;;  %10787 = vmatpush2.bf16.msra.mxu1 %v14893_v2  ;;  %v1617_v36 = vld [vmem:[#allocation2 + $0x2dd0] sm:$0xff]  ;;  %v14990_v52 = vcombine.high %v1489_v23, %v1493_v24 }
 0x48c   :  { %10747 = vmatprep.subr.bf16.mxu0 %v14758_v7  ;;  %10788 = vmatprep.subr.bf16.mxu1 %v14886_v45  ;;  %v1621_v47 = vld [vmem:[#allocation2 + $0x2df0] sm:$0xff]  ;;  %v14989_v45 = vcombine.low %v1489_v23, %v1493_v24 }
 0x48d   :  { %v15118_v43 = vcombine.high %v1617_v36, %v1621_v47  ;;  %v1481_v48 = vld [vmem:[#allocation2 + $0x2990] sm:$0xff]  ;;  %v15117_v55 = vcombine.low %v1617_v36, %v1621_v47 }
 0x48e   :  { %v1485_v19 = vld [vmem:[#allocation2 + $0x29b0] sm:$0xff] }
 0x48f   :  { %10748 = vmatpush2.bf16.msra.mxu0 %v14757_v1  ;;  %10789 = vmatpush2.bf16.msra.mxu1 %v14885_v4  ;;  %v1609_v2 = vld [vmem:[#allocation2 + $0x2d90] sm:$0xff]  ;;  %v14982_v63 = vcombine.high %v1481_v48, %v1485_v19  ;;  %v14981_v33 = vcombine.low %v1481_v48, %v1485_v19 }
 0x490   :  { %10749 = vmatprep.subr.bf16.mxu0 %v14750_v8  ;;  %10790 = vmatprep.subr.bf16.mxu1 %v14878_v57  ;;  %v1613_v7 = vld [vmem:[#allocation2 + $0x2db0] sm:$0xff] }
 0x491   :  { %v15110_v60 = vcombine.high %v1609_v2, %v1613_v7  ;;  %v1473_v62 = vld [vmem:[#allocation2 + $0x2950] sm:$0xff] }
 0x492   :  { %v1477_v1 = vld [vmem:[#allocation2 + $0x2970] sm:$0xff] }
 0x493   :  { %10750 = vmatpush2.bf16.msra.mxu0 %v14749_v42  ;;  %10791 = vmatpush2.bf16.msra.mxu1 %v14877_v29  ;;  %v1601_v8 = vld [vmem:[#allocation2 + $0x2d50] sm:$0xff]  ;;  %v15109_v42 = vcombine.low %v1609_v2, %v1613_v7  ;;  %v14974_v29 = vcombine.high %v1473_v62, %v1477_v1  ;;  %v14973_v48 = vcombine.low %v1473_v62, %v1477_v1 }
 0x494   :  { %10751 = vmatprep.subr.bf16.mxu0 %v14742_v11  ;;  %10792 = vmatprep.subr.bf16.mxu1 %v14870_v30  ;;  %v1605_v57 = vld [vmem:[#allocation2 + $0x2d70] sm:$0xff] }
 0x495   :  { %v15102_v24 = vcombine.high %v1601_v8, %v1605_v57  ;;  %v1465_v36 = vld [vmem:[#allocation2 + $0x2910] sm:$0xff] }
 0x496   :  { %v1469_v47 = vld [vmem:[#allocation2 + $0x2930] sm:$0xff] }
 0x497   :  { %10752 = vmatpush2.bf16.msra.mxu0 %v14741_v27  ;;  %10793 = vmatpush2.bf16.msra.mxu1 %v14869_v0  ;;  %v1593_v27 = vld [vmem:[#allocation2 + $0x2d10] sm:$0xff]  ;;  %v14966_v2 = vcombine.high %v1465_v36, %v1469_v47 }
 0x498   :  { %10803 = vmatprep.subr.bf16.mxu0 %v14990_v52  ;;  %10844 = vmatprep.subr.bf16.mxu1 %v15118_v43  ;;  %v1597_v0 = vld [vmem:[#allocation2 + $0x2d30] sm:$0xff] }
 0x499   :  { %v1449_v1 = vld [vmem:[#allocation2 + $0x2890] sm:$0xff] }
 0x49a   :  { %v10509_v4 = vpop.f32.mrf.mxu0  ;;  %10754 = vmatmul.mubr.bf16.vlgmr.msra.gmra.mxu0 %v16277_v21  ;;  %v10550_v14 = vpop.f32.mrf.mxu1  ;;  %10795 = vmatmul.mubr.bf16.vlgmr.msra.gmra.mxu1 %v16282_v25 }
 0x49b   :  { %v10510_v35 = vadd.f32 %v10509_v4, %v16419_v41  ;;  %10804 = vmatpush1.bf16.msra.mxu0 %v14989_v45  ;;  %10845 = vmatpush1.bf16.msra.mxu1 %v15117_v55  ;;  %v15094_v45 = vcombine.high %v1593_v27, %v1597_v0  ;;  %v1457_v55 = vld [vmem:[#allocation2 + $0x28d0] sm:$0xff] }
 0x49c   :  { %v10511_v22 = vpop.f32.mrf.mxu0  ;;  %10805 = vmatprep.subr.bf16.mxu0 %v14982_v63  ;;  %v10552_v23 = vpop.f32.mrf.mxu1  ;;  %10846 = vmatprep.subr.bf16.mxu1 %v15110_v60  ;;  %v1461_v63 = vld [vmem:[#allocation2 + $0x28f0] sm:$0xff] }
 0x49d   :  { %v16428_v11 = vadd.f32 %v10550_v14, %v10510_v35  ;;  %v10512_v30 = vadd.f32 %v10511_v22, %v16423_v12  ;;  %10835 = vmatprep.mubr.bf16.mxu0 %v16287_v38  ;;  %10876 = vmatprep.mubr.bf16.mxu1 %v16290_v44  ;;  %v15101_v12 = vcombine.low %v1601_v8, %v1605_v57  ;;  %v1585_v60 = vld [vmem:[#allocation2 + $0x2cd0] sm:$0xff] }
 0x49e   :  { %v10513_v41 = vpop.f32.mrf.mxu0  ;;  %v10554_v43 = vpop.f32.mrf.mxu1  ;;  %v1589_v4 = vld [vmem:[#allocation2 + $0x2cf0] sm:$0xff]  ;;  %v14965_v35 = vcombine.low %v1465_v36, %v1469_v47  ;;  %v15093_v14 = vcombine.low %v1593_v27, %v1597_v0  ;;  %v14958_v22 = vcombine.high %v1457_v55, %v1461_v63  ;;  %v14957_v57 = vcombine.low %v1457_v55, %v1461_v63 }
 0x49f   :  { %v16433_v52 = vadd.f32 %v10552_v23, %v10512_v30  ;;  %10806 = vmatpush1.bf16.msra.mxu0 %v14981_v33  ;;  %10847 = vmatpush1.bf16.msra.mxu1 %v15109_v42  ;;  %v15086_v62 = vcombine.high %v1585_v60, %v1589_v4  ;;  %v1453_v33 = vld [vmem:[#allocation2 + $0x28b0] sm:$0xff] }
 0x4a0   :  { %v10514_v19 = vpop.f32.mrf.mxu0  ;;  %10807 = vmatprep.subr.bf16.mxu0 %v14974_v29  ;;  %v10555_v7 = vpop.f32.mrf.mxu1  ;;  %10848 = vmatprep.subr.bf16.mxu1 %v15102_v24  ;;  %v1577_v42 = vld [vmem:[#allocation2 + $0x2c90] sm:$0xff]  ;;  %v15085_v29 = vcombine.low %v1585_v60, %v1589_v4  ;;  %v14950_v30 = vcombine.high %v1449_v1, %v1453_v33  ;;  %v14949_v27 = vcombine.low %v1449_v1, %v1453_v33 }
 0x4a1   :  { %v1581_v8 = vld [vmem:[#allocation2 + $0x2cb0] sm:$0xff] }
 0x4a2   :  { %v15078_v23 = vcombine.high %v1577_v42, %v1581_v8  ;;  %v1441_v24 = vld [vmem:[#allocation2 + $0x2850] sm:$0xff]  ;;  %v15077_v0 = vcombine.low %v1577_v42, %v1581_v8 }
 0x4a3   :  { %10808 = vmatpush1.bf16.msra.mxu0 %v14973_v48  ;;  %10849 = vmatpush1.bf16.msra.mxu1 %v15101_v12  ;;  %v1445_v36 = vld [vmem:[#allocation2 + $0x2870] sm:$0xff] }
 0x4a4   :  { %10809 = vmatprep.subr.bf16.mxu0 %v14966_v2  ;;  %10850 = vmatprep.subr.bf16.mxu1 %v15094_v45  ;;  %v1569_v47 = vld [vmem:[#allocation2 + $0x2c50] sm:$0xff]  ;;  %v14942_v43 = vcombine.high %v1441_v24, %v1445_v36  ;;  %v14941_v45 = vcombine.low %v1441_v24, %v1445_v36 }
 0x4a5   :  { %v1573_v41 = vld [vmem:[#allocation2 + $0x2c70] sm:$0xff] }
 0x4a6   :  { %v15070_v48 = vcombine.high %v1569_v47, %v1573_v41  ;;  %v1433_v19 = vld [vmem:[#allocation2 + $0x2810] sm:$0xff]  ;;  %v15069_v55 = vcombine.low %v1569_v47, %v1573_v41 }
 0x4a7   :  { %10810 = vmatpush1.bf16.msra.mxu0 %v14965_v35  ;;  %10851 = vmatpush1.bf16.msra.mxu1 %v15093_v14  ;;  %v1437_v12 = vld [vmem:[#allocation2 + $0x2830] sm:$0xff] }
 0x4a8   :  { %10811 = vmatprep.subr.bf16.mxu0 %v14958_v22  ;;  %10852 = vmatprep.subr.bf16.mxu1 %v15086_v62  ;;  %v1561_v2 = vld [vmem:[#allocation2 + $0x2c10] sm:$0xff]  ;;  %v14934_v63 = vcombine.high %v1433_v19, %v1437_v12  ;;  %v14933_v62 = vcombine.low %v1433_v19, %v1437_v12 }
 0x4a9   :  { %v1565_v7 = vld [vmem:[#allocation2 + $0x2c30] sm:$0xff] }
 0x4aa   :  { %v15062_v60 = vcombine.high %v1561_v2, %v1565_v7  ;;  %v1553_v4 = vld [vmem:[#allocation2 + $0x2bd0] sm:$0xff]  ;;  %v15061_v1 = vcombine.low %v1561_v2, %v1565_v7 }
 0x4ab   :  { %10812 = vmatpush1.bf16.msra.mxu0 %v14957_v57  ;;  %10853 = vmatpush1.bf16.msra.mxu1 %v15085_v29  ;;  %v1557_v35 = vld [vmem:[#allocation2 + $0x2bf0] sm:$0xff] }
 0x4ac   :  { %10813 = vmatprep.subr.bf16.mxu0 %v14950_v30  ;;  %10854 = vmatprep.subr.bf16.mxu1 %v15078_v23  ;;  %v1681_v14 = vld [vmem:[#allocation2 + $0x2fd0] sm:$0xff]  ;;  %v15054_v33 = vcombine.high %v1553_v4, %v1557_v35  ;;  %v15053_v23 = vcombine.low %v1553_v4, %v1557_v35 }
 0x4ad   :  { %v1685_v22 = vld [vmem:[#allocation2 + $0x2ff0] sm:$0xff] }
 0x4ae   :  { %v15182_v42 = vcombine.high %v1681_v14, %v1685_v22  ;;  %v1545_v8 = vld [vmem:[#allocation2 + $0x2b90] sm:$0xff]  ;;  %v15181_v24 = vcombine.low %v1681_v14, %v1685_v22 }
 0x4af   :  { %10814 = vmatpush1.bf16.msra.mxu0 %v14949_v27  ;;  %10855 = vmatpush1.bf16.msra.mxu1 %v15077_v0  ;;  %v1549_v57 = vld [vmem:[#allocation2 + $0x2bb0] sm:$0xff] }
 0x4b0   :  { %10815 = vmatprep.subr.bf16.mxu0 %v14942_v43  ;;  %10856 = vmatprep.subr.bf16.mxu1 %v15070_v48  ;;  %v1673_v29 = vld [vmem:[#allocation2 + $0x2f90] sm:$0xff]  ;;  %v15046_v36 = vcombine.high %v1545_v8, %v1549_v57  ;;  %v15045_v48 = vcombine.low %v1545_v8, %v1549_v57 }
 0x4b1   :  { %v1677_v30 = vld [vmem:[#allocation2 + $0x2fb0] sm:$0xff] }
 0x4b2   :  { %v15174_v47 = vcombine.high %v1673_v29, %v1677_v30  ;;  %v1537_v41 = vld [vmem:[#allocation2 + $0x2b50] sm:$0xff]  ;;  %v15173_v19 = vcombine.low %v1673_v29, %v1677_v30 }
 0x4b3   :  { %10816 = vmatpush1.bf16.msra.mxu0 %v14941_v45  ;;  %10857 = vmatpush1.bf16.msra.mxu1 %v15069_v55  ;;  %v1541_v27 = vld [vmem:[#allocation2 + $0x2b70] sm:$0xff] }
 0x4b4   :  { %10817 = vmatprep.subr.bf16.mxu0 %v14934_v63  ;;  %10858 = vmatprep.subr.bf16.mxu1 %v15062_v60  ;;  %v1665_v0 = vld [vmem:[#allocation2 + $0x2f50] sm:$0xff]  ;;  %v15038_v12 = vcombine.high %v1537_v41, %v1541_v27  ;;  %v15037_v60 = vcombine.low %v1537_v41, %v1541_v27 }
 0x4b5   :  { %v1669_v43 = vld [vmem:[#allocation2 + $0x2f70] sm:$0xff] }
 0x4b6   :  { %v15166_v2 = vcombine.high %v1665_v0, %v1669_v43  ;;  %v1529_v7 = vld [vmem:[#allocation2 + $0x2b10] sm:$0xff]  ;;  %v15165_v4 = vcombine.low %v1665_v0, %v1669_v43 }
 0x4b7   :  { %10818 = vmatpush1.bf16.msra.mxu0 %v14933_v62  ;;  %10859 = vmatpush1.bf16.msra.mxu1 %v15061_v1  ;;  %v1533_v45 = vld [vmem:[#allocation2 + $0x2b30] sm:$0xff] }
 0x4b8   :  { %10819 = vmatprep.subr.bf16.mxu0 %v15054_v33  ;;  %10860 = vmatprep.subr.bf16.mxu1 %v15182_v42  ;;  %v1657_v55 = vld [vmem:[#allocation2 + $0x2f10] sm:$0xff]  ;;  %v15030_v35 = vcombine.high %v1529_v7, %v1533_v45  ;;  %v15029_v42 = vcombine.low %v1529_v7, %v1533_v45 }
 0x4b9   :  { %v1661_v63 = vld [vmem:[#allocation2 + $0x2f30] sm:$0xff] }
 0x4ba   :  { %v15158_v14 = vcombine.high %v1657_v55, %v1661_v63  ;;  %v1521_v22 = vld [vmem:[#allocation2 + $0x2ad0] sm:$0xff]  ;;  %v15157_v8 = vcombine.low %v1657_v55, %v1661_v63 }
 0x4bb   :  { %10820 = vmatpush2.bf16.msra.mxu0 %v15053_v23  ;;  %10861 = vmatpush2.bf16.msra.mxu1 %v15181_v24  ;;  %v1525_v62 = vld [vmem:[#allocation2 + $0x2af0] sm:$0xff] }
 0x4bc   :  { %10821 = vmatprep.subr.bf16.mxu0 %v15046_v36  ;;  %10862 = vmatprep.subr.bf16.mxu1 %v15174_v47  ;;  %v1649_v1 = vld [vmem:[#allocation2 + $0x2ed0] sm:$0xff]  ;;  %v15022_v57 = vcombine.high %v1521_v22, %v1525_v62  ;;  %v15021_v47 = vcombine.low %v1521_v22, %v1525_v62 }
 0x4bd   :  { %v1653_v33 = vld [vmem:[#allocation2 + $0x2ef0] sm:$0xff] }
 0x4be   :  { %v15150_v29 = vcombine.high %v1649_v1, %v1653_v33  ;;  %v1513_v30 = vld [vmem:[#allocation2 + $0x2a90] sm:$0xff]  ;;  %v15149_v41 = vcombine.low %v1649_v1, %v1653_v33  ;;  %v210_v33 = vld [vmem:[#allocation2 + $0x1d8] sm:$0xff] }
 0x4bf   :  { %10822 = vmatpush2.bf16.msra.mxu0 %v15045_v48  ;;  %10863 = vmatpush2.bf16.msra.mxu1 %v15173_v19  ;;  %v1517_v23 = vld [vmem:[#allocation2 + $0x2ab0] sm:$0xff] }
 0x4c0   :  { %10823 = vmatprep.subr.bf16.mxu0 %v15038_v12  ;;  %10864 = vmatprep.subr.bf16.mxu1 %v15166_v2  ;;  %v1641_v24 = vld [vmem:[#allocation2 + $0x2e90] sm:$0xff]  ;;  %v15014_v27 = vcombine.high %v1513_v30, %v1517_v23  ;;  %v15013_v2 = vcombine.low %v1513_v30, %v1517_v23 }
 0x4c1   :  { %v1645_v36 = vld [vmem:[#allocation2 + $0x2eb0] sm:$0xff] }
 0x4c2   :  { %v15142_v0 = vcombine.high %v1641_v24, %v1645_v36  ;;  %v1505_v43 = vld [vmem:[#allocation2 + $0x2a50] sm:$0xff]  ;;  %v15141_v7 = vcombine.low %v1641_v24, %v1645_v36  ;;  %v202_v36 = vld [vmem:[#allocation2 + $0x198] sm:$0xff] }
 0x4c3   :  { %10824 = vmatpush2.bf16.msra.mxu0 %v15037_v60  ;;  %10865 = vmatpush2.bf16.msra.mxu1 %v15165_v4  ;;  %v1509_v48 = vld [vmem:[#allocation2 + $0x2a70] sm:$0xff] }
 0x4c4   :  { %10825 = vmatprep.subr.bf16.mxu0 %v15030_v35  ;;  %10866 = vmatprep.subr.bf16.mxu1 %v15158_v14  ;;  %v1633_v19 = vld [vmem:[#allocation2 + $0x2e50] sm:$0xff]  ;;  %v15006_v45 = vcombine.high %v1505_v43, %v1509_v48  ;;  %v15005_v14 = vcombine.low %v1505_v43, %v1509_v48 }
 0x4c5   :  { %v1637_v12 = vld [vmem:[#allocation2 + $0x2e70] sm:$0xff] }
 0x4c6   :  { %v15134_v55 = vcombine.high %v1633_v19, %v1637_v12  ;;  %v1497_v63 = vld [vmem:[#allocation2 + $0x2a10] sm:$0xff]  ;;  %v15133_v22 = vcombine.low %v1633_v19, %v1637_v12  ;;  %v194_v12 = vld [vmem:[#allocation2 + $0x158] sm:$0xff] }
 0x4c7   :  { %10826 = vmatpush2.bf16.msra.mxu0 %v15029_v42  ;;  %10867 = vmatpush2.bf16.msra.mxu1 %v15157_v8  ;;  %v1501_v60 = vld [vmem:[#allocation2 + $0x2a30] sm:$0xff]  ;;  %v214_v42 = vld [vmem:[#allocation2 + $0x1f8] sm:$0xff] }
 0x4c8   :  { %10827 = vmatprep.subr.bf16.mxu0 %v15022_v57  ;;  %10868 = vmatprep.subr.bf16.mxu1 %v15150_v29  ;;  %v1625_v4 = vld [vmem:[#allocation2 + $0x2e10] sm:$0xff]  ;;  %v14998_v62 = vcombine.high %v1497_v63, %v1501_v60  ;;  %v338_v8 = vld [vmem:[#allocation2 + $0x5d8] sm:$0xff]  ;;  %v14997_v29 = vcombine.low %v1497_v63, %v1501_v60  ;;  %v13712_v23 = vcombine.high %v210_v33, %v214_v42 }
 0x4c9   :  { %v1629_v35 = vld [vmem:[#allocation2 + $0x2e30] sm:$0xff]  ;;  %v342_v57 = vld [vmem:[#allocation2 + $0x5f8] sm:$0xff] }
 0x4ca   :  { %v15126_v1 = vcombine.high %v1625_v4, %v1629_v35  ;;  %v15125_v30 = vcombine.low %v1625_v4, %v1629_v35  ;;  %v13840_v24 = vcombine.high %v338_v8, %v342_v57  ;;  %v13839_v43 = vcombine.low %v338_v8, %v342_v57  ;;  %v186_v8 = vld [vmem:[#allocation2 + $0x118] sm:$0xff] }
 0x4cb   :  { %10828 = vmatpush2.bf16.msra.mxu0 %v15021_v47  ;;  %10869 = vmatpush2.bf16.msra.mxu1 %v15149_v41  ;;  %v206_v47 = vld [vmem:[#allocation2 + $0x1b8] sm:$0xff] }
 0x4cc   :  { %10829 = vmatprep.subr.bf16.mxu0 %v15014_v27  ;;  %10870 = vmatprep.subr.bf16.mxu1 %v15142_v0  ;;  %v330_v41 = vld [vmem:[#allocation2 + $0x598] sm:$0xff]  ;;  %v13711_v0 = vcombine.low %v210_v33, %v214_v42  ;;  %v13704_v48 = vcombine.high %v202_v36, %v206_v47  ;;  %v13703_v4 = vcombine.low %v202_v36, %v206_v47 }
 0x4cd   :  { %v334_v27 = vld [vmem:[#allocation2 + $0x5b8] sm:$0xff] }
 0x4ce   :  { %v13832_v19 = vcombine.high %v330_v41, %v334_v27  ;;  %v190_v57 = vld [vmem:[#allocation2 + $0x138] sm:$0xff] }
 0x4cf   :  { %10830 = vmatpush2.bf16.msra.mxu0 %v15013_v2  ;;  %10871 = vmatpush2.bf16.msra.mxu1 %v15141_v7  ;;  %v198_v2 = vld [vmem:[#allocation2 + $0x178] sm:$0xff] }
 0x4d0   :  { %10831 = vmatprep.subr.bf16.mxu0 %v15006_v45  ;;  %10872 = vmatprep.subr.bf16.mxu1 %v15134_v55  ;;  %v322_v45 = vld [vmem:[#allocation2 + $0x558] sm:$0xff]  ;;  %v13695_v36 = vcombine.low %v194_v12, %v198_v2 }
 0x4d1   :  { %v326_v55 = vld [vmem:[#allocation2 + $0x578] sm:$0xff] }
 0x4d2   :  { %v13824_v42 = vcombine.high %v322_v45, %v326_v55 }
 0x4d3   :  { %10832 = vmatpush2.bf16.msra.mxu0 %v15005_v14  ;;  %10873 = vmatpush2.bf16.msra.mxu1 %v15133_v22  ;;  %v13831_v14 = vcombine.low %v330_v41, %v334_v27  ;;  %v13696_v22 = vcombine.high %v194_v12, %v198_v2  ;;  %v13688_v41 = vcombine.high %v186_v8, %v190_v57  ;;  %v170_v2 = vld [vmem:[#allocation2 + $0x98] sm:$0xff] }
 0x4d4   :  { %10833 = vmatprep.subr.bf16.mxu0 %v14998_v62  ;;  %10874 = vmatprep.subr.bf16.mxu1 %v15126_v1 }
 0x4d7   :  { %10834 = vmatpush2.bf16.msra.mxu0 %v14997_v29  ;;  %10875 = vmatpush2.bf16.msra.mxu1 %v15125_v30  ;;  %v314_v29 = vld [vmem:[#allocation2 + $0x518] sm:$0xff] }
 0x4d8   :  { %10885 = vmatprep.subr.bf16.mxu0 %v13712_v23  ;;  %10926 = vmatprep.subr.bf16.mxu1 %v13840_v24  ;;  %v318_v30 = vld [vmem:[#allocation2 + $0x538] sm:$0xff] }
 0x4da   :  { %v10591_v7 = vpop.f32.mrf.mxu0  ;;  %10836 = vmatmul.mubr.bf16.vlgmr.msra.gmra.mxu0 %v16307_v10  ;;  %v10632_v60 = vpop.f32.mrf.mxu1  ;;  %10877 = vmatmul.mubr.bf16.vlgmr.msra.gmra.mxu1 %v16309_v13 }
 0x4db   :  { %v10592_v63 = vadd.f32 %v10591_v7, %v16428_v11  ;;  %10886 = vmatpush1.bf16.msra.mxu0 %v13711_v0  ;;  %10927 = vmatpush1.bf16.msra.mxu1 %v13839_v43  ;;  %v13816_v0 = vcombine.high %v314_v29, %v318_v30  ;;  %v178_v43 = vld [vmem:[#allocation2 + $0xd8] sm:$0xff]  ;;  %v13687_v7 = vcombine.low %v186_v8, %v190_v57 }
 0x4dc   :  { %v10593_v35 = vpop.f32.mrf.mxu0  ;;  %10887 = vmatprep.subr.bf16.mxu0 %v13704_v48  ;;  %v10634_v33 = vpop.f32.mrf.mxu1  ;;  %10928 = vmatprep.subr.bf16.mxu1 %v13832_v19  ;;  %v306_v48 = vld [vmem:[#allocation2 + $0x4d8] sm:$0xff] }
 0x4dd   :  { %v16438_v62 = vadd.f32 %v10632_v60, %v10592_v63  ;;  %v10594_v1 = vadd.f32 %v10593_v35, %v16433_v52  ;;  %10917 = vmatprep.mubr.bf16.mxu0 %v16157_v58  ;;  %10958 = vmatprep.mubr.bf16.mxu1 %v16159_v59  ;;  %v13823_v52 = vcombine.low %v322_v45, %v326_v55  ;;  %v182_v58 = vld [vmem:[#allocation2 + $0xf8] sm:$0xff] }
 0x4de   :  { %v10595_v11 = vpop.f32.mrf.mxu0  ;;  %v10636_v24 = vpop.f32.mrf.mxu1  ;;  %v310_v19 = vld [vmem:[#allocation2 + $0x4f8] sm:$0xff]  ;;  %v13815_v59 = vcombine.low %v314_v29, %v318_v30  ;;  %v13680_v63 = vcombine.high %v178_v43, %v182_v58  ;;  %v13679_v55 = vcombine.low %v178_v43, %v182_v58 }
 0x4df   :  { %v16443_v23 = vadd.f32 %v10634_v33, %v10594_v1  ;;  %10888 = vmatpush1.bf16.msra.mxu0 %v13703_v4  ;;  %10929 = vmatpush1.bf16.msra.mxu1 %v13831_v14  ;;  %v13808_v12 = vcombine.high %v306_v48, %v310_v19  ;;  %v174_v60 = vld [vmem:[#allocation2 + $0xb8] sm:$0xff]  ;;  %v13807_v35 = vcombine.low %v306_v48, %v310_v19 }
 0x4e0   :  { %v10596_v47 = vpop.f32.mrf.mxu0  ;;  %10889 = vmatprep.subr.bf16.mxu0 %v13696_v22  ;;  %v10637_v27 = vpop.f32.mrf.mxu1  ;;  %10930 = vmatprep.subr.bf16.mxu1 %v13824_v42  ;;  %v298_v4 = vld [vmem:[#allocation2 + $0x498] sm:$0xff]  ;;  %v13672_v14 = vcombine.high %v170_v2, %v174_v60  ;;  %v13671_v57 = vcombine.low %v170_v2, %v174_v60 }
 0x4e1   :  { %v302_v45 = vld [vmem:[#allocation2 + $0x4b8] sm:$0xff] }
 0x4e2   :  { %v13800_v22 = vcombine.high %v298_v4, %v302_v45  ;;  %v162_v1 = vld [vmem:[#allocation2 + $0x58] sm:$0xff]  ;;  %v13799_v11 = vcombine.low %v298_v4, %v302_v45 }
 0x4e3   :  { %10890 = vmatpush1.bf16.msra.mxu0 %v13695_v36  ;;  %10931 = vmatpush1.bf16.msra.mxu1 %v13823_v52  ;;  %v166_v33 = vld [vmem:[#allocation2 + $0x78] sm:$0xff] }
 0x4e4   :  { %10891 = vmatprep.subr.bf16.mxu0 %v13688_v41  ;;  %10932 = vmatprep.subr.bf16.mxu1 %v13816_v0  ;;  %v290_v42 = vld [vmem:[#allocation2 + $0x458] sm:$0xff]  ;;  %v13664_v29 = vcombine.high %v162_v1, %v166_v33  ;;  %v13663_v41 = vcombine.low %v162_v1, %v166_v33 }
 0x4e5   :  { %v294_v8 = vld [vmem:[#allocation2 + $0x478] sm:$0xff] }
 0x4e6   :  { %v13792_v30 = vcombine.high %v290_v42, %v294_v8  ;;  %v154_v24 = vld [vmem:[#allocation2 + $0x18] sm:$0xff]  ;;  %v13791_v27 = vcombine.low %v290_v42, %v294_v8 }
 0x4e7   :  { %10892 = vmatpush1.bf16.msra.mxu0 %v13687_v7  ;;  %10933 = vmatpush1.bf16.msra.mxu1 %v13815_v59  ;;  %v158_v36 = vld [vmem:[#allocation2 + $0x38] sm:$0xff] }
 0x4e8   :  { %10893 = vmatprep.subr.bf16.mxu0 %v13680_v63  ;;  %10934 = vmatprep.subr.bf16.mxu1 %v13808_v12  ;;  %v282_v47 = vld [vmem:[#allocation2 + $0x418] sm:$0xff]  ;;  %v13656_v0 = vcombine.high %v154_v24, %v158_v36  ;;  %v13655_v59 = vcombine.low %v154_v24, %v158_v36 }
 0x4e9   :  { %v286_v52 = vld [vmem:[#allocation2 + $0x438] sm:$0xff] }
 0x4ea   :  { %v13784_v43 = vcombine.high %v282_v47, %v286_v52  ;;  %v274_v58 = vld [vmem:[#allocation2 + $0x3d8] sm:$0xff]  ;;  %v13783_v63 = vcombine.low %v282_v47, %v286_v52 }
 0x4eb   :  { %10894 = vmatpush1.bf16.msra.mxu0 %v13679_v55  ;;  %10935 = vmatpush1.bf16.msra.mxu1 %v13807_v35  ;;  %v278_v48 = vld [vmem:[#allocation2 + $0x3f8] sm:$0xff] }
 0x4ec   :  { %10895 = vmatprep.subr.bf16.mxu0 %v13672_v14  ;;  %10936 = vmatprep.subr.bf16.mxu1 %v13800_v22  ;;  %v402_v19 = vld [vmem:[#allocation2 + $0x7d8] sm:$0xff]  ;;  %v13776_v12 = vcombine.high %v274_v58, %v278_v48  ;;  %v13775_v35 = vcombine.low %v274_v58, %v278_v48 }
 0x4ed   :  { %v406_v7 = vld [vmem:[#allocation2 + $0x7f8] sm:$0xff] }
 0x4ee   :  { %v13904_v2 = vcombine.high %v402_v19, %v406_v7  ;;  %v266_v60 = vld [vmem:[#allocation2 + $0x398] sm:$0xff]  ;;  %v13903_v14 = vcombine.low %v402_v19, %v406_v7 }
 0x4ef   :  { %10896 = vmatpush1.bf16.msra.mxu0 %v13671_v57  ;;  %10937 = vmatpush1.bf16.msra.mxu1 %v13799_v11  ;;  %v270_v4 = vld [vmem:[#allocation2 + $0x3b8] sm:$0xff] }
 0x4f0   :  { %10897 = vmatprep.subr.bf16.mxu0 %v13664_v29  ;;  %10938 = vmatprep.subr.bf16.mxu1 %v13792_v30  ;;  %v394_v45 = vld [vmem:[#allocation2 + $0x798] sm:$0xff]  ;;  %v13768_v22 = vcombine.high %v266_v60, %v270_v4  ;;  %v13767_v11 = vcombine.low %v266_v60, %v270_v4 }
 0x4f1   :  { %v398_v55 = vld [vmem:[#allocation2 + $0x7b8] sm:$0xff] }
 0x4f2   :  { %v13896_v1 = vcombine.high %v394_v45, %v398_v55  ;;  %v258_v33 = vld [vmem:[#allocation2 + $0x358] sm:$0xff]  ;;  %v13895_v29 = vcombine.low %v394_v45, %v398_v55 }
 0x4f3   :  { %10898 = vmatpush1.bf16.msra.mxu0 %v13663_v41  ;;  %10939 = vmatpush1.bf16.msra.mxu1 %v13791_v27  ;;  %v262_v42 = vld [vmem:[#allocation2 + $0x378] sm:$0xff] }
 0x4f4   :  { %10899 = vmatprep.subr.bf16.mxu0 %v13656_v0  ;;  %10940 = vmatprep.subr.bf16.mxu1 %v13784_v43  ;;  %v386_v8 = vld [vmem:[#allocation2 + $0x758] sm:$0xff]  ;;  %v13760_v30 = vcombine.high %v258_v33, %v262_v42  ;;  %v13759_v27 = vcombine.low %v258_v33, %v262_v42 }
 0x4f5   :  { %v390_v57 = vld [vmem:[#allocation2 + $0x778] sm:$0xff] }
 0x4f6   :  { %v13888_v24 = vcombine.high %v386_v8, %v390_v57  ;;  %v250_v36 = vld [vmem:[#allocation2 + $0x318] sm:$0xff]  ;;  %v13887_v0 = vcombine.low %v386_v8, %v390_v57 }
 0x4f7   :  { %10900 = vmatpush1.bf16.msra.mxu0 %v13655_v59  ;;  %10941 = vmatpush1.bf16.msra.mxu1 %v13783_v63  ;;  %v254_v47 = vld [vmem:[#allocation2 + $0x338] sm:$0xff] }
 0x4f8   :  { %10901 = vmatprep.subr.bf16.mxu0 %v13776_v12  ;;  %10942 = vmatprep.subr.bf16.mxu1 %v13904_v2  ;;  %v378_v52 = vld [vmem:[#allocation2 + $0x718] sm:$0xff]  ;;  %v13752_v43 = vcombine.high %v250_v36, %v254_v47  ;;  %v13751_v63 = vcombine.low %v250_v36, %v254_v47 }
 0x4f9   :  { %v382_v41 = vld [vmem:[#allocation2 + $0x738] sm:$0xff] }
 0x4fa   :  { %v13880_v58 = vcombine.high %v378_v52, %v382_v41  ;;  %v242_v48 = vld [vmem:[#allocation2 + $0x2d8] sm:$0xff]  ;;  %v13879_v12 = vcombine.low %v378_v52, %v382_v41 }
 0x4fb   :  { %10902 = vmatpush2.bf16.msra.mxu0 %v13775_v35  ;;  %10943 = vmatpush2.bf16.msra.mxu1 %v13903_v14  ;;  %v246_v19 = vld [vmem:[#allocation2 + $0x2f8] sm:$0xff] }
 0x4fc   :  { %10903 = vmatprep.subr.bf16.mxu0 %v13768_v22  ;;  %10944 = vmatprep.subr.bf16.mxu1 %v13896_v1  ;;  %v370_v7 = vld [vmem:[#allocation2 + $0x6d8] sm:$0xff]  ;;  %v13744_v2 = vcombine.high %v242_v48, %v246_v19  ;;  %v13743_v14 = vcombine.low %v242_v48, %v246_v19 }
 0x4fd   :  { %v374_v59 = vld [vmem:[#allocation2 + $0x6f8] sm:$0xff] }
 0x4fe   :  { %v13872_v60 = vcombine.high %v370_v7, %v374_v59  ;;  %v234_v4 = vld [vmem:[#allocation2 + $0x298] sm:$0xff]  ;;  %v13871_v22 = vcombine.low %v370_v7, %v374_v59 }
 0x4ff   :  { %10904 = vmatpush2.bf16.msra.mxu0 %v13767_v11  ;;  %10945 = vmatpush2.bf16.msra.mxu1 %v13895_v29  ;;  %v238_v45 = vld [vmem:[#allocation2 + $0x2b8] sm:$0xff] }
 0x500   :  { %10905 = vmatprep.subr.bf16.mxu0 %v13760_v30  ;;  %10946 = vmatprep.subr.bf16.mxu1 %v13888_v24  ;;  %v362_v55 = vld [vmem:[#allocation2 + $0x698] sm:$0xff]  ;;  %v13736_v1 = vcombine.high %v234_v4, %v238_v45  ;;  %v13735_v29 = vcombine.low %v234_v4, %v238_v45 }
 0x501   :  { %v366_v35 = vld [vmem:[#allocation2 + $0x6b8] sm:$0xff] }
 0x502   :  { %v13864_v33 = vcombine.high %v362_v55, %v366_v35  ;;  %v226_v42 = vld [vmem:[#allocation2 + $0x258] sm:$0xff]  ;;  %v13863_v30 = vcombine.low %v362_v55, %v366_v35 }
 0x503   :  { %10906 = vmatpush2.bf16.msra.mxu0 %v13759_v27  ;;  %10947 = vmatpush2.bf16.msra.mxu1 %v13887_v0  ;;  %v230_v8 = vld [vmem:[#allocation2 + $0x278] sm:$0xff] }
 0x504   :  { %10907 = vmatprep.subr.bf16.mxu0 %v13752_v43  ;;  %10948 = vmatprep.subr.bf16.mxu1 %v13880_v58  ;;  %v354_v57 = vld [vmem:[#allocation2 + $0x658] sm:$0xff]  ;;  %v13728_v24 = vcombine.high %v226_v42, %v230_v8  ;;  %v13727_v0 = vcombine.low %v226_v42, %v230_v8 }
 0x505   :  { %v358_v11 = vld [vmem:[#allocation2 + $0x678] sm:$0xff] }
 0x506   :  { %v13856_v36 = vcombine.high %v354_v57, %v358_v11  ;;  %v218_v47 = vld [vmem:[#allocation2 + $0x218] sm:$0xff]  ;;  %v13855_v43 = vcombine.low %v354_v57, %v358_v11 }
 0x507   :  { %10908 = vmatpush2.bf16.msra.mxu0 %v13751_v63  ;;  %10949 = vmatpush2.bf16.msra.mxu1 %v13879_v12  ;;  %v222_v52 = vld [vmem:[#allocation2 + $0x238] sm:$0xff] }
 0x508   :  { %10909 = vmatprep.subr.bf16.mxu0 %v13744_v2  ;;  %10950 = vmatprep.subr.bf16.mxu1 %v13872_v60  ;;  %v346_v41 = vld [vmem:[#allocation2 + $0x618] sm:$0xff]  ;;  %v13720_v58 = vcombine.high %v218_v47, %v222_v52  ;;  %v13719_v12 = vcombine.low %v218_v47, %v222_v52 }
 0x509   :  { %v350_v27 = vld [vmem:[#allocation2 + $0x638] sm:$0xff] }
 0x50a   :  { %v13848_v48 = vcombine.high %v346_v41, %v350_v27  ;;  %v466_v19 = vld [vmem:[#allocation2 + $0x9d8] sm:$0xff]  ;;  %v13847_v2 = vcombine.low %v346_v41, %v350_v27 }
 0x50b   :  { %10910 = vmatpush2.bf16.msra.mxu0 %v13743_v14  ;;  %10951 = vmatpush2.bf16.msra.mxu1 %v13871_v22  ;;  %v470_v7 = vld [vmem:[#allocation2 + $0x9f8] sm:$0xff] }
 0x50c   :  { %10911 = vmatprep.subr.bf16.mxu0 %v13736_v1  ;;  %10952 = vmatprep.subr.bf16.mxu1 %v13864_v33  ;;  %v594_v59 = vld [vmem:[#allocation2 + $0xdd8] sm:$0xff]  ;;  %v13968_v60 = vcombine.high %v466_v19, %v470_v7  ;;  %v13967_v22 = vcombine.low %v466_v19, %v470_v7 }
 0x50d   :  { %v598_v63 = vld [vmem:[#allocation2 + $0xdf8] sm:$0xff] }
 0x50e   :  { %v14096_v4 = vcombine.high %v594_v59, %v598_v63  ;;  %v458_v45 = vld [vmem:[#allocation2 + $0x998] sm:$0xff]  ;;  %v14095_v1 = vcombine.low %v594_v59, %v598_v63 }
 0x50f   :  { %10912 = vmatpush2.bf16.msra.mxu0 %v13735_v29  ;;  %10953 = vmatpush2.bf16.msra.mxu1 %v13863_v30  ;;  %v462_v55 = vld [vmem:[#allocation2 + $0x9b8] sm:$0xff] }
 0x510   :  { %10913 = vmatprep.subr.bf16.mxu0 %v13728_v24  ;;  %10954 = vmatprep.subr.bf16.mxu1 %v13856_v36  ;;  %v586_v35 = vld [vmem:[#allocation2 + $0xd98] sm:$0xff]  ;;  %v13960_v33 = vcombine.high %v458_v45, %v462_v55  ;;  %v13959_v47 = vcombine.low %v458_v45, %v462_v55 }
 0x511   :  { %v590_v14 = vld [vmem:[#allocation2 + $0xdb8] sm:$0xff] }
 0x512   :  { %v14088_v42 = vcombine.high %v586_v35, %v590_v14  ;;  %v450_v8 = vld [vmem:[#allocation2 + $0x958] sm:$0xff]  ;;  %v14087_v41 = vcombine.low %v586_v35, %v590_v14 }
 0x513   :  { %10914 = vmatpush2.bf16.msra.mxu0 %v13727_v0  ;;  %10955 = vmatpush2.bf16.msra.mxu1 %v13855_v43  ;;  %v454_v57 = vld [vmem:[#allocation2 + $0x978] sm:$0xff] }
 0x514   :  { %10915 = vmatprep.subr.bf16.mxu0 %v13720_v58  ;;  %10956 = vmatprep.subr.bf16.mxu1 %v13848_v48  ;;  %v578_v29 = vld [vmem:[#allocation2 + $0xd58] sm:$0xff]  ;;  %v13952_v27 = vcombine.high %v450_v8, %v454_v57 }
 0x515   :  { %v582_v30 = vld [vmem:[#allocation2 + $0xd78] sm:$0xff] }
 0x516   :  { %v442_v48 = vld [vmem:[#allocation2 + $0x918] sm:$0xff] }
 0x517   :  { %10916 = vmatpush2.bf16.msra.mxu0 %v13719_v12  ;;  %10957 = vmatpush2.bf16.msra.mxu1 %v13847_v2  ;;  %v446_v19 = vld [vmem:[#allocation2 + $0x938] sm:$0xff]  ;;  %v13951_v12 = vcombine.low %v450_v8, %v454_v57 }
 0x518   :  { %10967 = vmatprep.subr.bf16.mxu0 %v13968_v60  ;;  %11008 = vmatprep.subr.bf16.mxu1 %v14096_v4  ;;  %v574_v7 = vld [vmem:[#allocation2 + $0xd38] sm:$0xff]  ;;  %v13944_v60 = vcombine.high %v442_v48, %v446_v19 }
 0x519   :  { %v434_v55 = vld [vmem:[#allocation2 + $0x8d8] sm:$0xff] }
 0x51a   :  { %v10673_v11 = vpop.f32.mrf.mxu0  ;;  %10918 = vmatmul.mubr.bf16.vlgmr.msra.gmra.mxu0 %v16169_v16  ;;  %v10714_v36 = vpop.f32.mrf.mxu1  ;;  %10959 = vmatmul.mubr.bf16.vlgmr.msra.gmra.mxu1 %v16174_v20  ;;  %v14080_v16 = vcombine.high %v578_v29, %v582_v30  ;;  %v570_v20 = vld [vmem:[#allocation2 + $0xd18] sm:$0xff] }
 0x51b   :  { %v10674_v24 = vadd.f32 %v10673_v11, %v16438_v62  ;;  %10968 = vmatpush1.bf16.msra.mxu0 %v13967_v22  ;;  %11009 = vmatpush1.bf16.msra.mxu1 %v14095_v1  ;;  %v14072_v45 = vcombine.high %v570_v20, %v574_v7  ;;  %v562_v35 = vld [vmem:[#allocation2 + $0xcd8] sm:$0xff]  ;;  %v13943_v22 = vcombine.low %v442_v48, %v446_v19 }
 0x51c   :  { %v10675_v52 = vpop.f32.mrf.mxu0  ;;  %10969 = vmatprep.subr.bf16.mxu0 %v13960_v33  ;;  %v10716_v58 = vpop.f32.mrf.mxu1  ;;  %11010 = vmatprep.subr.bf16.mxu1 %v14088_v42  ;;  %v566_v14 = vld [vmem:[#allocation2 + $0xcf8] sm:$0xff] }
 0x51d   :  { %v16448_v0 = vadd.f32 %v10714_v36, %v10674_v24  ;;  %v10676_v43 = vadd.f32 %v10675_v52, %v16443_v23  ;;  %10999 = vmatprep.mubr.bf16.mxu0 %v16179_v28  ;;  %11040 = vmatprep.mubr.bf16.mxu1 %v16182_v31  ;;  %v14079_v23 = vcombine.low %v578_v29, %v582_v30  ;;  %v438_v28 = vld [vmem:[#allocation2 + $0x8f8] sm:$0xff] }
 0x51e   :  { %v10677_v62 = vpop.f32.mrf.mxu0  ;;  %v10718_v63 = vpop.f32.mrf.mxu1  ;;  %v14071_v31 = vcombine.low %v570_v20, %v574_v7  ;;  %v13936_v1 = vcombine.high %v434_v55, %v438_v28  ;;  %v14064_v33 = vcombine.high %v562_v35, %v566_v14  ;;  %v426_v42 = vld [vmem:[#allocation2 + $0x898] sm:$0xff]  ;;  %v13935_v29 = vcombine.low %v434_v55, %v438_v28 }
 0x51f   :  { %v16453_v59 = vadd.f32 %v10716_v58, %v10676_v43  ;;  %10970 = vmatpush1.bf16.msra.mxu0 %v13959_v47  ;;  %11011 = vmatpush1.bf16.msra.mxu1 %v14087_v41  ;;  %v430_v8 = vld [vmem:[#allocation2 + $0x8b8] sm:$0xff]  ;;  %v14063_v30 = vcombine.low %v562_v35, %v566_v14 }
 0x520   :  { %v10678_v2 = vpop.f32.mrf.mxu0  ;;  %10971 = vmatprep.subr.bf16.mxu0 %v13952_v27  ;;  %v10719_v4 = vpop.f32.mrf.mxu1  ;;  %11012 = vmatprep.subr.bf16.mxu1 %v14080_v16  ;;  %v554_v57 = vld [vmem:[#allocation2 + $0xc98] sm:$0xff]  ;;  %v13928_v24 = vcombine.high %v426_v42, %v430_v8  ;;  %v13927_v43 = vcombine.low %v426_v42, %v430_v8 }
 0x521   :  { %v558_v11 = vld [vmem:[#allocation2 + $0xcb8] sm:$0xff] }
 0x522   :  { %v14056_v36 = vcombine.high %v554_v57, %v558_v11  ;;  %v418_v47 = vld [vmem:[#allocation2 + $0x858] sm:$0xff]  ;;  %v14055_v58 = vcombine.low %v554_v57, %v558_v11 }
 0x523   :  { %10972 = vmatpush1.bf16.msra.mxu0 %v13951_v12  ;;  %11013 = vmatpush1.bf16.msra.mxu1 %v14079_v23  ;;  %v422_v52 = vld [vmem:[#allocation2 + $0x878] sm:$0xff] }
 0x524   :  { %10973 = vmatprep.subr.bf16.mxu0 %v13944_v60  ;;  %11014 = vmatprep.subr.bf16.mxu1 %v14072_v45  ;;  %v546_v41 = vld [vmem:[#allocation2 + $0xc58] sm:$0xff]  ;;  %v13920_v16 = vcombine.high %v418_v47, %v422_v52  ;;  %v13919_v63 = vcombine.low %v418_v47, %v422_v52 }
 0x525   :  { %v550_v27 = vld [vmem:[#allocation2 + $0xc78] sm:$0xff] }
 0x526   :  { %v14048_v48 = vcombine.high %v546_v41, %v550_v27  ;;  %v410_v19 = vld [vmem:[#allocation2 + $0x818] sm:$0xff]  ;;  %v14047_v12 = vcombine.low %v546_v41, %v550_v27 }
 0x527   :  { %10974 = vmatpush1.bf16.msra.mxu0 %v13943_v22  ;;  %11015 = vmatpush1.bf16.msra.mxu1 %v14071_v31  ;;  %v414_v62 = vld [vmem:[#allocation2 + $0x838] sm:$0xff] }
 0x528   :  { %10975 = vmatprep.subr.bf16.mxu0 %v13936_v1  ;;  %11016 = vmatprep.subr.bf16.mxu1 %v14064_v33  ;;  %v538_v20 = vld [vmem:[#allocation2 + $0xc18] sm:$0xff]  ;;  %v13912_v2 = vcombine.high %v410_v19, %v414_v62  ;;  %v13911_v28 = vcombine.low %v410_v19, %v414_v62 }
 0x529   :  { %v542_v7 = vld [vmem:[#allocation2 + $0xc38] sm:$0xff] }
 0x52a   :  { %v14040_v23 = vcombine.high %v538_v20, %v542_v7  ;;  %v530_v60 = vld [vmem:[#allocation2 + $0xbd8] sm:$0xff]  ;;  %v14039_v35 = vcombine.low %v538_v20, %v542_v7 }
 0x52b   :  { %10976 = vmatpush1.bf16.msra.mxu0 %v13935_v29  ;;  %11017 = vmatpush1.bf16.msra.mxu1 %v14063_v30  ;;  %v534_v4 = vld [vmem:[#allocation2 + $0xbf8] sm:$0xff] }
 0x52c   :  { %10977 = vmatprep.subr.bf16.mxu0 %v13928_v24  ;;  %11018 = vmatprep.subr.bf16.mxu1 %v14056_v36  ;;  %v658_v45 = vld [vmem:[#allocation2 + $0xfd8] sm:$0xff]  ;;  %v14032_v14 = vcombine.high %v530_v60, %v534_v4  ;;  %v14031_v8 = vcombine.low %v530_v60, %v534_v4 }
 0x52d   :  { %v662_v55 = vld [vmem:[#allocation2 + $0xff8] sm:$0xff] }
 0x52e   :  { %v14160_v22 = vcombine.high %v658_v45, %v662_v55  ;;  %v522_v31 = vld [vmem:[#allocation2 + $0xb98] sm:$0xff]  ;;  %v14159_v57 = vcombine.low %v658_v45, %v662_v55 }
 0x52f   :  { %10978 = vmatpush1.bf16.msra.mxu0 %v13927_v43  ;;  %11019 = vmatpush1.bf16.msra.mxu1 %v14055_v58  ;;  %v526_v1 = vld [vmem:[#allocation2 + $0xbb8] sm:$0xff] }
 0x530   :  { %10979 = vmatprep.subr.bf16.mxu0 %v13920_v16  ;;  %11020 = vmatprep.subr.bf16.mxu1 %v14048_v48  ;;  %v650_v33 = vld [vmem:[#allocation2 + $0xf98] sm:$0xff]  ;;  %v14024_v11 = vcombine.high %v522_v31, %v526_v1  ;;  %v14023_v52 = vcombine.low %v522_v31, %v526_v1 }
 0x531   :  { %v654_v42 = vld [vmem:[#allocation2 + $0xfb8] sm:$0xff] }
 0x532   :  { %v14152_v29 = vcombine.high %v650_v33, %v654_v42  ;;  %v514_v30 = vld [vmem:[#allocation2 + $0xb58] sm:$0xff]  ;;  %v14151_v41 = vcombine.low %v650_v33, %v654_v42 }
 0x533   :  { %10980 = vmatpush1.bf16.msra.mxu0 %v13919_v63  ;;  %11021 = vmatpush1.bf16.msra.mxu1 %v14047_v12  ;;  %v518_v24 = vld [vmem:[#allocation2 + $0xb78] sm:$0xff] }
 0x534   :  { %10981 = vmatprep.subr.bf16.mxu0 %v13912_v2  ;;  %11022 = vmatprep.subr.bf16.mxu1 %v14040_v23  ;;  %v642_v36 = vld [vmem:[#allocation2 + $0xf58] sm:$0xff]  ;;  %v14016_v27 = vcombine.high %v514_v30, %v518_v24  ;;  %v14015_v62 = vcombine.low %v514_v30, %v518_v24 }
 0x535   :  { %v646_v47 = vld [vmem:[#allocation2 + $0xf78] sm:$0xff] }
 0x536   :  { %v14144_v43 = vcombine.high %v642_v36, %v646_v47  ;;  %v506_v58 = vld [vmem:[#allocation2 + $0xb18] sm:$0xff]  ;;  %v14143_v20 = vcombine.low %v642_v36, %v646_v47 }
 0x537   :  { %10982 = vmatpush1.bf16.msra.mxu0 %v13911_v28  ;;  %11023 = vmatpush1.bf16.msra.mxu1 %v14039_v35  ;;  %v510_v16 = vld [vmem:[#allocation2 + $0xb38] sm:$0xff] }
 0x538   :  { %10983 = vmatprep.subr.bf16.mxu0 %v14032_v14  ;;  %11024 = vmatprep.subr.bf16.mxu1 %v14160_v22  ;;  %v634_v48 = vld [vmem:[#allocation2 + $0xf18] sm:$0xff]  ;;  %v14008_v7 = vcombine.high %v506_v58, %v510_v16  ;;  %v14007_v4 = vcombine.low %v506_v58, %v510_v16 }
 0x539   :  { %v638_v19 = vld [vmem:[#allocation2 + $0xf38] sm:$0xff] }
 0x53a   :  { %v14136_v63 = vcombine.high %v634_v48, %v638_v19  ;;  %v498_v12 = vld [vmem:[#allocation2 + $0xad8] sm:$0xff]  ;;  %v14135_v45 = vcombine.low %v634_v48, %v638_v19 }
 0x53b   :  { %10984 = vmatpush2.bf16.msra.mxu0 %v14031_v8  ;;  %11025 = vmatpush2.bf16.msra.mxu1 %v14159_v57  ;;  %v502_v2 = vld [vmem:[#allocation2 + $0xaf8] sm:$0xff] }
 0x53c   :  { %10985 = vmatprep.subr.bf16.mxu0 %v14024_v11  ;;  %11026 = vmatprep.subr.bf16.mxu1 %v14152_v29  ;;  %v626_v23 = vld [vmem:[#allocation2 + $0xed8] sm:$0xff]  ;;  %v14000_v55 = vcombine.high %v498_v12, %v502_v2  ;;  %v13999_v1 = vcombine.low %v498_v12, %v502_v2 }
 0x53d   :  { %v630_v60 = vld [vmem:[#allocation2 + $0xef8] sm:$0xff] }
 0x53e   :  { %v14128_v28 = vcombine.high %v626_v23, %v630_v60  ;;  %v490_v35 = vld [vmem:[#allocation2 + $0xa98] sm:$0xff]  ;;  %v14127_v33 = vcombine.low %v626_v23, %v630_v60 }
 0x53f   :  { %10986 = vmatpush2.bf16.msra.mxu0 %v14023_v52  ;;  %11027 = vmatpush2.bf16.msra.mxu1 %v14151_v41  ;;  %v494_v14 = vld [vmem:[#allocation2 + $0xab8] sm:$0xff] }
 0x540   :  { %10987 = vmatprep.subr.bf16.mxu0 %v14016_v27  ;;  %11028 = vmatprep.subr.bf16.mxu1 %v14144_v43  ;;  %v618_v22 = vld [vmem:[#allocation2 + $0xe98] sm:$0xff]  ;;  %v13992_v42 = vcombine.high %v490_v35, %v494_v14  ;;  %v13991_v24 = vcombine.low %v490_v35, %v494_v14 }
 0x541   :  { %v622_v31 = vld [vmem:[#allocation2 + $0xeb8] sm:$0xff] }
 0x542   :  { %v14120_v8 = vcombine.high %v618_v22, %v622_v31  ;;  %v482_v57 = vld [vmem:[#allocation2 + $0xa58] sm:$0xff]  ;;  %v14119_v36 = vcombine.low %v618_v22, %v622_v31 }
 0x543   :  { %10988 = vmatpush2.bf16.msra.mxu0 %v14015_v62  ;;  %11029 = vmatpush2.bf16.msra.mxu1 %v14143_v20  ;;  %v486_v11 = vld [vmem:[#allocation2 + $0xa78] sm:$0xff] }
 0x544   :  { %10989 = vmatprep.subr.bf16.mxu0 %v14008_v7  ;;  %11030 = vmatprep.subr.bf16.mxu1 %v14136_v63  ;;  %v610_v29 = vld [vmem:[#allocation2 + $0xe58] sm:$0xff]  ;;  %v13984_v47 = vcombine.high %v482_v57, %v486_v11  ;;  %v13983_v16 = vcombine.low %v482_v57, %v486_v11 }
 0x545   :  { %v614_v30 = vld [vmem:[#allocation2 + $0xe78] sm:$0xff] }
 0x546   :  { %v14112_v52 = vcombine.high %v610_v29, %v614_v30  ;;  %v474_v41 = vld [vmem:[#allocation2 + $0xa18] sm:$0xff]  ;;  %v14111_v48 = vcombine.low %v610_v29, %v614_v30 }
 0x547   :  { %10990 = vmatpush2.bf16.msra.mxu0 %v14007_v4  ;;  %11031 = vmatpush2.bf16.msra.mxu1 %v14135_v45  ;;  %v478_v27 = vld [vmem:[#allocation2 + $0xa38] sm:$0xff] }
 0x548   :  { %10991 = vmatprep.subr.bf16.mxu0 %v14000_v55  ;;  %11032 = vmatprep.subr.bf16.mxu1 %v14128_v28  ;;  %v602_v43 = vld [vmem:[#allocation2 + $0xe18] sm:$0xff]  ;;  %v13976_v19 = vcombine.high %v474_v41, %v478_v27  ;;  %v13975_v2 = vcombine.low %v474_v41, %v478_v27 }
 0x549   :  { %v606_v58 = vld [vmem:[#allocation2 + $0xe38] sm:$0xff] }
 0x54a   :  { %v14104_v62 = vcombine.high %v602_v43, %v606_v58  ;;  %v722_v20 = vld [vmem:[#allocation2 + $0x11d8] sm:$0xff]  ;;  %v14103_v23 = vcombine.low %v602_v43, %v606_v58 }
 0x54b   :  { %10992 = vmatpush2.bf16.msra.mxu0 %v13999_v1  ;;  %11033 = vmatpush2.bf16.msra.mxu1 %v14127_v33  ;;  %v726_v7 = vld [vmem:[#allocation2 + $0x11f8] sm:$0xff] }
 0x54c   :  { %10993 = vmatprep.subr.bf16.mxu0 %v13992_v42  ;;  %11034 = vmatprep.subr.bf16.mxu1 %v14120_v8  ;;  %v850_v63 = vld [vmem:[#allocation2 + $0x15d8] sm:$0xff]  ;;  %v14224_v60 = vcombine.high %v722_v20, %v726_v7  ;;  %v14223_v14 = vcombine.low %v722_v20, %v726_v7 }
 0x54d   :  { %v854_v12 = vld [vmem:[#allocation2 + $0x15f8] sm:$0xff] }
 0x54e   :  { %v14352_v4 = vcombine.high %v850_v63, %v854_v12  ;;  %v714_v45 = vld [vmem:[#allocation2 + $0x1198] sm:$0xff]  ;;  %v14351_v22 = vcombine.low %v850_v63, %v854_v12 }
 0x54f   :  { %10994 = vmatpush2.bf16.msra.mxu0 %v13991_v24  ;;  %11035 = vmatpush2.bf16.msra.mxu1 %v14119_v36  ;;  %v718_v55 = vld [vmem:[#allocation2 + $0x11b8] sm:$0xff] }
 0x550   :  { %10995 = vmatprep.subr.bf16.mxu0 %v13984_v47  ;;  %11036 = vmatprep.subr.bf16.mxu1 %v14112_v52  ;;  %v842_v28 = vld [vmem:[#allocation2 + $0x1598] sm:$0xff]  ;;  %v14216_v31 = vcombine.high %v714_v45, %v718_v55  ;;  %v14215_v24 = vcombine.low %v714_v45, %v718_v55 }
 0x551   :  { %v846_v35 = vld [vmem:[#allocation2 + $0x15b8] sm:$0xff] }
 0x552   :  { %v14344_v1 = vcombine.high %v842_v28, %v846_v35  ;;  %v706_v33 = vld [vmem:[#allocation2 + $0x1158] sm:$0xff]  ;;  %v14343_v47 = vcombine.low %v842_v28, %v846_v35 }
 0x553   :  { %10996 = vmatpush2.bf16.msra.mxu0 %v13983_v16  ;;  %11037 = vmatpush2.bf16.msra.mxu1 %v14111_v48  ;;  %v710_v42 = vld [vmem:[#allocation2 + $0x1178] sm:$0xff] }
 0x554   :  { %10997 = vmatprep.subr.bf16.mxu0 %v13976_v19  ;;  %11038 = vmatprep.subr.bf16.mxu1 %v14104_v62  ;;  %v834_v57 = vld [vmem:[#allocation2 + $0x1558] sm:$0xff]  ;;  %v14208_v52 = vcombine.high %v706_v33, %v710_v42  ;;  %v14207_v20 = vcombine.low %v706_v33, %v710_v42 }
 0x555   :  { %v838_v11 = vld [vmem:[#allocation2 + $0x1578] sm:$0xff] }
 0x556   :  { %v698_v58 = vld [vmem:[#allocation2 + $0x1118] sm:$0xff] }
 0x557   :  { %10998 = vmatpush2.bf16.msra.mxu0 %v13975_v2  ;;  %11039 = vmatpush2.bf16.msra.mxu1 %v14103_v23  ;;  %v702_v16 = vld [vmem:[#allocation2 + $0x1138] sm:$0xff] }
 0x558   :  { %11049 = vmatprep.subr.bf16.mxu0 %v14224_v60  ;;  %11090 = vmatprep.subr.bf16.mxu1 %v14352_v4  ;;  %v830_v48 = vld [vmem:[#allocation2 + $0x1538] sm:$0xff]  ;;  %v14200_v63 = vcombine.high %v698_v58, %v702_v16  ;;  %v14199_v45 = vcombine.low %v698_v58, %v702_v16 }
 0x559   :  { %v690_v23 = vld [vmem:[#allocation2 + $0x10d8] sm:$0xff] }
 0x55a   :  { %v10755_v8 = vpop.f32.mrf.mxu0  ;;  %11000 = vmatmul.mubr.bf16.vlgmr.msra.gmra.mxu0 %v16196_v39  ;;  %v10796_v30 = vpop.f32.mrf.mxu1  ;;  %11041 = vmatmul.mubr.bf16.vlgmr.msra.gmra.mxu1 %v16198_v40  ;;  %v14336_v39 = vcombine.high %v834_v57, %v838_v11  ;;  %v826_v40 = vld [vmem:[#allocation2 + $0x1518] sm:$0xff] }
 0x55b   :  { %v10756_v29 = vadd.f32 %v10755_v8, %v16448_v0  ;;  %11050 = vmatpush1.bf16.msra.mxu0 %v14223_v14  ;;  %11091 = vmatpush1.bf16.msra.mxu1 %v14351_v22  ;;  %v14328_v2 = vcombine.high %v826_v40, %v830_v48  ;;  %v818_v60 = vld [vmem:[#allocation2 + $0x14d8] sm:$0xff] }
 0x55c   :  { %v10757_v36 = vpop.f32.mrf.mxu0  ;;  %11051 = vmatprep.subr.bf16.mxu0 %v14216_v31  ;;  %v10798_v43 = vpop.f32.mrf.mxu1  ;;  %11092 = vmatprep.subr.bf16.mxu1 %v14344_v1  ;;  %v822_v4 = vld [vmem:[#allocation2 + $0x14f8] sm:$0xff] }
 0x55d   :  { %v16458_v41 = vadd.f32 %v10796_v30, %v10756_v29  ;;  %v10758_v27 = vadd.f32 %v10757_v36, %v16453_v59  ;;  %11081 = vmatprep.mubr.bf16.mxu0 %v16203_v49  ;;  %11122 = vmatprep.mubr.bf16.mxu1 %v16206_v51  ;;  %v14335_v59 = vcombine.low %v834_v57, %v838_v11  ;;  %v694_v49 = vld [vmem:[#allocation2 + $0x10f8] sm:$0xff] }
 0x55e   :  { %v10759_v0 = vpop.f32.mrf.mxu0  ;;  %v10800_v62 = vpop.f32.mrf.mxu1  ;;  %v14327_v51 = vcombine.low %v826_v40, %v830_v48  ;;  %v14192_v55 = vcombine.high %v690_v23, %v694_v49  ;;  %v14320_v28 = vcombine.high %v818_v60, %v822_v4  ;;  %v682_v35 = vld [vmem:[#allocation2 + $0x1098] sm:$0xff]  ;;  %v14191_v1 = vcombine.low %v690_v23, %v694_v49 }
 0x55f   :  { %v16463_v19 = vadd.f32 %v10798_v43, %v10758_v27  ;;  %11052 = vmatpush1.bf16.msra.mxu0 %v14215_v24  ;;  %11093 = vmatpush1.bf16.msra.mxu1 %v14343_v47  ;;  %v686_v14 = vld [vmem:[#allocation2 + $0x10b8] sm:$0xff]  ;;  %v14319_v33 = vcombine.low %v818_v60, %v822_v4 }
 0x560   :  { %v10760_v7 = vpop.f32.mrf.mxu0  ;;  %11053 = vmatprep.subr.bf16.mxu0 %v14208_v52  ;;  %v10801_v12 = vpop.f32.mrf.mxu1  ;;  %11094 = vmatprep.subr.bf16.mxu1 %v14336_v39  ;;  %v810_v22 = vld [vmem:[#allocation2 + $0x1498] sm:$0xff]  ;;  %v14184_v42 = vcombine.high %v682_v35, %v686_v14  ;;  %v14183_v24 = vcombine.low %v682_v35, %v686_v14 }
 0x561   :  { %v814_v31 = vld [vmem:[#allocation2 + $0x14b8] sm:$0xff] }
 0x562   :  { %v14312_v8 = vcombine.high %v810_v22, %v814_v31  ;;  %v674_v57 = vld [vmem:[#allocation2 + $0x1058] sm:$0xff]  ;;  %v14311_v36 = vcombine.low %v810_v22, %v814_v31 }
 0x563   :  { %11054 = vmatpush1.bf16.msra.mxu0 %v14207_v20  ;;  %11095 = vmatpush1.bf16.msra.mxu1 %v14335_v59  ;;  %v678_v11 = vld [vmem:[#allocation2 + $0x1078] sm:$0xff] }
 0x564   :  { %11055 = vmatprep.subr.bf16.mxu0 %v14200_v63  ;;  %11096 = vmatprep.subr.bf16.mxu1 %v14328_v2  ;;  %v802_v29 = vld [vmem:[#allocation2 + $0x1458] sm:$0xff]  ;;  %v14176_v47 = vcombine.high %v674_v57, %v678_v11  ;;  %v14175_v16 = vcombine.low %v674_v57, %v678_v11 }
 0x565   :  { %v806_v30 = vld [vmem:[#allocation2 + $0x1478] sm:$0xff] }
 0x566   :  { %v14304_v52 = vcombine.high %v802_v29, %v806_v30  ;;  %v666_v27 = vld [vmem:[#allocation2 + $0x1018] sm:$0xff]  ;;  %v14303_v0 = vcombine.low %v802_v29, %v806_v30 }
 0x567   :  { %11056 = vmatpush1.bf16.msra.mxu0 %v14199_v45  ;;  %11097 = vmatpush1.bf16.msra.mxu1 %v14327_v51  ;;  %v670_v43 = vld [vmem:[#allocation2 + $0x1038] sm:$0xff] }
 0x568   :  { %11057 = vmatprep.subr.bf16.mxu0 %v14192_v55  ;;  %11098 = vmatprep.subr.bf16.mxu1 %v14320_v28  ;;  %v794_v39 = vld [vmem:[#allocation2 + $0x1418] sm:$0xff]  ;;  %v14168_v40 = vcombine.high %v666_v27, %v670_v43  ;;  %v14167_v63 = vcombine.low %v666_v27, %v670_v43 }
 0x569   :  { %v798_v58 = vld [vmem:[#allocation2 + $0x1438] sm:$0xff] }
 0x56a   :  { %v14296_v48 = vcombine.high %v794_v39, %v798_v58  ;;  %v786_v62 = vld [vmem:[#allocation2 + $0x13d8] sm:$0xff]  ;;  %v14295_v12 = vcombine.low %v794_v39, %v798_v58 }
 0x56b   :  { %11058 = vmatpush1.bf16.msra.mxu0 %v14191_v1  ;;  %11099 = vmatpush1.bf16.msra.mxu1 %v14319_v33  ;;  %v790_v20 = vld [vmem:[#allocation2 + $0x13f8] sm:$0xff] }
 0x56c   :  { %11059 = vmatprep.subr.bf16.mxu0 %v14184_v42  ;;  %11100 = vmatprep.subr.bf16.mxu1 %v14312_v8  ;;  %v914_v7 = vld [vmem:[#allocation2 + $0x17d8] sm:$0xff]  ;;  %v14288_v2 = vcombine.high %v786_v62, %v790_v20  ;;  %v14287_v51 = vcombine.low %v786_v62, %v790_v20 }
 0x56d   :  { %v918_v59 = vld [vmem:[#allocation2 + $0x17f8] sm:$0xff] }
 0x56e   :  { %v14416_v23 = vcombine.high %v914_v7, %v918_v59  ;;  %v778_v49 = vld [vmem:[#allocation2 + $0x1398] sm:$0xff]  ;;  %v14415_v55 = vcombine.low %v914_v7, %v918_v59 }
 0x56f   :  { %11060 = vmatpush1.bf16.msra.mxu0 %v14183_v24  ;;  %11101 = vmatpush1.bf16.msra.mxu1 %v14311_v36  ;;  %v782_v60 = vld [vmem:[#allocation2 + $0x13b8] sm:$0xff] }
 0x570   :  { %11061 = vmatprep.subr.bf16.mxu0 %v14176_v47  ;;  %11102 = vmatprep.subr.bf16.mxu1 %v14304_v52  ;;  %v906_v4 = vld [vmem:[#allocation2 + $0x1798] sm:$0xff]  ;;  %v14280_v28 = vcombine.high %v778_v49, %v782_v60  ;;  %v14279_v33 = vcombine.low %v778_v49, %v782_v60 }
 0x571   :  { %v910_v45 = vld [vmem:[#allocation2 + $0x17b8] sm:$0xff] }
 0x572   :  { %v14408_v35 = vcombine.high %v906_v4, %v910_v45  ;;  %v770_v14 = vld [vmem:[#allocation2 + $0x1358] sm:$0xff]  ;;  %v14407_v42 = vcombine.low %v906_v4, %v910_v45 }
 0x573   :  { %11062 = vmatpush1.bf16.msra.mxu0 %v14175_v16  ;;  %11103 = vmatpush1.bf16.msra.mxu1 %v14303_v0  ;;  %v774_v22 = vld [vmem:[#allocation2 + $0x1378] sm:$0xff] }
 0x574   :  { %11063 = vmatprep.subr.bf16.mxu0 %v14168_v40  ;;  %11104 = vmatprep.subr.bf16.mxu1 %v14296_v48  ;;  %v898_v31 = vld [vmem:[#allocation2 + $0x1758] sm:$0xff]  ;;  %v14272_v8 = vcombine.high %v770_v14, %v774_v22  ;;  %v14271_v36 = vcombine.low %v770_v14, %v774_v22 }
 0x575   :  { %v902_v1 = vld [vmem:[#allocation2 + $0x1778] sm:$0xff] }
 0x576   :  { %v14400_v57 = vcombine.high %v898_v31, %v902_v1  ;;  %v762_v11 = vld [vmem:[#allocation2 + $0x1318] sm:$0xff]  ;;  %v14399_v47 = vcombine.low %v898_v31, %v902_v1 }
 0x577   :  { %11064 = vmatpush1.bf16.msra.mxu0 %v14167_v63  ;;  %11105 = vmatpush1.bf16.msra.mxu1 %v14295_v12  ;;  %v766_v29 = vld [vmem:[#allocation2 + $0x1338] sm:$0xff] }
 0x578   :  { %11065 = vmatprep.subr.bf16.mxu0 %v14288_v2  ;;  %11106 = vmatprep.subr.bf16.mxu1 %v14416_v23  ;;  %v890_v30 = vld [vmem:[#allocation2 + $0x1718] sm:$0xff]  ;;  %v14264_v52 = vcombine.high %v762_v11, %v766_v29  ;;  %v14263_v0 = vcombine.low %v762_v11, %v766_v29 }
 0x579   :  { %v894_v24 = vld [vmem:[#allocation2 + $0x1738] sm:$0xff] }
 0x57a   :  { %v14392_v27 = vcombine.high %v890_v30, %v894_v24  ;;  %v754_v43 = vld [vmem:[#allocation2 + $0x12d8] sm:$0xff]  ;;  %v14391_v40 = vcombine.low %v890_v30, %v894_v24 }
 0x57b   :  { %11066 = vmatpush2.bf16.msra.mxu0 %v14287_v51  ;;  %11107 = vmatpush2.bf16.msra.mxu1 %v14415_v55  ;;  %v758_v39 = vld [vmem:[#allocation2 + $0x12f8] sm:$0xff] }
 0x57c   :  { %11067 = vmatprep.subr.bf16.mxu0 %v14280_v28  ;;  %11108 = vmatprep.subr.bf16.mxu1 %v14408_v35  ;;  %v882_v58 = vld [vmem:[#allocation2 + $0x16d8] sm:$0xff]  ;;  %v14256_v48 = vcombine.high %v754_v43, %v758_v39  ;;  %v14255_v12 = vcombine.low %v754_v43, %v758_v39 }
 0x57d   :  { %v886_v16 = vld [vmem:[#allocation2 + $0x16f8] sm:$0xff] }
 0x57e   :  { %v14384_v62 = vcombine.high %v882_v58, %v886_v16  ;;  %v746_v20 = vld [vmem:[#allocation2 + $0x1298] sm:$0xff]  ;;  %v14383_v2 = vcombine.low %v882_v58, %v886_v16 }
 0x57f   :  { %11068 = vmatpush2.bf16.msra.mxu0 %v14279_v33  ;;  %11109 = vmatpush2.bf16.msra.mxu1 %v14407_v42  ;;  %v750_v7 = vld [vmem:[#allocation2 + $0x12b8] sm:$0xff] }
 0x580   :  { %11069 = vmatprep.subr.bf16.mxu0 %v14272_v8  ;;  %11110 = vmatprep.subr.bf16.mxu1 %v14400_v57  ;;  %v874_v59 = vld [vmem:[#allocation2 + $0x1698] sm:$0xff]  ;;  %v14248_v23 = vcombine.high %v746_v20, %v750_v7  ;;  %v14247_v55 = vcombine.low %v746_v20, %v750_v7 }
 0x581   :  { %v878_v63 = vld [vmem:[#allocation2 + $0x16b8] sm:$0xff] }
 0x582   :  { %v14376_v49 = vcombine.high %v874_v59, %v878_v63  ;;  %v738_v60 = vld [vmem:[#allocation2 + $0x1258] sm:$0xff]  ;;  %v14375_v28 = vcombine.low %v874_v59, %v878_v63 }
 0x583   :  { %11070 = vmatpush2.bf16.msra.mxu0 %v14271_v36  ;;  %11111 = vmatpush2.bf16.msra.mxu1 %v14399_v47  ;;  %v742_v4 = vld [vmem:[#allocation2 + $0x1278] sm:$0xff] }
 0x584   :  { %11071 = vmatprep.subr.bf16.mxu0 %v14264_v52  ;;  %11112 = vmatprep.subr.bf16.mxu1 %v14392_v27  ;;  %v866_v45 = vld [vmem:[#allocation2 + $0x1658] sm:$0xff]  ;;  %v14240_v35 = vcombine.high %v738_v60, %v742_v4  ;;  %v14239_v42 = vcombine.low %v738_v60, %v742_v4 }
 0x585   :  { %v870_v51 = vld [vmem:[#allocation2 + $0x1678] sm:$0xff] }
 0x586   :  { %v14368_v14 = vcombine.high %v866_v45, %v870_v51  ;;  %v730_v22 = vld [vmem:[#allocation2 + $0x1218] sm:$0xff]  ;;  %v14367_v8 = vcombine.low %v866_v45, %v870_v51 }
 0x587   :  { %11072 = vmatpush2.bf16.msra.mxu0 %v14263_v0  ;;  %11113 = vmatpush2.bf16.msra.mxu1 %v14391_v40  ;;  %v734_v31 = vld [vmem:[#allocation2 + $0x1238] sm:$0xff] }
 0x588   :  { %11073 = vmatprep.subr.bf16.mxu0 %v14256_v48  ;;  %11114 = vmatprep.subr.bf16.mxu1 %v14384_v62  ;;  %v858_v1 = vld [vmem:[#allocation2 + $0x1618] sm:$0xff]  ;;  %v14232_v57 = vcombine.high %v730_v22, %v734_v31  ;;  %v14231_v47 = vcombine.low %v730_v22, %v734_v31 }
 0x589   :  { %v862_v33 = vld [vmem:[#allocation2 + $0x1638] sm:$0xff] }
 0x58a   :  { %v14360_v11 = vcombine.high %v858_v1, %v862_v33  ;;  %v978_v29 = vld [vmem:[#allocation2 + $0x19d8] sm:$0xff]  ;;  %v14359_v52 = vcombine.low %v858_v1, %v862_v33 }
 0x58b   :  { %11074 = vmatpush2.bf16.msra.mxu0 %v14255_v12  ;;  %11115 = vmatpush2.bf16.msra.mxu1 %v14383_v2  ;;  %v982_v30 = vld [vmem:[#allocation2 + $0x19f8] sm:$0xff] }
 0x58c   :  { %11075 = vmatprep.subr.bf16.mxu0 %v14248_v23  ;;  %11116 = vmatprep.subr.bf16.mxu1 %v14376_v49  ;;  %v1106_v24 = vld [vmem:[#allocation2 + $0x1dd8] sm:$0xff]  ;;  %v14480_v27 = vcombine.high %v978_v29, %v982_v30  ;;  %v14479_v40 = vcombine.low %v978_v29, %v982_v30 }
 0x58d   :  { %v1110_v36 = vld [vmem:[#allocation2 + $0x1df8] sm:$0xff] }
 0x58e   :  { %v14608_v43 = vcombine.high %v1106_v24, %v1110_v36  ;;  %v970_v39 = vld [vmem:[#allocation2 + $0x1998] sm:$0xff]  ;;  %v14607_v48 = vcombine.low %v1106_v24, %v1110_v36 }
 0x58f   :  { %11076 = vmatpush2.bf16.msra.mxu0 %v14247_v55  ;;  %11117 = vmatpush2.bf16.msra.mxu1 %v14375_v28  ;;  %v974_v58 = vld [vmem:[#allocation2 + $0x19b8] sm:$0xff] }
 0x590   :  { %11077 = vmatprep.subr.bf16.mxu0 %v14240_v35  ;;  %11118 = vmatprep.subr.bf16.mxu1 %v14368_v14  ;;  %v1098_v16 = vld [vmem:[#allocation2 + $0x1d98] sm:$0xff]  ;;  %v14472_v62 = vcombine.high %v970_v39, %v974_v58  ;;  %v14471_v60 = vcombine.low %v970_v39, %v974_v58 }
 0x591   :  { %v1102_v0 = vld [vmem:[#allocation2 + $0x1db8] sm:$0xff] }
 0x592   :  { %v14600_v20 = vcombine.high %v1098_v16, %v1102_v0  ;;  %v962_v7 = vld [vmem:[#allocation2 + $0x1958] sm:$0xff]  ;;  %v14599_v45 = vcombine.low %v1098_v16, %v1102_v0 }
 0x593   :  { %11078 = vmatpush2.bf16.msra.mxu0 %v14239_v42  ;;  %11119 = vmatpush2.bf16.msra.mxu1 %v14367_v8  ;;  %v966_v59 = vld [vmem:[#allocation2 + $0x1978] sm:$0xff] }
 0x594   :  { %11079 = vmatprep.subr.bf16.mxu0 %v14232_v57  ;;  %11120 = vmatprep.subr.bf16.mxu1 %v14360_v11  ;;  %v1090_v12 = vld [vmem:[#allocation2 + $0x1d58] sm:$0xff]  ;;  %v14464_v51 = vcombine.high %v962_v7, %v966_v59  ;;  %v14463_v42 = vcombine.low %v962_v7, %v966_v59 }
 0x595   :  { %v1094_v2 = vld [vmem:[#allocation2 + $0x1d78] sm:$0xff] }
 0x596   :  { %v954_v14 = vld [vmem:[#allocation2 + $0x1918] sm:$0xff] }
 0x597   :  { %11080 = vmatpush2.bf16.msra.mxu0 %v14231_v47  ;;  %11121 = vmatpush2.bf16.msra.mxu1 %v14359_v52  ;;  %v958_v22 = vld [vmem:[#allocation2 + $0x1938] sm:$0xff] }
 0x598   :  { %11131 = vmatprep.subr.bf16.mxu0 %v14480_v27  ;;  %11172 = vmatprep.subr.bf16.mxu1 %v14608_v43  ;;  %v1086_v31 = vld [vmem:[#allocation2 + $0x1d38] sm:$0xff]  ;;  %v14456_v57 = vcombine.high %v954_v14, %v958_v22  ;;  %v14455_v47 = vcombine.low %v954_v14, %v958_v22 }
 0x599   :  { %v946_v30 = vld [vmem:[#allocation2 + $0x18d8] sm:$0xff] }
 0x59a   :  { %v10837_v63 = vpop.f32.mrf.mxu0  ;;  %11082 = vmatmul.mubr.bf16.vlgmr.msra.gmra.mxu0 %v16220_v5  ;;  %v10878_v49 = vpop.f32.mrf.mxu1  ;;  %11123 = vmatmul.mubr.bf16.vlgmr.msra.gmra.mxu1 %v16222_v6  ;;  %v14592_v5 = vcombine.high %v1090_v12, %v1094_v2  ;;  %v1082_v6 = vld [vmem:[#allocation2 + $0x1d18] sm:$0xff] }
 0x59b   :  { %v10838_v23 = vadd.f32 %v10837_v63, %v16458_v41  ;;  %11132 = vmatpush1.bf16.msra.mxu0 %v14479_v40  ;;  %11173 = vmatpush1.bf16.msra.mxu1 %v14607_v48  ;;  %v14584_v29 = vcombine.high %v1082_v6, %v1086_v31  ;;  %v1074_v24 = vld [vmem:[#allocation2 + $0x1cd8] sm:$0xff] }
 0x59c   :  { %v10839_v4 = vpop.f32.mrf.mxu0  ;;  %11133 = vmatprep.subr.bf16.mxu0 %v14472_v62  ;;  %v10880_v35 = vpop.f32.mrf.mxu1  ;;  %11174 = vmatprep.subr.bf16.mxu1 %v14600_v20  ;;  %v1078_v36 = vld [vmem:[#allocation2 + $0x1cf8] sm:$0xff] }
 0x59d   :  { %v16468_v55 = vadd.f32 %v10878_v49, %v10838_v23  ;;  %v10840_v28 = vadd.f32 %v10839_v4, %v16463_v19  ;;  %11163 = vmatprep.mubr.bf16.mxu0 %v16227_v17  ;;  %11204 = vmatprep.mubr.bf16.mxu1 %v16230_v18  ;;  %v14591_v19 = vcombine.low %v1090_v12, %v1094_v2  ;;  %v950_v17 = vld [vmem:[#allocation2 + $0x18f8] sm:$0xff] }
 0x59e   :  { %v10841_v41 = vpop.f32.mrf.mxu0  ;;  %v10882_v33 = vpop.f32.mrf.mxu1  ;;  %v14583_v18 = vcombine.low %v1082_v6, %v1086_v31  ;;  %v14448_v52 = vcombine.high %v946_v30, %v950_v17  ;;  %v14576_v27 = vcombine.high %v1074_v24, %v1078_v36  ;;  %v938_v43 = vld [vmem:[#allocation2 + $0x1898] sm:$0xff]  ;;  %v14447_v0 = vcombine.low %v946_v30, %v950_v17 }
 0x59f   :  { %v16473_v1 = vadd.f32 %v10880_v35, %v10840_v28  ;;  %11134 = vmatpush1.bf16.msra.mxu0 %v14471_v60  ;;  %11175 = vmatpush1.bf16.msra.mxu1 %v14599_v45  ;;  %v942_v39 = vld [vmem:[#allocation2 + $0x18b8] sm:$0xff]  ;;  %v14575_v40 = vcombine.low %v1074_v24, %v1078_v36 }
 0x5a0   :  { %v10842_v8 = vpop.f32.mrf.mxu0  ;;  %11135 = vmatprep.subr.bf16.mxu0 %v14464_v51  ;;  %v10883_v11 = vpop.f32.mrf.mxu1  ;;  %11176 = vmatprep.subr.bf16.mxu1 %v14592_v5  ;;  %v1066_v58 = vld [vmem:[#allocation2 + $0x1c98] sm:$0xff]  ;;  %v14440_v48 = vcombine.high %v938_v43, %v942_v39  ;;  %v14439_v12 = vcombine.low %v938_v43, %v942_v39 }
 0x5a1   :  { %v1070_v16 = vld [vmem:[#allocation2 + $0x1cb8] sm:$0xff] }
 0x5a2   :  { %v14568_v62 = vcombine.high %v1066_v58, %v1070_v16  ;;  %v930_v20 = vld [vmem:[#allocation2 + $0x1858] sm:$0xff]  ;;  %v14567_v2 = vcombine.low %v1066_v58, %v1070_v16 }
 0x5a3   :  { %11136 = vmatpush1.bf16.msra.mxu0 %v14463_v42  ;;  %11177 = vmatpush1.bf16.msra.mxu1 %v14591_v19  ;;  %v934_v7 = vld [vmem:[#allocation2 + $0x1878] sm:$0xff] }
 0x5a4   :  { %11137 = vmatprep.subr.bf16.mxu0 %v14456_v57  ;;  %11178 = vmatprep.subr.bf16.mxu1 %v14584_v29  ;;  %v1058_v59 = vld [vmem:[#allocation2 + $0x1c58] sm:$0xff]  ;;  %v14432_v23 = vcombine.high %v930_v20, %v934_v7  ;;  %v14431_v28 = vcombine.low %v930_v20, %v934_v7 }
 0x5a5   :  { %v1062_v63 = vld [vmem:[#allocation2 + $0x1c78] sm:$0xff] }
 0x5a6   :  { %v14560_v49 = vcombine.high %v1058_v59, %v1062_v63  ;;  %v922_v60 = vld [vmem:[#allocation2 + $0x1818] sm:$0xff]  ;;  %v14559_v35 = vcombine.low %v1058_v59, %v1062_v63 }
 0x5a7   :  { %11138 = vmatpush1.bf16.msra.mxu0 %v14455_v47  ;;  %11179 = vmatpush1.bf16.msra.mxu1 %v14583_v18  ;;  %v926_v4 = vld [vmem:[#allocation2 + $0x1838] sm:$0xff] }
 0x5a8   :  { %11139 = vmatprep.subr.bf16.mxu0 %v14448_v52  ;;  %11180 = vmatprep.subr.bf16.mxu1 %v14576_v27  ;;  %v1050_v45 = vld [vmem:[#allocation2 + $0x1c18] sm:$0xff]  ;;  %v14424_v5 = vcombine.high %v922_v60, %v926_v4  ;;  %v14423_v33 = vcombine.low %v922_v60, %v926_v4 }
 0x5a9   :  { %v1054_v51 = vld [vmem:[#allocation2 + $0x1c38] sm:$0xff] }
 0x5aa   :  { %v14552_v14 = vcombine.high %v1050_v45, %v1054_v51  ;;  %v1042_v22 = vld [vmem:[#allocation2 + $0x1bd8] sm:$0xff]  ;;  %v14551_v42 = vcombine.low %v1050_v45, %v1054_v51 }
 0x5ab   :  { %11140 = vmatpush1.bf16.msra.mxu0 %v14447_v0  ;;  %11181 = vmatpush1.bf16.msra.mxu1 %v14575_v40  ;;  %v1046_v41 = vld [vmem:[#allocation2 + $0x1bf8] sm:$0xff] }
 0x5ac   :  { %11141 = vmatprep.subr.bf16.mxu0 %v14440_v48  ;;  %11182 = vmatprep.subr.bf16.mxu1 %v14568_v62  ;;  %v1170_v6 = vld [vmem:[#allocation2 + $0x1fd8] sm:$0xff]  ;;  %v14544_v8 = vcombine.high %v1042_v22, %v1046_v41  ;;  %v14543_v17 = vcombine.low %v1042_v22, %v1046_v41 }
 0x5ad   :  { %v1174_v31 = vld [vmem:[#allocation2 + $0x1ff8] sm:$0xff] }
 0x5ae   :  { %v14672_v19 = vcombine.high %v1170_v6, %v1174_v31  ;;  %v1034_v57 = vld [vmem:[#allocation2 + $0x1b98] sm:$0xff]  ;;  %v14671_v24 = vcombine.low %v1170_v6, %v1174_v31 }
 0x5af   :  { %11142 = vmatpush1.bf16.msra.mxu0 %v14439_v12  ;;  %11183 = vmatpush1.bf16.msra.mxu1 %v14567_v2  ;;  %v1038_v11 = vld [vmem:[#allocation2 + $0x1bb8] sm:$0xff] }
 0x5b0   :  { %11143 = vmatprep.subr.bf16.mxu0 %v14432_v23  ;;  %11184 = vmatprep.subr.bf16.mxu1 %v14560_v49  ;;  %v1162_v29 = vld [vmem:[#allocation2 + $0x1f98] sm:$0xff]  ;;  %v14536_v36 = vcombine.high %v1034_v57, %v1038_v11  ;;  %v14535_v39 = vcombine.low %v1034_v57, %v1038_v11 }
 0x5b1   :  { %v1166_v30 = vld [vmem:[#allocation2 + $0x1fb8] sm:$0xff] }
 0x5b2   :  { %v14664_v47 = vcombine.high %v1162_v29, %v1166_v30  ;;  %v1026_v18 = vld [vmem:[#allocation2 + $0x1b58] sm:$0xff]  ;;  %v14663_v58 = vcombine.low %v1162_v29, %v1166_v30 }
 0x5b3   :  { %11144 = vmatpush1.bf16.msra.mxu0 %v14431_v28  ;;  %11185 = vmatpush1.bf16.msra.mxu1 %v14559_v35  ;;  %v1030_v52 = vld [vmem:[#allocation2 + $0x1b78] sm:$0xff] }
 0x5b4   :  { %11145 = vmatprep.subr.bf16.mxu0 %v14424_v5  ;;  %11186 = vmatprep.subr.bf16.mxu1 %v14552_v14  ;;  %v1154_v27 = vld [vmem:[#allocation2 + $0x1f58] sm:$0xff]  ;;  %v14528_v16 = vcombine.high %v1026_v18, %v1030_v52  ;;  %v14527_v7 = vcombine.low %v1026_v18, %v1030_v52 }
 0x5b5   :  { %v1158_v43 = vld [vmem:[#allocation2 + $0x1f78] sm:$0xff] }
 0x5b6   :  { %v14656_v0 = vcombine.high %v1154_v27, %v1158_v43  ;;  %v1018_v40 = vld [vmem:[#allocation2 + $0x1b18] sm:$0xff]  ;;  %v14655_v59 = vcombine.low %v1154_v27, %v1158_v43 }
 0x5b7   :  { %11146 = vmatpush1.bf16.msra.mxu0 %v14423_v33  ;;  %11187 = vmatpush1.bf16.msra.mxu1 %v14551_v42  ;;  %v1022_v48 = vld [vmem:[#allocation2 + $0x1b38] sm:$0xff] }
 0x5b8   :  { %11147 = vmatprep.subr.bf16.mxu0 %v14544_v8  ;;  %11188 = vmatprep.subr.bf16.mxu1 %v14672_v19  ;;  %v1146_v62 = vld [vmem:[#allocation2 + $0x1f18] sm:$0xff]  ;;  %v14520_v63 = vcombine.high %v1018_v40, %v1022_v48  ;;  %v14519_v4 = vcombine.low %v1018_v40, %v1022_v48 }
 0x5b9   :  { %v1150_v20 = vld [vmem:[#allocation2 + $0x1f38] sm:$0xff] }
 0x5ba   :  { %v14648_v12 = vcombine.high %v1146_v62, %v1150_v20  ;;  %v1010_v2 = vld [vmem:[#allocation2 + $0x1ad8] sm:$0xff]  ;;  %v14647_v45 = vcombine.low %v1146_v62, %v1150_v20  ;;  %v1715_v62 = vsub.s32 6, %v16235_v26 }
 0x5bb   :  { %11148 = vmatpush2.bf16.msra.mxu0 %v14543_v17  ;;  %11189 = vmatpush2.bf16.msra.mxu1 %v14671_v24  ;;  %v1014_v23 = vld [vmem:[#allocation2 + $0x1af8] sm:$0xff] }
 0x5bc   :  { %11149 = vmatprep.subr.bf16.mxu0 %v14536_v36  ;;  %11190 = vmatprep.subr.bf16.mxu1 %v14664_v47  ;;  %v1138_v49 = vld [vmem:[#allocation2 + $0x1ed8] sm:$0xff]  ;;  %v14512_v51 = vcombine.high %v1010_v2, %v1014_v23  ;;  %v14511_v41 = vcombine.low %v1010_v2, %v1014_v23 }
 0x5bd   :  { %v1142_v60 = vld [vmem:[#allocation2 + $0x1ef8] sm:$0xff] }
 0x5be   :  { %v14640_v28 = vcombine.high %v1138_v49, %v1142_v60  ;;  %v1002_v35 = vld [vmem:[#allocation2 + $0x1a98] sm:$0xff]  ;;  %v14639_v6 = vcombine.low %v1138_v49, %v1142_v60  ;;  %v15952_v60 = vld [vmem:[#allocation4] sm:$0xff] }
 0x5bf   :  { %11150 = vmatpush2.bf16.msra.mxu0 %v14535_v39  ;;  %11191 = vmatpush2.bf16.msra.mxu1 %v14663_v58  ;;  %v1006_v5 = vld [vmem:[#allocation2 + $0x1ab8] sm:$0xff] }
 0x5c0   :  { %11151 = vmatprep.subr.bf16.mxu0 %v14528_v16  ;;  %11192 = vmatprep.subr.bf16.mxu1 %v14656_v0  ;;  %v1130_v14 = vld [vmem:[#allocation2 + $0x1e98] sm:$0xff]  ;;  %v14504_v31 = vcombine.high %v1002_v35, %v1006_v5  ;;  %v14503_v11 = vcombine.low %v1002_v35, %v1006_v5 }
 0x5c1   :  { %v1134_v22 = vld [vmem:[#allocation2 + $0x1eb8] sm:$0xff] }
 0x5c2   :  { %v14632_v33 = vcombine.high %v1130_v14, %v1134_v22  ;;  %v994_v42 = vld [vmem:[#allocation2 + $0x1a58] sm:$0xff]  ;;  %v14631_v29 = vcombine.low %v1130_v14, %v1134_v22 }
 0x5c3   :  { %11152 = vmatpush2.bf16.msra.mxu0 %v14527_v7  ;;  %11193 = vmatpush2.bf16.msra.mxu1 %v14655_v59  ;;  %v998_v8 = vld [vmem:[#allocation2 + $0x1a78] sm:$0xff] }
 0x5c4   :  { %11153 = vmatprep.subr.bf16.mxu0 %v14520_v63  ;;  %11194 = vmatprep.subr.bf16.mxu1 %v14648_v12  ;;  %v1122_v19 = vld [vmem:[#allocation2 + $0x1e58] sm:$0xff]  ;;  %v14496_v30 = vcombine.high %v994_v42, %v998_v8  ;;  %v14495_v52 = vcombine.low %v994_v42, %v998_v8  ;;  %v1719_v63 = vsub.s32 7, %v16235_v26 }
 0x5c5   :  { %v1126_v57 = vld [vmem:[#allocation2 + $0x1e78] sm:$0xff] }
 0x5c6   :  { %v14624_v17 = vcombine.high %v1122_v19, %v1126_v57  ;;  %v986_v24 = vld [vmem:[#allocation2 + $0x1a18] sm:$0xff]  ;;  %v14623_v27 = vcombine.low %v1122_v19, %v1126_v57  ;;  %v1720_v35 = vrot.slane %v15952_v60, %v1719_v63 }
 0x5c7   :  { %11154 = vmatpush2.bf16.msra.mxu0 %v14519_v4  ;;  %11195 = vmatpush2.bf16.msra.mxu1 %v14647_v45  ;;  %v990_v36 = vld [vmem:[#allocation2 + $0x1a38] sm:$0xff]  ;;  %v1716_v4 = vrot.slane %v15952_v60, %v1715_v62 }
 0x5c8   :  { %11155 = vmatprep.subr.bf16.mxu0 %v14512_v51  ;;  %11196 = vmatprep.subr.bf16.mxu1 %v14640_v28  ;;  %v1114_v47 = vld [vmem:[#allocation2 + $0x1e18] sm:$0xff]  ;;  %v14488_v43 = vcombine.high %v986_v24, %v990_v36  ;;  %v14487_v48 = vcombine.low %v986_v24, %v990_v36 }
 0x5c9   :  { %v1118_v18 = vld [vmem:[#allocation2 + $0x1e38] sm:$0xff] }
 0x5ca   :  { %v14616_v39 = vcombine.high %v1114_v47, %v1118_v18  ;;  %v1234_v58 = vld [vmem:[#allocation2 + $0x21d8] sm:$0xff]  ;;  %v14615_v20 = vcombine.low %v1114_v47, %v1118_v18 }
 0x5cb   :  { %11156 = vmatpush2.bf16.msra.mxu0 %v14511_v41  ;;  %11197 = vmatpush2.bf16.msra.mxu1 %v14639_v6  ;;  %v1238_v16 = vld [vmem:[#allocation2 + $0x21f8] sm:$0xff] }
 0x5cc   :  { %11157 = vmatprep.subr.bf16.mxu0 %v14504_v31  ;;  %11198 = vmatprep.subr.bf16.mxu1 %v14632_v33  ;;  %v1362_v0 = vld [vmem:[#allocation2 + $0x25d8] sm:$0xff]  ;;  %v14736_v7 = vcombine.high %v1234_v58, %v1238_v16  ;;  %v14735_v45 = vcombine.low %v1234_v58, %v1238_v16 }
 0x5cd   :  { %v1366_v40 = vld [vmem:[#allocation2 + $0x25f8] sm:$0xff] }
 0x5ce   :  { %v14864_v59 = vcombine.high %v1362_v0, %v1366_v40  ;;  %v1226_v12 = vld [vmem:[#allocation2 + $0x2198] sm:$0xff]  ;;  %v14863_v51 = vcombine.low %v1362_v0, %v1366_v40 }
 0x5cf   :  { %11158 = vmatpush2.bf16.msra.mxu0 %v14503_v11  ;;  %11199 = vmatpush2.bf16.msra.mxu1 %v14631_v29  ;;  %v1230_v2 = vld [vmem:[#allocation2 + $0x21b8] sm:$0xff] }
 0x5d0   :  { %11159 = vmatprep.subr.bf16.mxu0 %v14496_v30  ;;  %11200 = vmatprep.subr.bf16.mxu1 %v14624_v17  ;;  %v1354_v23 = vld [vmem:[#allocation2 + $0x2598] sm:$0xff]  ;;  %v14728_v28 = vcombine.high %v1226_v12, %v1230_v2  ;;  %v14727_v8 = vcombine.low %v1226_v12, %v1230_v2 }
 0x5d1   :  { %v1358_v49 = vld [vmem:[#allocation2 + $0x25b8] sm:$0xff] }
 0x5d2   :  { %v14856_v5 = vcombine.high %v1354_v23, %v1358_v49  ;;  %v1218_v14 = vld [vmem:[#allocation2 + $0x2158] sm:$0xff]  ;;  %v14855_v57 = vcombine.low %v1354_v23, %v1358_v49 }
 0x5d3   :  { %11160 = vmatpush2.bf16.msra.mxu0 %v14495_v52  ;;  %11201 = vmatpush2.bf16.msra.mxu1 %v14623_v27  ;;  %v1222_v22 = vld [vmem:[#allocation2 + $0x2178] sm:$0xff] }
 0x5d4   :  { %11161 = vmatprep.subr.bf16.mxu0 %v14488_v43  ;;  %11202 = vmatprep.subr.bf16.mxu1 %v14616_v39  ;;  %v1346_v6 = vld [vmem:[#allocation2 + $0x2558] sm:$0xff]  ;;  %v14720_v11 = vcombine.high %v1218_v14, %v1222_v22  ;;  %v14719_v43 = vcombine.low %v1218_v14, %v1222_v22 }
 0x5d5   :  { %v1350_v31 = vld [vmem:[#allocation2 + $0x2578] sm:$0xff] }
 0x5d6   :  { %v14848_v24 = vcombine.high %v1346_v6, %v1350_v31  ;;  %v1214_v36 = vld [vmem:[#allocation2 + $0x2138] sm:$0xff]  ;;  %v14847_v58 = vcombine.low %v1346_v6, %v1350_v31 }
 0x5d7   :  { %11162 = vmatpush2.bf16.msra.mxu0 %v14487_v48  ;;  %11203 = vmatpush2.bf16.msra.mxu1 %v14615_v20  ;;  %v1338_v18 = vld [vmem:[#allocation2 + $0x2518] sm:$0xff] }
 0x5d8   :  { %11213 = vmatprep.subr.bf16.mxu0 %v14736_v7  ;;  %11254 = vmatprep.subr.bf16.mxu1 %v14864_v59  ;;  %v1202_v48 = vld [vmem:[#allocation2 + $0x20d8] sm:$0xff] }
 0x5d9   :  { %v1330_v62 = vld [vmem:[#allocation2 + $0x24d8] sm:$0xff] }
 0x5da   :  { %v10919_v41 = vpop.f32.mrf.mxu0  ;;  %11164 = vmatmul.mubr.bf16.vlgmr.msra.gmra.mxu0 %v16245_v50  ;;  %v10960_v42 = vpop.f32.mrf.mxu1  ;;  %11205 = vmatmul.mubr.bf16.vlgmr.msra.gmra.mxu1 %v16252_v56  ;;  %v1210_v50 = vld [vmem:[#allocation2 + $0x2118] sm:$0xff] }
 0x5db   :  { %v10920_v33 = vadd.f32 %v10919_v41, %v1716_v4  ;;  %11214 = vmatpush1.bf16.msra.mxu0 %v14735_v45  ;;  %11255 = vmatpush1.bf16.msra.mxu1 %v14863_v51  ;;  %v1342_v56 = vld [vmem:[#allocation2 + $0x2538] sm:$0xff]  ;;  %v14712_v16 = vcombine.high %v1210_v50, %v1214_v36  ;;  %v14711_v7 = vcombine.low %v1210_v50, %v1214_v36 }
 0x5dc   :  { %v10921_v19 = vpop.f32.mrf.mxu0  ;;  %11215 = vmatprep.subr.bf16.mxu0 %v14728_v28  ;;  %v10962_v17 = vpop.f32.mrf.mxu1  ;;  %11256 = vmatprep.subr.bf16.mxu1 %v14856_v5  ;;  %v14840_v40 = vcombine.high %v1338_v18, %v1342_v56  ;;  %v1334_v20 = vld [vmem:[#allocation2 + $0x24f8] sm:$0xff] }
 0x5dd   :  { %v16479_v29 = vadd.f32 %v10960_v42, %v10920_v33  ;;  %v10922_v30 = vadd.f32 %v10921_v19, %v1720_v35  ;;  %11245 = vmatprep.mubr.bf16.mxu0 %v16259_v3  ;;  %11286 = vmatprep.mubr.bf16.mxu1 %v16262_v9  ;;  %v1206_v3 = vld [vmem:[#allocation2 + $0x20f8] sm:$0xff]  ;;  %v14839_v9 = vcombine.low %v1338_v18, %v1342_v56 }
 0x5de   :  { %v10923_v47 = vpop.f32.mrf.mxu0  ;;  %v10964_v27 = vpop.f32.mrf.mxu1  ;;  %v14704_v59 = vcombine.high %v1202_v48, %v1206_v3  ;;  %v14832_v63 = vcombine.high %v1330_v62, %v1334_v20  ;;  %v1194_v12 = vld [vmem:[#allocation2 + $0x2098] sm:$0xff]  ;;  %v14703_v60 = vcombine.low %v1202_v48, %v1206_v3  ;;  %v14831_v4 = vcombine.low %v1330_v62, %v1334_v20 }
 0x5df   :  { %v16483_v52 = vadd.f32 %v10962_v17, %v10922_v30  ;;  %11216 = vmatpush1.bf16.msra.mxu0 %v14727_v8  ;;  %11257 = vmatpush1.bf16.msra.mxu1 %v14855_v57  ;;  %v1198_v2 = vld [vmem:[#allocation2 + $0x20b8] sm:$0xff] }
 0x5e0   :  { %v10924_v39 = vpop.f32.mrf.mxu0  ;;  %11217 = vmatprep.subr.bf16.mxu0 %v14720_v11  ;;  %v10965_v0 = vpop.f32.mrf.mxu1  ;;  %11258 = vmatprep.subr.bf16.mxu1 %v14848_v24  ;;  %v1322_v23 = vld [vmem:[#allocation2 + $0x2498] sm:$0xff]  ;;  %v14696_v45 = vcombine.high %v1194_v12, %v1198_v2  ;;  %v14695_v22 = vcombine.low %v1194_v12, %v1198_v2 }
 0x5e1   :  { %v1326_v49 = vld [vmem:[#allocation2 + $0x24b8] sm:$0xff] }
 0x5e2   :  { %v14824_v51 = vcombine.high %v1322_v23, %v1326_v49  ;;  %v1186_v28 = vld [vmem:[#allocation2 + $0x2058] sm:$0xff]  ;;  %v14823_v41 = vcombine.low %v1322_v23, %v1326_v49 }
 0x5e3   :  { %11218 = vmatpush1.bf16.msra.mxu0 %v14719_v43  ;;  %11259 = vmatpush1.bf16.msra.mxu1 %v14847_v58  ;;  %v1190_v35 = vld [vmem:[#allocation2 + $0x2078] sm:$0xff] }
 0x5e4   :  { %11219 = vmatprep.subr.bf16.mxu0 %v14712_v16  ;;  %11260 = vmatprep.subr.bf16.mxu1 %v14840_v40  ;;  %v1314_v5 = vld [vmem:[#allocation2 + $0x2458] sm:$0xff]  ;;  %v14688_v6 = vcombine.high %v1186_v28, %v1190_v35  ;;  %v14687_v57 = vcombine.low %v1186_v28, %v1190_v35 }
 0x5e5   :  { %v1318_v14 = vld [vmem:[#allocation2 + $0x2478] sm:$0xff] }
 0x5e6   :  { %v14816_v31 = vcombine.high %v1314_v5, %v1318_v14  ;;  %v1178_v33 = vld [vmem:[#allocation2 + $0x2018] sm:$0xff]  ;;  %v14815_v11 = vcombine.low %v1314_v5, %v1318_v14 }
 0x5e7   :  { %11220 = vmatpush1.bf16.msra.mxu0 %v14711_v7  ;;  %11261 = vmatpush1.bf16.msra.mxu1 %v14839_v9  ;;  %v1182_v42 = vld [vmem:[#allocation2 + $0x2038] sm:$0xff] }
 0x5e8   :  { %11221 = vmatprep.subr.bf16.mxu0 %v14704_v59  ;;  %11262 = vmatprep.subr.bf16.mxu1 %v14832_v63  ;;  %v1306_v8 = vld [vmem:[#allocation2 + $0x2418] sm:$0xff]  ;;  %v14680_v30 = vcombine.high %v1178_v33, %v1182_v42  ;;  %v14679_v18 = vcombine.low %v1178_v33, %v1182_v42 }
 0x5e9   :  { %v1310_v19 = vld [vmem:[#allocation2 + $0x2438] sm:$0xff] }
 0x5ea   :  { %v14808_v17 = vcombine.high %v1306_v8, %v1310_v19  ;;  %v1298_v24 = vld [vmem:[#allocation2 + $0x23d8] sm:$0xff]  ;;  %v14807_v56 = vcombine.low %v1306_v8, %v1310_v19 }
 0x5eb   :  { %11222 = vmatpush1.bf16.msra.mxu0 %v14703_v60  ;;  %11263 = vmatpush1.bf16.msra.mxu1 %v14831_v4  ;;  %v1302_v50 = vld [vmem:[#allocation2 + $0x23f8] sm:$0xff] }
 0x5ec   :  { %11223 = vmatprep.subr.bf16.mxu0 %v14696_v45  ;;  %11264 = vmatprep.subr.bf16.mxu1 %v14824_v51  ;;  %v1426_v36 = vld [vmem:[#allocation2 + $0x27d8] sm:$0xff]  ;;  %v14800_v27 = vcombine.high %v1298_v24, %v1302_v50  ;;  %v14799_v40 = vcombine.low %v1298_v24, %v1302_v50 }
 0x5ed   :  { %v1430_v47 = vld [vmem:[#allocation2 + $0x27f8] sm:$0xff] }
 0x5ee   :  { %v14928_v43 = vcombine.high %v1426_v36, %v1430_v47  ;;  %v1290_v39 = vld [vmem:[#allocation2 + $0x2398] sm:$0xff]  ;;  %v14927_v48 = vcombine.low %v1426_v36, %v1430_v47 }
 0x5ef   :  { %11224 = vmatpush1.bf16.msra.mxu0 %v14695_v22  ;;  %11265 = vmatpush1.bf16.msra.mxu1 %v14823_v41  ;;  %v1294_v58 = vld [vmem:[#allocation2 + $0x23b8] sm:$0xff] }
 0x5f0   :  { %11225 = vmatprep.subr.bf16.mxu0 %v14688_v6  ;;  %11266 = vmatprep.subr.bf16.mxu1 %v14816_v31  ;;  %v1418_v16 = vld [vmem:[#allocation2 + $0x2798] sm:$0xff]  ;;  %v14792_v3 = vcombine.high %v1290_v39, %v1294_v58  ;;  %v14791_v63 = vcombine.low %v1290_v39, %v1294_v58 }
 0x5f1   :  { %v1422_v0 = vld [vmem:[#allocation2 + $0x27b8] sm:$0xff] }
 0x5f2   :  { %v14920_v62 = vcombine.high %v1418_v16, %v1422_v0  ;;  %v1282_v20 = vld [vmem:[#allocation2 + $0x2358] sm:$0xff]  ;;  %v14919_v12 = vcombine.low %v1418_v16, %v1422_v0 }
 0x5f3   :  { %11226 = vmatpush1.bf16.msra.mxu0 %v14687_v57  ;;  %11267 = vmatpush1.bf16.msra.mxu1 %v14815_v11  ;;  %v1286_v7 = vld [vmem:[#allocation2 + $0x2378] sm:$0xff] }
 0x5f4   :  { %11227 = vmatprep.subr.bf16.mxu0 %v14680_v30  ;;  %11268 = vmatprep.subr.bf16.mxu1 %v14808_v17  ;;  %v1410_v9 = vld [vmem:[#allocation2 + $0x2758] sm:$0xff]  ;;  %v14784_v2 = vcombine.high %v1282_v20, %v1286_v7  ;;  %v14783_v51 = vcombine.low %v1282_v20, %v1286_v7 }
 0x5f5   :  { %v1414_v59 = vld [vmem:[#allocation2 + $0x2778] sm:$0xff] }
 0x5f6   :  { %v14912_v23 = vcombine.high %v1410_v9, %v1414_v59  ;;  %v1274_v49 = vld [vmem:[#allocation2 + $0x2318] sm:$0xff]  ;;  %v14911_v28 = vcombine.low %v1410_v9, %v1414_v59 }
 0x5f7   :  { %11228 = vmatpush1.bf16.msra.mxu0 %v14679_v18  ;;  %11269 = vmatpush1.bf16.msra.mxu1 %v14807_v56  ;;  %v1278_v60 = vld [vmem:[#allocation2 + $0x2338] sm:$0xff] }
 0x5f8   :  { %11229 = vmatprep.subr.bf16.mxu0 %v14800_v27  ;;  %11270 = vmatprep.subr.bf16.mxu1 %v14928_v43  ;;  %v1402_v4 = vld [vmem:[#allocation2 + $0x2718] sm:$0xff]  ;;  %v14776_v35 = vcombine.high %v1274_v49, %v1278_v60  ;;  %v14775_v31 = vcombine.low %v1274_v49, %v1278_v60 }
 0x5f9   :  { %v1406_v45 = vld [vmem:[#allocation2 + $0x2738] sm:$0xff] }
 0x5fa   :  { %v14904_v5 = vcombine.high %v1402_v4, %v1406_v45  ;;  %v1266_v14 = vld [vmem:[#allocation2 + $0x22d8] sm:$0xff]  ;;  %v14903_v33 = vcombine.low %v1402_v4, %v1406_v45 }
 0x5fb   :  { %11230 = vmatpush2.bf16.msra.mxu0 %v14799_v40  ;;  %11271 = vmatpush2.bf16.msra.mxu1 %v14927_v48  ;;  %v1270_v22 = vld [vmem:[#allocation2 + $0x22f8] sm:$0xff] }
 0x5fc   :  { %11231 = vmatprep.subr.bf16.mxu0 %v14792_v3  ;;  %11272 = vmatprep.subr.bf16.mxu1 %v14920_v62  ;;  %v1394_v41 = vld [vmem:[#allocation2 + $0x26d8] sm:$0xff]  ;;  %v14768_v42 = vcombine.high %v1266_v14, %v1270_v22  ;;  %v14767_v17 = vcombine.low %v1266_v14, %v1270_v22 }
 0x5fd   :  { %v1398_v6 = vld [vmem:[#allocation2 + $0x26f8] sm:$0xff] }
 0x5fe   :  { %v14896_v8 = vcombine.high %v1394_v41, %v1398_v6  ;;  %v1258_v19 = vld [vmem:[#allocation2 + $0x2298] sm:$0xff]  ;;  %v14895_v24 = vcombine.low %v1394_v41, %v1398_v6 }
 0x5ff   :  { %11232 = vmatpush2.bf16.msra.mxu0 %v14791_v63  ;;  %11273 = vmatpush2.bf16.msra.mxu1 %v14919_v12  ;;  %v1262_v57 = vld [vmem:[#allocation2 + $0x22b8] sm:$0xff] }
 0x600   :  { %11233 = vmatprep.subr.bf16.mxu0 %v14784_v2  ;;  %11274 = vmatprep.subr.bf16.mxu1 %v14912_v23  ;;  %v1386_v11 = vld [vmem:[#allocation2 + $0x2698] sm:$0xff]  ;;  %v14760_v50 = vcombine.high %v1258_v19, %v1262_v57  ;;  %v14759_v43 = vcombine.low %v1258_v19, %v1262_v57 }
 0x601   :  { %v1390_v30 = vld [vmem:[#allocation2 + $0x26b8] sm:$0xff] }
 0x602   :  { %v14888_v36 = vcombine.high %v1386_v11, %v1390_v30  ;;  %v1250_v47 = vld [vmem:[#allocation2 + $0x2258] sm:$0xff]  ;;  %v14887_v39 = vcombine.low %v1386_v11, %v1390_v30 }
 0x603   :  { %11234 = vmatpush2.bf16.msra.mxu0 %v14783_v51  ;;  %11275 = vmatpush2.bf16.msra.mxu1 %v14911_v28  ;;  %v1254_v18 = vld [vmem:[#allocation2 + $0x2278] sm:$0xff] }
 0x604   :  { %11235 = vmatprep.subr.bf16.mxu0 %v14776_v35  ;;  %11276 = vmatprep.subr.bf16.mxu1 %v14904_v5  ;;  %v1378_v56 = vld [vmem:[#allocation2 + $0x2658] sm:$0xff]  ;;  %v14752_v58 = vcombine.high %v1250_v47, %v1254_v18  ;;  %v14751_v62 = vcombine.low %v1250_v47, %v1254_v18 }
 0x605   :  { %v1382_v27 = vld [vmem:[#allocation2 + $0x2678] sm:$0xff] }
 0x606   :  { %v14880_v16 = vcombine.high %v1378_v56, %v1382_v27  ;;  %v1242_v0 = vld [vmem:[#allocation2 + $0x2218] sm:$0xff]  ;;  %v14879_v20 = vcombine.low %v1378_v56, %v1382_v27 }
 0x607   :  { %11236 = vmatpush2.bf16.msra.mxu0 %v14775_v31  ;;  %11277 = vmatpush2.bf16.msra.mxu1 %v14903_v33  ;;  %v1246_v40 = vld [vmem:[#allocation2 + $0x2238] sm:$0xff] }
 0x608   :  { %11237 = vmatprep.subr.bf16.mxu0 %v14768_v42  ;;  %11278 = vmatprep.subr.bf16.mxu1 %v14896_v8  ;;  %v1370_v48 = vld [vmem:[#allocation2 + $0x2618] sm:$0xff]  ;;  %v14744_v7 = vcombine.high %v1242_v0, %v1246_v40  ;;  %v14743_v23 = vcombine.low %v1242_v0, %v1246_v40 }
 0x609   :  { %v1374_v3 = vld [vmem:[#allocation2 + $0x2638] sm:$0xff] }
 0x60a   :  { %v14872_v9 = vcombine.high %v1370_v48, %v1374_v3  ;;  %v1490_v59 = vld [vmem:[#allocation2 + $0x29d8] sm:$0xff]  ;;  %v14871_v49 = vcombine.low %v1370_v48, %v1374_v3 }
 0x60b   :  { %11238 = vmatpush2.bf16.msra.mxu0 %v14767_v17  ;;  %11279 = vmatpush2.bf16.msra.mxu1 %v14895_v24  ;;  %v1494_v63 = vld [vmem:[#allocation2 + $0x29f8] sm:$0xff] }
 0x60c   :  { %11239 = vmatprep.subr.bf16.mxu0 %v14760_v50  ;;  %11280 = vmatprep.subr.bf16.mxu1 %v14888_v36  ;;  %v1618_v12 = vld [vmem:[#allocation2 + $0x2dd8] sm:$0xff]  ;;  %v14992_v60 = vcombine.high %v1490_v59, %v1494_v63  ;;  %v14991_v5 = vcombine.low %v1490_v59, %v1494_v63 }
 0x60d   :  { %v1622_v2 = vld [vmem:[#allocation2 + $0x2df8] sm:$0xff] }
 0x60e   :  { %v15120_v4 = vcombine.high %v1618_v12, %v1622_v2  ;;  %v1482_v45 = vld [vmem:[#allocation2 + $0x2998] sm:$0xff]  ;;  %v15119_v14 = vcombine.low %v1618_v12, %v1622_v2 }
 0x60f   :  { %11240 = vmatpush2.bf16.msra.mxu0 %v14759_v43  ;;  %11281 = vmatpush2.bf16.msra.mxu1 %v14887_v39  ;;  %v1486_v51 = vld [vmem:[#allocation2 + $0x29b8] sm:$0xff] }
 0x610   :  { %11241 = vmatprep.subr.bf16.mxu0 %v14752_v58  ;;  %11282 = vmatprep.subr.bf16.mxu1 %v14880_v16  ;;  %v1610_v28 = vld [vmem:[#allocation2 + $0x2d98] sm:$0xff]  ;;  %v14984_v22 = vcombine.high %v1482_v45, %v1486_v51  ;;  %v14983_v11 = vcombine.low %v1482_v45, %v1486_v51 }
 0x611   :  { %v1614_v35 = vld [vmem:[#allocation2 + $0x2db8] sm:$0xff] }
 0x612   :  { %v15112_v41 = vcombine.high %v1610_v28, %v1614_v35  ;;  %v1474_v6 = vld [vmem:[#allocation2 + $0x2958] sm:$0xff]  ;;  %v15111_v17 = vcombine.low %v1610_v28, %v1614_v35 }
 0x613   :  { %11242 = vmatpush2.bf16.msra.mxu0 %v14751_v62  ;;  %11283 = vmatpush2.bf16.msra.mxu1 %v14879_v20  ;;  %v1478_v31 = vld [vmem:[#allocation2 + $0x2978] sm:$0xff] }
 0x614   :  { %11243 = vmatprep.subr.bf16.mxu0 %v14744_v7  ;;  %11284 = vmatprep.subr.bf16.mxu1 %v14872_v9  ;;  %v1602_v42 = vld [vmem:[#allocation2 + $0x2d58] sm:$0xff]  ;;  %v14976_v24 = vcombine.high %v1474_v6, %v1478_v31  ;;  %v14975_v58 = vcombine.low %v1474_v6, %v1478_v31 }
 0x615   :  { %v1606_v8 = vld [vmem:[#allocation2 + $0x2d78] sm:$0xff] }
 0x616   :  { %v1466_v18 = vld [vmem:[#allocation2 + $0x2918] sm:$0xff] }
 0x617   :  { %11244 = vmatpush2.bf16.msra.mxu0 %v14743_v23  ;;  %11285 = vmatpush2.bf16.msra.mxu1 %v14871_v49  ;;  %v1470_v56 = vld [vmem:[#allocation2 + $0x2938] sm:$0xff] }
 0x618   :  { %11295 = vmatprep.subr.bf16.mxu0 %v14992_v60  ;;  %11336 = vmatprep.subr.bf16.mxu1 %v15120_v4  ;;  %v1598_v27 = vld [vmem:[#allocation2 + $0x2d38] sm:$0xff]  ;;  %v14968_v0 = vcombine.high %v1466_v18, %v1470_v56  ;;  %v14967_v7 = vcombine.low %v1466_v18, %v1470_v56 }
 0x619   :  { %v1458_v3 = vld [vmem:[#allocation2 + $0x28d8] sm:$0xff] }
 0x61a   :  { %v11001_v33 = vpop.f32.mrf.mxu0  ;;  %11246 = vmatmul.mubr.bf16.vlgmr.msra.gmra.mxu0 %v16277_v21  ;;  %v11042_v57 = vpop.f32.mrf.mxu1  ;;  %11287 = vmatmul.mubr.bf16.vlgmr.msra.gmra.mxu1 %v16282_v25  ;;  %v15104_v21 = vcombine.high %v1602_v42, %v1606_v8  ;;  %v1594_v25 = vld [vmem:[#allocation2 + $0x2d18] sm:$0xff] }
 0x61b   :  { %v11002_v19 = vadd.f32 %v11001_v33, %v16479_v29  ;;  %11296 = vmatpush1.bf16.msra.mxu0 %v14991_v5  ;;  %11337 = vmatpush1.bf16.msra.mxu1 %v15119_v14  ;;  %v15096_v48 = vcombine.high %v1594_v25, %v1598_v27  ;;  %v1586_v62 = vld [vmem:[#allocation2 + $0x2cd8] sm:$0xff] }
 0x61c   :  { %v11003_v30 = vpop.f32.mrf.mxu0  ;;  %11297 = vmatprep.subr.bf16.mxu0 %v14984_v22  ;;  %v11044_v47 = vpop.f32.mrf.mxu1  ;;  %11338 = vmatprep.subr.bf16.mxu1 %v15112_v41  ;;  %v1590_v20 = vld [vmem:[#allocation2 + $0x2cf8] sm:$0xff] }
 0x61d   :  { %v16488_v50 = vadd.f32 %v11042_v57, %v11002_v19  ;;  %v11004_v36 = vadd.f32 %v11003_v30, %v16483_v52  ;;  %11327 = vmatprep.mubr.bf16.mxu0 %v16287_v38  ;;  %11368 = vmatprep.mubr.bf16.mxu1 %v16290_v44  ;;  %v15103_v52 = vcombine.low %v1602_v42, %v1606_v8  ;;  %v1462_v38 = vld [vmem:[#allocation2 + $0x28f8] sm:$0xff] }
 0x61e   :  { %v11005_v29 = vpop.f32.mrf.mxu0  ;;  %v11046_v39 = vpop.f32.mrf.mxu1  ;;  %v15095_v44 = vcombine.low %v1594_v25, %v1598_v27  ;;  %v14960_v9 = vcombine.high %v1458_v3, %v1462_v38  ;;  %v15088_v59 = vcombine.high %v1586_v62, %v1590_v20  ;;  %v1450_v63 = vld [vmem:[#allocation2 + $0x2898] sm:$0xff]  ;;  %v14959_v49 = vcombine.low %v1458_v3, %v1462_v38 }
 0x61f   :  { %v16493_v43 = vadd.f32 %v11044_v47, %v11004_v36  ;;  %11298 = vmatpush1.bf16.msra.mxu0 %v14983_v11  ;;  %11339 = vmatpush1.bf16.msra.mxu1 %v15111_v17  ;;  %v1454_v12 = vld [vmem:[#allocation2 + $0x28b8] sm:$0xff]  ;;  %v15087_v60 = vcombine.low %v1586_v62, %v1590_v20 }
 0x620   :  { %v11006_v16 = vpop.f32.mrf.mxu0  ;;  %11299 = vmatprep.subr.bf16.mxu0 %v14976_v24  ;;  %v11047_v40 = vpop.f32.mrf.mxu1  ;;  %11340 = vmatprep.subr.bf16.mxu1 %v15104_v21  ;;  %v1578_v2 = vld [vmem:[#allocation2 + $0x2c98] sm:$0xff]  ;;  %v14952_v4 = vcombine.high %v1450_v63, %v1454_v12  ;;  %v14951_v14 = vcombine.low %v1450_v63, %v1454_v12 }
 0x621   :  { %v1582_v23 = vld [vmem:[#allocation2 + $0x2cb8] sm:$0xff] }
 0x622   :  { %v15080_v45 = vcombine.high %v1578_v2, %v1582_v23  ;;  %v1442_v51 = vld [vmem:[#allocation2 + $0x2858] sm:$0xff]  ;;  %v15079_v22 = vcombine.low %v1578_v2, %v1582_v23 }
 0x623   :  { %11300 = vmatpush1.bf16.msra.mxu0 %v14975_v58  ;;  %11341 = vmatpush1.bf16.msra.mxu1 %v15103_v52  ;;  %v1446_v28 = vld [vmem:[#allocation2 + $0x2878] sm:$0xff] }
 0x624   :  { %11301 = vmatprep.subr.bf16.mxu0 %v14968_v0  ;;  %11342 = vmatprep.subr.bf16.mxu1 %v15096_v48  ;;  %v1570_v35 = vld [vmem:[#allocation2 + $0x2c58] sm:$0xff]  ;;  %v14944_v41 = vcombine.high %v1442_v51, %v1446_v28  ;;  %v14943_v19 = vcombine.low %v1442_v51, %v1446_v28 }
 0x625   :  { %v1574_v5 = vld [vmem:[#allocation2 + $0x2c78] sm:$0xff] }
 0x626   :  { %v15072_v6 = vcombine.high %v1570_v35, %v1574_v5  ;;  %v1434_v31 = vld [vmem:[#allocation2 + $0x2818] sm:$0xff]  ;;  %v15071_v57 = vcombine.low %v1570_v35, %v1574_v5 }
 0x627   :  { %11302 = vmatpush1.bf16.msra.mxu0 %v14967_v7  ;;  %11343 = vmatpush1.bf16.msra.mxu1 %v15095_v44  ;;  %v1438_v33 = vld [vmem:[#allocation2 + $0x2838] sm:$0xff] }
 0x628   :  { %11303 = vmatprep.subr.bf16.mxu0 %v14960_v9  ;;  %11344 = vmatprep.subr.bf16.mxu1 %v15088_v59  ;;  %v1562_v42 = vld [vmem:[#allocation2 + $0x2c18] sm:$0xff]  ;;  %v14936_v11 = vcombine.high %v1434_v31, %v1438_v33  ;;  %v14935_v21 = vcombine.low %v1434_v31, %v1438_v33 }
 0x629   :  { %v1566_v8 = vld [vmem:[#allocation2 + $0x2c38] sm:$0xff] }
 0x62a   :  { %v15064_v30 = vcombine.high %v1562_v42, %v1566_v8  ;;  %v1554_v17 = vld [vmem:[#allocation2 + $0x2bd8] sm:$0xff]  ;;  %v15063_v18 = vcombine.low %v1562_v42, %v1566_v8 }
 0x62b   :  { %11304 = vmatpush1.bf16.msra.mxu0 %v14959_v49  ;;  %11345 = vmatpush1.bf16.msra.mxu1 %v15087_v60  ;;  %v1558_v24 = vld [vmem:[#allocation2 + $0x2bf8] sm:$0xff] }
 0x62c   :  { %11305 = vmatprep.subr.bf16.mxu0 %v14952_v4  ;;  %11346 = vmatprep.subr.bf16.mxu1 %v15080_v45  ;;  %v1682_v36 = vld [vmem:[#allocation2 + $0x2fd8] sm:$0xff]  ;;  %v15056_v56 = vcombine.high %v1554_v17, %v1558_v24  ;;  %v15055_v16 = vcombine.low %v1554_v17, %v1558_v24 }
 0x62d   :  { %v1686_v47 = vld [vmem:[#allocation2 + $0x2ff8] sm:$0xff] }
 0x62e   :  { %v15184_v29 = vcombine.high %v1682_v36, %v1686_v47  ;;  %v1546_v25 = vld [vmem:[#allocation2 + $0x2b98] sm:$0xff]  ;;  %v15183_v52 = vcombine.low %v1682_v36, %v1686_v47 }
 0x62f   :  { %11306 = vmatpush1.bf16.msra.mxu0 %v14951_v14  ;;  %11347 = vmatpush1.bf16.msra.mxu1 %v15079_v22  ;;  %v1550_v27 = vld [vmem:[#allocation2 + $0x2bb8] sm:$0xff] }
 0x630   :  { %11307 = vmatprep.subr.bf16.mxu0 %v14944_v41  ;;  %11348 = vmatprep.subr.bf16.mxu1 %v15072_v6  ;;  %v1674_v39 = vld [vmem:[#allocation2 + $0x2f98] sm:$0xff]  ;;  %v15048_v0 = vcombine.high %v1546_v25, %v1550_v27  ;;  %v15047_v20 = vcombine.low %v1546_v25, %v1550_v27 }
 0x631   :  { %v1678_v58 = vld [vmem:[#allocation2 + $0x2fb8] sm:$0xff] }
 0x632   :  { %v15176_v40 = vcombine.high %v1674_v39, %v1678_v58  ;;  %v1538_v48 = vld [vmem:[#allocation2 + $0x2b58] sm:$0xff]  ;;  %v15175_v7 = vcombine.low %v1674_v39, %v1678_v58 }
 0x633   :  { %11308 = vmatpush1.bf16.msra.mxu0 %v14943_v19  ;;  %11349 = vmatpush1.bf16.msra.mxu1 %v15071_v57  ;;  %v1542_v3 = vld [vmem:[#allocation2 + $0x2b78] sm:$0xff] }
 0x634   :  { %11309 = vmatprep.subr.bf16.mxu0 %v14936_v11  ;;  %11350 = vmatprep.subr.bf16.mxu1 %v15064_v30  ;;  %v1666_v38 = vld [vmem:[#allocation2 + $0x2f58] sm:$0xff]  ;;  %v15040_v44 = vcombine.high %v1538_v48, %v1542_v3  ;;  %v15039_v23 = vcombine.low %v1538_v48, %v1542_v3 }
 0x635   :  { %v1670_v62 = vld [vmem:[#allocation2 + $0x2f78] sm:$0xff] }
 0x636   :  { %v15168_v9 = vcombine.high %v1666_v38, %v1670_v62  ;;  %v1530_v59 = vld [vmem:[#allocation2 + $0x2b18] sm:$0xff]  ;;  %v15167_v49 = vcombine.low %v1666_v38, %v1670_v62  ;;  %v11378_v62 = vmax.f32 %v16349_v53, 0.0 }
 0x637   :  { %11310 = vmatpush1.bf16.msra.mxu0 %v14935_v21  ;;  %11351 = vmatpush1.bf16.msra.mxu1 %v15063_v18  ;;  %v1534_v63 = vld [vmem:[#allocation2 + $0x2b38] sm:$0xff] }
 0x638   :  { %11311 = vmatprep.subr.bf16.mxu0 %v15056_v56  ;;  %11352 = vmatprep.subr.bf16.mxu1 %v15184_v29  ;;  %v1658_v12 = vld [vmem:[#allocation2 + $0x2f18] sm:$0xff]  ;;  %v15032_v60 = vcombine.high %v1530_v59, %v1534_v63  ;;  %v15031_v5 = vcombine.low %v1530_v59, %v1534_v63  ;;  %v16497_v59 = vpack.c.bf16 %v11378_v62, %v11378_v62 }
 0x639   :  { %v1662_v2 = vld [vmem:[#allocation2 + $0x2f38] sm:$0xff] }
 0x63a   :  { %v15160_v4 = vcombine.high %v1658_v12, %v1662_v2  ;;  %v1522_v45 = vld [vmem:[#allocation2 + $0x2ad8] sm:$0xff]  ;;  %v15159_v14 = vcombine.low %v1658_v12, %v1662_v2 }
 0x63b   :  { %11312 = vmatpush2.bf16.msra.mxu0 %v15055_v16  ;;  %11353 = vmatpush2.bf16.msra.mxu1 %v15183_v52  ;;  %v1526_v51 = vld [vmem:[#allocation2 + $0x2af8] sm:$0xff] }
 0x63c   :  { %11313 = vmatprep.subr.bf16.mxu0 %v15048_v0  ;;  %11354 = vmatprep.subr.bf16.mxu1 %v15176_v40  ;;  %v1650_v28 = vld [vmem:[#allocation2 + $0x2ed8] sm:$0xff]  ;;  %v15024_v22 = vcombine.high %v1522_v45, %v1526_v51  ;;  %v15023_v8 = vcombine.low %v1522_v45, %v1526_v51 }
 0x63d   :  { %v1654_v35 = vld [vmem:[#allocation2 + $0x2ef8] sm:$0xff] }
 0x63e   :  { %v15152_v41 = vcombine.high %v1650_v28, %v1654_v35  ;;  %v1514_v6 = vld [vmem:[#allocation2 + $0x2a98] sm:$0xff]  ;;  %v15151_v19 = vcombine.low %v1650_v28, %v1654_v35 }
 0x63f   :  { %11314 = vmatpush2.bf16.msra.mxu0 %v15047_v20  ;;  %11355 = vmatpush2.bf16.msra.mxu1 %v15175_v7  ;;  %v1518_v31 = vld [vmem:[#allocation2 + $0x2ab8] sm:$0xff]  ;;  %v11380_v20 = vmax.f32 %v16413_v32, 0.0 }
 0x640   :  { %11315 = vmatprep.subr.bf16.mxu0 %v15040_v44  ;;  %11356 = vmatprep.subr.bf16.mxu1 %v15168_v9  ;;  %v1642_v33 = vld [vmem:[#allocation2 + $0x2e98] sm:$0xff]  ;;  %v15016_v57 = vcombine.high %v1514_v6, %v1518_v31  ;;  %v15015_v47 = vcombine.low %v1514_v6, %v1518_v31 }
 0x641   :  { %v1646_v42 = vld [vmem:[#allocation2 + $0x2eb8] sm:$0xff]  ;;  %v16500_v2 = vpack.c.bf16 %v11380_v20, %v11380_v20 }
 0x642   :  { %v15144_v11 = vcombine.high %v1642_v33, %v1646_v42  ;;  %v1506_v30 = vld [vmem:[#allocation2 + $0x2a58] sm:$0xff]  ;;  %v15143_v21 = vcombine.low %v1642_v33, %v1646_v42 }
 0x643   :  { %11316 = vmatpush2.bf16.msra.mxu0 %v15039_v23  ;;  %11357 = vmatpush2.bf16.msra.mxu1 %v15167_v49  ;;  %v1510_v17 = vld [vmem:[#allocation2 + $0x2a78] sm:$0xff] }
 0x644   :  { %11317 = vmatprep.subr.bf16.mxu0 %v15032_v60  ;;  %11358 = vmatprep.subr.bf16.mxu1 %v15160_v4  ;;  %v1634_v24 = vld [vmem:[#allocation2 + $0x2e58] sm:$0xff]  ;;  %v15008_v18 = vcombine.high %v1506_v30, %v1510_v17  ;;  %v15007_v58 = vcombine.low %v1506_v30, %v1510_v17 }
 0x645   :  { %v1638_v36 = vld [vmem:[#allocation2 + $0x2e78] sm:$0xff] }
 0x646   :  { %v15136_v56 = vcombine.high %v1634_v24, %v1638_v36  ;;  %v1498_v29 = vld [vmem:[#allocation2 + $0x2a18] sm:$0xff]  ;;  %v15135_v16 = vcombine.low %v1634_v24, %v1638_v36 }
 0x647   :  { %11318 = vmatpush2.bf16.msra.mxu0 %v15031_v5  ;;  %11359 = vmatpush2.bf16.msra.mxu1 %v15159_v14  ;;  %v1502_v25 = vld [vmem:[#allocation2 + $0x2a38] sm:$0xff] }
 0x648   :  { %11319 = vmatprep.subr.bf16.mxu0 %v15024_v22  ;;  %11360 = vmatprep.subr.bf16.mxu1 %v15152_v41  ;;  %v1626_v27 = vld [vmem:[#allocation2 + $0x2e18] sm:$0xff]  ;;  %v15000_v52 = vcombine.high %v1498_v29, %v1502_v25  ;;  %v14999_v40 = vcombine.low %v1498_v29, %v1502_v25 }
 0x649   :  { %v1630_v39 = vld [vmem:[#allocation2 + $0x2e38] sm:$0xff] }
 0x64a   :  { %v15128_v0 = vcombine.high %v1626_v27, %v1630_v39  ;;  %v15127_v48 = vcombine.low %v1626_v27, %v1630_v39  ;;  %v15532_v3 = vld [vmem:[#allocation6 + $0xe4] ss:$16 sps:$4 sm:$0xff]   ;;  %v15530_v7 = vld [vmem:[#allocation6 + $0xe0] ss:$16 sps:$4 sm:$0xff]  }
 0x64b   :  { %11320 = vmatpush2.bf16.msra.mxu0 %v15023_v8  ;;  %11361 = vmatpush2.bf16.msra.mxu1 %v15151_v19  ;;  %v15535_v38 = vld [vmem:[#allocation6 + $0x2e4] ss:$16 sps:$4 sm:$0xff]   ;;  %v15533_v44 = vld [vmem:[#allocation6 + $0x2e0] ss:$16 sps:$4 sm:$0xff]  }
 0x64c   :  { %11321 = vmatprep.subr.bf16.mxu0 %v15016_v57  ;;  %11362 = vmatprep.subr.bf16.mxu1 %v15144_v11  ;;  %v15538_v9 = vld [vmem:[#allocation6 + $0xc4] ss:$16 sps:$4 sm:$0xff]   ;;  %v15536_v32 = vld [vmem:[#allocation6 + $0xc0] ss:$16 sps:$4 sm:$0xff]  }
 0x64d   :  { %v15541_v12 = vld [vmem:[#allocation6 + $0x2c4] ss:$16 sps:$4 sm:$0xff]   ;;  %v15539_v60 = vld [vmem:[#allocation6 + $0x2c0] ss:$16 sps:$4 sm:$0xff]  }
 0x64e   :  { %v15544_v4 = vld [vmem:[#allocation6 + $0xa4] ss:$16 sps:$4 sm:$0xff]   ;;  %v15542_v5 = vld [vmem:[#allocation6 + $0xa0] ss:$16 sps:$4 sm:$0xff]  }
 0x64f   :  { %11322 = vmatpush2.bf16.msra.mxu0 %v15015_v47  ;;  %11363 = vmatpush2.bf16.msra.mxu1 %v15143_v21  ;;  %v15545_v22 = vld [vmem:[#allocation6 + $0x2a0] ss:$16 sps:$4 sm:$0xff]   ;;  %v15550_v41 = vld [vmem:[#allocation6 + $0x84] ss:$16 sps:$4 sm:$0xff]  }
 0x650   :  { %11323 = vmatprep.subr.bf16.mxu0 %v15008_v18  ;;  %11364 = vmatprep.subr.bf16.mxu1 %v15136_v56  ;;  %v15553_v31 = vld [vmem:[#allocation6 + $0x284] ss:$16 sps:$4 sm:$0xff]   ;;  %v15551_v33 = vld [vmem:[#allocation6 + $0x280] ss:$16 sps:$4 sm:$0xff]  }
 0x651   :  { %v15556_v42 = vld [vmem:[#allocation6 + $0x64] ss:$16 sps:$4 sm:$0xff]   ;;  %v15554_v19 = vld [vmem:[#allocation6 + $0x60] ss:$16 sps:$4 sm:$0xff]  }
 0x652   :  { %v15559_v8 = vld [vmem:[#allocation6 + $0x264] ss:$16 sps:$4 sm:$0xff]   ;;  %v15557_v57 = vld [vmem:[#allocation6 + $0x260] ss:$16 sps:$4 sm:$0xff]  }
 0x653   :  { %11324 = vmatpush2.bf16.msra.mxu0 %v15007_v58  ;;  %11365 = vmatpush2.bf16.msra.mxu1 %v15135_v16  ;;  %v15562_v11 = vld [vmem:[#allocation6 + $0x44] ss:$16 sps:$4 sm:$0xff]   ;;  %v15560_v17 = vld [vmem:[#allocation6 + $0x40] ss:$16 sps:$4 sm:$0xff]  }
 0x654   :  { %11325 = vmatprep.subr.bf16.mxu0 %v15000_v52  ;;  %11366 = vmatprep.subr.bf16.mxu1 %v15128_v0  ;;  %v15565_v30 = vld [vmem:[#allocation6 + $0x244] ss:$16 sps:$4 sm:$0xff]   ;;  %v15563_v24 = vld [vmem:[#allocation6 + $0x240] ss:$16 sps:$4 sm:$0xff]  }
 0x655   :  { %v15568_v36 = vld [vmem:[#allocation6 + $0x24] ss:$16 sps:$4 sm:$0xff]   ;;  %v15566_v21 = vld [vmem:[#allocation6 + $0x20] ss:$16 sps:$4 sm:$0xff]  }
 0x656   :  { %v15571_v47 = vld [vmem:[#allocation6 + $0x224] ss:$16 sps:$4 sm:$0xff]   ;;  %v15569_v18 = vld [vmem:[#allocation6 + $0x220] ss:$16 sps:$4 sm:$0xff]  }
 0x657   :  { %11326 = vmatpush2.bf16.msra.mxu0 %v14999_v40  ;;  %11367 = vmatpush2.bf16.msra.mxu1 %v15127_v48  ;;  %v15574_v56 = vld [vmem:[#allocation6 + $0x4] ss:$16 sps:$4 sm:$0xff]   ;;  %v15572_v25 = vld [vmem:[#allocation6] ss:$16 sps:$4 sm:$0xff]  }
 0x658   :  { %12951 = vmatprep.subr.bf16.mxu0 %v15532_v3  ;;  %12992 = vmatprep.subr.bf16.mxu1 %v15535_v38  ;;  %v15577_v29 = vld [vmem:[#allocation6 + $0x204] ss:$16 sps:$4 sm:$0xff]   ;;  %v15575_v27 = vld [vmem:[#allocation6 + $0x200] ss:$16 sps:$4 sm:$0xff]  }
 0x659   :  { %v15580_v39 = vld [vmem:[#allocation6 + $0x1e4] ss:$16 sps:$4 sm:$0xff]   ;;  %v15578_v16 = vld [vmem:[#allocation6 + $0x1e0] ss:$16 sps:$4 sm:$0xff]  }
 0x65a   :  { %v11083_v63 = vpop.f32.mrf.mxu0  ;;  %11328 = vmatmul.mubr.bf16.vlgmr.msra.gmra.mxu0 %v16307_v10  ;;  %v11124_v53 = vpop.f32.mrf.mxu1  ;;  %11369 = vmatmul.mubr.bf16.vlgmr.msra.gmra.mxu1 %v16309_v13  ;;  %v15583_v58 = vld [vmem:[#allocation6 + $0x3e4] ss:$16 sps:$4 sm:$0xff]   ;;  %v15581_v52 = vld [vmem:[#allocation6 + $0x3e0] ss:$16 sps:$4 sm:$0xff]  }
 0x65b   :  { %v11084_v23 = vadd.f32 %v11083_v63, %v16488_v50  ;;  %12952 = vmatpush1.bf16.msra.mxu0 %v15530_v7  ;;  %12983 = vmatprep.mubr.bf16.mxu0 %v16497_v59  ;;  %v15547_v50 = vld [vmem:[#allocation6 + $0x2a4] ss:$16 sps:$4 sm:$0xff]   ;;  %v15584_v48 = vld [vmem:[#allocation6 + $0x1c0] ss:$16 sps:$4 sm:$0xff]  }
 0x65c   :  { %12993 = vmatpush1.bf16.msra.mxu1 %v15533_v44  ;;  %v11085_v49 = vpop.f32.mrf.mxu0  ;;  %13024 = vmatprep.mubr.bf16.mxu1 %v16500_v2  ;;  %v11126_v51 = vpop.f32.mrf.mxu1  ;;  %v15586_v0 = vld [vmem:[#allocation6 + $0x1c4] ss:$16 sps:$4 sm:$0xff]   ;;  %v15587_v3 = vld [vmem:[#allocation6 + $0x3c0] ss:$16 sps:$4 sm:$0xff]  }
 0x65d   :  { %v16505_v45 = vadd.f32 %v11124_v53, %v11084_v23  ;;  %v11086_v10 = vadd.f32 %v11085_v49, %v16493_v43  ;;  %12953 = vmatprep.subr.bf16.mxu0 %v15538_v9  ;;  %12994 = vmatprep.subr.bf16.mxu1 %v15541_v12  ;;  %v15548_v43 = vld [vmem:[#allocation6 + $0x80] ss:$16 sps:$4 sm:$0xff]   ;;  %v15589_v40 = vld [vmem:[#allocation6 + $0x3c4] ss:$16 sps:$4 sm:$0xff]  }
 0x65e   :  { %v11087_v28 = vpop.f32.mrf.mxu0  ;;  %v11128_v35 = vpop.f32.mrf.mxu1  ;;  %v15592_v38 = vld [vmem:[#allocation6 + $0x1a4] ss:$16 sps:$4 sm:$0xff]   ;;  %v15590_v20 = vld [vmem:[#allocation6 + $0x1a0] ss:$16 sps:$4 sm:$0xff]  }
 0x65f   :  { %v16509_v13 = vadd.f32 %v11126_v51, %v11086_v10  ;;  %12954 = vmatpush1.bf16.msra.mxu0 %v15536_v32  ;;  %v15595_v62 = vld [vmem:[#allocation6 + $0x3a4] ss:$16 sps:$4 sm:$0xff]   ;;  %v15593_v7 = vld [vmem:[#allocation6 + $0x3a0] ss:$16 sps:$4 sm:$0xff]  }
 0x660   :  { %12995 = vmatpush1.bf16.msra.mxu1 %v15539_v60  ;;  %v11088_v14 = vpop.f32.mrf.mxu0  ;;  %12955 = vmatprep.subr.bf16.mxu0 %v15544_v4  ;;  %v11129_v6 = vpop.f32.mrf.mxu1  ;;  %v15598_v44 = vld [vmem:[#allocation6 + $0x184] ss:$16 sps:$4 sm:$0xff]   ;;  %v15596_v63 = vld [vmem:[#allocation6 + $0x180] ss:$16 sps:$4 sm:$0xff]  }
 0x661   :  { %12996 = vmatprep.subr.bf16.mxu1 %v15547_v50  ;;  %v15601_v9 = vld [vmem:[#allocation6 + $0x384] ss:$16 sps:$4 sm:$0xff]   ;;  %v15599_v12 = vld [vmem:[#allocation6 + $0x380] ss:$16 sps:$4 sm:$0xff]   ;;  %v11377_v6 = vmax.f32 %v16344_v34, 0.0 }
 0x662   :  { %v15604_v23 = vld [vmem:[#allocation6 + $0x164] ss:$16 sps:$4 sm:$0xff]   ;;  %v15602_v32 = vld [vmem:[#allocation6 + $0x160] ss:$16 sps:$4 sm:$0xff]  }
 0x663   :  { %12956 = vmatpush1.bf16.msra.mxu0 %v15542_v5  ;;  %v15607_v53 = vld [vmem:[#allocation6 + $0x364] ss:$16 sps:$4 sm:$0xff]   ;;  %v15605_v49 = vld [vmem:[#allocation6 + $0x360] ss:$16 sps:$4 sm:$0xff]  }
 0x664   :  { %12997 = vmatpush1.bf16.msra.mxu1 %v15545_v22  ;;  %12957 = vmatprep.subr.bf16.mxu0 %v15550_v41  ;;  %v15610_v60 = vld [vmem:[#allocation6 + $0x144] ss:$16 sps:$4 sm:$0xff]   ;;  %v15608_v10 = vld [vmem:[#allocation6 + $0x140] ss:$16 sps:$4 sm:$0xff]  }
 0x665   :  { %12998 = vmatprep.subr.bf16.mxu1 %v15553_v31  ;;  %v15613_v4 = vld [vmem:[#allocation6 + $0x344] ss:$16 sps:$4 sm:$0xff]   ;;  %v15611_v51 = vld [vmem:[#allocation6 + $0x340] ss:$16 sps:$4 sm:$0xff]  }
 0x666   :  { %v15616_v50 = vld [vmem:[#allocation6 + $0x124] ss:$16 sps:$4 sm:$0xff]   ;;  %v15614_v35 = vld [vmem:[#allocation6 + $0x120] ss:$16 sps:$4 sm:$0xff]  }
 0x667   :  { %12958 = vmatpush1.bf16.msra.mxu0 %v15548_v43  ;;  %v15619_v28 = vld [vmem:[#allocation6 + $0x324] ss:$16 sps:$4 sm:$0xff]   ;;  %v15617_v5 = vld [vmem:[#allocation6 + $0x320] ss:$16 sps:$4 sm:$0xff]  }
 0x668   :  { %12999 = vmatpush1.bf16.msra.mxu1 %v15551_v33  ;;  %12959 = vmatprep.subr.bf16.mxu0 %v15556_v42  ;;  %v15622_v14 = vld [vmem:[#allocation6 + $0x104] ss:$16 sps:$4 sm:$0xff]   ;;  %v15620_v41 = vld [vmem:[#allocation6 + $0x100] ss:$16 sps:$4 sm:$0xff]   ;;  %v11379_v33 = vmax.f32 %v16408_v15, 0.0 }
 0x669   :  { %13000 = vmatprep.subr.bf16.mxu1 %v15559_v8  ;;  %v15625_v22 = vld [vmem:[#allocation6 + $0x304] ss:$16 sps:$4 sm:$0xff]   ;;  %v15623_v31 = vld [vmem:[#allocation6 + $0x300] ss:$16 sps:$4 sm:$0xff]   ;;  %v11382_v8 = vmax.f32 %v16473_v1, 0.0 }
 0x66a   :  { %v15628_v43 = vld [vmem:[#allocation6 + $0x4e4] ss:$16 sps:$4 sm:$0xff]   ;;  %v15683_v34 = vld [vmem:[#allocation6 + $0x6e0] ss:$16 sps:$4 sm:$0xff]  }
 0x66b   :  { %12960 = vmatpush1.bf16.msra.mxu0 %v15554_v19  ;;  %v15685_v42 = vld [vmem:[#allocation6 + $0x6e4] ss:$16 sps:$4 sm:$0xff]   ;;  %v15626_v19 = vld [vmem:[#allocation6 + $0x4e0] ss:$16 sps:$4 sm:$0xff]  }
 0x66c   :  { %13001 = vmatpush1.bf16.msra.mxu1 %v15557_v57  ;;  %12961 = vmatprep.subr.bf16.mxu0 %v15562_v11  ;;  %v16514_v57 = vpack.c.bf16 %v11377_v6, %v11377_v6  ;;  %v15631_v11 = vld [vmem:[#allocation6 + $0x4c4] ss:$16 sps:$4 sm:$0xff]  }
 0x66d   :  { %13002 = vmatprep.subr.bf16.mxu1 %v15565_v30  ;;  %v16516_v30 = vpack.c.bf16 %v11379_v33, %v11379_v33  ;;  %v15691_v15 = vld [vmem:[#allocation6 + $0x6c4] ss:$16 sps:$4 sm:$0xff]   ;;  %v15737_v33 = vld [vmem:[#allocation6 + $0x7c0] ss:$16 sps:$4 sm:$0xff]  }
 0x66e   :  { %v15739_v6 = vld [vmem:[#allocation6 + $0x7c4] ss:$16 sps:$4 sm:$0xff]  }
 0x66f   :  { %12962 = vmatpush1.bf16.msra.mxu0 %v15560_v17  ;;  %v16518_v17 = vpack.c.bf16 %v11382_v8, %v11382_v8  ;;  %v15656_v8 = vld [vmem:[#allocation6 + $0x5a0] ss:$16 sps:$4 sm:$0xff]  }
 0x670   :  { %13003 = vmatpush1.bf16.msra.mxu1 %v15563_v24  ;;  %12963 = vmatprep.subr.bf16.mxu0 %v15568_v36 }
 0x671   :  { %13004 = vmatprep.subr.bf16.mxu1 %v15571_v47  ;;  %v15629_v47 = vld [vmem:[#allocation6 + $0x4c0] ss:$16 sps:$4 sm:$0xff]  }
 0x673   :  { %12964 = vmatpush1.bf16.msra.mxu0 %v15566_v21 }
 0x674   :  { %13005 = vmatpush1.bf16.msra.mxu1 %v15569_v18  ;;  %12965 = vmatprep.subr.bf16.mxu0 %v15574_v56  ;;  %v15634_v18 = vld [vmem:[#allocation6 + $0x4a4] ss:$16 sps:$4 sm:$0xff]  }
 0x675   :  { %13006 = vmatprep.subr.bf16.mxu1 %v15577_v29 }
 0x677   :  { %12966 = vmatpush1.bf16.msra.mxu0 %v15572_v25 }
 0x678   :  { %13007 = vmatpush1.bf16.msra.mxu1 %v15575_v27  ;;  %12967 = vmatprep.subr.bf16.mxu0 %v15580_v39  ;;  %v15689_v27 = vld [vmem:[#allocation6 + $0x6c0] ss:$16 sps:$4 sm:$0xff]  }
 0x679   :  { %13008 = vmatprep.subr.bf16.mxu1 %v15583_v58 }
 0x67b   :  { %12968 = vmatpush2.bf16.msra.mxu0 %v15578_v16 }
 0x67c   :  { %13009 = vmatpush2.bf16.msra.mxu1 %v15581_v52  ;;  %12969 = vmatprep.subr.bf16.mxu0 %v15586_v0  ;;  %v15632_v52 = vld [vmem:[#allocation6 + $0x4a0] ss:$16 sps:$4 sm:$0xff]  }
 0x67d   :  { %13010 = vmatprep.subr.bf16.mxu1 %v15589_v40  ;;  %v15637_v40 = vld [vmem:[#allocation6 + $0x484] ss:$16 sps:$4 sm:$0xff]  }
 0x67f   :  { %12970 = vmatpush2.bf16.msra.mxu0 %v15584_v48 }
 0x680   :  { %13011 = vmatpush2.bf16.msra.mxu1 %v15587_v3  ;;  %12971 = vmatprep.subr.bf16.mxu0 %v15592_v38  ;;  %v15695_v3 = vld [vmem:[#allocation6 + $0x6a0] ss:$16 sps:$4 sm:$0xff]   ;;  %v15703_v38 = vld [vmem:[#allocation6 + $0x684] ss:$16 sps:$4 sm:$0xff]  }
 0x681   :  { %13012 = vmatprep.subr.bf16.mxu1 %v15595_v62  ;;  %v15640_v62 = vld [vmem:[#allocation6 + $0x464] ss:$16 sps:$4 sm:$0xff]  }
 0x683   :  { %12972 = vmatpush2.bf16.msra.mxu0 %v15590_v20  ;;  %v15701_v20 = vld [vmem:[#allocation6 + $0x680] ss:$16 sps:$4 sm:$0xff]  }
 0x684   :  { %13013 = vmatpush2.bf16.msra.mxu1 %v15593_v7  ;;  %12973 = vmatprep.subr.bf16.mxu0 %v15598_v44  ;;  %v15709_v7 = vld [vmem:[#allocation6 + $0x664] ss:$16 sps:$4 sm:$0xff]   ;;  %v15638_v44 = vld [vmem:[#allocation6 + $0x460] ss:$16 sps:$4 sm:$0xff]  }
 0x685   :  { %13014 = vmatprep.subr.bf16.mxu1 %v15601_v9  ;;  %v15643_v9 = vld [vmem:[#allocation6 + $0x444] ss:$16 sps:$4 sm:$0xff]  }
 0x687   :  { %12974 = vmatpush2.bf16.msra.mxu0 %v15596_v63  ;;  %v15707_v63 = vld [vmem:[#allocation6 + $0x660] ss:$16 sps:$4 sm:$0xff]  }
 0x688   :  { %13015 = vmatpush2.bf16.msra.mxu1 %v15599_v12  ;;  %12975 = vmatprep.subr.bf16.mxu0 %v15604_v23  ;;  %v15715_v12 = vld [vmem:[#allocation6 + $0x644] ss:$16 sps:$4 sm:$0xff]   ;;  %v15641_v23 = vld [vmem:[#allocation6 + $0x440] ss:$16 sps:$4 sm:$0xff]  }
 0x689   :  { %13016 = vmatprep.subr.bf16.mxu1 %v15607_v53  ;;  %v15646_v53 = vld [vmem:[#allocation6 + $0x424] ss:$16 sps:$4 sm:$0xff]  }
 0x68b   :  { %12976 = vmatpush2.bf16.msra.mxu0 %v15602_v32  ;;  %v15713_v32 = vld [vmem:[#allocation6 + $0x640] ss:$16 sps:$4 sm:$0xff]  }
 0x68c   :  { %13017 = vmatpush2.bf16.msra.mxu1 %v15605_v49  ;;  %12977 = vmatprep.subr.bf16.mxu0 %v15610_v60  ;;  %v15721_v49 = vld [vmem:[#allocation6 + $0x624] ss:$16 sps:$4 sm:$0xff]   ;;  %v15644_v60 = vld [vmem:[#allocation6 + $0x420] ss:$16 sps:$4 sm:$0xff]  }
 0x68d   :  { %13018 = vmatprep.subr.bf16.mxu1 %v15613_v4  ;;  %v15649_v4 = vld [vmem:[#allocation6 + $0x404] ss:$16 sps:$4 sm:$0xff]  }
 0x68f   :  { %12978 = vmatpush2.bf16.msra.mxu0 %v15608_v10  ;;  %v15719_v10 = vld [vmem:[#allocation6 + $0x620] ss:$16 sps:$4 sm:$0xff]  }
 0x690   :  { %13019 = vmatpush2.bf16.msra.mxu1 %v15611_v51  ;;  %12979 = vmatprep.subr.bf16.mxu0 %v15616_v50  ;;  %v15727_v51 = vld [vmem:[#allocation6 + $0x604] ss:$16 sps:$4 sm:$0xff]   ;;  %v15647_v50 = vld [vmem:[#allocation6 + $0x400] ss:$16 sps:$4 sm:$0xff]  }
 0x691   :  { %13020 = vmatprep.subr.bf16.mxu1 %v15619_v28  ;;  %v15652_v28 = vld [vmem:[#allocation6 + $0x5e4] ss:$16 sps:$4 sm:$0xff]  }
 0x693   :  { %12980 = vmatpush2.bf16.msra.mxu0 %v15614_v35  ;;  %v15725_v35 = vld [vmem:[#allocation6 + $0x600] ss:$16 sps:$4 sm:$0xff]  }
 0x694   :  { %13021 = vmatpush2.bf16.msra.mxu1 %v15617_v5  ;;  %12981 = vmatprep.subr.bf16.mxu0 %v15622_v14  ;;  %v15733_v5 = vld [vmem:[#allocation6 + $0x7e4] ss:$16 sps:$4 sm:$0xff]   ;;  %v15650_v14 = vld [vmem:[#allocation6 + $0x5e0] ss:$16 sps:$4 sm:$0xff]  }
 0x695   :  { %13022 = vmatprep.subr.bf16.mxu1 %v15625_v22  ;;  %v15655_v22 = vld [vmem:[#allocation6 + $0x5c4] ss:$16 sps:$4 sm:$0xff]  }
 0x697   :  { %12982 = vmatpush2.bf16.msra.mxu0 %v15620_v41  ;;  %v15731_v41 = vld [vmem:[#allocation6 + $0x7e0] ss:$16 sps:$4 sm:$0xff]  }
 0x698   :  { %13023 = vmatpush2.bf16.msra.mxu1 %v15623_v31  ;;  %13033 = vmatprep.subr.bf16.mxu0 %v15628_v43  ;;  %v15653_v31 = vld [vmem:[#allocation6 + $0x5c0] ss:$16 sps:$4 sm:$0xff]   ;;  %v15658_v43 = vld [vmem:[#allocation6 + $0x5a4] ss:$16 sps:$4 sm:$0xff]  }
 0x699   :  { %13074 = vmatprep.subr.bf16.mxu1 %v15685_v42  ;;  %v15745_v42 = vld [vmem:[#allocation6 + $0x7a4] ss:$16 sps:$4 sm:$0xff]  }
 0x69a   :  { %v11165_v24 = vpop.f32.mrf.mxu0  ;;  %12984 = vmatmul.mubr.bf16.vlgmr.msra.gmra.mxu0 %v16514_v57  ;;  %v11206_v1 = vpop.f32.mrf.mxu1 }
 0x69b   :  { %v11166_v36 = vadd.f32 %v11165_v24, %v16505_v45  ;;  %13025 = vmatmul.mubr.bf16.vlgmr.msra.gmra.mxu1 %v16516_v30  ;;  %13034 = vmatpush1.bf16.msra.mxu0 %v15626_v19  ;;  %v15697_v45 = vld [vmem:[#allocation6 + $0x6a4] ss:$16 sps:$4 sm:$0xff]   ;;  %v15659_v24 = vld [vmem:[#allocation6 + $0x580] ss:$16 sps:$4 sm:$0xff]  }
 0x69c   :  { %13065 = vmatprep.mubr.bf16.mxu0 %v16518_v17  ;;  %v11167_v21 = vpop.f32.mrf.mxu0  ;;  %13035 = vmatprep.subr.bf16.mxu0 %v15631_v11  ;;  %v11208_v25 = vpop.f32.mrf.mxu1  ;;  %v15661_v19 = vld [vmem:[#allocation6 + $0x584] ss:$16 sps:$4 sm:$0xff]   ;;  %v15743_v11 = vld [vmem:[#allocation6 + $0x7a0] ss:$16 sps:$4 sm:$0xff]  }
 0x69d   :  { %v16524_v56 = vadd.f32 %v11206_v1, %v11166_v36  ;;  %v11168_v29 = vadd.f32 %v11167_v21, %v16509_v13  ;;  %13075 = vmatpush1.bf16.msra.mxu1 %v15683_v34  ;;  %v15635_v13 = vld [vmem:[#allocation6 + $0x480] ss:$16 sps:$4 sm:$0xff]   ;;  %v15751_v34 = vld [vmem:[#allocation6 + $0x784] ss:$16 sps:$4 sm:$0xff]  }
 0x69e   :  { %v11169_v39 = vpop.f32.mrf.mxu0  ;;  %13076 = vmatprep.subr.bf16.mxu1 %v15691_v15  ;;  %v11210_v16 = vpop.f32.mrf.mxu1  ;;  %v15664_v15 = vld [vmem:[#allocation6 + $0x564] ss:$16 sps:$4 sm:$0xff]   ;;  %v15749_v36 = vld [vmem:[#allocation6 + $0x780] ss:$16 sps:$4 sm:$0xff]  }
 0x69f   :  { %v16527_v58 = vadd.f32 %v11208_v25, %v11168_v29  ;;  %13036 = vmatpush1.bf16.msra.mxu0 %v15629_v47  ;;  %v15757_v1 = vld [vmem:[#allocation6 + $0x764] ss:$16 sps:$4 sm:$0xff]   ;;  %v15662_v47 = vld [vmem:[#allocation6 + $0x560] ss:$16 sps:$4 sm:$0xff]  }
 0x6a0   :  { %v11170_v0 = vpop.f32.mrf.mxu0  ;;  %13037 = vmatprep.subr.bf16.mxu0 %v15634_v18  ;;  %v11211_v48 = vpop.f32.mrf.mxu1  ;;  %v15667_v21 = vld [vmem:[#allocation6 + $0x544] ss:$16 sps:$4 sm:$0xff]   ;;  %v15755_v18 = vld [vmem:[#allocation6 + $0x760] ss:$16 sps:$4 sm:$0xff]  }
 0x6a1   :  { %13077 = vmatpush1.bf16.msra.mxu1 %v15689_v27  ;;  %v15763_v29 = vld [vmem:[#allocation6 + $0x744] ss:$16 sps:$4 sm:$0xff]   ;;  %v15665_v25 = vld [vmem:[#allocation6 + $0x540] ss:$16 sps:$4 sm:$0xff]  }
 0x6a2   :  { %13078 = vmatprep.subr.bf16.mxu1 %v15697_v45  ;;  %v15670_v27 = vld [vmem:[#allocation6 + $0x524] ss:$16 sps:$4 sm:$0xff]   ;;  %v15761_v39 = vld [vmem:[#allocation6 + $0x740] ss:$16 sps:$4 sm:$0xff]  }
 0x6a3   :  { %13038 = vmatpush1.bf16.msra.mxu0 %v15632_v52  ;;  %v15769_v45 = vld [vmem:[#allocation6 + $0x724] ss:$16 sps:$4 sm:$0xff]   ;;  %v15668_v16 = vld [vmem:[#allocation6 + $0x520] ss:$16 sps:$4 sm:$0xff]  }
 0x6a4   :  { %13039 = vmatprep.subr.bf16.mxu0 %v15637_v40  ;;  %v15673_v52 = vld [vmem:[#allocation6 + $0x504] ss:$16 sps:$4 sm:$0xff]   ;;  %v15767_v0 = vld [vmem:[#allocation6 + $0x720] ss:$16 sps:$4 sm:$0xff]  }
 0x6a5   :  { %13079 = vmatpush1.bf16.msra.mxu1 %v15695_v3  ;;  %v15775_v40 = vld [vmem:[#allocation6 + $0x704] ss:$16 sps:$4 sm:$0xff]   ;;  %v15671_v48 = vld [vmem:[#allocation6 + $0x500] ss:$16 sps:$4 sm:$0xff]   ;;  %v11381_v3 = vmax.f32 %v16468_v55, 0.0 }
 0x6a6   :  { %13080 = vmatprep.subr.bf16.mxu1 %v15703_v38  ;;  %v15676_v38 = vld [vmem:[#allocation6 + $0xec] ss:$16 sps:$4 sm:$0xff]  }
 0x6a7   :  { %13040 = vmatpush1.bf16.msra.mxu0 %v15635_v13  ;;  %v15773_v13 = vld [vmem:[#allocation6 + $0x700] ss:$16 sps:$4 sm:$0xff]  }
 0x6a8   :  { %13041 = vmatprep.subr.bf16.mxu0 %v15640_v62  ;;  %v15781_v62 = vld [vmem:[#allocation6 + $0x2ec] ss:$16 sps:$4 sm:$0xff]  }
 0x6a9   :  { %13081 = vmatpush1.bf16.msra.mxu1 %v15701_v20  ;;  %v15674_v20 = vld [vmem:[#allocation6 + $0xe8] ss:$16 sps:$4 sm:$0xff]  }
 0x6aa   :  { %13082 = vmatprep.subr.bf16.mxu1 %v15709_v7  ;;  %v16530_v7 = vpack.c.bf16 %v11381_v3, %v11381_v3  ;;  %v15770_v3 = vld [vmem:[#allocation6 + $0x4c8] ss:$16 sps:$4 sm:$0xff]  }
 0x6ab   :  { %13042 = vmatpush1.bf16.msra.mxu0 %v15638_v44  ;;  %v15679_v44 = vld [vmem:[#allocation6 + $0xcc] ss:$16 sps:$4 sm:$0xff]  }
 0x6ac   :  { %13043 = vmatprep.subr.bf16.mxu0 %v15643_v9 }
 0x6ad   :  { %13083 = vmatpush1.bf16.msra.mxu1 %v15707_v63 }
 0x6ae   :  { %13084 = vmatprep.subr.bf16.mxu1 %v15715_v12  ;;  %v15677_v12 = vld [vmem:[#allocation6 + $0xc8] ss:$16 sps:$4 sm:$0xff]  }
 0x6af   :  { %13044 = vmatpush1.bf16.msra.mxu0 %v15641_v23 }
 0x6b0   :  { %13045 = vmatprep.subr.bf16.mxu0 %v15646_v53  ;;  %v15682_v53 = vld [vmem:[#allocation6 + $0xac] ss:$16 sps:$4 sm:$0xff]  }
 0x6b1   :  { %13085 = vmatpush1.bf16.msra.mxu1 %v15713_v32 }
 0x6b2   :  { %13086 = vmatprep.subr.bf16.mxu1 %v15721_v49 }
 0x6b3   :  { %13046 = vmatpush1.bf16.msra.mxu0 %v15644_v60 }
 0x6b4   :  { %13047 = vmatprep.subr.bf16.mxu0 %v15649_v4 }
 0x6b5   :  { %13087 = vmatpush1.bf16.msra.mxu1 %v15719_v10  ;;  %v15680_v10 = vld [vmem:[#allocation6 + $0xa8] ss:$16 sps:$4 sm:$0xff]  }
 0x6b6   :  { %13088 = vmatprep.subr.bf16.mxu1 %v15727_v51 }
 0x6b7   :  { %13048 = vmatpush1.bf16.msra.mxu0 %v15647_v50 }
 0x6b8   :  { %13049 = vmatprep.subr.bf16.mxu0 %v15652_v28  ;;  %v15686_v28 = vld [vmem:[#allocation6 + $0x88] ss:$16 sps:$4 sm:$0xff]  }
 0x6b9   :  { %13089 = vmatpush1.bf16.msra.mxu1 %v15725_v35  ;;  %v15692_v35 = vld [vmem:[#allocation6 + $0x68] ss:$16 sps:$4 sm:$0xff]  }
 0x6ba   :  { %13090 = vmatprep.subr.bf16.mxu1 %v15733_v5  ;;  %v15700_v5 = vld [vmem:[#allocation6 + $0x4c] ss:$16 sps:$4 sm:$0xff]  }
 0x6bb   :  { %13050 = vmatpush2.bf16.msra.mxu0 %v15650_v14  ;;  %v15698_v14 = vld [vmem:[#allocation6 + $0x48] ss:$16 sps:$4 sm:$0xff]  }
 0x6bc   :  { %13051 = vmatprep.subr.bf16.mxu0 %v15655_v22  ;;  %v15706_v22 = vld [vmem:[#allocation6 + $0x2c] ss:$16 sps:$4 sm:$0xff]  }
 0x6bd   :  { %13091 = vmatpush2.bf16.msra.mxu1 %v15731_v41  ;;  %v15704_v41 = vld [vmem:[#allocation6 + $0x28] ss:$16 sps:$4 sm:$0xff]  }
 0x6be   :  { %13092 = vmatprep.subr.bf16.mxu1 %v15739_v6  ;;  %v15712_v6 = vld [vmem:[#allocation6 + $0xc] ss:$16 sps:$4 sm:$0xff]  }
 0x6bf   :  { %13052 = vmatpush2.bf16.msra.mxu0 %v15653_v31  ;;  %v15710_v31 = vld [vmem:[#allocation6 + $0x8] ss:$16 sps:$4 sm:$0xff]  }
 0x6c0   :  { %13053 = vmatprep.subr.bf16.mxu0 %v15658_v43  ;;  %v15718_v43 = vld [vmem:[#allocation6 + $0x1ec] ss:$16 sps:$4 sm:$0xff]  }
 0x6c1   :  { %13093 = vmatpush2.bf16.msra.mxu1 %v15737_v33  ;;  %v15716_v33 = vld [vmem:[#allocation6 + $0x1e8] ss:$16 sps:$4 sm:$0xff]  }
 0x6c2   :  { %13094 = vmatprep.subr.bf16.mxu1 %v15745_v42  ;;  %v15724_v42 = vld [vmem:[#allocation6 + $0x1cc] ss:$16 sps:$4 sm:$0xff]  }
 0x6c3   :  { %13054 = vmatpush2.bf16.msra.mxu0 %v15656_v8  ;;  %v15722_v8 = vld [vmem:[#allocation6 + $0x1c8] ss:$16 sps:$4 sm:$0xff]  }
 0x6c4   :  { %13055 = vmatprep.subr.bf16.mxu0 %v15661_v19  ;;  %v15730_v19 = vld [vmem:[#allocation6 + $0x1ac] ss:$16 sps:$4 sm:$0xff]  }
 0x6c5   :  { %13095 = vmatpush2.bf16.msra.mxu1 %v15743_v11  ;;  %v15728_v11 = vld [vmem:[#allocation6 + $0x1a8] ss:$16 sps:$4 sm:$0xff]  }
 0x6c6   :  { %13096 = vmatprep.subr.bf16.mxu1 %v15751_v34  ;;  %v15736_v34 = vld [vmem:[#allocation6 + $0x18c] ss:$16 sps:$4 sm:$0xff]  }
 0x6c7   :  { %13056 = vmatpush2.bf16.msra.mxu0 %v15659_v24  ;;  %v15734_v24 = vld [vmem:[#allocation6 + $0x188] ss:$16 sps:$4 sm:$0xff]  }
 0x6c8   :  { %13057 = vmatprep.subr.bf16.mxu0 %v15664_v15  ;;  %v15742_v15 = vld [vmem:[#allocation6 + $0x16c] ss:$16 sps:$4 sm:$0xff]  }
 0x6c9   :  { %13097 = vmatpush2.bf16.msra.mxu1 %v15749_v36  ;;  %v15740_v36 = vld [vmem:[#allocation6 + $0x168] ss:$16 sps:$4 sm:$0xff]  }
 0x6ca   :  { %13098 = vmatprep.subr.bf16.mxu1 %v15757_v1  ;;  %v15748_v1 = vld [vmem:[#allocation6 + $0x14c] ss:$16 sps:$4 sm:$0xff]  }
 0x6cb   :  { %13058 = vmatpush2.bf16.msra.mxu0 %v15662_v47  ;;  %v15746_v47 = vld [vmem:[#allocation6 + $0x148] ss:$16 sps:$4 sm:$0xff]  }
 0x6cc   :  { %13059 = vmatprep.subr.bf16.mxu0 %v15667_v21  ;;  %v15754_v21 = vld [vmem:[#allocation6 + $0x12c] ss:$16 sps:$4 sm:$0xff]  }
 0x6cd   :  { %13099 = vmatpush2.bf16.msra.mxu1 %v15755_v18  ;;  %v15752_v18 = vld [vmem:[#allocation6 + $0x128] ss:$16 sps:$4 sm:$0xff]  }
 0x6ce   :  { %13100 = vmatprep.subr.bf16.mxu1 %v15763_v29  ;;  %v15760_v29 = vld [vmem:[#allocation6 + $0x10c] ss:$16 sps:$4 sm:$0xff]  }
 0x6cf   :  { %13060 = vmatpush2.bf16.msra.mxu0 %v15665_v25  ;;  %v15758_v25 = vld [vmem:[#allocation6 + $0x108] ss:$16 sps:$4 sm:$0xff]  }
 0x6d0   :  { %13061 = vmatprep.subr.bf16.mxu0 %v15670_v27  ;;  %v15766_v27 = vld [vmem:[#allocation6 + $0x4ec] ss:$16 sps:$4 sm:$0xff]  }
 0x6d1   :  { %13101 = vmatpush2.bf16.msra.mxu1 %v15761_v39 }
 0x6d2   :  { %13102 = vmatprep.subr.bf16.mxu1 %v15769_v45  ;;  %v15764_v45 = vld [vmem:[#allocation6 + $0x4e8] ss:$16 sps:$4 sm:$0xff]  }
 0x6d3   :  { %13062 = vmatpush2.bf16.msra.mxu0 %v15668_v16  ;;  %v15772_v16 = vld [vmem:[#allocation6 + $0x4cc] ss:$16 sps:$4 sm:$0xff]  }
 0x6d4   :  { %13063 = vmatprep.subr.bf16.mxu0 %v15673_v52 }
 0x6d5   :  { %13103 = vmatpush2.bf16.msra.mxu1 %v15767_v0 }
 0x6d6   :  { %13104 = vmatprep.subr.bf16.mxu1 %v15775_v40 }
 0x6d7   :  { %13064 = vmatpush2.bf16.msra.mxu0 %v15671_v48 }
 0x6d8   :  { %13115 = vmatprep.subr.bf16.mxu0 %v15676_v38 }
 0x6d9   :  { %13105 = vmatpush2.bf16.msra.mxu1 %v15773_v13  ;;  %v15778_v13 = vld [vmem:[#allocation6 + $0x4ac] ss:$16 sps:$4 sm:$0xff]  }
 0x6da   :  { %v11247_v9 = vpop.f32.mrf.mxu0  ;;  %13066 = vmatmul.mubr.bf16.vlgmr.msra.gmra.mxu0 %v16530_v7  ;;  %13156 = vmatprep.subr.bf16.mxu1 %v15781_v62  ;;  %v11288_v55 = vpop.f32.mrf.mxu1 }
 0x6db   :  { %v11248_v63 = vadd.f32 %v11247_v9, %v16524_v56  ;;  %13116 = vmatpush1.bf16.msra.mxu0 %v15674_v20  ;;  %13147 = vmatprep.mubr.bf16.mxu0 %v16497_v59  ;;  %v15688_v56 = vld [vmem:[#allocation6 + $0x8c] ss:$16 sps:$4 sm:$0xff]  }
 0x6dc   :  { %v16535_v23 = vpop.f32.mrf.mxu0  ;;  %13117 = vmatprep.subr.bf16.mxu0 %v15679_v44  ;;  %v16539_v49 = vpop.f32.mrf.mxu1  ;;  %v15694_v59 = vld [vmem:[#allocation6 + $0x6c] ss:$16 sps:$4 sm:$0xff]  }
 0x6dd   :  { %v16537_v32 = vadd.f32 %v11288_v55, %v11248_v63  ;;  %v11250_v39 = vadd.f32 %v16535_v23, %v16527_v58  ;;  %v15784_v23 = vld [vmem:[#allocation6 + $0x48c] ss:$16 sps:$4 sm:$0xff]  }
 0x6de   :  { %v11251_v60 = vpop.f32.mrf.mxu0  ;;  %v11292_v4 = vpop.f32.mrf.mxu1 }
 0x6df   :  { %13118 = vmatpush1.bf16.msra.mxu0 %v15677_v12  ;;  %v11291_v0 = vadd.f32 %v16539_v49, %v11250_v39  ;;  %v15782_v4 = vld [vmem:[#allocation6 + $0x488] ss:$16 sps:$4 sm:$0xff]  }
 0x6e0   :  { %v11252_v51 = vpop.f32.mrf.mxu0  ;;  %13119 = vmatprep.subr.bf16.mxu0 %v15682_v53  ;;  %v11293_v50 = vpop.f32.mrf.mxu1  ;;  %v15830_v39 = vld [vmem:[#allocation6 + $0x588] ss:$16 sps:$4 sm:$0xff]  }
 0x6e1   :  { %v15790_v51 = vld [vmem:[#allocation6 + $0x46c] ss:$16 sps:$4 sm:$0xff]   ;;  %v15788_v50 = vld [vmem:[#allocation6 + $0x468] ss:$16 sps:$4 sm:$0xff]  }
 0x6e3   :  { %13120 = vmatpush1.bf16.msra.mxu0 %v15680_v10  ;;  %v15787_v10 = vld [vmem:[#allocation6 + $0x2cc] ss:$16 sps:$4 sm:$0xff]  }
 0x6e4   :  { %13121 = vmatprep.subr.bf16.mxu0 %v15688_v56  ;;  %v15785_v56 = vld [vmem:[#allocation6 + $0x2c8] ss:$16 sps:$4 sm:$0xff]  }
 0x6e7   :  { %13122 = vmatpush1.bf16.msra.mxu0 %v15686_v28  ;;  %v15793_v28 = vld [vmem:[#allocation6 + $0x2ac] ss:$16 sps:$4 sm:$0xff]  }
 0x6e8   :  { %13123 = vmatprep.subr.bf16.mxu0 %v15694_v59  ;;  %v15796_v59 = vld [vmem:[#allocation6 + $0x44c] ss:$16 sps:$4 sm:$0xff]  }
 0x6eb   :  { %13124 = vmatpush1.bf16.msra.mxu0 %v15692_v35  ;;  %v15791_v35 = vld [vmem:[#allocation6 + $0x2a8] ss:$16 sps:$4 sm:$0xff]  }
 0x6ec   :  { %13125 = vmatprep.subr.bf16.mxu0 %v15700_v5  ;;  %v15794_v5 = vld [vmem:[#allocation6 + $0x448] ss:$16 sps:$4 sm:$0xff]  }
 0x6ef   :  { %13126 = vmatpush1.bf16.msra.mxu0 %v15698_v14  ;;  %v15799_v14 = vld [vmem:[#allocation6 + $0x28c] ss:$16 sps:$4 sm:$0xff]  }
 0x6f0   :  { %13127 = vmatprep.subr.bf16.mxu0 %v15706_v22  ;;  %v15802_v22 = vld [vmem:[#allocation6 + $0x42c] ss:$16 sps:$4 sm:$0xff]  }
 0x6f3   :  { %13128 = vmatpush1.bf16.msra.mxu0 %v15704_v41  ;;  %v15797_v41 = vld [vmem:[#allocation6 + $0x288] ss:$16 sps:$4 sm:$0xff]  }
 0x6f4   :  { %13129 = vmatprep.subr.bf16.mxu0 %v15712_v6  ;;  %v15805_v6 = vld [vmem:[#allocation6 + $0x26c] ss:$16 sps:$4 sm:$0xff]  }
 0x6f7   :  { %13130 = vmatpush1.bf16.msra.mxu0 %v15710_v31  ;;  %v15808_v31 = vld [vmem:[#allocation6 + $0x40c] ss:$16 sps:$4 sm:$0xff]  }
 0x6f8   :  { %13131 = vmatprep.subr.bf16.mxu0 %v15718_v43  ;;  %v15803_v43 = vld [vmem:[#allocation6 + $0x268] ss:$16 sps:$4 sm:$0xff]  }
 0x6fb   :  { %13132 = vmatpush2.bf16.msra.mxu0 %v15716_v33  ;;  %v15806_v33 = vld [vmem:[#allocation6 + $0x408] ss:$16 sps:$4 sm:$0xff]  }
 0x6fc   :  { %13133 = vmatprep.subr.bf16.mxu0 %v15724_v42  ;;  %v15811_v42 = vld [vmem:[#allocation6 + $0x24c] ss:$16 sps:$4 sm:$0xff]  }
 0x6ff   :  { %13134 = vmatpush2.bf16.msra.mxu0 %v15722_v8  ;;  %v15814_v8 = vld [vmem:[#allocation6 + $0x5ec] ss:$16 sps:$4 sm:$0xff]  }
 0x700   :  { %13135 = vmatprep.subr.bf16.mxu0 %v15730_v19  ;;  %v15809_v19 = vld [vmem:[#allocation6 + $0x248] ss:$16 sps:$4 sm:$0xff]  }
 0x703   :  { %13136 = vmatpush2.bf16.msra.mxu0 %v15728_v11  ;;  %v15812_v11 = vld [vmem:[#allocation6 + $0x5e8] ss:$16 sps:$4 sm:$0xff]  }
 0x704   :  { %13137 = vmatprep.subr.bf16.mxu0 %v15736_v34  ;;  %v15817_v34 = vld [vmem:[#allocation6 + $0x22c] ss:$16 sps:$4 sm:$0xff]  }
 0x707   :  { %13138 = vmatpush2.bf16.msra.mxu0 %v15734_v24  ;;  %v15820_v24 = vld [vmem:[#allocation6 + $0x5cc] ss:$16 sps:$4 sm:$0xff]  }
 0x708   :  { %13139 = vmatprep.subr.bf16.mxu0 %v15742_v15  ;;  %v15815_v15 = vld [vmem:[#allocation6 + $0x228] ss:$16 sps:$4 sm:$0xff]  }
 0x70b   :  { %13140 = vmatpush2.bf16.msra.mxu0 %v15740_v36  ;;  %v15818_v36 = vld [vmem:[#allocation6 + $0x5c8] ss:$16 sps:$4 sm:$0xff]  }
 0x70c   :  { %13141 = vmatprep.subr.bf16.mxu0 %v15748_v1  ;;  %v15823_v1 = vld [vmem:[#allocation6 + $0x20c] ss:$16 sps:$4 sm:$0xff]  }
 0x70f   :  { %13142 = vmatpush2.bf16.msra.mxu0 %v15746_v47  ;;  %v15826_v47 = vld [vmem:[#allocation6 + $0x5ac] ss:$16 sps:$4 sm:$0xff]  }
 0x710   :  { %13143 = vmatprep.subr.bf16.mxu0 %v15754_v21  ;;  %v15821_v21 = vld [vmem:[#allocation6 + $0x208] ss:$16 sps:$4 sm:$0xff]  }
 0x713   :  { %13144 = vmatpush2.bf16.msra.mxu0 %v15752_v18  ;;  %v15824_v18 = vld [vmem:[#allocation6 + $0x5a8] ss:$16 sps:$4 sm:$0xff]  }
 0x714   :  { %13145 = vmatprep.subr.bf16.mxu0 %v15760_v29  ;;  %v15829_v29 = vld [vmem:[#allocation6 + $0x3ec] ss:$16 sps:$4 sm:$0xff]  }
 0x717   :  { %13146 = vmatpush2.bf16.msra.mxu0 %v15758_v25  ;;  %v15832_v25 = vld [vmem:[#allocation6 + $0x58c] ss:$16 sps:$4 sm:$0xff]  }
 0x718   :  { %13197 = vmatprep.subr.bf16.mxu0 %v15766_v27  ;;  %v15827_v27 = vld [vmem:[#allocation6 + $0x3e8] ss:$16 sps:$4 sm:$0xff]  }
 0x71a   :  { %v11329_v52 = vpop.f32.mrf.mxu0  ;;  %13148 = vmatmul.mubr.bf16.vlgmr.msra.gmra.mxu0 %v16514_v57  ;;  %v11370_v48 = vpop.f32.mrf.mxu1  ;;  %v15776_v57 = vld [vmem:[#allocation6 + $0x4a8] ss:$16 sps:$4 sm:$0xff]  }
 0x71b   :  { %v11330_v40 = vadd.f32 %v11329_v52, %v16537_v32  ;;  %13198 = vmatpush1.bf16.msra.mxu0 %v15764_v45  ;;  %13229 = vmatprep.mubr.bf16.mxu0 %v16518_v17  ;;  %v15779_v17 = vld [vmem:[#allocation6 + $0x2e8] ss:$16 sps:$4 sm:$0xff]   ;;  %v15835_v45 = vld [vmem:[#allocation6 + $0x3cc] ss:$16 sps:$4 sm:$0xff]  }
 0x71c   :  { %v11331_v38 = vpop.f32.mrf.mxu0  ;;  %13199 = vmatprep.subr.bf16.mxu0 %v15772_v16  ;;  %v11372_v20 = vpop.f32.mrf.mxu1  ;;  %v15838_v16 = vld [vmem:[#allocation6 + $0x56c] ss:$16 sps:$4 sm:$0xff]   ;;  %v15833_v52 = vld [vmem:[#allocation6 + $0x3c8] ss:$16 sps:$4 sm:$0xff]  }
 0x71d   :  { %v11371_v58 = vadd.f32 %v11370_v48, %v11330_v40  ;;  %v11332_v62 = vadd.f32 %v11331_v38, %v11291_v0  ;;  %v15836_v0 = vld [vmem:[#allocation6 + $0x568] ss:$16 sps:$4 sm:$0xff]   ;;  %v15841_v40 = vld [vmem:[#allocation6 + $0x3ac] ss:$16 sps:$4 sm:$0xff]  }
 0x71e   :  { %v11333_v44 = vpop.f32.mrf.mxu0  ;;  %v11374_v63 = vpop.f32.mrf.mxu1  ;;  %v15844_v48 = vld [vmem:[#allocation6 + $0x54c] ss:$16 sps:$4 sm:$0xff]   ;;  %v15842_v38 = vld [vmem:[#allocation6 + $0x548] ss:$16 sps:$4 sm:$0xff]  }
 0x71f   :  { %v11373_v9 = vadd.f32 %v11372_v20, %v11332_v62  ;;  %13200 = vmatpush1.bf16.msra.mxu0 %v15770_v3  ;;  %v11383_v55 = vmax.f32 %v11371_v58, 0.0  ;;  %v15839_v3 = vld [vmem:[#allocation6 + $0x3a8] ss:$16 sps:$4 sm:$0xff]   ;;  %v15850_v58 = vld [vmem:[#allocation6 + $0x52c] ss:$16 sps:$4 sm:$0xff]  }
 0x720   :  { %v11334_v12 = vpop.f32.mrf.mxu0  ;;  %13201 = vmatprep.subr.bf16.mxu0 %v15778_v13  ;;  %v11375_v32 = vpop.f32.mrf.mxu1  ;;  %v15847_v13 = vld [vmem:[#allocation6 + $0x38c] ss:$16 sps:$4 sm:$0xff]   ;;  %v15845_v62 = vld [vmem:[#allocation6 + $0x388] ss:$16 sps:$4 sm:$0xff]  }
 0x721   :  { %v11384_v53 = vmax.f32 %v11373_v9, 0.0  ;;  %v16549_v60 = vpack.c.bf16 %v11383_v55, %v11383_v55  ;;  %v15848_v20 = vld [vmem:[#allocation6 + $0x528] ss:$16 sps:$4 sm:$0xff]   ;;  %v15853_v44 = vld [vmem:[#allocation6 + $0x36c] ss:$16 sps:$4 sm:$0xff]  }
 0x722   :  { %v15856_v9 = vld [vmem:[#allocation6 + $0x50c] ss:$16 sps:$4 sm:$0xff]   ;;  %v15851_v63 = vld [vmem:[#allocation6 + $0x368] ss:$16 sps:$4 sm:$0xff]   ;;  %v16554_v12 = vld [vmem:[#allocation7] sm:$0xf] }
 0x723   :  { %v16547_v49 = vpack.c.bf16 %v11384_v53, %v11384_v53  ;;  %13202 = vmatpush1.bf16.msra.mxu0 %v15776_v57  ;;  %v15854_v57 = vld [vmem:[#allocation6 + $0x508] ss:$16 sps:$4 sm:$0xff]   ;;  %v15859_v55 = vld [vmem:[#allocation6 + $0x34c] ss:$16 sps:$4 sm:$0xff]   ;;  %v11654_v32 = vrot.slane %v16554_v12, %v1691_v37 }
 0x724   :  { %13203 = vmatprep.subr.bf16.mxu0 %v15784_v23  ;;  %v15914_v23 = vld [vmem:[#allocation9 + $0x78] sm:$0xff]   ;;  %v15857_v53 = vld [vmem:[#allocation6 + $0x348] ss:$16 sps:$4 sm:$0xff]  }
 0x725   :  { %13106 = vmatprep.mubr.bf16.mxu1 %v16547_v49  ;;  %v15865_v37 = vld [vmem:[#allocation6 + $0x30c] ss:$16 sps:$4 sm:$0xff]  }
 0x726   :  { %13107 = vmatmul.mubr.bf16.vlgmr.msra.gmra.mxu1 %v16549_v60 }
 0x727   :  { %13157 = vmatpush1.bf16.msra.mxu1 %v15779_v17  ;;  %13188 = vmatprep.mubr.bf16.mxu1 %v16500_v2  ;;  %v15800_v2 = vld [vmem:[#allocation6 + $0x428] ss:$16 sps:$4 sm:$0xff]   ;;  %v15862_v17 = vld [vmem:[#allocation6 + $0x32c] ss:$16 sps:$4 sm:$0xff]  }
 0x728   :  { %13204 = vmatpush1.bf16.msra.mxu0 %v15782_v4  ;;  %13158 = vmatprep.subr.bf16.mxu1 %v15787_v10  ;;  %v15915_v4 = vld [vmem:[#allocation9 + $0x38] sm:$0xff]   ;;  %v11658_v10 = vrot.slane %v16554_v12, %v1695_v46  ;;  %v15918_v46 = vld [vmem:[#allocation9 + $0x68] sm:$0xff]  }
 0x729   :  { %13205 = vmatprep.subr.bf16.mxu0 %v15790_v51  ;;  %v15916_v51 = vld [vmem:[#allocation9 + $0x70] sm:$0xff]  }
 0x72b   :  { %13159 = vmatpush1.bf16.msra.mxu1 %v15785_v56 }
 0x72c   :  { %13206 = vmatpush1.bf16.msra.mxu0 %v15788_v50  ;;  %13160 = vmatprep.subr.bf16.mxu1 %v15793_v28 }
 0x72d   :  { %13207 = vmatprep.subr.bf16.mxu0 %v15796_v59  ;;  %v15860_v59 = vld [vmem:[#allocation6 + $0x328] ss:$16 sps:$4 sm:$0xff]  }
 0x72f   :  { %13161 = vmatpush1.bf16.msra.mxu1 %v15791_v35 }
 0x730   :  { %13208 = vmatpush1.bf16.msra.mxu0 %v15794_v5  ;;  %13162 = vmatprep.subr.bf16.mxu1 %v15799_v14  ;;  %v15917_v5 = vld [vmem:[#allocation9 + $0x30] sm:$0xff]  }
 0x731   :  { %13209 = vmatprep.subr.bf16.mxu0 %v15802_v22 }
 0x733   :  { %13163 = vmatpush1.bf16.msra.mxu1 %v15797_v41 }
 0x734   :  { %13210 = vmatpush1.bf16.msra.mxu0 %v15800_v2  ;;  %13164 = vmatprep.subr.bf16.mxu1 %v15805_v6 }
 0x735   :  { %13211 = vmatprep.subr.bf16.mxu0 %v15808_v31 }
 0x737   :  { %13165 = vmatpush1.bf16.msra.mxu1 %v15803_v43  ;;  %v15863_v43 = vld [vmem:[#allocation6 + $0x308] ss:$16 sps:$4 sm:$0xff]  }
 0x738   :  { %13212 = vmatpush1.bf16.msra.mxu0 %v15806_v33  ;;  %13166 = vmatprep.subr.bf16.mxu1 %v15811_v42  ;;  %v15919_v42 = vld [vmem:[#allocation9 + $0x28] sm:$0xff]  }
 0x739   :  { %13213 = vmatprep.subr.bf16.mxu0 %v15814_v8 }
 0x73b   :  { %13167 = vmatpush1.bf16.msra.mxu1 %v15809_v19  ;;  %v15920_v19 = vld [vmem:[#allocation9 + $0x60] sm:$0xff]  }
 0x73c   :  { %13214 = vmatpush2.bf16.msra.mxu0 %v15812_v11  ;;  %13168 = vmatprep.subr.bf16.mxu1 %v15817_v34  ;;  %v15866_v11 = vld [vmem:[#allocation6 + $0x6e8] ss:$16 sps:$4 sm:$0xff]   ;;  %v15871_v34 = vld [vmem:[#allocation6 + $0x6cc] ss:$16 sps:$4 sm:$0xff]  }
 0x73d   :  { %13215 = vmatprep.subr.bf16.mxu0 %v15820_v24  ;;  %v15921_v24 = vld [vmem:[#allocation9 + $0x20] sm:$0xff]  }
 0x73f   :  { %13169 = vmatpush1.bf16.msra.mxu1 %v15815_v15  ;;  %v15922_v15 = vld [vmem:[#allocation9 + $0x58] sm:$0xff]  }
 0x740   :  { %13216 = vmatpush2.bf16.msra.mxu0 %v15818_v36  ;;  %13170 = vmatprep.subr.bf16.mxu1 %v15823_v1  ;;  %v15869_v36 = vld [vmem:[#allocation6 + $0x6c8] ss:$16 sps:$4 sm:$0xff]   ;;  %v15874_v1 = vld [vmem:[#allocation6 + $0x6ac] ss:$16 sps:$4 sm:$0xff]  }
 0x741   :  { %13217 = vmatprep.subr.bf16.mxu0 %v15826_v47  ;;  %v15923_v47 = vld [vmem:[#allocation9 + $0x18] sm:$0xff]  }
 0x743   :  { %13171 = vmatpush1.bf16.msra.mxu1 %v15821_v21  ;;  %v15924_v21 = vld [vmem:[#allocation9 + $0x50] sm:$0xff]  }
 0x744   :  { %13218 = vmatpush2.bf16.msra.mxu0 %v15824_v18  ;;  %13172 = vmatprep.subr.bf16.mxu1 %v15829_v29  ;;  %v15872_v18 = vld [vmem:[#allocation6 + $0x6a8] ss:$16 sps:$4 sm:$0xff]   ;;  %v15877_v29 = vld [vmem:[#allocation6 + $0x68c] ss:$16 sps:$4 sm:$0xff]  }
 0x745   :  { %13219 = vmatprep.subr.bf16.mxu0 %v15832_v25  ;;  %v15925_v25 = vld [vmem:[#allocation9 + $0x10] sm:$0xff]  }
 0x747   :  { %13173 = vmatpush2.bf16.msra.mxu1 %v15827_v27  ;;  %v15926_v27 = vld [vmem:[#allocation9 + $0x48] sm:$0xff]  }
 0x748   :  { %13220 = vmatpush2.bf16.msra.mxu0 %v15830_v39  ;;  %13174 = vmatprep.subr.bf16.mxu1 %v15835_v45  ;;  %v15880_v39 = vld [vmem:[#allocation6 + $0x66c] ss:$16 sps:$4 sm:$0xff]   ;;  %v15928_v45 = vld [vmem:[#allocation9 + $0x40] sm:$0xff]  }
 0x749   :  { %13221 = vmatprep.subr.bf16.mxu0 %v15838_v16  ;;  %v15878_v16 = vld [vmem:[#allocation6 + $0x668] ss:$16 sps:$4 sm:$0xff]  }
 0x74b   :  { %13175 = vmatpush2.bf16.msra.mxu1 %v15833_v52  ;;  %v15883_v52 = vld [vmem:[#allocation6 + $0x64c] ss:$16 sps:$4 sm:$0xff]  }
 0x74c   :  { %13222 = vmatpush2.bf16.msra.mxu0 %v15836_v0  ;;  %13176 = vmatprep.subr.bf16.mxu1 %v15841_v40  ;;  %v15929_v0 = vld [vmem:[#allocation9] sm:$0xff]  }
 0x74d   :  { %13223 = vmatprep.subr.bf16.mxu0 %v15844_v48  ;;  %v15881_v40 = vld [vmem:[#allocation6 + $0x648] ss:$16 sps:$4 sm:$0xff]   ;;  %v15886_v48 = vld [vmem:[#allocation6 + $0x62c] ss:$16 sps:$4 sm:$0xff]  }
 0x74f   :  { %13177 = vmatpush2.bf16.msra.mxu1 %v15839_v3  ;;  %v15884_v3 = vld [vmem:[#allocation6 + $0x628] ss:$16 sps:$4 sm:$0xff]  }
 0x750   :  { %13224 = vmatpush2.bf16.msra.mxu0 %v15842_v38  ;;  %13178 = vmatprep.subr.bf16.mxu1 %v15847_v13  ;;  %v15889_v38 = vld [vmem:[#allocation6 + $0x60c] ss:$16 sps:$4 sm:$0xff]   ;;  %v15887_v13 = vld [vmem:[#allocation6 + $0x608] ss:$16 sps:$4 sm:$0xff]  }
 0x751   :  { %13225 = vmatprep.subr.bf16.mxu0 %v15850_v58  ;;  %v15892_v58 = vld [vmem:[#allocation6 + $0x7ec] ss:$16 sps:$4 sm:$0xff]  }
 0x753   :  { %13179 = vmatpush2.bf16.msra.mxu1 %v15845_v62  ;;  %v15890_v62 = vld [vmem:[#allocation6 + $0x7e8] ss:$16 sps:$4 sm:$0xff]  }
 0x754   :  { %13226 = vmatpush2.bf16.msra.mxu0 %v15848_v20  ;;  %13180 = vmatprep.subr.bf16.mxu1 %v15853_v44  ;;  %v15895_v20 = vld [vmem:[#allocation6 + $0x7cc] ss:$16 sps:$4 sm:$0xff]   ;;  %v15893_v44 = vld [vmem:[#allocation6 + $0x7c8] ss:$16 sps:$4 sm:$0xff]  }
 0x755   :  { %13227 = vmatprep.subr.bf16.mxu0 %v15856_v9  ;;  %v15898_v9 = vld [vmem:[#allocation6 + $0x7ac] ss:$16 sps:$4 sm:$0xff]  }
 0x757   :  { %13181 = vmatpush2.bf16.msra.mxu1 %v15851_v63  ;;  %v15896_v63 = vld [vmem:[#allocation6 + $0x7a8] ss:$16 sps:$4 sm:$0xff]  }
 0x758   :  { %13228 = vmatpush2.bf16.msra.mxu0 %v15854_v57  ;;  %13182 = vmatprep.subr.bf16.mxu1 %v15859_v55  ;;  %v15901_v57 = vld [vmem:[#allocation6 + $0x78c] ss:$16 sps:$4 sm:$0xff]   ;;  %v15899_v55 = vld [vmem:[#allocation6 + $0x788] ss:$16 sps:$4 sm:$0xff]  }
 0x759   :  { %15474 = vmatprep.subr.bf16.mxu0 %v15914_v23  ;;  %v15904_v23 = vld [vmem:[#allocation6 + $0x76c] ss:$16 sps:$4 sm:$0xff]  }
 0x75a   :  { %v12985_v56 = vpop.f32.mrf.mxu0 }
 0x75b   :  { %v12986_v50 = vadd.f32 %v12985_v56, %v11654_v32  ;;  %v13026_v28 = vpop.f32.mrf.mxu1  ;;  %13183 = vmatpush2.bf16.msra.mxu1 %v15857_v53  ;;  %13230 = vmatmul.mubr.bf16.vlgmr.msra.gmra.mxu0 %v16530_v7  ;;  %v15868_v7 = vld [vmem:[#allocation6 + $0x6ec] ss:$16 sps:$4 sm:$0xff]   ;;  %v15902_v53 = vld [vmem:[#allocation6 + $0x768] ss:$16 sps:$4 sm:$0xff]  }
 0x75c   :  { %v12987_v35 = vpop.f32.mrf.mxu0  ;;  %13184 = vmatprep.subr.bf16.mxu1 %v15862_v17  ;;  %15475 = vmatpush3.bf16.msra.mxu0 %v15915_v4  ;;  %v15907_v32 = vld [vmem:[#allocation6 + $0x74c] ss:$16 sps:$4 sm:$0xff]   ;;  %v15905_v17 = vld [vmem:[#allocation6 + $0x748] ss:$16 sps:$4 sm:$0xff]  }
 0x75d   :  { %v16563_v14 = vadd.f32 %v13026_v28, %v12986_v50  ;;  %v12988_v22 = vadd.f32 %v12987_v35, %v11658_v10  ;;  %v13028_v41 = vpop.f32.mrf.mxu1  ;;  %15476 = vmatprep.subr.bf16.mxu0 %v15916_v51  ;;  %v15910_v4 = vld [vmem:[#allocation6 + $0x72c] ss:$16 sps:$4 sm:$0xff]   ;;  %v15908_v56 = vld [vmem:[#allocation6 + $0x728] ss:$16 sps:$4 sm:$0xff]  }
 0x75e   :  { %v12989_v2 = vpop.f32.mrf.mxu0  ;;  %v15913_v28 = vld [vmem:[#allocation6 + $0x70c] ss:$16 sps:$4 sm:$0xff]  }
 0x75f   :  { %v16565_v6 = vadd.f32 %v13028_v41, %v12988_v22  ;;  %v13030_v31 = vpop.f32.mrf.mxu1  ;;  %13185 = vmatpush2.bf16.msra.mxu1 %v15860_v59  ;;  %v15930_v22 = vld [vmem:[#allocation9 + $0xf8] sm:$0xff]   ;;  %v15934_v2 = vld [vmem:[#allocation9 + $0xe8] sm:$0xff]  }
 0x760   :  { %v12990_v33 = vpop.f32.mrf.mxu0  ;;  %13186 = vmatprep.subr.bf16.mxu1 %v15865_v37  ;;  %15477 = vmatpush3.bf16.msra.mxu0 %v15917_v5  ;;  %v15911_v37 = vld [vmem:[#allocation6 + $0x708] ss:$16 sps:$4 sm:$0xff]   ;;  %v15931_v41 = vld [vmem:[#allocation9 + $0xb8] sm:$0xff]   ;;  %v15935_v31 = vld [vmem:[#allocation9 + $0xa8] sm:$0xff]  }
 0x761   :  { %v13031_v8 = vpop.f32.mrf.mxu1  ;;  %15478 = vmatprep.subr.bf16.mxu0 %v15918_v46  ;;  %v15932_v46 = vld [vmem:[#allocation9 + $0xf0] sm:$0xff]   ;;  %v15938_v33 = vld [vmem:[#allocation9 + $0xd8] sm:$0xff]  }
 0x763   :  { %13187 = vmatpush2.bf16.msra.mxu1 %v15863_v43  ;;  %v15937_v43 = vld [vmem:[#allocation9 + $0xa0] sm:$0xff]  }
 0x764   :  { %13238 = vmatprep.subr.bf16.mxu1 %v15868_v7  ;;  %15479 = vmatpush3.bf16.msra.mxu0 %v15919_v42  ;;  %v15939_v7 = vld [vmem:[#allocation9 + $0x98] sm:$0xff]   ;;  %v15941_v42 = vld [vmem:[#allocation9 + $0x90] sm:$0xff]  }
 0x765   :  { %15480 = vmatprep.subr.bf16.mxu0 %v15920_v19 }
 0x766   :  { %13189 = vmatmul.mubr.bf16.vlgmr.msra.gmra.mxu1 %v16516_v30  ;;  %v15875_v30 = vld [vmem:[#allocation6 + $0x688] ss:$16 sps:$4 sm:$0xff]  }
 0x767   :  { %13239 = vmatpush1.bf16.msra.mxu1 %v15866_v11  ;;  %13270 = vmatprep.mubr.bf16.mxu1 %v16547_v49  ;;  %v15927_v49 = vld [vmem:[#allocation9 + $0x8] sm:$0xff]  }
 0x768   :  { %13240 = vmatprep.subr.bf16.mxu1 %v15871_v34  ;;  %15481 = vmatpush3.bf16.msra.mxu0 %v15921_v24 }
 0x769   :  { %15482 = vmatprep.subr.bf16.mxu0 %v15922_v15 }
 0x76b   :  { %13241 = vmatpush1.bf16.msra.mxu1 %v15869_v36  ;;  %v15942_v36 = vld [vmem:[#allocation9 + $0xc8] sm:$0xff]  }
 0x76c   :  { %13242 = vmatprep.subr.bf16.mxu1 %v15874_v1  ;;  %15483 = vmatpush3.bf16.msra.mxu0 %v15923_v47  ;;  %v15943_v47 = vld [vmem:[#allocation9 + $0x88] sm:$0xff]  }
 0x76d   :  { %15484 = vmatprep.subr.bf16.mxu0 %v15924_v21 }
 0x76f   :  { %13243 = vmatpush1.bf16.msra.mxu1 %v15872_v18 }
 0x770   :  { %13244 = vmatprep.subr.bf16.mxu1 %v15877_v29  ;;  %15485 = vmatpush3.bf16.msra.mxu0 %v15925_v25 }
 0x771   :  { %15486 = vmatprep.subr.bf16.mxu0 %v15926_v27  ;;  %v15944_v27 = vld [vmem:[#allocation9 + $0xc0] sm:$0xff]  }
 0x773   :  { %13245 = vmatpush1.bf16.msra.mxu1 %v15875_v30 }
 0x774   :  { %13246 = vmatprep.subr.bf16.mxu1 %v15880_v39  ;;  %15487 = vmatpush3.bf16.msra.mxu0 %v15927_v49  ;;  %v15945_v39 = vld [vmem:[#allocation9 + $0x80] sm:$0xff]  }
 0x775   :  { %15488 = vmatprep.subr.bf16.mxu0 %v15928_v45 }
 0x777   :  { %13247 = vmatpush1.bf16.msra.mxu1 %v15878_v16 }
 0x778   :  { %13248 = vmatprep.subr.bf16.mxu1 %v15883_v52  ;;  %15489 = vmatpush3.bf16.msra.mxu0 %v15929_v0 }
 0x77b   :  { %13249 = vmatpush1.bf16.msra.mxu1 %v15881_v40  ;;  %v11662_v40 = vrot.slane %v16554_v12, %v1699_v54 }
 0x77c   :  { %13250 = vmatprep.subr.bf16.mxu1 %v15886_v48 }
 0x77f   :  { %13251 = vmatpush1.bf16.msra.mxu1 %v15884_v3  ;;  %v11666_v3 = vrot.slane %v16554_v12, %v1703_v61 }
 0x780   :  { %13252 = vmatprep.subr.bf16.mxu1 %v15889_v38 }
 0x783   :  { %13253 = vmatpush1.bf16.msra.mxu1 %v15887_v13 }
 0x784   :  { %13254 = vmatprep.subr.bf16.mxu1 %v15892_v58 }
 0x787   :  { %13255 = vmatpush2.bf16.msra.mxu1 %v15890_v62 }
 0x788   :  { %13256 = vmatprep.subr.bf16.mxu1 %v15895_v20 }
 0x78b   :  { %13257 = vmatpush2.bf16.msra.mxu1 %v15893_v44 }
 0x78c   :  { %13258 = vmatprep.subr.bf16.mxu1 %v15898_v9 }
 0x78f   :  { %13259 = vmatpush2.bf16.msra.mxu1 %v15896_v63 }
 0x790   :  { %13260 = vmatprep.subr.bf16.mxu1 %v15901_v57 }
 0x793   :  { %13261 = vmatpush2.bf16.msra.mxu1 %v15899_v55 }
 0x794   :  { %13262 = vmatprep.subr.bf16.mxu1 %v15904_v23 }
 0x797   :  { %13263 = vmatpush2.bf16.msra.mxu1 %v15902_v53 }
 0x798   :  { %13264 = vmatprep.subr.bf16.mxu1 %v15907_v32 }
 0x79a   :  { %v13067_v10 = vpop.f32.mrf.mxu0 }
 0x79b   :  { %v13068_v51 = vadd.f32 %v13067_v10, %v16563_v14  ;;  %13265 = vmatpush2.bf16.msra.mxu1 %v15905_v17  ;;  %v15933_v14 = vld [vmem:[#allocation9 + $0xb0] sm:$0xff]  }
 0x79c   :  { %v13069_v50 = vpop.f32.mrf.mxu0  ;;  %13266 = vmatprep.subr.bf16.mxu1 %v15910_v4 }
 0x79d   :  { %v13070_v59 = vadd.f32 %v13069_v50, %v16565_v6  ;;  %v15936_v6 = vld [vmem:[#allocation9 + $0xe0] sm:$0xff]  }
 0x79e   :  { %v13071_v35 = vpop.f32.mrf.mxu0 }
 0x79f   :  { %13267 = vmatpush2.bf16.msra.mxu1 %v15908_v56  ;;  %v15441_v35 = vld [vmem:[#allocation10] ss:$0 sm:$0xff] }
 0x7a0   :  { %v13072_v5 = vpop.f32.mrf.mxu0  ;;  %13268 = vmatprep.subr.bf16.mxu1 %v15913_v28 }
 0x7a3   :  { %13269 = vmatpush2.bf16.msra.mxu1 %v15911_v37 }
 0x7a4   :  { %15496 = vmatprep.subr.bf16.mxu1 %v15930_v22 }
 0x7a6   :  { %13271 = vmatmul.mubr.bf16.vlgmr.msra.gmra.mxu1 %v16549_v60  ;;  %v15940_v60 = vld [vmem:[#allocation9 + $0xd0] sm:$0xff]  }
 0x7a7   :  { %15497 = vmatpush3.bf16.msra.mxu1 %v15931_v41 }
 0x7a8   :  { %15498 = vmatprep.subr.bf16.mxu1 %v15932_v46 }
 0x7ab   :  { %15499 = vmatpush3.bf16.msra.mxu1 %v15933_v14 }
 0x7ac   :  { %15500 = vmatprep.subr.bf16.mxu1 %v15934_v2 }
 0x7af   :  { %15501 = vmatpush3.bf16.msra.mxu1 %v15935_v31 }
 0x7b0   :  { %15502 = vmatprep.subr.bf16.mxu1 %v15936_v6 }
 0x7b3   :  { %15503 = vmatpush3.bf16.msra.mxu1 %v15937_v43 }
 0x7b4   :  { %15504 = vmatprep.subr.bf16.mxu1 %v15938_v33 }
 0x7b7   :  { %15505 = vmatpush3.bf16.msra.mxu1 %v15939_v7 }
 0x7b8   :  { %15506 = vmatprep.subr.bf16.mxu1 %v15940_v60 }
 0x7bb   :  { %15507 = vmatpush3.bf16.msra.mxu1 %v15941_v42 }
 0x7bc   :  { %15508 = vmatprep.subr.bf16.mxu1 %v15942_v36 }
 0x7bf   :  { %15509 = vmatpush3.bf16.msra.mxu1 %v15943_v47 }
 0x7c0   :  { %15510 = vmatprep.subr.bf16.mxu1 %v15944_v27 }
 0x7c3   :  { %15511 = vmatpush3.bf16.msra.mxu1 %v15945_v39 }
 0x7da   :  { %v13149_v8 = vpop.f32.mrf.mxu0 }
 0x7db   :  { %v13150_v38 = vadd.f32 %v13149_v8, %v11662_v40 }
 0x7dc   :  { %v13151_v19 = vpop.f32.mrf.mxu0 }
 0x7dd   :  { %v13152_v58 = vadd.f32 %v13151_v19, %v11666_v3 }
 0x7de   :  { %v13153_v11 = vpop.f32.mrf.mxu0 }
 0x7e0   :  { %v13154_v34 = vpop.f32.mrf.mxu0 }
 0x7e6   :  { %v13108_v24 = vpop.f32.mrf.mxu1 }
 0x7e7   :  { %v13109_v15 = vadd.f32 %v13108_v24, %v13068_v51 }
 0x7e8   :  { %v13110_v1 = vpop.f32.mrf.mxu1 }
 0x7e9   :  { %v13111_v21 = vadd.f32 %v13110_v1, %v13070_v59  ;;  %v13279_v18 = vmax.f32 %v13109_v15, 0.0 }
 0x7ea   :  { %v13112_v29 = vpop.f32.mrf.mxu1 }
 0x7eb   :  { %v13280_v25 = vmax.f32 %v13111_v21, 0.0  ;;  %v13283_v45 = vpack.c.bf16 %v13279_v18, %v13279_v18 }
 0x7ec   :  { %v13113_v30 = vpop.f32.mrf.mxu1 }
 0x7ed   :  { %v13284_v49 = vpack.c.bf16 %v13280_v25, %v13280_v25 }
 0x7ef   :  { %13582 = vmatprep.mubr.bf16.mxu0 %v13284_v49 }
 0x7f0   :  { %13583 = vmatmul.mubr.bf16.vlgmr.msra.gmra.mxu0 %v13283_v45 }
 0x81b   :  { %v13231_v16 = vpop.f32.mrf.mxu0 }
 0x81d   :  { %v13233_v52 = vpop.f32.mrf.mxu0 }
 0x81f   :  { %v13235_v0 = vpop.f32.mrf.mxu0 }
 0x821   :  { %v13236_v48 = vpop.f32.mrf.mxu0 }
 0x826   :  { %v13190_v13 = vpop.f32.mrf.mxu1 }
 0x827   :  { %v13191_v62 = vadd.f32 %v13190_v13, %v13150_v38 }
 0x828   :  { %v13192_v20 = vpop.f32.mrf.mxu1 }
 0x829   :  { %v13193_v44 = vadd.f32 %v13192_v20, %v13152_v58  ;;  %v13232_v9 = vadd.f32 %v13231_v16, %v13191_v62 }
 0x82a   :  { %v13194_v63 = vpop.f32.mrf.mxu1 }
 0x82b   :  { %v13234_v57 = vadd.f32 %v13233_v52, %v13193_v44 }
 0x82c   :  { %v13195_v55 = vpop.f32.mrf.mxu1 }
 0x866   :  { %v13272_v23 = vpop.f32.mrf.mxu1 }
 0x867   :  { %v13273_v53 = vadd.f32 %v13272_v23, %v13232_v9 }
 0x868   :  { %v13274_v32 = vpop.f32.mrf.mxu1 }
 0x869   :  { %v13275_v17 = vadd.f32 %v13274_v32, %v13234_v57  ;;  %v13281_v54 = vmax.f32 %v13273_v53, 0.0 }
 0x86a   :  { %v13276_v4 = vpop.f32.mrf.mxu1 }
 0x86b   :  { %v13282_v10 = vmax.f32 %v13275_v17, 0.0  ;;  %v13285_v61 = vpack.c.bf16 %v13281_v54, %v13281_v54 }
 0x86c   :  { %v13277_v26 = vpop.f32.mrf.mxu1 }
 0x86d   :  { %v13286_v51 = vpack.c.bf16 %v13282_v10, %v13282_v10 }
 0x86f   :  { %13622 = vmatprep.mubr.bf16.mxu1 %v13286_v51 }
 0x870   :  { %13623 = vmatmul.mubr.bf16.vlgmr.msra.gmra.mxu1 %v13285_v61 }
 0x8b0   :  { %v15490_v12 = vpop.f32.mrf.mxu0 }
 0x8b2   :  { %v15491_v56 = vpop.f32.mrf.mxu0 }
 0x8b3   :  { %v15492_v50 = vadd.f32 %v15491_v56, %v15490_v12 }
 0x8b4   :  { %v15493_v28 = vpop.f32.mrf.mxu0 }
 0x8b5   :  { %v13585_v22 = vadd.f32 %v15492_v50, %v15441_v35 }
 0x8b6   :  { %v15494_v59 = vpop.f32.mrf.mxu0 }
 0x930   :  { %v15512_v37 = vpop.f32.mrf.mxu1 }
 0x932   :  { %v15513_v5 = vpop.f32.mrf.mxu1 }
 0x933   :  { %v15514_v41 = vadd.f32 %v15513_v5, %v15512_v37 }
 0x934   :  { %v15515_v46 = vpop.f32.mrf.mxu1 }
 0x935   :  { %v13625_v14 = vadd.f32 %v15514_v41, %v13585_v22 }
 0x936   :  { %v15516_v2 = vpop.f32.mrf.mxu1 }
 0x937   :  { %13630 = vmax.xlane.f32.xlu0 %v13625_v14 }
 0x9c0   :  { %v13631_v31 = vpop.xlane.xlu0 %13630 }
 0x9c1   :  { %v13632_v6 = vsub.f32 %v13625_v14, %v13631_v31 }
 0x9c3   :  { %v13633_v43 = vmul.f32 1.442695, %v13632_v6 }
 0x9c5   :  { %15946 = vpow2.f32 %v13633_v43 }
 0x9d2   :  { %v15947_v33 = vpop.eup %15946 }
 0x9d3   :  { %13635 = vadd.xlane.f32.xlu0 %v15947_v33 }
 0xa5c   :  { %v13636_v7 = vpop.xlane.xlu0 %13635 }
 0xa5d   :  { %15948 = vlog2.f32 %v13636_v7 }
 0xa6a   :  { %v15949_v60 = vpop.eup %15948 }
 0xa6b   :  { %v13638_v42 = vmul.f32 0.6931472, %v15949_v60 }
 0xa6d   :  { %v13639_v8 = vsub.f32 %v13632_v6, %v13638_v42 }
 0xa6f   :  { %13640 = vst [vmem:[%s16588_s7] sm:$0xff] %v13639_v8 }
 0xa70   :  { %13645 = vsyncpa [#allocation3], 1 }
 0xa71   :  { %13646 = vsyncpa [#allocation5], 1 }
 0xa72   :  { %13647 = vsyncpa [#allocation8], 1 }
 0xa73   :  { %13648 = vsyncpa [#allocation11], 1 }

</bundles_post_ra>
